<compile_context>
chip_gen: v6e
topology: v6e:2x2x1
jax: 0.10.0
libtpu: 0.0.40
codegen_flags: <defaults>
</compile_context>

<pallas_src>
import math
import numpy as np
import jax
import jax.numpy as jnp
from jax.experimental import pallas as pl
from jax.experimental.pallas import tpu as pltpu

EMBED_DIM = 32
NUM_HEADS = 4
NUM_LEVELS = 2
NUM_POINTS = 4
HEAD_DIM = EMBED_DIM // NUM_HEADS
SPATIAL_SHAPES = ((8, 8), (4, 4))          # (H_l, W_l) per feature level
LEN_V = sum(h * w for h, w in SPATIAL_SHAPES)
LEN_Q = 16
BATCH = 2


# --------------------------------------------------------------------------- #
# Kernel
# --------------------------------------------------------------------------- #
def make_kernel(B, Lq, Lv, C, H, L, P, level_info, mxu_dtype):
    """level_info: static tuple of (start, n, H_l, W_l) per feature level."""
    LP = L * P
    TP = H * LP

    def kernel(q_ref, v_ref, rc_ref, wqa_ref, wvo_ref, bout_ref, o_ref):
        f32 = jnp.float32

        # --- fused projections: one MXU op each, batch folded into M ---
        # qa columns: [ix (TP) | iy (TP) | attention logits (TP)]; pixel-space
        # reference points and the biases are already folded in via the
        # augmented K columns of q / Wqa, so ix/iy are final sampling coords.
        qa = jnp.dot(q_ref[...], wqa_ref[...], preferred_element_type=f32)
        # vpw columns: per-head value_proj @ output_proj; keep-mask and bias
        # folded in via the augmented K column (vpw = keep * (v @ Wvo + bvo)).
        vpw = jnp.dot(v_ref[...], wvo_ref[...], preferred_element_type=f32)

        rc = rc_ref[...]                                    # (2L, n_max) row/col tables
        bout_b = jnp.broadcast_to(bout_ref[...], (Lq, C))   # hoisted: one broadcast total

        # Small static unroll over the folded batch (B is 1 on the grid path,
        # bs on the 1-TC collapse path); per-b live set is only a few vregs now.
        for b in range(B):
            qrows = slice(b * Lq, (b + 1) * Lq)
            ix_b = qa[qrows, 0 * TP:1 * TP]                 # (Lq, TP) pixel x per (h,l,p)
            iy_b = qa[qrows, 1 * TP:2 * TP]
            att_b = qa[qrows, 2 * TP:3 * TP]
            vpw_b = vpw[b * Lv:(b + 1) * Lv, :]             # (Lv, H*C)

            acc = bout_b                                    # output_proj bias folded into init
            for h in range(H):
                c0 = h * LP
                # per-head softmax, normalisation applied on the narrow panel
                logits = att_b[:, c0:c0 + LP]               # (Lq, LP)
                e = jnp.exp(logits - jnp.max(logits, axis=-1, keepdims=True))
                den = jnp.sum(e, axis=-1, keepdims=True)
                inv = pl.reciprocal(den, approx=True)       # EUP slot
                inv = inv * (2.0 - den * inv)               # one Newton step -> f32 accuracy
                a = e * inv                                 # (Lq, LP) normalised weights

                vpw_h = vpw_b[:, h * C:(h + 1) * C].astype(mxu_dtype)   # (Lv, C)

                for l, (start, n, Hl, Wl) in enumerate(level_info):
                    row_l = rc[2 * l:2 * l + 1, :n]         # (1, n) y index per position
                    col_l = rc[2 * l + 1:2 * l + 2, :n]     # (1, n) x index per position
                    comb = None
                    for p in range(P):
                        c = c0 + l * P + p
                        ix = ix_b[:, c:c + 1]               # (Lq, 1) pixel-space sample x
                        iy = iy_b[:, c:c + 1]
                        w = a[:, l * P + p:l * P + p + 1]   # (Lq, 1) softmax weight
                        tent = (jnp.maximum(1.0 - jnp.abs(ix - col_l), 0.0) *
                                jnp.maximum(1.0 - jnp.abs(iy - row_l), 0.0))   # (Lq, n)
                        term = w * tent
                        comb = term if comb is None else comb + term
                    # accumulating MXU dot: (Lq, n_l) @ (n_l, C); MXU is idle here,
                    # so H*L small dots beat any in-kernel concatenation/copy.
                    acc = acc + jnp.dot(comb.astype(mxu_dtype),
                                        vpw_h[start:start + n, :],
                                        preferred_element_type=f32)

            o_ref[qrows, :] = acc.astype(o_ref.dtype)

    return kernel


# --------------------------------------------------------------------------- #
# Host-side helpers: device / VMEM sizing
# --------------------------------------------------------------------------- #
def _device_kind():
    try:
        return jax.devices()[0].device_kind.lower()
    except Exception:
        return ""


def _is_v7x(kind):
    return ("v7" in kind) or ("7x" in kind)


def _vmem_budget_bytes(kind):
    if _is_v7x(kind):
        return 48 << 20      # v7x: 64 MiB physical VMEM per TensorCore
    if "tpu" in kind or "v4" in kind or "v5" in kind or "v6" in kind:
        return 96 << 20      # v4/v5e/v6e: 128 MiB physical VMEM
    return 32 << 20          # unknown backend: stay near default scoped limit


def _block_vmem_bytes(B_blk, Lq_blk, Lv, Kq, Kv, C, TP, H, L, n_max, in_itemsize):
    f32 = 4
    # double-buffered pipelined inputs / output
    io = 2 * ((B_blk * Lq_blk * Kq + B_blk * Lv * Kv
               + Kq * 3 * TP + Kv * H * C) * in_itemsize
              + (2 * L * n_max + C + B_blk * Lq_blk * C) * f32)
    # dominant in-kernel intermediates (qa, vpw) + slack for small temporaries
    interm = (B_blk * Lq_blk * 3 * TP + B_blk * Lv * H * C) * f32
    return io + interm + (1 << 20)


# --------------------------------------------------------------------------- #
# Wrapper
# --------------------------------------------------------------------------- #
def ms_deformable_attention_pallas(query, reference_points, value, value_mask, params,
                                   spatial_shapes=SPATIAL_SHAPES,
                                   collapse_batch=None, use_bf16_operands=None):
    Wv, bv, Woff, boff, Watt, batt, Wout, bout = params
    bs, Lq, C = query.shape
    Lv = value.shape[1]
    L = len(spatial_shapes)
    H, P = NUM_HEADS, NUM_POINTS
    hd = C // H
    LP = L * P
    TP = H * LP
    Kq = C + 2 * LP + 1      # [query | ref_x | ref_y | 1]
    Kv = C + 1               # [value*keep | keep]
    hp = jax.lax.Precision.HIGHEST   # exact f32 host-side weight folding

    # ---- host-side weight folding ----
    # sampling_offsets + attention_weights fused into one matmul; offset columns
    # de-interleaved to [x (h,l,p) | y (h,l,p) | att (h,l,p)].
    Wqa = jnp.concatenate([Woff[:, 0::2], Woff[:, 1::2], Watt], axis=1)     # (C, 3TP)
    bqa = jnp.concatenate([boff[:, 0::2], boff[:, 1::2], batt], axis=1)     # (1, 3TP)
    # identity rows mapping the pixel-space reference-point columns of q_aug onto
    # every head's x / y panel, so qa = [ix | iy | logits] straight out of the MXU.
    eye_lp = np.tile(np.eye(LP, dtype=np.float32), (1, H))                  # (LP, TP)
    z_lp = np.zeros((LP, TP), np.float32)
    ref_rows = jnp.asarray(np.block([[eye_lp, z_lp, z_lp],
                                     [z_lp, eye_lp, z_lp]]))                # (2LP, 3TP)
    Wqa_aug = jnp.concatenate([Wqa, ref_rows, bqa], axis=0)                 # (Kq, 3TP)

    # value_proj folded with output_proj per head; keep-mask / bias folded via the
    # augmented K column (row-masking commutes with the right-multiplication).
    Wvo = jnp.concatenate(
        [jnp.matmul(Wv[:, h * hd:(h + 1) * hd], Wout[h * hd:(h + 1) * hd, :], precision=hp)
         for h in range(H)], axis=1)                                        # (C, H*C)
    bvo = jnp.concatenate(
        [jnp.matmul(bv[:, h * hd:(h + 1) * hd], Wout[h * hd:(h + 1) * hd, :], precision=hp)
         for h in range(H)], axis=1)                                        # (1, H*C)
    Wvo_aug = jnp.concatenate([Wvo, bvo], axis=0)                           # (Kv, H*C)

    # ---- host-side input augmentation ----
    norm_w = np.repeat(np.array([w for (_h, w) in spatial_shapes], np.float32), P)  # (LP,)
    norm_h = np.repeat(np.array([h for (h, _w) in spatial_shapes], np.float32), P)
    ref_x = jnp.repeat(reference_points[..., 0], P, axis=-1) * norm_w - 0.5  # (bs,Lq,LP)
    ref_y = jnp.repeat(reference_points[..., 1], P, axis=-1) * norm_h - 0.5
    q_aug = jnp.concatenate(
        [query, ref_x, ref_y, jnp.ones((bs, Lq, 1), jnp.float32)], axis=-1
    ).reshape(bs * Lq, Kq)

    keep = jnp.where(value_mask, 0.0, 1.0).astype(jnp.float32)[..., None]    # (bs,Lv,1)
    v_aug = jnp.concatenate([value * keep, keep], axis=-1).reshape(bs * Lv, Kv)

    # ---- per-level (row, col) geometry tables ----
    n_max = max(h * w for h, w in spatial_shapes)
    rc_np = np.zeros((2 * L, n_max), np.float32)
    level_info = []
    start = 0
    for l, (Hl, Wl) in enumerate(spatial_shapes):
        n = Hl * Wl
        idx = np.arange(n)
        rc_np[2 * l, :n] = idx // Wl
        rc_np[2 * l + 1, :n] = idx % Wl
        level_info.append((start, n, Hl, Wl))
        start += n
    assert start == Lv, "spatial_shapes inconsistent with Len_v"
    rc = jnp.asarray(rc_np)

    # ---- MXU-operand precision (elementwise tent math stays f32 everywhere) ----
    if use_bf16_operands is None:
        use_bf16_operands = (Lv >= 4096) or (C >= 128)   # production sizes only
    in_dtype = jnp.bfloat16 if use_bf16_operands else jnp.float32
    q_aug, v_aug = q_aug.astype(in_dtype), v_aug.astype(in_dtype)
    Wqa_aug, Wvo_aug = Wqa_aug.astype(in_dtype), Wvo_aug.astype(in_dtype)

    # ---- generation-aware, size-aware grid / batch-collapse choice ----
    kind = _device_kind()
    is_v7x = _is_v7x(kind)
    budget = _vmem_budget_bytes(kind)
    itemsize = jnp.dtype(in_dtype).itemsize
    if collapse_batch is None:
        collapse_batch = not is_v7x          # v5e/v6e: 1 TC -> fold batch if it fits
    B_blk = 1
    if collapse_batch:
        for d in range(bs, 0, -1):           # largest divisor of bs fitting the VMEM budget
            if bs % d == 0 and _block_vmem_bytes(
                    d, Lq, Lv, Kq, Kv, C, TP, H, L, n_max, itemsize) <= budget:
                B_blk = d
                break
    nb = bs // B_blk

    # optional Lq split so both v7x TensorCores get work when bs is 1 / odd
    Lq_blk = Lq
    if is_v7x and B_blk == 1 and (bs % 2 == 1) and (Lq % 16 == 0):
        Lq_blk = Lq // 2
    nq = Lq // Lq_blk

    kernel = make_kernel(B_blk, Lq_blk, Lv, C, H, L, P, tuple(level_info), in_dtype)
    qmap = lambda b, qi: (b * nq + qi, 0)    # query / output row blocks
    vmap_ = lambda b, qi: (b, 0)             # value rows: per batch block
    cmap = lambda b, qi: (0, 0)              # replicated weights / tables

    out2 = pl.pallas_call(
        kernel,
        out_shape=jax.ShapeDtypeStruct((bs * Lq, C), jnp.float32),
        grid=(nb, nq),
        in_specs=[
            pl.BlockSpec((B_blk * Lq_blk, Kq), qmap),   # [query | ref_x | ref_y | 1]
            pl.BlockSpec((B_blk * Lv, Kv), vmap_),      # [value * keep | keep]
            pl.BlockSpec((2 * L, n_max), cmap),         # per-level row/col tables
            pl.BlockSpec((Kq, 3 * TP), cmap),           # fused offs+att (+refpix, +bias)
            pl.BlockSpec((Kv, H * C), cmap),            # per-head value_proj@output_proj (+bias)
            pl.BlockSpec((1, C), cmap),                 # output_proj bias
        ],
        out_specs=pl.BlockSpec((B_blk * Lq_blk, C), qmap),
        compiler_params=pltpu.CompilerParams(
            dimension_semantics=("parallel", "parallel"),
            vmem_limit_bytes=int(budget)),
    )(q_aug, v_aug, rc, Wqa_aug, Wvo_aug, bout)

    return out2.reshape(bs, Lq, C)


# --------------------------------------------------------------------------- #
# Pure-JAX reference, faithful to the torch forward (corner-gather bilinear)
# --------------------------------------------------------------------------- #
def ms_deformable_attention_ref(query, reference_points, value, value_mask, params,
                                spatial_shapes=SPATIAL_SHAPES):
    Wv, bv, Woff, boff, Watt, batt, Wout, bout = params
    bs, Lq, C = query.shape
    Lv = value.shape[1]
    H, P, hd = NUM_HEADS, NUM_POINTS, HEAD_DIM
    L = len(spatial_shapes)

    vp = value @ Wv + bv
    vp = jnp.where(value_mask[..., None], 0.0, vp)
    vph = vp.reshape(bs, Lv, H, hd)

    off = (query @ Woff + boff).reshape(bs, Lq, H, L, P, 2)
    att = (query @ Watt + batt).reshape(bs, Lq, H, L * P)
    att = jax.nn.softmax(att, axis=-1).reshape(bs, Lq, H, L, P)

    normalizer = jnp.array([[w, h] for (h, w) in spatial_shapes], jnp.float32)  # (L,2)=(W,H)
    loc = (reference_points[:, :, None, :, None, :] +
           off / normalizer[None, None, None, :, None, :])                      # (bs,Lq,H,L,P,2)

    out = jnp.zeros((bs, Lq, H, hd), jnp.float32)
    start = 0
    for l, (Hl, Wl) in enumerate(spatial_shapes):
        v_l = vph[:, start:start + Hl * Wl].reshape(bs, Hl, Wl, H, hd)
        start += Hl * Wl
        ix = loc[:, :, :, l, :, 0] * Wl - 0.5   # (bs, Lq, H, P)
        iy = loc[:, :, :, l, :, 1] * Hl - 0.5
        x0 = jnp.floor(ix)
        y0 = jnp.floor(iy)

        def gather_bh(v_bh, yi_bh, xi_bh):      # (Hl, Wl, hd), (Lq, P), (Lq, P)
            return v_bh[yi_bh, xi_bh]           # (Lq, P, hd)

        gather = jax.vmap(jax.vmap(gather_bh, in_axes=(2, 1, 1), out_axes=1),
                          in_axes=(0, 0, 0), out_axes=0)

        sampled = jnp.zeros((bs, Lq, H, P, hd), jnp.float32)
        for dy in (0.0, 1.0):
            for dx in (0.0, 1.0):
                xc = x0 + dx
                yc = y0 + dy
                w = (1.0 - jnp.abs(ix - xc)) * (1.0 - jnp.abs(iy - yc))
                valid = ((xc >= 0) & (xc <= Wl - 1) &
                         (yc >= 0) & (yc <= Hl - 1)).astype(jnp.float32)
                xi = jnp.clip(xc, 0, Wl - 1).astype(jnp.int32)
                yi = jnp.clip(yc, 0, Hl - 1).astype(jnp.int32)
                g = gather(v_l, yi, xi)          # (bs, Lq, H, P, hd)
                sampled = sampled + g * (w * valid)[..., None]
        out = out + jnp.sum(att[:, :, :, l, :, None] * sampled, axis=3)

    out = out.reshape(bs, Lq, C)
    return out @ Wout + bout


# --------------------------------------------------------------------------- #
# Parameter init (mirrors MSDeformableAttention._reset_parameters)
# --------------------------------------------------------------------------- #
def init_params(key):
    C, H, L, P = EMBED_DIM, NUM_HEADS, NUM_LEVELS, NUM_POINTS
    total = H * L * P
    k1, k2, k3, k4 = jax.random.split(key, 4)

    def xavier(k, fan_in, fan_out):
        bound = math.sqrt(6.0 / (fan_in + fan_out))
        return jax.random.uniform(k, (fan_in, fan_out), jnp.float32, -bound, bound)

    Wv = xavier(k1, C, C)                       # stored as (in, out); torch is y = x @ W.T + b
    bv = jnp.zeros((1, C), jnp.float32)
    Wout = xavier(k2, C, C)
    bout = jnp.zeros((1, C), jnp.float32)

    # NOTE: the torch module zero-inits these two weights; small random weights are
    # used instead so the matmul paths are actually exercised.
    Woff = 0.01 * jax.random.normal(k3, (C, total * 2), jnp.float32)
    Watt = 0.01 * jax.random.normal(k4, (C, total), jnp.float32)
    batt = jnp.zeros((1, total), jnp.float32)

    # sampling_offsets bias = grid_init, exactly as in _reset_parameters
    thetas = jnp.arange(H, dtype=jnp.float32) * (2.0 * math.pi / H)
    grid = jnp.stack([jnp.cos(thetas), jnp.sin(thetas)], axis=-1)           # (H, 2)
    grid = grid / jnp.max(jnp.abs(grid), axis=-1, keepdims=True)
    grid = jnp.tile(grid[:, None, None, :], (1, L, P, 1))                   # (H, L, P, 2)
    grid = grid * jnp.arange(1, P + 1, dtype=jnp.float32)[None, None, :, None]
    boff = grid.reshape(1, total * 2)

    return (Wv, bv, Woff, boff, Watt, batt, Wout, bout)


if __name__ == "__main__":
    key = jax.random.PRNGKey(0)
    kp, kq, kr, kv, km = jax.random.split(key, 5)
    params = init_params(kp)

    query = jax.random.normal(kq, (BATCH, LEN_Q, EMBED_DIM), jnp.float32)
    reference_points = jax.random.uniform(kr, (BATCH, LEN_Q, NUM_LEVELS, 2), jnp.float32)
    value = jax.random.normal(kv, (BATCH, LEN_V, EMBED_DIM), jnp.float32)
    value_mask = jax.random.uniform(km, (BATCH, LEN_V)) < 0.15   # True -> zero-filled (as in torch code)

    out = ms_deformable_attention_pallas(query, reference_points, value, value_mask, params)
    out = jax.block_until_ready(out)

    with jax.default_matmul_precision("highest"):
        ref = ms_deformable_attention_ref(query, reference_points, value, value_mask, params)
        ref = jax.block_until_ready(ref)

    assert out.shape == (BATCH, LEN_Q, EMBED_DIM)
    err = float(jnp.max(jnp.abs(out - ref)))
    assert err < 3e-3, f"max abs error vs reference: {err}"
    print("KERNEL_OK")
</pallas_src>

<mosaic_0001>
module attributes {stable_mosaic.version = 11 : i64} {
  func.func @kernel(%arg0: i32, %arg1: i32, %arg2: memref<32x49xf32, #tpu.memory_space<vmem>>, %arg3: memref<160x33xf32, #tpu.memory_space<vmem>>, %arg4: memref<4x64xf32, #tpu.memory_space<vmem>>, %arg5: memref<49x96xf32, #tpu.memory_space<vmem>>, %arg6: memref<33x128xf32, #tpu.memory_space<vmem>>, %arg7: memref<1x32xf32, #tpu.memory_space<vmem>>, %arg8: memref<32x32xf32, #tpu.memory_space<vmem>>) attributes {dimension_semantics = [#tpu.dimension_semantics<parallel>, #tpu.dimension_semantics<parallel>], iteration_bounds = array<i64: 1, 1>, scalar_prefetch = 0 : i64, scratch_operands = 0 : i64, tpu.core_type = #tpu.core_type<tc>, window_params = [{transform_indices = @transform_0, window_bounds = array<i64: 32, 49>}, {transform_indices = @transform_1, window_bounds = array<i64: 160, 33>}, {pipeline_mode = #tpu.pipeline_mode<synchronous>, transform_indices = @transform_2, window_bounds = array<i64: 4, 64>}, {pipeline_mode = #tpu.pipeline_mode<synchronous>, transform_indices = @transform_3, window_bounds = array<i64: 49, 96>}, {pipeline_mode = #tpu.pipeline_mode<synchronous>, transform_indices = @transform_4, window_bounds = array<i64: 33, 128>}, {pipeline_mode = #tpu.pipeline_mode<synchronous>, transform_indices = @transform_5, window_bounds = array<i64: 1, 32>}, {transform_indices = @transform_6, window_bounds = array<i64: 32, 32>}]} {
    %c0 = arith.constant 0 : index
    %c0_0 = arith.constant 0 : index
    %0 = vector.load %arg2[%c0, %c0_0] : memref<32x49xf32, #tpu.memory_space<vmem>>, vector<32x49xf32>
    %c0_1 = arith.constant 0 : index
    %c0_2 = arith.constant 0 : index
    %1 = vector.load %arg5[%c0_1, %c0_2] : memref<49x96xf32, #tpu.memory_space<vmem>>, vector<49x96xf32>
    %cst = arith.constant dense<0.000000e+00> : vector<32x96xf32>
    %2 = tpu.matmul %0, %1, %cst {dimension_numbers = #tpu.dot_dimension_numbers<[1], [0], [0], [1], [0, 0, 1, 1], [], []>} : vector<32x49xf32>, vector<49x96xf32>, vector<32x96xf32> -> vector<32x96xf32>
    %c0_3 = arith.constant 0 : index
    %c0_4 = arith.constant 0 : index
    %3 = vector.load %arg3[%c0_3, %c0_4] : memref<160x33xf32, #tpu.memory_space<vmem>>, vector<160x33xf32>
    %c0_5 = arith.constant 0 : index
    %c0_6 = arith.constant 0 : index
    %4 = vector.load %arg6[%c0_5, %c0_6] : memref<33x128xf32, #tpu.memory_space<vmem>>, vector<33x128xf32>
    %cst_7 = arith.constant dense<0.000000e+00> : vector<160x128xf32>
    %5 = tpu.matmul %3, %4, %cst_7 {dimension_numbers = #tpu.dot_dimension_numbers<[1], [0], [0], [1], [0, 0, 1, 1], [], []>} : vector<160x33xf32>, vector<33x128xf32>, vector<160x128xf32> -> vector<160x128xf32>
    %c0_8 = arith.constant 0 : index
    %c0_9 = arith.constant 0 : index
    %6 = vector.load %arg4[%c0_8, %c0_9] : memref<4x64xf32, #tpu.memory_space<vmem>>, vector<4x64xf32>
    %c0_10 = arith.constant 0 : index
    %c0_11 = arith.constant 0 : index
    %7 = vector.load %arg7[%c0_10, %c0_11] : memref<1x32xf32, #tpu.memory_space<vmem>>, vector<1x32xf32>
    %8 = vector.shape_cast %7 : vector<1x32xf32> to vector<1x32xf32>
    %9 = vector.broadcast %8 : vector<1x32xf32> to vector<16x32xf32>
    %10 = vector.extract_strided_slice %2 {offsets = [0, 0], sizes = [16, 32], strides = [1, 1]} : vector<32x96xf32> to vector<16x32xf32>
    %11 = vector.extract_strided_slice %2 {offsets = [0, 32], sizes = [16, 32], strides = [1, 1]} : vector<32x96xf32> to vector<16x32xf32>
    %12 = vector.extract_strided_slice %2 {offsets = [0, 64], sizes = [16, 32], strides = [1, 1]} : vector<32x96xf32> to vector<16x32xf32>
    %13 = vector.extract_strided_slice %5 {offsets = [0, 0], sizes = [80, 128], strides = [1, 1]} : vector<160x128xf32> to vector<80x128xf32>
    %14 = vector.extract_strided_slice %12 {offsets = [0, 0], sizes = [16, 8], strides = [1, 1]} : vector<16x32xf32> to vector<16x8xf32>
    %cst_12 = arith.constant dense<0xFF800000> : vector<16xf32>
    %15 = vector.multi_reduction <maximumf>, %14, %cst_12 [1] : vector<16x8xf32> to vector<16xf32>
    %16 = vector.shape_cast %15 : vector<16xf32> to vector<16x1xf32>
    %17 = vector.broadcast %16 : vector<16x1xf32> to vector<16x8xf32>
    %18 = arith.subf %14, %17 : vector<16x8xf32>
    %19 = math.exp %18 : vector<16x8xf32>
    %cst_13 = arith.constant dense<0.000000e+00> : vector<16xf32>
    %20 = vector.multi_reduction <add>, %19, %cst_13 [1] : vector<16x8xf32> to vector<16xf32>
    %21 = vector.shape_cast %20 : vector<16xf32> to vector<16x1xf32>
    %22 = tpu.reciprocal %21 {approx = true} : vector<16x1xf32> -> vector<16x1xf32>
    %23 = arith.mulf %21, %22 : vector<16x1xf32>
    %cst_14 = arith.constant 2.000000e+00 : f32
    %24 = vector.broadcast %cst_14 : f32 to vector<16x1xf32>
    %25 = arith.subf %24, %23 : vector<16x1xf32>
    %26 = arith.mulf %22, %25 : vector<16x1xf32>
    %27 = vector.broadcast %26 : vector<16x1xf32> to vector<16x8xf32>
    %28 = arith.mulf %19, %27 : vector<16x8xf32>
    %29 = vector.extract_strided_slice %13 {offsets = [0, 0], sizes = [80, 32], strides = [1, 1]} : vector<80x128xf32> to vector<80x32xf32>
    %30 = vector.extract_strided_slice %6 {offsets = [0, 0], sizes = [1, 64], strides = [1, 1]} : vector<4x64xf32> to vector<1x64xf32>
    %31 = vector.extract_strided_slice %6 {offsets = [1, 0], sizes = [1, 64], strides = [1, 1]} : vector<4x64xf32> to vector<1x64xf32>
    %32 = vector.extract_strided_slice %10 {offsets = [0, 0], sizes = [16, 1], strides = [1, 1]} : vector<16x32xf32> to vector<16x1xf32>
    %33 = vector.extract_strided_slice %11 {offsets = [0, 0], sizes = [16, 1], strides = [1, 1]} : vector<16x32xf32> to vector<16x1xf32>
    %34 = vector.extract_strided_slice %28 {offsets = [0, 0], sizes = [16, 1], strides = [1, 1]} : vector<16x8xf32> to vector<16x1xf32>
    %35 = vector.broadcast %32 : vector<16x1xf32> to vector<16x64xf32>
    %36 = vector.broadcast %31 : vector<1x64xf32> to vector<16x64xf32>
    %37 = arith.subf %35, %36 : vector<16x64xf32>
    %38 = math.absf %37 : vector<16x64xf32>
    %cst_15 = arith.constant 1.000000e+00 : f32
    %39 = vector.broadcast %cst_15 : f32 to vector<16x64xf32>
    %40 = arith.subf %39, %38 : vector<16x64xf32>
    %cst_16 = arith.constant 0.000000e+00 : f32
    %41 = vector.broadcast %cst_16 : f32 to vector<16x64xf32>
    %42 = arith.maximumf %40, %41 : vector<16x64xf32>
    %43 = vector.broadcast %33 : vector<16x1xf32> to vector<16x64xf32>
    %44 = vector.broadcast %30 : vector<1x64xf32> to vector<16x64xf32>
    %45 = arith.subf %43, %44 : vector<16x64xf32>
    %46 = math.absf %45 : vector<16x64xf32>
    %cst_17 = arith.constant 1.000000e+00 : f32
    %47 = vector.broadcast %cst_17 : f32 to vector<16x64xf32>
    %48 = arith.subf %47, %46 : vector<16x64xf32>
    %cst_18 = arith.constant 0.000000e+00 : f32
    %49 = vector.broadcast %cst_18 : f32 to vector<16x64xf32>
    %50 = arith.maximumf %48, %49 : vector<16x64xf32>
    %51 = arith.mulf %42, %50 : vector<16x64xf32>
    %52 = vector.broadcast %34 : vector<16x1xf32> to vector<16x64xf32>
    %53 = arith.mulf %52, %51 : vector<16x64xf32>
    %54 = vector.extract_strided_slice %10 {offsets = [0, 1], sizes = [16, 1], strides = [1, 1]} : vector<16x32xf32> to vector<16x1xf32>
    %55 = vector.extract_strided_slice %11 {offsets = [0, 1], sizes = [16, 1], strides = [1, 1]} : vector<16x32xf32> to vector<16x1xf32>
    %56 = vector.extract_strided_slice %28 {offsets = [0, 1], sizes = [16, 1], strides = [1, 1]} : vector<16x8xf32> to vector<16x1xf32>
    %57 = vector.broadcast %54 : vector<16x1xf32> to vector<16x64xf32>
    %58 = vector.broadcast %31 : vector<1x64xf32> to vector<16x64xf32>
    %59 = arith.subf %57, %58 : vector<16x64xf32>
    %60 = math.absf %59 : vector<16x64xf32>
    %cst_19 = arith.constant 1.000000e+00 : f32
    %61 = vector.broadcast %cst_19 : f32 to vector<16x64xf32>
    %62 = arith.subf %61, %60 : vector<16x64xf32>
    %cst_20 = arith.constant 0.000000e+00 : f32
    %63 = vector.broadcast %cst_20 : f32 to vector<16x64xf32>
    %64 = arith.maximumf %62, %63 : vector<16x64xf32>
    %65 = vector.broadcast %55 : vector<16x1xf32> to vector<16x64xf32>
    %66 = vector.broadcast %30 : vector<1x64xf32> to vector<16x64xf32>
    %67 = arith.subf %65, %66 : vector<16x64xf32>
    %68 = math.absf %67 : vector<16x64xf32>
    %cst_21 = arith.constant 1.000000e+00 : f32
    %69 = vector.broadcast %cst_21 : f32 to vector<16x64xf32>
    %70 = arith.subf %69, %68 : vector<16x64xf32>
    %cst_22 = arith.constant 0.000000e+00 : f32
    %71 = vector.broadcast %cst_22 : f32 to vector<16x64xf32>
    %72 = arith.maximumf %70, %71 : vector<16x64xf32>
    %73 = arith.mulf %64, %72 : vector<16x64xf32>
    %74 = vector.broadcast %56 : vector<16x1xf32> to vector<16x64xf32>
    %75 = arith.mulf %74, %73 : vector<16x64xf32>
    %76 = arith.addf %53, %75 : vector<16x64xf32>
    %77 = vector.extract_strided_slice %10 {offsets = [0, 2], sizes = [16, 1], strides = [1, 1]} : vector<16x32xf32> to vector<16x1xf32>
    %78 = vector.extract_strided_slice %11 {offsets = [0, 2], sizes = [16, 1], strides = [1, 1]} : vector<16x32xf32> to vector<16x1xf32>
    %79 = vector.extract_strided_slice %28 {offsets = [0, 2], sizes = [16, 1], strides = [1, 1]} : vector<16x8xf32> to vector<16x1xf32>
    %80 = vector.broadcast %77 : vector<16x1xf32> to vector<16x64xf32>
    %81 = vector.broadcast %31 : vector<1x64xf32> to vector<16x64xf32>
    %82 = arith.subf %80, %81 : vector<16x64xf32>
    %83 = math.absf %82 : vector<16x64xf32>
    %cst_23 = arith.constant 1.000000e+00 : f32
    %84 = vector.broadcast %cst_23 : f32 to vector<16x64xf32>
    %85 = arith.subf %84, %83 : vector<16x64xf32>
    %cst_24 = arith.constant 0.000000e+00 : f32
    %86 = vector.broadcast %cst_24 : f32 to vector<16x64xf32>
    %87 = arith.maximumf %85, %86 : vector<16x64xf32>
    %88 = vector.broadcast %78 : vector<16x1xf32> to vector<16x64xf32>
    %89 = vector.broadcast %30 : vector<1x64xf32> to vector<16x64xf32>
    %90 = arith.subf %88, %89 : vector<16x64xf32>
    %91 = math.absf %90 : vector<16x64xf32>
    %cst_25 = arith.constant 1.000000e+00 : f32
    %92 = vector.broadcast %cst_25 : f32 to vector<16x64xf32>
    %93 = arith.subf %92, %91 : vector<16x64xf32>
    %cst_26 = arith.constant 0.000000e+00 : f32
    %94 = vector.broadcast %cst_26 : f32 to vector<16x64xf32>
    %95 = arith.maximumf %93, %94 : vector<16x64xf32>
    %96 = arith.mulf %87, %95 : vector<16x64xf32>
    %97 = vector.broadcast %79 : vector<16x1xf32> to vector<16x64xf32>
    %98 = arith.mulf %97, %96 : vector<16x64xf32>
    %99 = arith.addf %76, %98 : vector<16x64xf32>
    %100 = vector.extract_strided_slice %10 {offsets = [0, 3], sizes = [16, 1], strides = [1, 1]} : vector<16x32xf32> to vector<16x1xf32>
    %101 = vector.extract_strided_slice %11 {offsets = [0, 3], sizes = [16, 1], strides = [1, 1]} : vector<16x32xf32> to vector<16x1xf32>
    %102 = vector.extract_strided_slice %28 {offsets = [0, 3], sizes = [16, 1], strides = [1, 1]} : vector<16x8xf32> to vector<16x1xf32>
    %103 = vector.broadcast %100 : vector<16x1xf32> to vector<16x64xf32>
    %104 = vector.broadcast %31 : vector<1x64xf32> to vector<16x64xf32>
    %105 = arith.subf %103, %104 : vector<16x64xf32>
    %106 = math.absf %105 : vector<16x64xf32>
    %cst_27 = arith.constant 1.000000e+00 : f32
    %107 = vector.broadcast %cst_27 : f32 to vector<16x64xf32>
    %108 = arith.subf %107, %106 : vector<16x64xf32>
    %cst_28 = arith.constant 0.000000e+00 : f32
    %109 = vector.broadcast %cst_28 : f32 to vector<16x64xf32>
    %110 = arith.maximumf %108, %109 : vector<16x64xf32>
    %111 = vector.broadcast %101 : vector<16x1xf32> to vector<16x64xf32>
    %112 = vector.broadcast %30 : vector<1x64xf32> to vector<16x64xf32>
    %113 = arith.subf %111, %112 : vector<16x64xf32>
    %114 = math.absf %113 : vector<16x64xf32>
    %cst_29 = arith.constant 1.000000e+00 : f32
    %115 = vector.broadcast %cst_29 : f32 to vector<16x64xf32>
    %116 = arith.subf %115, %114 : vector<16x64xf32>
    %cst_30 = arith.constant 0.000000e+00 : f32
    %117 = vector.broadcast %cst_30 : f32 to vector<16x64xf32>
    %118 = arith.maximumf %116, %117 : vector<16x64xf32>
    %119 = arith.mulf %110, %118 : vector<16x64xf32>
    %120 = vector.broadcast %102 : vector<16x1xf32> to vector<16x64xf32>
    %121 = arith.mulf %120, %119 : vector<16x64xf32>
    %122 = arith.addf %99, %121 : vector<16x64xf32>
    %123 = vector.extract_strided_slice %29 {offsets = [0, 0], sizes = [64, 32], strides = [1, 1]} : vector<80x32xf32> to vector<64x32xf32>
    %cst_31 = arith.constant dense<0.000000e+00> : vector<16x32xf32>
    %124 = tpu.matmul %122, %123, %cst_31 {dimension_numbers = #tpu.dot_dimension_numbers<[1], [0], [0], [1], [0, 0, 1, 1], [], []>} : vector<16x64xf32>, vector<64x32xf32>, vector<16x32xf32> -> vector<16x32xf32>
    %125 = arith.addf %9, %124 : vector<16x32xf32>
    %126 = vector.extract_strided_slice %6 {offsets = [2, 0], sizes = [1, 16], strides = [1, 1]} : vector<4x64xf32> to vector<1x16xf32>
    %127 = vector.extract_strided_slice %6 {offsets = [3, 0], sizes = [1, 16], strides = [1, 1]} : vector<4x64xf32> to vector<1x16xf32>
    %128 = vector.extract_strided_slice %10 {offsets = [0, 4], sizes = [16, 1], strides = [1, 1]} : vector<16x32xf32> to vector<16x1xf32>
    %129 = vector.extract_strided_slice %11 {offsets = [0, 4], sizes = [16, 1], strides = [1, 1]} : vector<16x32xf32> to vector<16x1xf32>
    %130 = vector.extract_strided_slice %28 {offsets = [0, 4], sizes = [16, 1], strides = [1, 1]} : vector<16x8xf32> to vector<16x1xf32>
    %131 = vector.broadcast %128 : vector<16x1xf32> to vector<16x16xf32>
    %132 = vector.broadcast %127 : vector<1x16xf32> to vector<16x16xf32>
    %133 = arith.subf %131, %132 : vector<16x16xf32>
    %134 = math.absf %133 : vector<16x16xf32>
    %cst_32 = arith.constant 1.000000e+00 : f32
    %135 = vector.broadcast %cst_32 : f32 to vector<16x16xf32>
    %136 = arith.subf %135, %134 : vector<16x16xf32>
    %cst_33 = arith.constant 0.000000e+00 : f32
    %137 = vector.broadcast %cst_33 : f32 to vector<16x16xf32>
    %138 = arith.maximumf %136, %137 : vector<16x16xf32>
    %139 = vector.broadcast %129 : vector<16x1xf32> to vector<16x16xf32>
    %140 = vector.broadcast %126 : vector<1x16xf32> to vector<16x16xf32>
    %141 = arith.subf %139, %140 : vector<16x16xf32>
    %142 = math.absf %141 : vector<16x16xf32>
    %cst_34 = arith.constant 1.000000e+00 : f32
    %143 = vector.broadcast %cst_34 : f32 to vector<16x16xf32>
    %144 = arith.subf %143, %142 : vector<16x16xf32>
    %cst_35 = arith.constant 0.000000e+00 : f32
    %145 = vector.broadcast %cst_35 : f32 to vector<16x16xf32>
    %146 = arith.maximumf %144, %145 : vector<16x16xf32>
    %147 = arith.mulf %138, %146 : vector<16x16xf32>
    %148 = vector.broadcast %130 : vector<16x1xf32> to vector<16x16xf32>
    %149 = arith.mulf %148, %147 : vector<16x16xf32>
    %150 = vector.extract_strided_slice %10 {offsets = [0, 5], sizes = [16, 1], strides = [1, 1]} : vector<16x32xf32> to vector<16x1xf32>
    %151 = vector.extract_strided_slice %11 {offsets = [0, 5], sizes = [16, 1], strides = [1, 1]} : vector<16x32xf32> to vector<16x1xf32>
    %152 = vector.extract_strided_slice %28 {offsets = [0, 5], sizes = [16, 1], strides = [1, 1]} : vector<16x8xf32> to vector<16x1xf32>
    %153 = vector.broadcast %150 : vector<16x1xf32> to vector<16x16xf32>
    %154 = vector.broadcast %127 : vector<1x16xf32> to vector<16x16xf32>
    %155 = arith.subf %153, %154 : vector<16x16xf32>
    %156 = math.absf %155 : vector<16x16xf32>
    %cst_36 = arith.constant 1.000000e+00 : f32
    %157 = vector.broadcast %cst_36 : f32 to vector<16x16xf32>
    %158 = arith.subf %157, %156 : vector<16x16xf32>
    %cst_37 = arith.constant 0.000000e+00 : f32
    %159 = vector.broadcast %cst_37 : f32 to vector<16x16xf32>
    %160 = arith.maximumf %158, %159 : vector<16x16xf32>
    %161 = vector.broadcast %151 : vector<16x1xf32> to vector<16x16xf32>
    %162 = vector.broadcast %126 : vector<1x16xf32> to vector<16x16xf32>
    %163 = arith.subf %161, %162 : vector<16x16xf32>
    %164 = math.absf %163 : vector<16x16xf32>
    %cst_38 = arith.constant 1.000000e+00 : f32
    %165 = vector.broadcast %cst_38 : f32 to vector<16x16xf32>
    %166 = arith.subf %165, %164 : vector<16x16xf32>
    %cst_39 = arith.constant 0.000000e+00 : f32
    %167 = vector.broadcast %cst_39 : f32 to vector<16x16xf32>
    %168 = arith.maximumf %166, %167 : vector<16x16xf32>
    %169 = arith.mulf %160, %168 : vector<16x16xf32>
    %170 = vector.broadcast %152 : vector<16x1xf32> to vector<16x16xf32>
    %171 = arith.mulf %170, %169 : vector<16x16xf32>
    %172 = arith.addf %149, %171 : vector<16x16xf32>
    %173 = vector.extract_strided_slice %10 {offsets = [0, 6], sizes = [16, 1], strides = [1, 1]} : vector<16x32xf32> to vector<16x1xf32>
    %174 = vector.extract_strided_slice %11 {offsets = [0, 6], sizes = [16, 1], strides = [1, 1]} : vector<16x32xf32> to vector<16x1xf32>
    %175 = vector.extract_strided_slice %28 {offsets = [0, 6], sizes = [16, 1], strides = [1, 1]} : vector<16x8xf32> to vector<16x1xf32>
    %176 = vector.broadcast %173 : vector<16x1xf32> to vector<16x16xf32>
    %177 = vector.broadcast %127 : vector<1x16xf32> to vector<16x16xf32>
    %178 = arith.subf %176, %177 : vector<16x16xf32>
    %179 = math.absf %178 : vector<16x16xf32>
    %cst_40 = arith.constant 1.000000e+00 : f32
    %180 = vector.broadcast %cst_40 : f32 to vector<16x16xf32>
    %181 = arith.subf %180, %179 : vector<16x16xf32>
    %cst_41 = arith.constant 0.000000e+00 : f32
    %182 = vector.broadcast %cst_41 : f32 to vector<16x16xf32>
    %183 = arith.maximumf %181, %182 : vector<16x16xf32>
    %184 = vector.broadcast %174 : vector<16x1xf32> to vector<16x16xf32>
    %185 = vector.broadcast %126 : vector<1x16xf32> to vector<16x16xf32>
    %186 = arith.subf %184, %185 : vector<16x16xf32>
    %187 = math.absf %186 : vector<16x16xf32>
    %cst_42 = arith.constant 1.000000e+00 : f32
    %188 = vector.broadcast %cst_42 : f32 to vector<16x16xf32>
    %189 = arith.subf %188, %187 : vector<16x16xf32>
    %cst_43 = arith.constant 0.000000e+00 : f32
    %190 = vector.broadcast %cst_43 : f32 to vector<16x16xf32>
    %191 = arith.maximumf %189, %190 : vector<16x16xf32>
    %192 = arith.mulf %183, %191 : vector<16x16xf32>
    %193 = vector.broadcast %175 : vector<16x1xf32> to vector<16x16xf32>
    %194 = arith.mulf %193, %192 : vector<16x16xf32>
    %195 = arith.addf %172, %194 : vector<16x16xf32>
    %196 = vector.extract_strided_slice %10 {offsets = [0, 7], sizes = [16, 1], strides = [1, 1]} : vector<16x32xf32> to vector<16x1xf32>
    %197 = vector.extract_strided_slice %11 {offsets = [0, 7], sizes = [16, 1], strides = [1, 1]} : vector<16x32xf32> to vector<16x1xf32>
    %198 = vector.extract_strided_slice %28 {offsets = [0, 7], sizes = [16, 1], strides = [1, 1]} : vector<16x8xf32> to vector<16x1xf32>
    %199 = vector.broadcast %196 : vector<16x1xf32> to vector<16x16xf32>
    %200 = vector.broadcast %127 : vector<1x16xf32> to vector<16x16xf32>
    %201 = arith.subf %199, %200 : vector<16x16xf32>
    %202 = math.absf %201 : vector<16x16xf32>
    %cst_44 = arith.constant 1.000000e+00 : f32
    %203 = vector.broadcast %cst_44 : f32 to vector<16x16xf32>
    %204 = arith.subf %203, %202 : vector<16x16xf32>
    %cst_45 = arith.constant 0.000000e+00 : f32
    %205 = vector.broadcast %cst_45 : f32 to vector<16x16xf32>
    %206 = arith.maximumf %204, %205 : vector<16x16xf32>
    %207 = vector.broadcast %197 : vector<16x1xf32> to vector<16x16xf32>
    %208 = vector.broadcast %126 : vector<1x16xf32> to vector<16x16xf32>
    %209 = arith.subf %207, %208 : vector<16x16xf32>
    %210 = math.absf %209 : vector<16x16xf32>
    %cst_46 = arith.constant 1.000000e+00 : f32
    %211 = vector.broadcast %cst_46 : f32 to vector<16x16xf32>
    %212 = arith.subf %211, %210 : vector<16x16xf32>
    %cst_47 = arith.constant 0.000000e+00 : f32
    %213 = vector.broadcast %cst_47 : f32 to vector<16x16xf32>
    %214 = arith.maximumf %212, %213 : vector<16x16xf32>
    %215 = arith.mulf %206, %214 : vector<16x16xf32>
    %216 = vector.broadcast %198 : vector<16x1xf32> to vector<16x16xf32>
    %217 = arith.mulf %216, %215 : vector<16x16xf32>
    %218 = arith.addf %195, %217 : vector<16x16xf32>
    %219 = vector.extract_strided_slice %29 {offsets = [64, 0], sizes = [16, 32], strides = [1, 1]} : vector<80x32xf32> to vector<16x32xf32>
    %cst_48 = arith.constant dense<0.000000e+00> : vector<16x32xf32>
    %220 = tpu.matmul %218, %219, %cst_48 {dimension_numbers = #tpu.dot_dimension_numbers<[1], [0], [0], [1], [0, 0, 1, 1], [], []>} : vector<16x16xf32>, vector<16x32xf32>, vector<16x32xf32> -> vector<16x32xf32>
    %221 = arith.addf %125, %220 : vector<16x32xf32>
    %222 = vector.extract_strided_slice %12 {offsets = [0, 8], sizes = [16, 8], strides = [1, 1]} : vector<16x32xf32> to vector<16x8xf32>
    %cst_49 = arith.constant dense<0xFF800000> : vector<16xf32>
    %223 = vector.multi_reduction <maximumf>, %222, %cst_49 [1] : vector<16x8xf32> to vector<16xf32>
    %224 = vector.shape_cast %223 : vector<16xf32> to vector<16x1xf32>
    %225 = vector.broadcast %224 : vector<16x1xf32> to vector<16x8xf32>
    %226 = arith.subf %222, %225 : vector<16x8xf32>
    %227 = math.exp %226 : vector<16x8xf32>
    %cst_50 = arith.constant dense<0.000000e+00> : vector<16xf32>
    %228 = vector.multi_reduction <add>, %227, %cst_50 [1] : vector<16x8xf32> to vector<16xf32>
    %229 = vector.shape_cast %228 : vector<16xf32> to vector<16x1xf32>
    %230 = tpu.reciprocal %229 {approx = true} : vector<16x1xf32> -> vector<16x1xf32>
    %231 = arith.mulf %229, %230 : vector<16x1xf32>
    %cst_51 = arith.constant 2.000000e+00 : f32
    %232 = vector.broadcast %cst_51 : f32 to vector<16x1xf32>
    %233 = arith.subf %232, %231 : vector<16x1xf32>
    %234 = arith.mulf %230, %233 : vector<16x1xf32>
    %235 = vector.broadcast %234 : vector<16x1xf32> to vector<16x8xf32>
    %236 = arith.mulf %227, %235 : vector<16x8xf32>
    %237 = vector.extract_strided_slice %13 {offsets = [0, 32], sizes = [80, 32], strides = [1, 1]} : vector<80x128xf32> to vector<80x32xf32>
    %238 = vector.extract_strided_slice %6 {offsets = [0, 0], sizes = [1, 64], strides = [1, 1]} : vector<4x64xf32> to vector<1x64xf32>
    %239 = vector.extract_strided_slice %6 {offsets = [1, 0], sizes = [1, 64], strides = [1, 1]} : vector<4x64xf32> to vector<1x64xf32>
    %240 = vector.extract_strided_slice %10 {offsets = [0, 8], sizes = [16, 1], strides = [1, 1]} : vector<16x32xf32> to vector<16x1xf32>
    %241 = vector.extract_strided_slice %11 {offsets = [0, 8], sizes = [16, 1], strides = [1, 1]} : vector<16x32xf32> to vector<16x1xf32>
    %242 = vector.extract_strided_slice %236 {offsets = [0, 0], sizes = [16, 1], strides = [1, 1]} : vector<16x8xf32> to vector<16x1xf32>
    %243 = vector.broadcast %240 : vector<16x1xf32> to vector<16x64xf32>
    %244 = vector.broadcast %239 : vector<1x64xf32> to vector<16x64xf32>
    %245 = arith.subf %243, %244 : vector<16x64xf32>
    %246 = math.absf %245 : vector<16x64xf32>
    %cst_52 = arith.constant 1.000000e+00 : f32
    %247 = vector.broadcast %cst_52 : f32 to vector<16x64xf32>
    %248 = arith.subf %247, %246 : vector<16x64xf32>
    %cst_53 = arith.constant 0.000000e+00 : f32
    %249 = vector.broadcast %cst_53 : f32 to vector<16x64xf32>
    %250 = arith.maximumf %248, %249 : vector<16x64xf32>
    %251 = vector.broadcast %241 : vector<16x1xf32> to vector<16x64xf32>
    %252 = vector.broadcast %238 : vector<1x64xf32> to vector<16x64xf32>
    %253 = arith.subf %251, %252 : vector<16x64xf32>
    %254 = math.absf %253 : vector<16x64xf32>
    %cst_54 = arith.constant 1.000000e+00 : f32
    %255 = vector.broadcast %cst_54 : f32 to vector<16x64xf32>
    %256 = arith.subf %255, %254 : vector<16x64xf32>
    %cst_55 = arith.constant 0.000000e+00 : f32
    %257 = vector.broadcast %cst_55 : f32 to vector<16x64xf32>
    %258 = arith.maximumf %256, %257 : vector<16x64xf32>
    %259 = arith.mulf %250, %258 : vector<16x64xf32>
    %260 = vector.broadcast %242 : vector<16x1xf32> to vector<16x64xf32>
    %261 = arith.mulf %260, %259 : vector<16x64xf32>
    %262 = vector.extract_strided_slice %10 {offsets = [0, 9], sizes = [16, 1], strides = [1, 1]} : vector<16x32xf32> to vector<16x1xf32>
    %263 = vector.extract_strided_slice %11 {offsets = [0, 9], sizes = [16, 1], strides = [1, 1]} : vector<16x32xf32> to vector<16x1xf32>
    %264 = vector.extract_strided_slice %236 {offsets = [0, 1], sizes = [16, 1], strides = [1, 1]} : vector<16x8xf32> to vector<16x1xf32>
    %265 = vector.broadcast %262 : vector<16x1xf32> to vector<16x64xf32>
    %266 = vector.broadcast %239 : vector<1x64xf32> to vector<16x64xf32>
    %267 = arith.subf %265, %266 : vector<16x64xf32>
    %268 = math.absf %267 : vector<16x64xf32>
    %cst_56 = arith.constant 1.000000e+00 : f32
    %269 = vector.broadcast %cst_56 : f32 to vector<16x64xf32>
    %270 = arith.subf %269, %268 : vector<16x64xf32>
    %cst_57 = arith.constant 0.000000e+00 : f32
    %271 = vector.broadcast %cst_57 : f32 to vector<16x64xf32>
    %272 = arith.maximumf %270, %271 : vector<16x64xf32>
    %273 = vector.broadcast %263 : vector<16x1xf32> to vector<16x64xf32>
    %274 = vector.broadcast %238 : vector<1x64xf32> to vector<16x64xf32>
    %275 = arith.subf %273, %274 : vector<16x64xf32>
    %276 = math.absf %275 : vector<16x64xf32>
    %cst_58 = arith.constant 1.000000e+00 : f32
    %277 = vector.broadcast %cst_58 : f32 to vector<16x64xf32>
    %278 = arith.subf %277, %276 : vector<16x64xf32>
    %cst_59 = arith.constant 0.000000e+00 : f32
    %279 = vector.broadcast %cst_59 : f32 to vector<16x64xf32>
    %280 = arith.maximumf %278, %279 : vector<16x64xf32>
    %281 = arith.mulf %272, %280 : vector<16x64xf32>
    %282 = vector.broadcast %264 : vector<16x1xf32> to vector<16x64xf32>
    %283 = arith.mulf %282, %281 : vector<16x64xf32>
    %284 = arith.addf %261, %283 : vector<16x64xf32>
    %285 = vector.extract_strided_slice %10 {offsets = [0, 10], sizes = [16, 1], strides = [1, 1]} : vector<16x32xf32> to vector<16x1xf32>
    %286 = vector.extract_strided_slice %11 {offsets = [0, 10], sizes = [16, 1], strides = [1, 1]} : vector<16x32xf32> to vector<16x1xf32>
    %287 = vector.extract_strided_slice %236 {offsets = [0, 2], sizes = [16, 1], strides = [1, 1]} : vector<16x8xf32> to vector<16x1xf32>
    %288 = vector.broadcast %285 : vector<16x1xf32> to vector<16x64xf32>
    %289 = vector.broadcast %239 : vector<1x64xf32> to vector<16x64xf32>
    %290 = arith.subf %288, %289 : vector<16x64xf32>
    %291 = math.absf %290 : vector<16x64xf32>
    %cst_60 = arith.constant 1.000000e+00 : f32
    %292 = vector.broadcast %cst_60 : f32 to vector<16x64xf32>
    %293 = arith.subf %292, %291 : vector<16x64xf32>
    %cst_61 = arith.constant 0.000000e+00 : f32
    %294 = vector.broadcast %cst_61 : f32 to vector<16x64xf32>
    %295 = arith.maximumf %293, %294 : vector<16x64xf32>
    %296 = vector.broadcast %286 : vector<16x1xf32> to vector<16x64xf32>
    %297 = vector.broadcast %238 : vector<1x64xf32> to vector<16x64xf32>
    %298 = arith.subf %296, %297 : vector<16x64xf32>
    %299 = math.absf %298 : vector<16x64xf32>
    %cst_62 = arith.constant 1.000000e+00 : f32
    %300 = vector.broadcast %cst_62 : f32 to vector<16x64xf32>
    %301 = arith.subf %300, %299 : vector<16x64xf32>
    %cst_63 = arith.constant 0.000000e+00 : f32
    %302 = vector.broadcast %cst_63 : f32 to vector<16x64xf32>
    %303 = arith.maximumf %301, %302 : vector<16x64xf32>
    %304 = arith.mulf %295, %303 : vector<16x64xf32>
    %305 = vector.broadcast %287 : vector<16x1xf32> to vector<16x64xf32>
    %306 = arith.mulf %305, %304 : vector<16x64xf32>
    %307 = arith.addf %284, %306 : vector<16x64xf32>
    %308 = vector.extract_strided_slice %10 {offsets = [0, 11], sizes = [16, 1], strides = [1, 1]} : vector<16x32xf32> to vector<16x1xf32>
    %309 = vector.extract_strided_slice %11 {offsets = [0, 11], sizes = [16, 1], strides = [1, 1]} : vector<16x32xf32> to vector<16x1xf32>
    %310 = vector.extract_strided_slice %236 {offsets = [0, 3], sizes = [16, 1], strides = [1, 1]} : vector<16x8xf32> to vector<16x1xf32>
    %311 = vector.broadcast %308 : vector<16x1xf32> to vector<16x64xf32>
    %312 = vector.broadcast %239 : vector<1x64xf32> to vector<16x64xf32>
    %313 = arith.subf %311, %312 : vector<16x64xf32>
    %314 = math.absf %313 : vector<16x64xf32>
    %cst_64 = arith.constant 1.000000e+00 : f32
    %315 = vector.broadcast %cst_64 : f32 to vector<16x64xf32>
    %316 = arith.subf %315, %314 : vector<16x64xf32>
    %cst_65 = arith.constant 0.000000e+00 : f32
    %317 = vector.broadcast %cst_65 : f32 to vector<16x64xf32>
    %318 = arith.maximumf %316, %317 : vector<16x64xf32>
    %319 = vector.broadcast %309 : vector<16x1xf32> to vector<16x64xf32>
    %320 = vector.broadcast %238 : vector<1x64xf32> to vector<16x64xf32>
    %321 = arith.subf %319, %320 : vector<16x64xf32>
    %322 = math.absf %321 : vector<16x64xf32>
    %cst_66 = arith.constant 1.000000e+00 : f32
    %323 = vector.broadcast %cst_66 : f32 to vector<16x64xf32>
    %324 = arith.subf %323, %322 : vector<16x64xf32>
    %cst_67 = arith.constant 0.000000e+00 : f32
    %325 = vector.broadcast %cst_67 : f32 to vector<16x64xf32>
    %326 = arith.maximumf %324, %325 : vector<16x64xf32>
    %327 = arith.mulf %318, %326 : vector<16x64xf32>
    %328 = vector.broadcast %310 : vector<16x1xf32> to vector<16x64xf32>
    %329 = arith.mulf %328, %327 : vector<16x64xf32>
    %330 = arith.addf %307, %329 : vector<16x64xf32>
    %331 = vector.extract_strided_slice %237 {offsets = [0, 0], sizes = [64, 32], strides = [1, 1]} : vector<80x32xf32> to vector<64x32xf32>
    %cst_68 = arith.constant dense<0.000000e+00> : vector<16x32xf32>
    %332 = tpu.matmul %330, %331, %cst_68 {dimension_numbers = #tpu.dot_dimension_numbers<[1], [0], [0], [1], [0, 0, 1, 1], [], []>} : vector<16x64xf32>, vector<64x32xf32>, vector<16x32xf32> -> vector<16x32xf32>
    %333 = arith.addf %221, %332 : vector<16x32xf32>
    %334 = vector.extract_strided_slice %6 {offsets = [2, 0], sizes = [1, 16], strides = [1, 1]} : vector<4x64xf32> to vector<1x16xf32>
    %335 = vector.extract_strided_slice %6 {offsets = [3, 0], sizes = [1, 16], strides = [1, 1]} : vector<4x64xf32> to vector<1x16xf32>
    %336 = vector.extract_strided_slice %10 {offsets = [0, 12], sizes = [16, 1], strides = [1, 1]} : vector<16x32xf32> to vector<16x1xf32>
    %337 = vector.extract_strided_slice %11 {offsets = [0, 12], sizes = [16, 1], strides = [1, 1]} : vector<16x32xf32> to vector<16x1xf32>
    %338 = vector.extract_strided_slice %236 {offsets = [0, 4], sizes = [16, 1], strides = [1, 1]} : vector<16x8xf32> to vector<16x1xf32>
    %339 = vector.broadcast %336 : vector<16x1xf32> to vector<16x16xf32>
    %340 = vector.broadcast %335 : vector<1x16xf32> to vector<16x16xf32>
    %341 = arith.subf %339, %340 : vector<16x16xf32>
    %342 = math.absf %341 : vector<16x16xf32>
    %cst_69 = arith.constant 1.000000e+00 : f32
    %343 = vector.broadcast %cst_69 : f32 to vector<16x16xf32>
    %344 = arith.subf %343, %342 : vector<16x16xf32>
    %cst_70 = arith.constant 0.000000e+00 : f32
    %345 = vector.broadcast %cst_70 : f32 to vector<16x16xf32>
    %346 = arith.maximumf %344, %345 : vector<16x16xf32>
    %347 = vector.broadcast %337 : vector<16x1xf32> to vector<16x16xf32>
    %348 = vector.broadcast %334 : vector<1x16xf32> to vector<16x16xf32>
    %349 = arith.subf %347, %348 : vector<16x16xf32>
    %350 = math.absf %349 : vector<16x16xf32>
    %cst_71 = arith.constant 1.000000e+00 : f32
    %351 = vector.broadcast %cst_71 : f32 to vector<16x16xf32>
    %352 = arith.subf %351, %350 : vector<16x16xf32>
    %cst_72 = arith.constant 0.000000e+00 : f32
    %353 = vector.broadcast %cst_72 : f32 to vector<16x16xf32>
    %354 = arith.maximumf %352, %353 : vector<16x16xf32>
    %355 = arith.mulf %346, %354 : vector<16x16xf32>
    %356 = vector.broadcast %338 : vector<16x1xf32> to vector<16x16xf32>
    %357 = arith.mulf %356, %355 : vector<16x16xf32>
    %358 = vector.extract_strided_slice %10 {offsets = [0, 13], sizes = [16, 1], strides = [1, 1]} : vector<16x32xf32> to vector<16x1xf32>
    %359 = vector.extract_strided_slice %11 {offsets = [0, 13], sizes = [16, 1], strides = [1, 1]} : vector<16x32xf32> to vector<16x1xf32>
    %360 = vector.extract_strided_slice %236 {offsets = [0, 5], sizes = [16, 1], strides = [1, 1]} : vector<16x8xf32> to vector<16x1xf32>
    %361 = vector.broadcast %358 : vector<16x1xf32> to vector<16x16xf32>
    %362 = vector.broadcast %335 : vector<1x16xf32> to vector<16x16xf32>
    %363 = arith.subf %361, %362 : vector<16x16xf32>
    %364 = math.absf %363 : vector<16x16xf32>
    %cst_73 = arith.constant 1.000000e+00 : f32
    %365 = vector.broadcast %cst_73 : f32 to vector<16x16xf32>
    %366 = arith.subf %365, %364 : vector<16x16xf32>
    %cst_74 = arith.constant 0.000000e+00 : f32
    %367 = vector.broadcast %cst_74 : f32 to vector<16x16xf32>
    %368 = arith.maximumf %366, %367 : vector<16x16xf32>
    %369 = vector.broadcast %359 : vector<16x1xf32> to vector<16x16xf32>
    %370 = vector.broadcast %334 : vector<1x16xf32> to vector<16x16xf32>
    %371 = arith.subf %369, %370 : vector<16x16xf32>
    %372 = math.absf %371 : vector<16x16xf32>
    %cst_75 = arith.constant 1.000000e+00 : f32
    %373 = vector.broadcast %cst_75 : f32 to vector<16x16xf32>
    %374 = arith.subf %373, %372 : vector<16x16xf32>
    %cst_76 = arith.constant 0.000000e+00 : f32
    %375 = vector.broadcast %cst_76 : f32 to vector<16x16xf32>
    %376 = arith.maximumf %374, %375 : vector<16x16xf32>
    %377 = arith.mulf %368, %376 : vector<16x16xf32>
    %378 = vector.broadcast %360 : vector<16x1xf32> to vector<16x16xf32>
    %379 = arith.mulf %378, %377 : vector<16x16xf32>
    %380 = arith.addf %357, %379 : vector<16x16xf32>
    %381 = vector.extract_strided_slice %10 {offsets = [0, 14], sizes = [16, 1], strides = [1, 1]} : vector<16x32xf32> to vector<16x1xf32>
    %382 = vector.extract_strided_slice %11 {offsets = [0, 14], sizes = [16, 1], strides = [1, 1]} : vector<16x32xf32> to vector<16x1xf32>
    %383 = vector.extract_strided_slice %236 {offsets = [0, 6], sizes = [16, 1], strides = [1, 1]} : vector<16x8xf32> to vector<16x1xf32>
    %384 = vector.broadcast %381 : vector<16x1xf32> to vector<16x16xf32>
    %385 = vector.broadcast %335 : vector<1x16xf32> to vector<16x16xf32>
    %386 = arith.subf %384, %385 : vector<16x16xf32>
    %387 = math.absf %386 : vector<16x16xf32>
    %cst_77 = arith.constant 1.000000e+00 : f32
    %388 = vector.broadcast %cst_77 : f32 to vector<16x16xf32>
    %389 = arith.subf %388, %387 : vector<16x16xf32>
    %cst_78 = arith.constant 0.000000e+00 : f32
    %390 = vector.broadcast %cst_78 : f32 to vector<16x16xf32>
    %391 = arith.maximumf %389, %390 : vector<16x16xf32>
    %392 = vector.broadcast %382 : vector<16x1xf32> to vector<16x16xf32>
    %393 = vector.broadcast %334 : vector<1x16xf32> to vector<16x16xf32>
    %394 = arith.subf %392, %393 : vector<16x16xf32>
    %395 = math.absf %394 : vector<16x16xf32>
    %cst_79 = arith.constant 1.000000e+00 : f32
    %396 = vector.broadcast %cst_79 : f32 to vector<16x16xf32>
    %397 = arith.subf %396, %395 : vector<16x16xf32>
    %cst_80 = arith.constant 0.000000e+00 : f32
    %398 = vector.broadcast %cst_80 : f32 to vector<16x16xf32>
    %399 = arith.maximumf %397, %398 : vector<16x16xf32>
    %400 = arith.mulf %391, %399 : vector<16x16xf32>
    %401 = vector.broadcast %383 : vector<16x1xf32> to vector<16x16xf32>
    %402 = arith.mulf %401, %400 : vector<16x16xf32>
    %403 = arith.addf %380, %402 : vector<16x16xf32>
    %404 = vector.extract_strided_slice %10 {offsets = [0, 15], sizes = [16, 1], strides = [1, 1]} : vector<16x32xf32> to vector<16x1xf32>
    %405 = vector.extract_strided_slice %11 {offsets = [0, 15], sizes = [16, 1], strides = [1, 1]} : vector<16x32xf32> to vector<16x1xf32>
    %406 = vector.extract_strided_slice %236 {offsets = [0, 7], sizes = [16, 1], strides = [1, 1]} : vector<16x8xf32> to vector<16x1xf32>
    %407 = vector.broadcast %404 : vector<16x1xf32> to vector<16x16xf32>
    %408 = vector.broadcast %335 : vector<1x16xf32> to vector<16x16xf32>
    %409 = arith.subf %407, %408 : vector<16x16xf32>
    %410 = math.absf %409 : vector<16x16xf32>
    %cst_81 = arith.constant 1.000000e+00 : f32
    %411 = vector.broadcast %cst_81 : f32 to vector<16x16xf32>
    %412 = arith.subf %411, %410 : vector<16x16xf32>
    %cst_82 = arith.constant 0.000000e+00 : f32
    %413 = vector.broadcast %cst_82 : f32 to vector<16x16xf32>
    %414 = arith.maximumf %412, %413 : vector<16x16xf32>
    %415 = vector.broadcast %405 : vector<16x1xf32> to vector<16x16xf32>
    %416 = vector.broadcast %334 : vector<1x16xf32> to vector<16x16xf32>
    %417 = arith.subf %415, %416 : vector<16x16xf32>
    %418 = math.absf %417 : vector<16x16xf32>
    %cst_83 = arith.constant 1.000000e+00 : f32
    %419 = vector.broadcast %cst_83 : f32 to vector<16x16xf32>
    %420 = arith.subf %419, %418 : vector<16x16xf32>
    %cst_84 = arith.constant 0.000000e+00 : f32
    %421 = vector.broadcast %cst_84 : f32 to vector<16x16xf32>
    %422 = arith.maximumf %420, %421 : vector<16x16xf32>
    %423 = arith.mulf %414, %422 : vector<16x16xf32>
    %424 = vector.broadcast %406 : vector<16x1xf32> to vector<16x16xf32>
    %425 = arith.mulf %424, %423 : vector<16x16xf32>
    %426 = arith.addf %403, %425 : vector<16x16xf32>
    %427 = vector.extract_strided_slice %237 {offsets = [64, 0], sizes = [16, 32], strides = [1, 1]} : vector<80x32xf32> to vector<16x32xf32>
    %cst_85 = arith.constant dense<0.000000e+00> : vector<16x32xf32>
    %428 = tpu.matmul %426, %427, %cst_85 {dimension_numbers = #tpu.dot_dimension_numbers<[1], [0], [0], [1], [0, 0, 1, 1], [], []>} : vector<16x16xf32>, vector<16x32xf32>, vector<16x32xf32> -> vector<16x32xf32>
    %429 = arith.addf %333, %428 : vector<16x32xf32>
    %430 = vector.extract_strided_slice %12 {offsets = [0, 16], sizes = [16, 8], strides = [1, 1]} : vector<16x32xf32> to vector<16x8xf32>
    %cst_86 = arith.constant dense<0xFF800000> : vector<16xf32>
    %431 = vector.multi_reduction <maximumf>, %430, %cst_86 [1] : vector<16x8xf32> to vector<16xf32>
    %432 = vector.shape_cast %431 : vector<16xf32> to vector<16x1xf32>
    %433 = vector.broadcast %432 : vector<16x1xf32> to vector<16x8xf32>
    %434 = arith.subf %430, %433 : vector<16x8xf32>
    %435 = math.exp %434 : vector<16x8xf32>
    %cst_87 = arith.constant dense<0.000000e+00> : vector<16xf32>
    %436 = vector.multi_reduction <add>, %435, %cst_87 [1] : vector<16x8xf32> to vector<16xf32>
    %437 = vector.shape_cast %436 : vector<16xf32> to vector<16x1xf32>
    %438 = tpu.reciprocal %437 {approx = true} : vector<16x1xf32> -> vector<16x1xf32>
    %439 = arith.mulf %437, %438 : vector<16x1xf32>
    %cst_88 = arith.constant 2.000000e+00 : f32
    %440 = vector.broadcast %cst_88 : f32 to vector<16x1xf32>
    %441 = arith.subf %440, %439 : vector<16x1xf32>
    %442 = arith.mulf %438, %441 : vector<16x1xf32>
    %443 = vector.broadcast %442 : vector<16x1xf32> to vector<16x8xf32>
    %444 = arith.mulf %435, %443 : vector<16x8xf32>
    %445 = vector.extract_strided_slice %13 {offsets = [0, 64], sizes = [80, 32], strides = [1, 1]} : vector<80x128xf32> to vector<80x32xf32>
    %446 = vector.extract_strided_slice %6 {offsets = [0, 0], sizes = [1, 64], strides = [1, 1]} : vector<4x64xf32> to vector<1x64xf32>
    %447 = vector.extract_strided_slice %6 {offsets = [1, 0], sizes = [1, 64], strides = [1, 1]} : vector<4x64xf32> to vector<1x64xf32>
    %448 = vector.extract_strided_slice %10 {offsets = [0, 16], sizes = [16, 1], strides = [1, 1]} : vector<16x32xf32> to vector<16x1xf32>
    %449 = vector.extract_strided_slice %11 {offsets = [0, 16], sizes = [16, 1], strides = [1, 1]} : vector<16x32xf32> to vector<16x1xf32>
    %450 = vector.extract_strided_slice %444 {offsets = [0, 0], sizes = [16, 1], strides = [1, 1]} : vector<16x8xf32> to vector<16x1xf32>
    %451 = vector.broadcast %448 : vector<16x1xf32> to vector<16x64xf32>
    %452 = vector.broadcast %447 : vector<1x64xf32> to vector<16x64xf32>
    %453 = arith.subf %451, %452 : vector<16x64xf32>
    %454 = math.absf %453 : vector<16x64xf32>
    %cst_89 = arith.constant 1.000000e+00 : f32
    %455 = vector.broadcast %cst_89 : f32 to vector<16x64xf32>
    %456 = arith.subf %455, %454 : vector<16x64xf32>
    %cst_90 = arith.constant 0.000000e+00 : f32
    %457 = vector.broadcast %cst_90 : f32 to vector<16x64xf32>
    %458 = arith.maximumf %456, %457 : vector<16x64xf32>
    %459 = vector.broadcast %449 : vector<16x1xf32> to vector<16x64xf32>
    %460 = vector.broadcast %446 : vector<1x64xf32> to vector<16x64xf32>
    %461 = arith.subf %459, %460 : vector<16x64xf32>
    %462 = math.absf %461 : vector<16x64xf32>
    %cst_91 = arith.constant 1.000000e+00 : f32
    %463 = vector.broadcast %cst_91 : f32 to vector<16x64xf32>
    %464 = arith.subf %463, %462 : vector<16x64xf32>
    %cst_92 = arith.constant 0.000000e+00 : f32
    %465 = vector.broadcast %cst_92 : f32 to vector<16x64xf32>
    %466 = arith.maximumf %464, %465 : vector<16x64xf32>
    %467 = arith.mulf %458, %466 : vector<16x64xf32>
    %468 = vector.broadcast %450 : vector<16x1xf32> to vector<16x64xf32>
    %469 = arith.mulf %468, %467 : vector<16x64xf32>
    %470 = vector.extract_strided_slice %10 {offsets = [0, 17], sizes = [16, 1], strides = [1, 1]} : vector<16x32xf32> to vector<16x1xf32>
    %471 = vector.extract_strided_slice %11 {offsets = [0, 17], sizes = [16, 1], strides = [1, 1]} : vector<16x32xf32> to vector<16x1xf32>
    %472 = vector.extract_strided_slice %444 {offsets = [0, 1], sizes = [16, 1], strides = [1, 1]} : vector<16x8xf32> to vector<16x1xf32>
    %473 = vector.broadcast %470 : vector<16x1xf32> to vector<16x64xf32>
    %474 = vector.broadcast %447 : vector<1x64xf32> to vector<16x64xf32>
    %475 = arith.subf %473, %474 : vector<16x64xf32>
    %476 = math.absf %475 : vector<16x64xf32>
    %cst_93 = arith.constant 1.000000e+00 : f32
    %477 = vector.broadcast %cst_93 : f32 to vector<16x64xf32>
    %478 = arith.subf %477, %476 : vector<16x64xf32>
    %cst_94 = arith.constant 0.000000e+00 : f32
    %479 = vector.broadcast %cst_94 : f32 to vector<16x64xf32>
    %480 = arith.maximumf %478, %479 : vector<16x64xf32>
    %481 = vector.broadcast %471 : vector<16x1xf32> to vector<16x64xf32>
    %482 = vector.broadcast %446 : vector<1x64xf32> to vector<16x64xf32>
    %483 = arith.subf %481, %482 : vector<16x64xf32>
    %484 = math.absf %483 : vector<16x64xf32>
    %cst_95 = arith.constant 1.000000e+00 : f32
    %485 = vector.broadcast %cst_95 : f32 to vector<16x64xf32>
    %486 = arith.subf %485, %484 : vector<16x64xf32>
    %cst_96 = arith.constant 0.000000e+00 : f32
    %487 = vector.broadcast %cst_96 : f32 to vector<16x64xf32>
    %488 = arith.maximumf %486, %487 : vector<16x64xf32>
    %489 = arith.mulf %480, %488 : vector<16x64xf32>
    %490 = vector.broadcast %472 : vector<16x1xf32> to vector<16x64xf32>
    %491 = arith.mulf %490, %489 : vector<16x64xf32>
    %492 = arith.addf %469, %491 : vector<16x64xf32>
    %493 = vector.extract_strided_slice %10 {offsets = [0, 18], sizes = [16, 1], strides = [1, 1]} : vector<16x32xf32> to vector<16x1xf32>
    %494 = vector.extract_strided_slice %11 {offsets = [0, 18], sizes = [16, 1], strides = [1, 1]} : vector<16x32xf32> to vector<16x1xf32>
    %495 = vector.extract_strided_slice %444 {offsets = [0, 2], sizes = [16, 1], strides = [1, 1]} : vector<16x8xf32> to vector<16x1xf32>
    %496 = vector.broadcast %493 : vector<16x1xf32> to vector<16x64xf32>
    %497 = vector.broadcast %447 : vector<1x64xf32> to vector<16x64xf32>
    %498 = arith.subf %496, %497 : vector<16x64xf32>
    %499 = math.absf %498 : vector<16x64xf32>
    %cst_97 = arith.constant 1.000000e+00 : f32
    %500 = vector.broadcast %cst_97 : f32 to vector<16x64xf32>
    %501 = arith.subf %500, %499 : vector<16x64xf32>
    %cst_98 = arith.constant 0.000000e+00 : f32
    %502 = vector.broadcast %cst_98 : f32 to vector<16x64xf32>
    %503 = arith.maximumf %501, %502 : vector<16x64xf32>
    %504 = vector.broadcast %494 : vector<16x1xf32> to vector<16x64xf32>
    %505 = vector.broadcast %446 : vector<1x64xf32> to vector<16x64xf32>
    %506 = arith.subf %504, %505 : vector<16x64xf32>
    %507 = math.absf %506 : vector<16x64xf32>
    %cst_99 = arith.constant 1.000000e+00 : f32
    %508 = vector.broadcast %cst_99 : f32 to vector<16x64xf32>
    %509 = arith.subf %508, %507 : vector<16x64xf32>
    %cst_100 = arith.constant 0.000000e+00 : f32
    %510 = vector.broadcast %cst_100 : f32 to vector<16x64xf32>
    %511 = arith.maximumf %509, %510 : vector<16x64xf32>
    %512 = arith.mulf %503, %511 : vector<16x64xf32>
    %513 = vector.broadcast %495 : vector<16x1xf32> to vector<16x64xf32>
    %514 = arith.mulf %513, %512 : vector<16x64xf32>
    %515 = arith.addf %492, %514 : vector<16x64xf32>
    %516 = vector.extract_strided_slice %10 {offsets = [0, 19], sizes = [16, 1], strides = [1, 1]} : vector<16x32xf32> to vector<16x1xf32>
    %517 = vector.extract_strided_slice %11 {offsets = [0, 19], sizes = [16, 1], strides = [1, 1]} : vector<16x32xf32> to vector<16x1xf32>
    %518 = vector.extract_strided_slice %444 {offsets = [0, 3], sizes = [16, 1], strides = [1, 1]} : vector<16x8xf32> to vector<16x1xf32>
    %519 = vector.broadcast %516 : vector<16x1xf32> to vector<16x64xf32>
    %520 = vector.broadcast %447 : vector<1x64xf32> to vector<16x64xf32>
    %521 = arith.subf %519, %520 : vector<16x64xf32>
    %522 = math.absf %521 : vector<16x64xf32>
    %cst_101 = arith.constant 1.000000e+00 : f32
    %523 = vector.broadcast %cst_101 : f32 to vector<16x64xf32>
    %524 = arith.subf %523, %522 : vector<16x64xf32>
    %cst_102 = arith.constant 0.000000e+00 : f32
    %525 = vector.broadcast %cst_102 : f32 to vector<16x64xf32>
    %526 = arith.maximumf %524, %525 : vector<16x64xf32>
    %527 = vector.broadcast %517 : vector<16x1xf32> to vector<16x64xf32>
    %528 = vector.broadcast %446 : vector<1x64xf32> to vector<16x64xf32>
    %529 = arith.subf %527, %528 : vector<16x64xf32>
    %530 = math.absf %529 : vector<16x64xf32>
    %cst_103 = arith.constant 1.000000e+00 : f32
    %531 = vector.broadcast %cst_103 : f32 to vector<16x64xf32>
    %532 = arith.subf %531, %530 : vector<16x64xf32>
    %cst_104 = arith.constant 0.000000e+00 : f32
    %533 = vector.broadcast %cst_104 : f32 to vector<16x64xf32>
    %534 = arith.maximumf %532, %533 : vector<16x64xf32>
    %535 = arith.mulf %526, %534 : vector<16x64xf32>
    %536 = vector.broadcast %518 : vector<16x1xf32> to vector<16x64xf32>
    %537 = arith.mulf %536, %535 : vector<16x64xf32>
    %538 = arith.addf %515, %537 : vector<16x64xf32>
    %539 = vector.extract_strided_slice %445 {offsets = [0, 0], sizes = [64, 32], strides = [1, 1]} : vector<80x32xf32> to vector<64x32xf32>
    %cst_105 = arith.constant dense<0.000000e+00> : vector<16x32xf32>
    %540 = tpu.matmul %538, %539, %cst_105 {dimension_numbers = #tpu.dot_dimension_numbers<[1], [0], [0], [1], [0, 0, 1, 1], [], []>} : vector<16x64xf32>, vector<64x32xf32>, vector<16x32xf32> -> vector<16x32xf32>
    %541 = arith.addf %429, %540 : vector<16x32xf32>
    %542 = vector.extract_strided_slice %6 {offsets = [2, 0], sizes = [1, 16], strides = [1, 1]} : vector<4x64xf32> to vector<1x16xf32>
    %543 = vector.extract_strided_slice %6 {offsets = [3, 0], sizes = [1, 16], strides = [1, 1]} : vector<4x64xf32> to vector<1x16xf32>
    %544 = vector.extract_strided_slice %10 {offsets = [0, 20], sizes = [16, 1], strides = [1, 1]} : vector<16x32xf32> to vector<16x1xf32>
    %545 = vector.extract_strided_slice %11 {offsets = [0, 20], sizes = [16, 1], strides = [1, 1]} : vector<16x32xf32> to vector<16x1xf32>
    %546 = vector.extract_strided_slice %444 {offsets = [0, 4], sizes = [16, 1], strides = [1, 1]} : vector<16x8xf32> to vector<16x1xf32>
    %547 = vector.broadcast %544 : vector<16x1xf32> to vector<16x16xf32>
    %548 = vector.broadcast %543 : vector<1x16xf32> to vector<16x16xf32>
    %549 = arith.subf %547, %548 : vector<16x16xf32>
    %550 = math.absf %549 : vector<16x16xf32>
    %cst_106 = arith.constant 1.000000e+00 : f32
    %551 = vector.broadcast %cst_106 : f32 to vector<16x16xf32>
    %552 = arith.subf %551, %550 : vector<16x16xf32>
    %cst_107 = arith.constant 0.000000e+00 : f32
    %553 = vector.broadcast %cst_107 : f32 to vector<16x16xf32>
    %554 = arith.maximumf %552, %553 : vector<16x16xf32>
    %555 = vector.broadcast %545 : vector<16x1xf32> to vector<16x16xf32>
    %556 = vector.broadcast %542 : vector<1x16xf32> to vector<16x16xf32>
    %557 = arith.subf %555, %556 : vector<16x16xf32>
    %558 = math.absf %557 : vector<16x16xf32>
    %cst_108 = arith.constant 1.000000e+00 : f32
    %559 = vector.broadcast %cst_108 : f32 to vector<16x16xf32>
    %560 = arith.subf %559, %558 : vector<16x16xf32>
    %cst_109 = arith.constant 0.000000e+00 : f32
    %561 = vector.broadcast %cst_109 : f32 to vector<16x16xf32>
    %562 = arith.maximumf %560, %561 : vector<16x16xf32>
    %563 = arith.mulf %554, %562 : vector<16x16xf32>
    %564 = vector.broadcast %546 : vector<16x1xf32> to vector<16x16xf32>
    %565 = arith.mulf %564, %563 : vector<16x16xf32>
    %566 = vector.extract_strided_slice %10 {offsets = [0, 21], sizes = [16, 1], strides = [1, 1]} : vector<16x32xf32> to vector<16x1xf32>
    %567 = vector.extract_strided_slice %11 {offsets = [0, 21], sizes = [16, 1], strides = [1, 1]} : vector<16x32xf32> to vector<16x1xf32>
    %568 = vector.extract_strided_slice %444 {offsets = [0, 5], sizes = [16, 1], strides = [1, 1]} : vector<16x8xf32> to vector<16x1xf32>
    %569 = vector.broadcast %566 : vector<16x1xf32> to vector<16x16xf32>
    %570 = vector.broadcast %543 : vector<1x16xf32> to vector<16x16xf32>
    %571 = arith.subf %569, %570 : vector<16x16xf32>
    %572 = math.absf %571 : vector<16x16xf32>
    %cst_110 = arith.constant 1.000000e+00 : f32
    %573 = vector.broadcast %cst_110 : f32 to vector<16x16xf32>
    %574 = arith.subf %573, %572 : vector<16x16xf32>
    %cst_111 = arith.constant 0.000000e+00 : f32
    %575 = vector.broadcast %cst_111 : f32 to vector<16x16xf32>
    %576 = arith.maximumf %574, %575 : vector<16x16xf32>
    %577 = vector.broadcast %567 : vector<16x1xf32> to vector<16x16xf32>
    %578 = vector.broadcast %542 : vector<1x16xf32> to vector<16x16xf32>
    %579 = arith.subf %577, %578 : vector<16x16xf32>
    %580 = math.absf %579 : vector<16x16xf32>
    %cst_112 = arith.constant 1.000000e+00 : f32
    %581 = vector.broadcast %cst_112 : f32 to vector<16x16xf32>
    %582 = arith.subf %581, %580 : vector<16x16xf32>
    %cst_113 = arith.constant 0.000000e+00 : f32
    %583 = vector.broadcast %cst_113 : f32 to vector<16x16xf32>
    %584 = arith.maximumf %582, %583 : vector<16x16xf32>
    %585 = arith.mulf %576, %584 : vector<16x16xf32>
    %586 = vector.broadcast %568 : vector<16x1xf32> to vector<16x16xf32>
    %587 = arith.mulf %586, %585 : vector<16x16xf32>
    %588 = arith.addf %565, %587 : vector<16x16xf32>
    %589 = vector.extract_strided_slice %10 {offsets = [0, 22], sizes = [16, 1], strides = [1, 1]} : vector<16x32xf32> to vector<16x1xf32>
    %590 = vector.extract_strided_slice %11 {offsets = [0, 22], sizes = [16, 1], strides = [1, 1]} : vector<16x32xf32> to vector<16x1xf32>
    %591 = vector.extract_strided_slice %444 {offsets = [0, 6], sizes = [16, 1], strides = [1, 1]} : vector<16x8xf32> to vector<16x1xf32>
    %592 = vector.broadcast %589 : vector<16x1xf32> to vector<16x16xf32>
    %593 = vector.broadcast %543 : vector<1x16xf32> to vector<16x16xf32>
    %594 = arith.subf %592, %593 : vector<16x16xf32>
    %595 = math.absf %594 : vector<16x16xf32>
    %cst_114 = arith.constant 1.000000e+00 : f32
    %596 = vector.broadcast %cst_114 : f32 to vector<16x16xf32>
    %597 = arith.subf %596, %595 : vector<16x16xf32>
    %cst_115 = arith.constant 0.000000e+00 : f32
    %598 = vector.broadcast %cst_115 : f32 to vector<16x16xf32>
    %599 = arith.maximumf %597, %598 : vector<16x16xf32>
    %600 = vector.broadcast %590 : vector<16x1xf32> to vector<16x16xf32>
    %601 = vector.broadcast %542 : vector<1x16xf32> to vector<16x16xf32>
    %602 = arith.subf %600, %601 : vector<16x16xf32>
    %603 = math.absf %602 : vector<16x16xf32>
    %cst_116 = arith.constant 1.000000e+00 : f32
    %604 = vector.broadcast %cst_116 : f32 to vector<16x16xf32>
    %605 = arith.subf %604, %603 : vector<16x16xf32>
    %cst_117 = arith.constant 0.000000e+00 : f32
    %606 = vector.broadcast %cst_117 : f32 to vector<16x16xf32>
    %607 = arith.maximumf %605, %606 : vector<16x16xf32>
    %608 = arith.mulf %599, %607 : vector<16x16xf32>
    %609 = vector.broadcast %591 : vector<16x1xf32> to vector<16x16xf32>
    %610 = arith.mulf %609, %608 : vector<16x16xf32>
    %611 = arith.addf %588, %610 : vector<16x16xf32>
    %612 = vector.extract_strided_slice %10 {offsets = [0, 23], sizes = [16, 1], strides = [1, 1]} : vector<16x32xf32> to vector<16x1xf32>
    %613 = vector.extract_strided_slice %11 {offsets = [0, 23], sizes = [16, 1], strides = [1, 1]} : vector<16x32xf32> to vector<16x1xf32>
    %614 = vector.extract_strided_slice %444 {offsets = [0, 7], sizes = [16, 1], strides = [1, 1]} : vector<16x8xf32> to vector<16x1xf32>
    %615 = vector.broadcast %612 : vector<16x1xf32> to vector<16x16xf32>
    %616 = vector.broadcast %543 : vector<1x16xf32> to vector<16x16xf32>
    %617 = arith.subf %615, %616 : vector<16x16xf32>
    %618 = math.absf %617 : vector<16x16xf32>
    %cst_118 = arith.constant 1.000000e+00 : f32
    %619 = vector.broadcast %cst_118 : f32 to vector<16x16xf32>
    %620 = arith.subf %619, %618 : vector<16x16xf32>
    %cst_119 = arith.constant 0.000000e+00 : f32
    %621 = vector.broadcast %cst_119 : f32 to vector<16x16xf32>
    %622 = arith.maximumf %620, %621 : vector<16x16xf32>
    %623 = vector.broadcast %613 : vector<16x1xf32> to vector<16x16xf32>
    %624 = vector.broadcast %542 : vector<1x16xf32> to vector<16x16xf32>
    %625 = arith.subf %623, %624 : vector<16x16xf32>
    %626 = math.absf %625 : vector<16x16xf32>
    %cst_120 = arith.constant 1.000000e+00 : f32
    %627 = vector.broadcast %cst_120 : f32 to vector<16x16xf32>
    %628 = arith.subf %627, %626 : vector<16x16xf32>
    %cst_121 = arith.constant 0.000000e+00 : f32
    %629 = vector.broadcast %cst_121 : f32 to vector<16x16xf32>
    %630 = arith.maximumf %628, %629 : vector<16x16xf32>
    %631 = arith.mulf %622, %630 : vector<16x16xf32>
    %632 = vector.broadcast %614 : vector<16x1xf32> to vector<16x16xf32>
    %633 = arith.mulf %632, %631 : vector<16x16xf32>
    %634 = arith.addf %611, %633 : vector<16x16xf32>
    %635 = vector.extract_strided_slice %445 {offsets = [64, 0], sizes = [16, 32], strides = [1, 1]} : vector<80x32xf32> to vector<16x32xf32>
    %cst_122 = arith.constant dense<0.000000e+00> : vector<16x32xf32>
    %636 = tpu.matmul %634, %635, %cst_122 {dimension_numbers = #tpu.dot_dimension_numbers<[1], [0], [0], [1], [0, 0, 1, 1], [], []>} : vector<16x16xf32>, vector<16x32xf32>, vector<16x32xf32> -> vector<16x32xf32>
    %637 = arith.addf %541, %636 : vector<16x32xf32>
    %638 = vector.extract_strided_slice %12 {offsets = [0, 24], sizes = [16, 8], strides = [1, 1]} : vector<16x32xf32> to vector<16x8xf32>
    %cst_123 = arith.constant dense<0xFF800000> : vector<16xf32>
    %639 = vector.multi_reduction <maximumf>, %638, %cst_123 [1] : vector<16x8xf32> to vector<16xf32>
    %640 = vector.shape_cast %639 : vector<16xf32> to vector<16x1xf32>
    %641 = vector.broadcast %640 : vector<16x1xf32> to vector<16x8xf32>
    %642 = arith.subf %638, %641 : vector<16x8xf32>
    %643 = math.exp %642 : vector<16x8xf32>
    %cst_124 = arith.constant dense<0.000000e+00> : vector<16xf32>
    %644 = vector.multi_reduction <add>, %643, %cst_124 [1] : vector<16x8xf32> to vector<16xf32>
    %645 = vector.shape_cast %644 : vector<16xf32> to vector<16x1xf32>
    %646 = tpu.reciprocal %645 {approx = true} : vector<16x1xf32> -> vector<16x1xf32>
    %647 = arith.mulf %645, %646 : vector<16x1xf32>
    %cst_125 = arith.constant 2.000000e+00 : f32
    %648 = vector.broadcast %cst_125 : f32 to vector<16x1xf32>
    %649 = arith.subf %648, %647 : vector<16x1xf32>
    %650 = arith.mulf %646, %649 : vector<16x1xf32>
    %651 = vector.broadcast %650 : vector<16x1xf32> to vector<16x8xf32>
    %652 = arith.mulf %643, %651 : vector<16x8xf32>
    %653 = vector.extract_strided_slice %13 {offsets = [0, 96], sizes = [80, 32], strides = [1, 1]} : vector<80x128xf32> to vector<80x32xf32>
    %654 = vector.extract_strided_slice %6 {offsets = [0, 0], sizes = [1, 64], strides = [1, 1]} : vector<4x64xf32> to vector<1x64xf32>
    %655 = vector.extract_strided_slice %6 {offsets = [1, 0], sizes = [1, 64], strides = [1, 1]} : vector<4x64xf32> to vector<1x64xf32>
    %656 = vector.extract_strided_slice %10 {offsets = [0, 24], sizes = [16, 1], strides = [1, 1]} : vector<16x32xf32> to vector<16x1xf32>
    %657 = vector.extract_strided_slice %11 {offsets = [0, 24], sizes = [16, 1], strides = [1, 1]} : vector<16x32xf32> to vector<16x1xf32>
    %658 = vector.extract_strided_slice %652 {offsets = [0, 0], sizes = [16, 1], strides = [1, 1]} : vector<16x8xf32> to vector<16x1xf32>
    %659 = vector.broadcast %656 : vector<16x1xf32> to vector<16x64xf32>
    %660 = vector.broadcast %655 : vector<1x64xf32> to vector<16x64xf32>
    %661 = arith.subf %659, %660 : vector<16x64xf32>
    %662 = math.absf %661 : vector<16x64xf32>
    %cst_126 = arith.constant 1.000000e+00 : f32
    %663 = vector.broadcast %cst_126 : f32 to vector<16x64xf32>
    %664 = arith.subf %663, %662 : vector<16x64xf32>
    %cst_127 = arith.constant 0.000000e+00 : f32
    %665 = vector.broadcast %cst_127 : f32 to vector<16x64xf32>
    %666 = arith.maximumf %664, %665 : vector<16x64xf32>
    %667 = vector.broadcast %657 : vector<16x1xf32> to vector<16x64xf32>
    %668 = vector.broadcast %654 : vector<1x64xf32> to vector<16x64xf32>
    %669 = arith.subf %667, %668 : vector<16x64xf32>
    %670 = math.absf %669 : vector<16x64xf32>
    %cst_128 = arith.constant 1.000000e+00 : f32
    %671 = vector.broadcast %cst_128 : f32 to vector<16x64xf32>
    %672 = arith.subf %671, %670 : vector<16x64xf32>
    %cst_129 = arith.constant 0.000000e+00 : f32
    %673 = vector.broadcast %cst_129 : f32 to vector<16x64xf32>
    %674 = arith.maximumf %672, %673 : vector<16x64xf32>
    %675 = arith.mulf %666, %674 : vector<16x64xf32>
    %676 = vector.broadcast %658 : vector<16x1xf32> to vector<16x64xf32>
    %677 = arith.mulf %676, %675 : vector<16x64xf32>
    %678 = vector.extract_strided_slice %10 {offsets = [0, 25], sizes = [16, 1], strides = [1, 1]} : vector<16x32xf32> to vector<16x1xf32>
    %679 = vector.extract_strided_slice %11 {offsets = [0, 25], sizes = [16, 1], strides = [1, 1]} : vector<16x32xf32> to vector<16x1xf32>
    %680 = vector.extract_strided_slice %652 {offsets = [0, 1], sizes = [16, 1], strides = [1, 1]} : vector<16x8xf32> to vector<16x1xf32>
    %681 = vector.broadcast %678 : vector<16x1xf32> to vector<16x64xf32>
    %682 = vector.broadcast %655 : vector<1x64xf32> to vector<16x64xf32>
    %683 = arith.subf %681, %682 : vector<16x64xf32>
    %684 = math.absf %683 : vector<16x64xf32>
    %cst_130 = arith.constant 1.000000e+00 : f32
    %685 = vector.broadcast %cst_130 : f32 to vector<16x64xf32>
    %686 = arith.subf %685, %684 : vector<16x64xf32>
    %cst_131 = arith.constant 0.000000e+00 : f32
    %687 = vector.broadcast %cst_131 : f32 to vector<16x64xf32>
    %688 = arith.maximumf %686, %687 : vector<16x64xf32>
    %689 = vector.broadcast %679 : vector<16x1xf32> to vector<16x64xf32>
    %690 = vector.broadcast %654 : vector<1x64xf32> to vector<16x64xf32>
    %691 = arith.subf %689, %690 : vector<16x64xf32>
    %692 = math.absf %691 : vector<16x64xf32>
    %cst_132 = arith.constant 1.000000e+00 : f32
    %693 = vector.broadcast %cst_132 : f32 to vector<16x64xf32>
    %694 = arith.subf %693, %692 : vector<16x64xf32>
    %cst_133 = arith.constant 0.000000e+00 : f32
    %695 = vector.broadcast %cst_133 : f32 to vector<16x64xf32>
    %696 = arith.maximumf %694, %695 : vector<16x64xf32>
    %697 = arith.mulf %688, %696 : vector<16x64xf32>
    %698 = vector.broadcast %680 : vector<16x1xf32> to vector<16x64xf32>
    %699 = arith.mulf %698, %697 : vector<16x64xf32>
    %700 = arith.addf %677, %699 : vector<16x64xf32>
    %701 = vector.extract_strided_slice %10 {offsets = [0, 26], sizes = [16, 1], strides = [1, 1]} : vector<16x32xf32> to vector<16x1xf32>
    %702 = vector.extract_strided_slice %11 {offsets = [0, 26], sizes = [16, 1], strides = [1, 1]} : vector<16x32xf32> to vector<16x1xf32>
    %703 = vector.extract_strided_slice %652 {offsets = [0, 2], sizes = [16, 1], strides = [1, 1]} : vector<16x8xf32> to vector<16x1xf32>
    %704 = vector.broadcast %701 : vector<16x1xf32> to vector<16x64xf32>
    %705 = vector.broadcast %655 : vector<1x64xf32> to vector<16x64xf32>
    %706 = arith.subf %704, %705 : vector<16x64xf32>
    %707 = math.absf %706 : vector<16x64xf32>
    %cst_134 = arith.constant 1.000000e+00 : f32
    %708 = vector.broadcast %cst_134 : f32 to vector<16x64xf32>
    %709 = arith.subf %708, %707 : vector<16x64xf32>
    %cst_135 = arith.constant 0.000000e+00 : f32
    %710 = vector.broadcast %cst_135 : f32 to vector<16x64xf32>
    %711 = arith.maximumf %709, %710 : vector<16x64xf32>
    %712 = vector.broadcast %702 : vector<16x1xf32> to vector<16x64xf32>
    %713 = vector.broadcast %654 : vector<1x64xf32> to vector<16x64xf32>
    %714 = arith.subf %712, %713 : vector<16x64xf32>
    %715 = math.absf %714 : vector<16x64xf32>
    %cst_136 = arith.constant 1.000000e+00 : f32
    %716 = vector.broadcast %cst_136 : f32 to vector<16x64xf32>
    %717 = arith.subf %716, %715 : vector<16x64xf32>
    %cst_137 = arith.constant 0.000000e+00 : f32
    %718 = vector.broadcast %cst_137 : f32 to vector<16x64xf32>
    %719 = arith.maximumf %717, %718 : vector<16x64xf32>
    %720 = arith.mulf %711, %719 : vector<16x64xf32>
    %721 = vector.broadcast %703 : vector<16x1xf32> to vector<16x64xf32>
    %722 = arith.mulf %721, %720 : vector<16x64xf32>
    %723 = arith.addf %700, %722 : vector<16x64xf32>
    %724 = vector.extract_strided_slice %10 {offsets = [0, 27], sizes = [16, 1], strides = [1, 1]} : vector<16x32xf32> to vector<16x1xf32>
    %725 = vector.extract_strided_slice %11 {offsets = [0, 27], sizes = [16, 1], strides = [1, 1]} : vector<16x32xf32> to vector<16x1xf32>
    %726 = vector.extract_strided_slice %652 {offsets = [0, 3], sizes = [16, 1], strides = [1, 1]} : vector<16x8xf32> to vector<16x1xf32>
    %727 = vector.broadcast %724 : vector<16x1xf32> to vector<16x64xf32>
    %728 = vector.broadcast %655 : vector<1x64xf32> to vector<16x64xf32>
    %729 = arith.subf %727, %728 : vector<16x64xf32>
    %730 = math.absf %729 : vector<16x64xf32>
    %cst_138 = arith.constant 1.000000e+00 : f32
    %731 = vector.broadcast %cst_138 : f32 to vector<16x64xf32>
    %732 = arith.subf %731, %730 : vector<16x64xf32>
    %cst_139 = arith.constant 0.000000e+00 : f32
    %733 = vector.broadcast %cst_139 : f32 to vector<16x64xf32>
    %734 = arith.maximumf %732, %733 : vector<16x64xf32>
    %735 = vector.broadcast %725 : vector<16x1xf32> to vector<16x64xf32>
    %736 = vector.broadcast %654 : vector<1x64xf32> to vector<16x64xf32>
    %737 = arith.subf %735, %736 : vector<16x64xf32>
    %738 = math.absf %737 : vector<16x64xf32>
    %cst_140 = arith.constant 1.000000e+00 : f32
    %739 = vector.broadcast %cst_140 : f32 to vector<16x64xf32>
    %740 = arith.subf %739, %738 : vector<16x64xf32>
    %cst_141 = arith.constant 0.000000e+00 : f32
    %741 = vector.broadcast %cst_141 : f32 to vector<16x64xf32>
    %742 = arith.maximumf %740, %741 : vector<16x64xf32>
    %743 = arith.mulf %734, %742 : vector<16x64xf32>
    %744 = vector.broadcast %726 : vector<16x1xf32> to vector<16x64xf32>
    %745 = arith.mulf %744, %743 : vector<16x64xf32>
    %746 = arith.addf %723, %745 : vector<16x64xf32>
    %747 = vector.extract_strided_slice %653 {offsets = [0, 0], sizes = [64, 32], strides = [1, 1]} : vector<80x32xf32> to vector<64x32xf32>
    %cst_142 = arith.constant dense<0.000000e+00> : vector<16x32xf32>
    %748 = tpu.matmul %746, %747, %cst_142 {dimension_numbers = #tpu.dot_dimension_numbers<[1], [0], [0], [1], [0, 0, 1, 1], [], []>} : vector<16x64xf32>, vector<64x32xf32>, vector<16x32xf32> -> vector<16x32xf32>
    %749 = arith.addf %637, %748 : vector<16x32xf32>
    %750 = vector.extract_strided_slice %6 {offsets = [2, 0], sizes = [1, 16], strides = [1, 1]} : vector<4x64xf32> to vector<1x16xf32>
    %751 = vector.extract_strided_slice %6 {offsets = [3, 0], sizes = [1, 16], strides = [1, 1]} : vector<4x64xf32> to vector<1x16xf32>
    %752 = vector.extract_strided_slice %10 {offsets = [0, 28], sizes = [16, 1], strides = [1, 1]} : vector<16x32xf32> to vector<16x1xf32>
    %753 = vector.extract_strided_slice %11 {offsets = [0, 28], sizes = [16, 1], strides = [1, 1]} : vector<16x32xf32> to vector<16x1xf32>
    %754 = vector.extract_strided_slice %652 {offsets = [0, 4], sizes = [16, 1], strides = [1, 1]} : vector<16x8xf32> to vector<16x1xf32>
    %755 = vector.broadcast %752 : vector<16x1xf32> to vector<16x16xf32>
    %756 = vector.broadcast %751 : vector<1x16xf32> to vector<16x16xf32>
    %757 = arith.subf %755, %756 : vector<16x16xf32>
    %758 = math.absf %757 : vector<16x16xf32>
    %cst_143 = arith.constant 1.000000e+00 : f32
    %759 = vector.broadcast %cst_143 : f32 to vector<16x16xf32>
    %760 = arith.subf %759, %758 : vector<16x16xf32>
    %cst_144 = arith.constant 0.000000e+00 : f32
    %761 = vector.broadcast %cst_144 : f32 to vector<16x16xf32>
    %762 = arith.maximumf %760, %761 : vector<16x16xf32>
    %763 = vector.broadcast %753 : vector<16x1xf32> to vector<16x16xf32>
    %764 = vector.broadcast %750 : vector<1x16xf32> to vector<16x16xf32>
    %765 = arith.subf %763, %764 : vector<16x16xf32>
    %766 = math.absf %765 : vector<16x16xf32>
    %cst_145 = arith.constant 1.000000e+00 : f32
    %767 = vector.broadcast %cst_145 : f32 to vector<16x16xf32>
    %768 = arith.subf %767, %766 : vector<16x16xf32>
    %cst_146 = arith.constant 0.000000e+00 : f32
    %769 = vector.broadcast %cst_146 : f32 to vector<16x16xf32>
    %770 = arith.maximumf %768, %769 : vector<16x16xf32>
    %771 = arith.mulf %762, %770 : vector<16x16xf32>
    %772 = vector.broadcast %754 : vector<16x1xf32> to vector<16x16xf32>
    %773 = arith.mulf %772, %771 : vector<16x16xf32>
    %774 = vector.extract_strided_slice %10 {offsets = [0, 29], sizes = [16, 1], strides = [1, 1]} : vector<16x32xf32> to vector<16x1xf32>
    %775 = vector.extract_strided_slice %11 {offsets = [0, 29], sizes = [16, 1], strides = [1, 1]} : vector<16x32xf32> to vector<16x1xf32>
    %776 = vector.extract_strided_slice %652 {offsets = [0, 5], sizes = [16, 1], strides = [1, 1]} : vector<16x8xf32> to vector<16x1xf32>
    %777 = vector.broadcast %774 : vector<16x1xf32> to vector<16x16xf32>
    %778 = vector.broadcast %751 : vector<1x16xf32> to vector<16x16xf32>
    %779 = arith.subf %777, %778 : vector<16x16xf32>
    %780 = math.absf %779 : vector<16x16xf32>
    %cst_147 = arith.constant 1.000000e+00 : f32
    %781 = vector.broadcast %cst_147 : f32 to vector<16x16xf32>
    %782 = arith.subf %781, %780 : vector<16x16xf32>
    %cst_148 = arith.constant 0.000000e+00 : f32
    %783 = vector.broadcast %cst_148 : f32 to vector<16x16xf32>
    %784 = arith.maximumf %782, %783 : vector<16x16xf32>
    %785 = vector.broadcast %775 : vector<16x1xf32> to vector<16x16xf32>
    %786 = vector.broadcast %750 : vector<1x16xf32> to vector<16x16xf32>
    %787 = arith.subf %785, %786 : vector<16x16xf32>
    %788 = math.absf %787 : vector<16x16xf32>
    %cst_149 = arith.constant 1.000000e+00 : f32
    %789 = vector.broadcast %cst_149 : f32 to vector<16x16xf32>
    %790 = arith.subf %789, %788 : vector<16x16xf32>
    %cst_150 = arith.constant 0.000000e+00 : f32
    %791 = vector.broadcast %cst_150 : f32 to vector<16x16xf32>
    %792 = arith.maximumf %790, %791 : vector<16x16xf32>
    %793 = arith.mulf %784, %792 : vector<16x16xf32>
    %794 = vector.broadcast %776 : vector<16x1xf32> to vector<16x16xf32>
    %795 = arith.mulf %794, %793 : vector<16x16xf32>
    %796 = arith.addf %773, %795 : vector<16x16xf32>
    %797 = vector.extract_strided_slice %10 {offsets = [0, 30], sizes = [16, 1], strides = [1, 1]} : vector<16x32xf32> to vector<16x1xf32>
    %798 = vector.extract_strided_slice %11 {offsets = [0, 30], sizes = [16, 1], strides = [1, 1]} : vector<16x32xf32> to vector<16x1xf32>
    %799 = vector.extract_strided_slice %652 {offsets = [0, 6], sizes = [16, 1], strides = [1, 1]} : vector<16x8xf32> to vector<16x1xf32>
    %800 = vector.broadcast %797 : vector<16x1xf32> to vector<16x16xf32>
    %801 = vector.broadcast %751 : vector<1x16xf32> to vector<16x16xf32>
    %802 = arith.subf %800, %801 : vector<16x16xf32>
    %803 = math.absf %802 : vector<16x16xf32>
    %cst_151 = arith.constant 1.000000e+00 : f32
    %804 = vector.broadcast %cst_151 : f32 to vector<16x16xf32>
    %805 = arith.subf %804, %803 : vector<16x16xf32>
    %cst_152 = arith.constant 0.000000e+00 : f32
    %806 = vector.broadcast %cst_152 : f32 to vector<16x16xf32>
    %807 = arith.maximumf %805, %806 : vector<16x16xf32>
    %808 = vector.broadcast %798 : vector<16x1xf32> to vector<16x16xf32>
    %809 = vector.broadcast %750 : vector<1x16xf32> to vector<16x16xf32>
    %810 = arith.subf %808, %809 : vector<16x16xf32>
    %811 = math.absf %810 : vector<16x16xf32>
    %cst_153 = arith.constant 1.000000e+00 : f32
    %812 = vector.broadcast %cst_153 : f32 to vector<16x16xf32>
    %813 = arith.subf %812, %811 : vector<16x16xf32>
    %cst_154 = arith.constant 0.000000e+00 : f32
    %814 = vector.broadcast %cst_154 : f32 to vector<16x16xf32>
    %815 = arith.maximumf %813, %814 : vector<16x16xf32>
    %816 = arith.mulf %807, %815 : vector<16x16xf32>
    %817 = vector.broadcast %799 : vector<16x1xf32> to vector<16x16xf32>
    %818 = arith.mulf %817, %816 : vector<16x16xf32>
    %819 = arith.addf %796, %818 : vector<16x16xf32>
    %820 = vector.extract_strided_slice %10 {offsets = [0, 31], sizes = [16, 1], strides = [1, 1]} : vector<16x32xf32> to vector<16x1xf32>
    %821 = vector.extract_strided_slice %11 {offsets = [0, 31], sizes = [16, 1], strides = [1, 1]} : vector<16x32xf32> to vector<16x1xf32>
    %822 = vector.extract_strided_slice %652 {offsets = [0, 7], sizes = [16, 1], strides = [1, 1]} : vector<16x8xf32> to vector<16x1xf32>
    %823 = vector.broadcast %820 : vector<16x1xf32> to vector<16x16xf32>
    %824 = vector.broadcast %751 : vector<1x16xf32> to vector<16x16xf32>
    %825 = arith.subf %823, %824 : vector<16x16xf32>
    %826 = math.absf %825 : vector<16x16xf32>
    %cst_155 = arith.constant 1.000000e+00 : f32
    %827 = vector.broadcast %cst_155 : f32 to vector<16x16xf32>
    %828 = arith.subf %827, %826 : vector<16x16xf32>
    %cst_156 = arith.constant 0.000000e+00 : f32
    %829 = vector.broadcast %cst_156 : f32 to vector<16x16xf32>
    %830 = arith.maximumf %828, %829 : vector<16x16xf32>
    %831 = vector.broadcast %821 : vector<16x1xf32> to vector<16x16xf32>
    %832 = vector.broadcast %750 : vector<1x16xf32> to vector<16x16xf32>
    %833 = arith.subf %831, %832 : vector<16x16xf32>
    %834 = math.absf %833 : vector<16x16xf32>
    %cst_157 = arith.constant 1.000000e+00 : f32
    %835 = vector.broadcast %cst_157 : f32 to vector<16x16xf32>
    %836 = arith.subf %835, %834 : vector<16x16xf32>
    %cst_158 = arith.constant 0.000000e+00 : f32
    %837 = vector.broadcast %cst_158 : f32 to vector<16x16xf32>
    %838 = arith.maximumf %836, %837 : vector<16x16xf32>
    %839 = arith.mulf %830, %838 : vector<16x16xf32>
    %840 = vector.broadcast %822 : vector<16x1xf32> to vector<16x16xf32>
    %841 = arith.mulf %840, %839 : vector<16x16xf32>
    %842 = arith.addf %819, %841 : vector<16x16xf32>
    %843 = vector.extract_strided_slice %653 {offsets = [64, 0], sizes = [16, 32], strides = [1, 1]} : vector<80x32xf32> to vector<16x32xf32>
    %cst_159 = arith.constant dense<0.000000e+00> : vector<16x32xf32>
    %844 = tpu.matmul %842, %843, %cst_159 {dimension_numbers = #tpu.dot_dimension_numbers<[1], [0], [0], [1], [0, 0, 1, 1], [], []>} : vector<16x16xf32>, vector<16x32xf32>, vector<16x32xf32> -> vector<16x32xf32>
    %845 = arith.addf %749, %844 : vector<16x32xf32>
    %c0_160 = arith.constant 0 : index
    %c0_161 = arith.constant 0 : index
    %846 = vector.load %arg8[%c0_160, %c0_161] : memref<32x32xf32, #tpu.memory_space<vmem>>, vector<16x32xf32>
    tpu.vector_store %arg8[%c0_160, %c0_161], %845 {strides = array<i32>} : memref<32x32xf32, #tpu.memory_space<vmem>>, vector<16x32xf32>,
    %847 = vector.extract_strided_slice %2 {offsets = [16, 0], sizes = [16, 32], strides = [1, 1]} : vector<32x96xf32> to vector<16x32xf32>
    %848 = vector.extract_strided_slice %2 {offsets = [16, 32], sizes = [16, 32], strides = [1, 1]} : vector<32x96xf32> to vector<16x32xf32>
    %849 = vector.extract_strided_slice %2 {offsets = [16, 64], sizes = [16, 32], strides = [1, 1]} : vector<32x96xf32> to vector<16x32xf32>
    %850 = vector.extract_strided_slice %5 {offsets = [80, 0], sizes = [80, 128], strides = [1, 1]} : vector<160x128xf32> to vector<80x128xf32>
    %851 = vector.extract_strided_slice %849 {offsets = [0, 0], sizes = [16, 8], strides = [1, 1]} : vector<16x32xf32> to vector<16x8xf32>
    %cst_162 = arith.constant dense<0xFF800000> : vector<16xf32>
    %852 = vector.multi_reduction <maximumf>, %851, %cst_162 [1] : vector<16x8xf32> to vector<16xf32>
    %853 = vector.shape_cast %852 : vector<16xf32> to vector<16x1xf32>
    %854 = vector.broadcast %853 : vector<16x1xf32> to vector<16x8xf32>
    %855 = arith.subf %851, %854 : vector<16x8xf32>
    %856 = math.exp %855 : vector<16x8xf32>
    %cst_163 = arith.constant dense<0.000000e+00> : vector<16xf32>
    %857 = vector.multi_reduction <add>, %856, %cst_163 [1] : vector<16x8xf32> to vector<16xf32>
    %858 = vector.shape_cast %857 : vector<16xf32> to vector<16x1xf32>
    %859 = tpu.reciprocal %858 {approx = true} : vector<16x1xf32> -> vector<16x1xf32>
    %860 = arith.mulf %858, %859 : vector<16x1xf32>
    %cst_164 = arith.constant 2.000000e+00 : f32
    %861 = vector.broadcast %cst_164 : f32 to vector<16x1xf32>
    %862 = arith.subf %861, %860 : vector<16x1xf32>
    %863 = arith.mulf %859, %862 : vector<16x1xf32>
    %864 = vector.broadcast %863 : vector<16x1xf32> to vector<16x8xf32>
    %865 = arith.mulf %856, %864 : vector<16x8xf32>
    %866 = vector.extract_strided_slice %850 {offsets = [0, 0], sizes = [80, 32], strides = [1, 1]} : vector<80x128xf32> to vector<80x32xf32>
    %867 = vector.extract_strided_slice %6 {offsets = [0, 0], sizes = [1, 64], strides = [1, 1]} : vector<4x64xf32> to vector<1x64xf32>
    %868 = vector.extract_strided_slice %6 {offsets = [1, 0], sizes = [1, 64], strides = [1, 1]} : vector<4x64xf32> to vector<1x64xf32>
    %869 = vector.extract_strided_slice %847 {offsets = [0, 0], sizes = [16, 1], strides = [1, 1]} : vector<16x32xf32> to vector<16x1xf32>
    %870 = vector.extract_strided_slice %848 {offsets = [0, 0], sizes = [16, 1], strides = [1, 1]} : vector<16x32xf32> to vector<16x1xf32>
    %871 = vector.extract_strided_slice %865 {offsets = [0, 0], sizes = [16, 1], strides = [1, 1]} : vector<16x8xf32> to vector<16x1xf32>
    %872 = vector.broadcast %869 : vector<16x1xf32> to vector<16x64xf32>
    %873 = vector.broadcast %868 : vector<1x64xf32> to vector<16x64xf32>
    %874 = arith.subf %872, %873 : vector<16x64xf32>
    %875 = math.absf %874 : vector<16x64xf32>
    %cst_165 = arith.constant 1.000000e+00 : f32
    %876 = vector.broadcast %cst_165 : f32 to vector<16x64xf32>
    %877 = arith.subf %876, %875 : vector<16x64xf32>
    %cst_166 = arith.constant 0.000000e+00 : f32
    %878 = vector.broadcast %cst_166 : f32 to vector<16x64xf32>
    %879 = arith.maximumf %877, %878 : vector<16x64xf32>
    %880 = vector.broadcast %870 : vector<16x1xf32> to vector<16x64xf32>
    %881 = vector.broadcast %867 : vector<1x64xf32> to vector<16x64xf32>
    %882 = arith.subf %880, %881 : vector<16x64xf32>
    %883 = math.absf %882 : vector<16x64xf32>
    %cst_167 = arith.constant 1.000000e+00 : f32
    %884 = vector.broadcast %cst_167 : f32 to vector<16x64xf32>
    %885 = arith.subf %884, %883 : vector<16x64xf32>
    %cst_168 = arith.constant 0.000000e+00 : f32
    %886 = vector.broadcast %cst_168 : f32 to vector<16x64xf32>
    %887 = arith.maximumf %885, %886 : vector<16x64xf32>
    %888 = arith.mulf %879, %887 : vector<16x64xf32>
    %889 = vector.broadcast %871 : vector<16x1xf32> to vector<16x64xf32>
    %890 = arith.mulf %889, %888 : vector<16x64xf32>
    %891 = vector.extract_strided_slice %847 {offsets = [0, 1], sizes = [16, 1], strides = [1, 1]} : vector<16x32xf32> to vector<16x1xf32>
    %892 = vector.extract_strided_slice %848 {offsets = [0, 1], sizes = [16, 1], strides = [1, 1]} : vector<16x32xf32> to vector<16x1xf32>
    %893 = vector.extract_strided_slice %865 {offsets = [0, 1], sizes = [16, 1], strides = [1, 1]} : vector<16x8xf32> to vector<16x1xf32>
    %894 = vector.broadcast %891 : vector<16x1xf32> to vector<16x64xf32>
    %895 = vector.broadcast %868 : vector<1x64xf32> to vector<16x64xf32>
    %896 = arith.subf %894, %895 : vector<16x64xf32>
    %897 = math.absf %896 : vector<16x64xf32>
    %cst_169 = arith.constant 1.000000e+00 : f32
    %898 = vector.broadcast %cst_169 : f32 to vector<16x64xf32>
    %899 = arith.subf %898, %897 : vector<16x64xf32>
    %cst_170 = arith.constant 0.000000e+00 : f32
    %900 = vector.broadcast %cst_170 : f32 to vector<16x64xf32>
    %901 = arith.maximumf %899, %900 : vector<16x64xf32>
    %902 = vector.broadcast %892 : vector<16x1xf32> to vector<16x64xf32>
    %903 = vector.broadcast %867 : vector<1x64xf32> to vector<16x64xf32>
    %904 = arith.subf %902, %903 : vector<16x64xf32>
    %905 = math.absf %904 : vector<16x64xf32>
    %cst_171 = arith.constant 1.000000e+00 : f32
    %906 = vector.broadcast %cst_171 : f32 to vector<16x64xf32>
    %907 = arith.subf %906, %905 : vector<16x64xf32>
    %cst_172 = arith.constant 0.000000e+00 : f32
    %908 = vector.broadcast %cst_172 : f32 to vector<16x64xf32>
    %909 = arith.maximumf %907, %908 : vector<16x64xf32>
    %910 = arith.mulf %901, %909 : vector<16x64xf32>
    %911 = vector.broadcast %893 : vector<16x1xf32> to vector<16x64xf32>
    %912 = arith.mulf %911, %910 : vector<16x64xf32>
    %913 = arith.addf %890, %912 : vector<16x64xf32>
    %914 = vector.extract_strided_slice %847 {offsets = [0, 2], sizes = [16, 1], strides = [1, 1]} : vector<16x32xf32> to vector<16x1xf32>
    %915 = vector.extract_strided_slice %848 {offsets = [0, 2], sizes = [16, 1], strides = [1, 1]} : vector<16x32xf32> to vector<16x1xf32>
    %916 = vector.extract_strided_slice %865 {offsets = [0, 2], sizes = [16, 1], strides = [1, 1]} : vector<16x8xf32> to vector<16x1xf32>
    %917 = vector.broadcast %914 : vector<16x1xf32> to vector<16x64xf32>
    %918 = vector.broadcast %868 : vector<1x64xf32> to vector<16x64xf32>
    %919 = arith.subf %917, %918 : vector<16x64xf32>
    %920 = math.absf %919 : vector<16x64xf32>
    %cst_173 = arith.constant 1.000000e+00 : f32
    %921 = vector.broadcast %cst_173 : f32 to vector<16x64xf32>
    %922 = arith.subf %921, %920 : vector<16x64xf32>
    %cst_174 = arith.constant 0.000000e+00 : f32
    %923 = vector.broadcast %cst_174 : f32 to vector<16x64xf32>
    %924 = arith.maximumf %922, %923 : vector<16x64xf32>
    %925 = vector.broadcast %915 : vector<16x1xf32> to vector<16x64xf32>
    %926 = vector.broadcast %867 : vector<1x64xf32> to vector<16x64xf32>
    %927 = arith.subf %925, %926 : vector<16x64xf32>
    %928 = math.absf %927 : vector<16x64xf32>
    %cst_175 = arith.constant 1.000000e+00 : f32
    %929 = vector.broadcast %cst_175 : f32 to vector<16x64xf32>
    %930 = arith.subf %929, %928 : vector<16x64xf32>
    %cst_176 = arith.constant 0.000000e+00 : f32
    %931 = vector.broadcast %cst_176 : f32 to vector<16x64xf32>
    %932 = arith.maximumf %930, %931 : vector<16x64xf32>
    %933 = arith.mulf %924, %932 : vector<16x64xf32>
    %934 = vector.broadcast %916 : vector<16x1xf32> to vector<16x64xf32>
    %935 = arith.mulf %934, %933 : vector<16x64xf32>
    %936 = arith.addf %913, %935 : vector<16x64xf32>
    %937 = vector.extract_strided_slice %847 {offsets = [0, 3], sizes = [16, 1], strides = [1, 1]} : vector<16x32xf32> to vector<16x1xf32>
    %938 = vector.extract_strided_slice %848 {offsets = [0, 3], sizes = [16, 1], strides = [1, 1]} : vector<16x32xf32> to vector<16x1xf32>
    %939 = vector.extract_strided_slice %865 {offsets = [0, 3], sizes = [16, 1], strides = [1, 1]} : vector<16x8xf32> to vector<16x1xf32>
    %940 = vector.broadcast %937 : vector<16x1xf32> to vector<16x64xf32>
    %941 = vector.broadcast %868 : vector<1x64xf32> to vector<16x64xf32>
    %942 = arith.subf %940, %941 : vector<16x64xf32>
    %943 = math.absf %942 : vector<16x64xf32>
    %cst_177 = arith.constant 1.000000e+00 : f32
    %944 = vector.broadcast %cst_177 : f32 to vector<16x64xf32>
    %945 = arith.subf %944, %943 : vector<16x64xf32>
    %cst_178 = arith.constant 0.000000e+00 : f32
    %946 = vector.broadcast %cst_178 : f32 to vector<16x64xf32>
    %947 = arith.maximumf %945, %946 : vector<16x64xf32>
    %948 = vector.broadcast %938 : vector<16x1xf32> to vector<16x64xf32>
    %949 = vector.broadcast %867 : vector<1x64xf32> to vector<16x64xf32>
    %950 = arith.subf %948, %949 : vector<16x64xf32>
    %951 = math.absf %950 : vector<16x64xf32>
    %cst_179 = arith.constant 1.000000e+00 : f32
    %952 = vector.broadcast %cst_179 : f32 to vector<16x64xf32>
    %953 = arith.subf %952, %951 : vector<16x64xf32>
    %cst_180 = arith.constant 0.000000e+00 : f32
    %954 = vector.broadcast %cst_180 : f32 to vector<16x64xf32>
    %955 = arith.maximumf %953, %954 : vector<16x64xf32>
    %956 = arith.mulf %947, %955 : vector<16x64xf32>
    %957 = vector.broadcast %939 : vector<16x1xf32> to vector<16x64xf32>
    %958 = arith.mulf %957, %956 : vector<16x64xf32>
    %959 = arith.addf %936, %958 : vector<16x64xf32>
    %960 = vector.extract_strided_slice %866 {offsets = [0, 0], sizes = [64, 32], strides = [1, 1]} : vector<80x32xf32> to vector<64x32xf32>
    %cst_181 = arith.constant dense<0.000000e+00> : vector<16x32xf32>
    %961 = tpu.matmul %959, %960, %cst_181 {dimension_numbers = #tpu.dot_dimension_numbers<[1], [0], [0], [1], [0, 0, 1, 1], [], []>} : vector<16x64xf32>, vector<64x32xf32>, vector<16x32xf32> -> vector<16x32xf32>
    %962 = arith.addf %9, %961 : vector<16x32xf32>
    %963 = vector.extract_strided_slice %6 {offsets = [2, 0], sizes = [1, 16], strides = [1, 1]} : vector<4x64xf32> to vector<1x16xf32>
    %964 = vector.extract_strided_slice %6 {offsets = [3, 0], sizes = [1, 16], strides = [1, 1]} : vector<4x64xf32> to vector<1x16xf32>
    %965 = vector.extract_strided_slice %847 {offsets = [0, 4], sizes = [16, 1], strides = [1, 1]} : vector<16x32xf32> to vector<16x1xf32>
    %966 = vector.extract_strided_slice %848 {offsets = [0, 4], sizes = [16, 1], strides = [1, 1]} : vector<16x32xf32> to vector<16x1xf32>
    %967 = vector.extract_strided_slice %865 {offsets = [0, 4], sizes = [16, 1], strides = [1, 1]} : vector<16x8xf32> to vector<16x1xf32>
    %968 = vector.broadcast %965 : vector<16x1xf32> to vector<16x16xf32>
    %969 = vector.broadcast %964 : vector<1x16xf32> to vector<16x16xf32>
    %970 = arith.subf %968, %969 : vector<16x16xf32>
    %971 = math.absf %970 : vector<16x16xf32>
    %cst_182 = arith.constant 1.000000e+00 : f32
    %972 = vector.broadcast %cst_182 : f32 to vector<16x16xf32>
    %973 = arith.subf %972, %971 : vector<16x16xf32>
    %cst_183 = arith.constant 0.000000e+00 : f32
    %974 = vector.broadcast %cst_183 : f32 to vector<16x16xf32>
    %975 = arith.maximumf %973, %974 : vector<16x16xf32>
    %976 = vector.broadcast %966 : vector<16x1xf32> to vector<16x16xf32>
    %977 = vector.broadcast %963 : vector<1x16xf32> to vector<16x16xf32>
    %978 = arith.subf %976, %977 : vector<16x16xf32>
    %979 = math.absf %978 : vector<16x16xf32>
    %cst_184 = arith.constant 1.000000e+00 : f32
    %980 = vector.broadcast %cst_184 : f32 to vector<16x16xf32>
    %981 = arith.subf %980, %979 : vector<16x16xf32>
    %cst_185 = arith.constant 0.000000e+00 : f32
    %982 = vector.broadcast %cst_185 : f32 to vector<16x16xf32>
    %983 = arith.maximumf %981, %982 : vector<16x16xf32>
    %984 = arith.mulf %975, %983 : vector<16x16xf32>
    %985 = vector.broadcast %967 : vector<16x1xf32> to vector<16x16xf32>
    %986 = arith.mulf %985, %984 : vector<16x16xf32>
    %987 = vector.extract_strided_slice %847 {offsets = [0, 5], sizes = [16, 1], strides = [1, 1]} : vector<16x32xf32> to vector<16x1xf32>
    %988 = vector.extract_strided_slice %848 {offsets = [0, 5], sizes = [16, 1], strides = [1, 1]} : vector<16x32xf32> to vector<16x1xf32>
    %989 = vector.extract_strided_slice %865 {offsets = [0, 5], sizes = [16, 1], strides = [1, 1]} : vector<16x8xf32> to vector<16x1xf32>
    %990 = vector.broadcast %987 : vector<16x1xf32> to vector<16x16xf32>
    %991 = vector.broadcast %964 : vector<1x16xf32> to vector<16x16xf32>
    %992 = arith.subf %990, %991 : vector<16x16xf32>
    %993 = math.absf %992 : vector<16x16xf32>
    %cst_186 = arith.constant 1.000000e+00 : f32
    %994 = vector.broadcast %cst_186 : f32 to vector<16x16xf32>
    %995 = arith.subf %994, %993 : vector<16x16xf32>
    %cst_187 = arith.constant 0.000000e+00 : f32
    %996 = vector.broadcast %cst_187 : f32 to vector<16x16xf32>
    %997 = arith.maximumf %995, %996 : vector<16x16xf32>
    %998 = vector.broadcast %988 : vector<16x1xf32> to vector<16x16xf32>
    %999 = vector.broadcast %963 : vector<1x16xf32> to vector<16x16xf32>
    %1000 = arith.subf %998, %999 : vector<16x16xf32>
    %1001 = math.absf %1000 : vector<16x16xf32>
    %cst_188 = arith.constant 1.000000e+00 : f32
    %1002 = vector.broadcast %cst_188 : f32 to vector<16x16xf32>
    %1003 = arith.subf %1002, %1001 : vector<16x16xf32>
    %cst_189 = arith.constant 0.000000e+00 : f32
    %1004 = vector.broadcast %cst_189 : f32 to vector<16x16xf32>
    %1005 = arith.maximumf %1003, %1004 : vector<16x16xf32>
    %1006 = arith.mulf %997, %1005 : vector<16x16xf32>
    %1007 = vector.broadcast %989 : vector<16x1xf32> to vector<16x16xf32>
    %1008 = arith.mulf %1007, %1006 : vector<16x16xf32>
    %1009 = arith.addf %986, %1008 : vector<16x16xf32>
    %1010 = vector.extract_strided_slice %847 {offsets = [0, 6], sizes = [16, 1], strides = [1, 1]} : vector<16x32xf32> to vector<16x1xf32>
    %1011 = vector.extract_strided_slice %848 {offsets = [0, 6], sizes = [16, 1], strides = [1, 1]} : vector<16x32xf32> to vector<16x1xf32>
    %1012 = vector.extract_strided_slice %865 {offsets = [0, 6], sizes = [16, 1], strides = [1, 1]} : vector<16x8xf32> to vector<16x1xf32>
    %1013 = vector.broadcast %1010 : vector<16x1xf32> to vector<16x16xf32>
    %1014 = vector.broadcast %964 : vector<1x16xf32> to vector<16x16xf32>
    %1015 = arith.subf %1013, %1014 : vector<16x16xf32>
    %1016 = math.absf %1015 : vector<16x16xf32>
    %cst_190 = arith.constant 1.000000e+00 : f32
    %1017 = vector.broadcast %cst_190 : f32 to vector<16x16xf32>
    %1018 = arith.subf %1017, %1016 : vector<16x16xf32>
    %cst_191 = arith.constant 0.000000e+00 : f32
    %1019 = vector.broadcast %cst_191 : f32 to vector<16x16xf32>
    %1020 = arith.maximumf %1018, %1019 : vector<16x16xf32>
    %1021 = vector.broadcast %1011 : vector<16x1xf32> to vector<16x16xf32>
    %1022 = vector.broadcast %963 : vector<1x16xf32> to vector<16x16xf32>
    %1023 = arith.subf %1021, %1022 : vector<16x16xf32>
    %1024 = math.absf %1023 : vector<16x16xf32>
    %cst_192 = arith.constant 1.000000e+00 : f32
    %1025 = vector.broadcast %cst_192 : f32 to vector<16x16xf32>
    %1026 = arith.subf %1025, %1024 : vector<16x16xf32>
    %cst_193 = arith.constant 0.000000e+00 : f32
    %1027 = vector.broadcast %cst_193 : f32 to vector<16x16xf32>
    %1028 = arith.maximumf %1026, %1027 : vector<16x16xf32>
    %1029 = arith.mulf %1020, %1028 : vector<16x16xf32>
    %1030 = vector.broadcast %1012 : vector<16x1xf32> to vector<16x16xf32>
    %1031 = arith.mulf %1030, %1029 : vector<16x16xf32>
    %1032 = arith.addf %1009, %1031 : vector<16x16xf32>
    %1033 = vector.extract_strided_slice %847 {offsets = [0, 7], sizes = [16, 1], strides = [1, 1]} : vector<16x32xf32> to vector<16x1xf32>
    %1034 = vector.extract_strided_slice %848 {offsets = [0, 7], sizes = [16, 1], strides = [1, 1]} : vector<16x32xf32> to vector<16x1xf32>
    %1035 = vector.extract_strided_slice %865 {offsets = [0, 7], sizes = [16, 1], strides = [1, 1]} : vector<16x8xf32> to vector<16x1xf32>
    %1036 = vector.broadcast %1033 : vector<16x1xf32> to vector<16x16xf32>
    %1037 = vector.broadcast %964 : vector<1x16xf32> to vector<16x16xf32>
    %1038 = arith.subf %1036, %1037 : vector<16x16xf32>
    %1039 = math.absf %1038 : vector<16x16xf32>
    %cst_194 = arith.constant 1.000000e+00 : f32
    %1040 = vector.broadcast %cst_194 : f32 to vector<16x16xf32>
    %1041 = arith.subf %1040, %1039 : vector<16x16xf32>
    %cst_195 = arith.constant 0.000000e+00 : f32
    %1042 = vector.broadcast %cst_195 : f32 to vector<16x16xf32>
    %1043 = arith.maximumf %1041, %1042 : vector<16x16xf32>
    %1044 = vector.broadcast %1034 : vector<16x1xf32> to vector<16x16xf32>
    %1045 = vector.broadcast %963 : vector<1x16xf32> to vector<16x16xf32>
    %1046 = arith.subf %1044, %1045 : vector<16x16xf32>
    %1047 = math.absf %1046 : vector<16x16xf32>
    %cst_196 = arith.constant 1.000000e+00 : f32
    %1048 = vector.broadcast %cst_196 : f32 to vector<16x16xf32>
    %1049 = arith.subf %1048, %1047 : vector<16x16xf32>
    %cst_197 = arith.constant 0.000000e+00 : f32
    %1050 = vector.broadcast %cst_197 : f32 to vector<16x16xf32>
    %1051 = arith.maximumf %1049, %1050 : vector<16x16xf32>
    %1052 = arith.mulf %1043, %1051 : vector<16x16xf32>
    %1053 = vector.broadcast %1035 : vector<16x1xf32> to vector<16x16xf32>
    %1054 = arith.mulf %1053, %1052 : vector<16x16xf32>
    %1055 = arith.addf %1032, %1054 : vector<16x16xf32>
    %1056 = vector.extract_strided_slice %866 {offsets = [64, 0], sizes = [16, 32], strides = [1, 1]} : vector<80x32xf32> to vector<16x32xf32>
    %cst_198 = arith.constant dense<0.000000e+00> : vector<16x32xf32>
    %1057 = tpu.matmul %1055, %1056, %cst_198 {dimension_numbers = #tpu.dot_dimension_numbers<[1], [0], [0], [1], [0, 0, 1, 1], [], []>} : vector<16x16xf32>, vector<16x32xf32>, vector<16x32xf32> -> vector<16x32xf32>
    %1058 = arith.addf %962, %1057 : vector<16x32xf32>
    %1059 = vector.extract_strided_slice %849 {offsets = [0, 8], sizes = [16, 8], strides = [1, 1]} : vector<16x32xf32> to vector<16x8xf32>
    %cst_199 = arith.constant dense<0xFF800000> : vector<16xf32>
    %1060 = vector.multi_reduction <maximumf>, %1059, %cst_199 [1] : vector<16x8xf32> to vector<16xf32>
    %1061 = vector.shape_cast %1060 : vector<16xf32> to vector<16x1xf32>
    %1062 = vector.broadcast %1061 : vector<16x1xf32> to vector<16x8xf32>
    %1063 = arith.subf %1059, %1062 : vector<16x8xf32>
    %1064 = math.exp %1063 : vector<16x8xf32>
    %cst_200 = arith.constant dense<0.000000e+00> : vector<16xf32>
    %1065 = vector.multi_reduction <add>, %1064, %cst_200 [1] : vector<16x8xf32> to vector<16xf32>
    %1066 = vector.shape_cast %1065 : vector<16xf32> to vector<16x1xf32>
    %1067 = tpu.reciprocal %1066 {approx = true} : vector<16x1xf32> -> vector<16x1xf32>
    %1068 = arith.mulf %1066, %1067 : vector<16x1xf32>
    %cst_201 = arith.constant 2.000000e+00 : f32
    %1069 = vector.broadcast %cst_201 : f32 to vector<16x1xf32>
    %1070 = arith.subf %1069, %1068 : vector<16x1xf32>
    %1071 = arith.mulf %1067, %1070 : vector<16x1xf32>
    %1072 = vector.broadcast %1071 : vector<16x1xf32> to vector<16x8xf32>
    %1073 = arith.mulf %1064, %1072 : vector<16x8xf32>
    %1074 = vector.extract_strided_slice %850 {offsets = [0, 32], sizes = [80, 32], strides = [1, 1]} : vector<80x128xf32> to vector<80x32xf32>
    %1075 = vector.extract_strided_slice %6 {offsets = [0, 0], sizes = [1, 64], strides = [1, 1]} : vector<4x64xf32> to vector<1x64xf32>
    %1076 = vector.extract_strided_slice %6 {offsets = [1, 0], sizes = [1, 64], strides = [1, 1]} : vector<4x64xf32> to vector<1x64xf32>
    %1077 = vector.extract_strided_slice %847 {offsets = [0, 8], sizes = [16, 1], strides = [1, 1]} : vector<16x32xf32> to vector<16x1xf32>
    %1078 = vector.extract_strided_slice %848 {offsets = [0, 8], sizes = [16, 1], strides = [1, 1]} : vector<16x32xf32> to vector<16x1xf32>
    %1079 = vector.extract_strided_slice %1073 {offsets = [0, 0], sizes = [16, 1], strides = [1, 1]} : vector<16x8xf32> to vector<16x1xf32>
    %1080 = vector.broadcast %1077 : vector<16x1xf32> to vector<16x64xf32>
    %1081 = vector.broadcast %1076 : vector<1x64xf32> to vector<16x64xf32>
    %1082 = arith.subf %1080, %1081 : vector<16x64xf32>
    %1083 = math.absf %1082 : vector<16x64xf32>
    %cst_202 = arith.constant 1.000000e+00 : f32
    %1084 = vector.broadcast %cst_202 : f32 to vector<16x64xf32>
    %1085 = arith.subf %1084, %1083 : vector<16x64xf32>
    %cst_203 = arith.constant 0.000000e+00 : f32
    %1086 = vector.broadcast %cst_203 : f32 to vector<16x64xf32>
    %1087 = arith.maximumf %1085, %1086 : vector<16x64xf32>
    %1088 = vector.broadcast %1078 : vector<16x1xf32> to vector<16x64xf32>
    %1089 = vector.broadcast %1075 : vector<1x64xf32> to vector<16x64xf32>
    %1090 = arith.subf %1088, %1089 : vector<16x64xf32>
    %1091 = math.absf %1090 : vector<16x64xf32>
    %cst_204 = arith.constant 1.000000e+00 : f32
    %1092 = vector.broadcast %cst_204 : f32 to vector<16x64xf32>
    %1093 = arith.subf %1092, %1091 : vector<16x64xf32>
    %cst_205 = arith.constant 0.000000e+00 : f32
    %1094 = vector.broadcast %cst_205 : f32 to vector<16x64xf32>
    %1095 = arith.maximumf %1093, %1094 : vector<16x64xf32>
    %1096 = arith.mulf %1087, %1095 : vector<16x64xf32>
    %1097 = vector.broadcast %1079 : vector<16x1xf32> to vector<16x64xf32>
    %1098 = arith.mulf %1097, %1096 : vector<16x64xf32>
    %1099 = vector.extract_strided_slice %847 {offsets = [0, 9], sizes = [16, 1], strides = [1, 1]} : vector<16x32xf32> to vector<16x1xf32>
    %1100 = vector.extract_strided_slice %848 {offsets = [0, 9], sizes = [16, 1], strides = [1, 1]} : vector<16x32xf32> to vector<16x1xf32>
    %1101 = vector.extract_strided_slice %1073 {offsets = [0, 1], sizes = [16, 1], strides = [1, 1]} : vector<16x8xf32> to vector<16x1xf32>
    %1102 = vector.broadcast %1099 : vector<16x1xf32> to vector<16x64xf32>
    %1103 = vector.broadcast %1076 : vector<1x64xf32> to vector<16x64xf32>
    %1104 = arith.subf %1102, %1103 : vector<16x64xf32>
    %1105 = math.absf %1104 : vector<16x64xf32>
    %cst_206 = arith.constant 1.000000e+00 : f32
    %1106 = vector.broadcast %cst_206 : f32 to vector<16x64xf32>
    %1107 = arith.subf %1106, %1105 : vector<16x64xf32>
    %cst_207 = arith.constant 0.000000e+00 : f32
    %1108 = vector.broadcast %cst_207 : f32 to vector<16x64xf32>
    %1109 = arith.maximumf %1107, %1108 : vector<16x64xf32>
    %1110 = vector.broadcast %1100 : vector<16x1xf32> to vector<16x64xf32>
    %1111 = vector.broadcast %1075 : vector<1x64xf32> to vector<16x64xf32>
    %1112 = arith.subf %1110, %1111 : vector<16x64xf32>
    %1113 = math.absf %1112 : vector<16x64xf32>
    %cst_208 = arith.constant 1.000000e+00 : f32
    %1114 = vector.broadcast %cst_208 : f32 to vector<16x64xf32>
    %1115 = arith.subf %1114, %1113 : vector<16x64xf32>
    %cst_209 = arith.constant 0.000000e+00 : f32
    %1116 = vector.broadcast %cst_209 : f32 to vector<16x64xf32>
    %1117 = arith.maximumf %1115, %1116 : vector<16x64xf32>
    %1118 = arith.mulf %1109, %1117 : vector<16x64xf32>
    %1119 = vector.broadcast %1101 : vector<16x1xf32> to vector<16x64xf32>
    %1120 = arith.mulf %1119, %1118 : vector<16x64xf32>
    %1121 = arith.addf %1098, %1120 : vector<16x64xf32>
    %1122 = vector.extract_strided_slice %847 {offsets = [0, 10], sizes = [16, 1], strides = [1, 1]} : vector<16x32xf32> to vector<16x1xf32>
    %1123 = vector.extract_strided_slice %848 {offsets = [0, 10], sizes = [16, 1], strides = [1, 1]} : vector<16x32xf32> to vector<16x1xf32>
    %1124 = vector.extract_strided_slice %1073 {offsets = [0, 2], sizes = [16, 1], strides = [1, 1]} : vector<16x8xf32> to vector<16x1xf32>
    %1125 = vector.broadcast %1122 : vector<16x1xf32> to vector<16x64xf32>
    %1126 = vector.broadcast %1076 : vector<1x64xf32> to vector<16x64xf32>
    %1127 = arith.subf %1125, %1126 : vector<16x64xf32>
    %1128 = math.absf %1127 : vector<16x64xf32>
    %cst_210 = arith.constant 1.000000e+00 : f32
    %1129 = vector.broadcast %cst_210 : f32 to vector<16x64xf32>
    %1130 = arith.subf %1129, %1128 : vector<16x64xf32>
    %cst_211 = arith.constant 0.000000e+00 : f32
    %1131 = vector.broadcast %cst_211 : f32 to vector<16x64xf32>
    %1132 = arith.maximumf %1130, %1131 : vector<16x64xf32>
    %1133 = vector.broadcast %1123 : vector<16x1xf32> to vector<16x64xf32>
    %1134 = vector.broadcast %1075 : vector<1x64xf32> to vector<16x64xf32>
    %1135 = arith.subf %1133, %1134 : vector<16x64xf32>
    %1136 = math.absf %1135 : vector<16x64xf32>
    %cst_212 = arith.constant 1.000000e+00 : f32
    %1137 = vector.broadcast %cst_212 : f32 to vector<16x64xf32>
    %1138 = arith.subf %1137, %1136 : vector<16x64xf32>
    %cst_213 = arith.constant 0.000000e+00 : f32
    %1139 = vector.broadcast %cst_213 : f32 to vector<16x64xf32>
    %1140 = arith.maximumf %1138, %1139 : vector<16x64xf32>
    %1141 = arith.mulf %1132, %1140 : vector<16x64xf32>
    %1142 = vector.broadcast %1124 : vector<16x1xf32> to vector<16x64xf32>
    %1143 = arith.mulf %1142, %1141 : vector<16x64xf32>
    %1144 = arith.addf %1121, %1143 : vector<16x64xf32>
    %1145 = vector.extract_strided_slice %847 {offsets = [0, 11], sizes = [16, 1], strides = [1, 1]} : vector<16x32xf32> to vector<16x1xf32>
    %1146 = vector.extract_strided_slice %848 {offsets = [0, 11], sizes = [16, 1], strides = [1, 1]} : vector<16x32xf32> to vector<16x1xf32>
    %1147 = vector.extract_strided_slice %1073 {offsets = [0, 3], sizes = [16, 1], strides = [1, 1]} : vector<16x8xf32> to vector<16x1xf32>
    %1148 = vector.broadcast %1145 : vector<16x1xf32> to vector<16x64xf32>
    %1149 = vector.broadcast %1076 : vector<1x64xf32> to vector<16x64xf32>
    %1150 = arith.subf %1148, %1149 : vector<16x64xf32>
    %1151 = math.absf %1150 : vector<16x64xf32>
    %cst_214 = arith.constant 1.000000e+00 : f32
    %1152 = vector.broadcast %cst_214 : f32 to vector<16x64xf32>
    %1153 = arith.subf %1152, %1151 : vector<16x64xf32>
    %cst_215 = arith.constant 0.000000e+00 : f32
    %1154 = vector.broadcast %cst_215 : f32 to vector<16x64xf32>
    %1155 = arith.maximumf %1153, %1154 : vector<16x64xf32>
    %1156 = vector.broadcast %1146 : vector<16x1xf32> to vector<16x64xf32>
    %1157 = vector.broadcast %1075 : vector<1x64xf32> to vector<16x64xf32>
    %1158 = arith.subf %1156, %1157 : vector<16x64xf32>
    %1159 = math.absf %1158 : vector<16x64xf32>
    %cst_216 = arith.constant 1.000000e+00 : f32
    %1160 = vector.broadcast %cst_216 : f32 to vector<16x64xf32>
    %1161 = arith.subf %1160, %1159 : vector<16x64xf32>
    %cst_217 = arith.constant 0.000000e+00 : f32
    %1162 = vector.broadcast %cst_217 : f32 to vector<16x64xf32>
    %1163 = arith.maximumf %1161, %1162 : vector<16x64xf32>
    %1164 = arith.mulf %1155, %1163 : vector<16x64xf32>
    %1165 = vector.broadcast %1147 : vector<16x1xf32> to vector<16x64xf32>
    %1166 = arith.mulf %1165, %1164 : vector<16x64xf32>
    %1167 = arith.addf %1144, %1166 : vector<16x64xf32>
    %1168 = vector.extract_strided_slice %1074 {offsets = [0, 0], sizes = [64, 32], strides = [1, 1]} : vector<80x32xf32> to vector<64x32xf32>
    %cst_218 = arith.constant dense<0.000000e+00> : vector<16x32xf32>
    %1169 = tpu.matmul %1167, %1168, %cst_218 {dimension_numbers = #tpu.dot_dimension_numbers<[1], [0], [0], [1], [0, 0, 1, 1], [], []>} : vector<16x64xf32>, vector<64x32xf32>, vector<16x32xf32> -> vector<16x32xf32>
    %1170 = arith.addf %1058, %1169 : vector<16x32xf32>
    %1171 = vector.extract_strided_slice %6 {offsets = [2, 0], sizes = [1, 16], strides = [1, 1]} : vector<4x64xf32> to vector<1x16xf32>
    %1172 = vector.extract_strided_slice %6 {offsets = [3, 0], sizes = [1, 16], strides = [1, 1]} : vector<4x64xf32> to vector<1x16xf32>
    %1173 = vector.extract_strided_slice %847 {offsets = [0, 12], sizes = [16, 1], strides = [1, 1]} : vector<16x32xf32> to vector<16x1xf32>
    %1174 = vector.extract_strided_slice %848 {offsets = [0, 12], sizes = [16, 1], strides = [1, 1]} : vector<16x32xf32> to vector<16x1xf32>
    %1175 = vector.extract_strided_slice %1073 {offsets = [0, 4], sizes = [16, 1], strides = [1, 1]} : vector<16x8xf32> to vector<16x1xf32>
    %1176 = vector.broadcast %1173 : vector<16x1xf32> to vector<16x16xf32>
    %1177 = vector.broadcast %1172 : vector<1x16xf32> to vector<16x16xf32>
    %1178 = arith.subf %1176, %1177 : vector<16x16xf32>
    %1179 = math.absf %1178 : vector<16x16xf32>
    %cst_219 = arith.constant 1.000000e+00 : f32
    %1180 = vector.broadcast %cst_219 : f32 to vector<16x16xf32>
    %1181 = arith.subf %1180, %1179 : vector<16x16xf32>
    %cst_220 = arith.constant 0.000000e+00 : f32
    %1182 = vector.broadcast %cst_220 : f32 to vector<16x16xf32>
    %1183 = arith.maximumf %1181, %1182 : vector<16x16xf32>
    %1184 = vector.broadcast %1174 : vector<16x1xf32> to vector<16x16xf32>
    %1185 = vector.broadcast %1171 : vector<1x16xf32> to vector<16x16xf32>
    %1186 = arith.subf %1184, %1185 : vector<16x16xf32>
    %1187 = math.absf %1186 : vector<16x16xf32>
    %cst_221 = arith.constant 1.000000e+00 : f32
    %1188 = vector.broadcast %cst_221 : f32 to vector<16x16xf32>
    %1189 = arith.subf %1188, %1187 : vector<16x16xf32>
    %cst_222 = arith.constant 0.000000e+00 : f32
    %1190 = vector.broadcast %cst_222 : f32 to vector<16x16xf32>
    %1191 = arith.maximumf %1189, %1190 : vector<16x16xf32>
    %1192 = arith.mulf %1183, %1191 : vector<16x16xf32>
    %1193 = vector.broadcast %1175 : vector<16x1xf32> to vector<16x16xf32>
    %1194 = arith.mulf %1193, %1192 : vector<16x16xf32>
    %1195 = vector.extract_strided_slice %847 {offsets = [0, 13], sizes = [16, 1], strides = [1, 1]} : vector<16x32xf32> to vector<16x1xf32>
    %1196 = vector.extract_strided_slice %848 {offsets = [0, 13], sizes = [16, 1], strides = [1, 1]} : vector<16x32xf32> to vector<16x1xf32>
    %1197 = vector.extract_strided_slice %1073 {offsets = [0, 5], sizes = [16, 1], strides = [1, 1]} : vector<16x8xf32> to vector<16x1xf32>
    %1198 = vector.broadcast %1195 : vector<16x1xf32> to vector<16x16xf32>
    %1199 = vector.broadcast %1172 : vector<1x16xf32> to vector<16x16xf32>
    %1200 = arith.subf %1198, %1199 : vector<16x16xf32>
    %1201 = math.absf %1200 : vector<16x16xf32>
    %cst_223 = arith.constant 1.000000e+00 : f32
    %1202 = vector.broadcast %cst_223 : f32 to vector<16x16xf32>
    %1203 = arith.subf %1202, %1201 : vector<16x16xf32>
    %cst_224 = arith.constant 0.000000e+00 : f32
    %1204 = vector.broadcast %cst_224 : f32 to vector<16x16xf32>
    %1205 = arith.maximumf %1203, %1204 : vector<16x16xf32>
    %1206 = vector.broadcast %1196 : vector<16x1xf32> to vector<16x16xf32>
    %1207 = vector.broadcast %1171 : vector<1x16xf32> to vector<16x16xf32>
    %1208 = arith.subf %1206, %1207 : vector<16x16xf32>
    %1209 = math.absf %1208 : vector<16x16xf32>
    %cst_225 = arith.constant 1.000000e+00 : f32
    %1210 = vector.broadcast %cst_225 : f32 to vector<16x16xf32>
    %1211 = arith.subf %1210, %1209 : vector<16x16xf32>
    %cst_226 = arith.constant 0.000000e+00 : f32
    %1212 = vector.broadcast %cst_226 : f32 to vector<16x16xf32>
    %1213 = arith.maximumf %1211, %1212 : vector<16x16xf32>
    %1214 = arith.mulf %1205, %1213 : vector<16x16xf32>
    %1215 = vector.broadcast %1197 : vector<16x1xf32> to vector<16x16xf32>
    %1216 = arith.mulf %1215, %1214 : vector<16x16xf32>
    %1217 = arith.addf %1194, %1216 : vector<16x16xf32>
    %1218 = vector.extract_strided_slice %847 {offsets = [0, 14], sizes = [16, 1], strides = [1, 1]} : vector<16x32xf32> to vector<16x1xf32>
    %1219 = vector.extract_strided_slice %848 {offsets = [0, 14], sizes = [16, 1], strides = [1, 1]} : vector<16x32xf32> to vector<16x1xf32>
    %1220 = vector.extract_strided_slice %1073 {offsets = [0, 6], sizes = [16, 1], strides = [1, 1]} : vector<16x8xf32> to vector<16x1xf32>
    %1221 = vector.broadcast %1218 : vector<16x1xf32> to vector<16x16xf32>
    %1222 = vector.broadcast %1172 : vector<1x16xf32> to vector<16x16xf32>
    %1223 = arith.subf %1221, %1222 : vector<16x16xf32>
    %1224 = math.absf %1223 : vector<16x16xf32>
    %cst_227 = arith.constant 1.000000e+00 : f32
    %1225 = vector.broadcast %cst_227 : f32 to vector<16x16xf32>
    %1226 = arith.subf %1225, %1224 : vector<16x16xf32>
    %cst_228 = arith.constant 0.000000e+00 : f32
    %1227 = vector.broadcast %cst_228 : f32 to vector<16x16xf32>
    %1228 = arith.maximumf %1226, %1227 : vector<16x16xf32>
    %1229 = vector.broadcast %1219 : vector<16x1xf32> to vector<16x16xf32>
    %1230 = vector.broadcast %1171 : vector<1x16xf32> to vector<16x16xf32>
    %1231 = arith.subf %1229, %1230 : vector<16x16xf32>
    %1232 = math.absf %1231 : vector<16x16xf32>
    %cst_229 = arith.constant 1.000000e+00 : f32
    %1233 = vector.broadcast %cst_229 : f32 to vector<16x16xf32>
    %1234 = arith.subf %1233, %1232 : vector<16x16xf32>
    %cst_230 = arith.constant 0.000000e+00 : f32
    %1235 = vector.broadcast %cst_230 : f32 to vector<16x16xf32>
    %1236 = arith.maximumf %1234, %1235 : vector<16x16xf32>
    %1237 = arith.mulf %1228, %1236 : vector<16x16xf32>
    %1238 = vector.broadcast %1220 : vector<16x1xf32> to vector<16x16xf32>
    %1239 = arith.mulf %1238, %1237 : vector<16x16xf32>
    %1240 = arith.addf %1217, %1239 : vector<16x16xf32>
    %1241 = vector.extract_strided_slice %847 {offsets = [0, 15], sizes = [16, 1], strides = [1, 1]} : vector<16x32xf32> to vector<16x1xf32>
    %1242 = vector.extract_strided_slice %848 {offsets = [0, 15], sizes = [16, 1], strides = [1, 1]} : vector<16x32xf32> to vector<16x1xf32>
    %1243 = vector.extract_strided_slice %1073 {offsets = [0, 7], sizes = [16, 1], strides = [1, 1]} : vector<16x8xf32> to vector<16x1xf32>
    %1244 = vector.broadcast %1241 : vector<16x1xf32> to vector<16x16xf32>
    %1245 = vector.broadcast %1172 : vector<1x16xf32> to vector<16x16xf32>
    %1246 = arith.subf %1244, %1245 : vector<16x16xf32>
    %1247 = math.absf %1246 : vector<16x16xf32>
    %cst_231 = arith.constant 1.000000e+00 : f32
    %1248 = vector.broadcast %cst_231 : f32 to vector<16x16xf32>
    %1249 = arith.subf %1248, %1247 : vector<16x16xf32>
    %cst_232 = arith.constant 0.000000e+00 : f32
    %1250 = vector.broadcast %cst_232 : f32 to vector<16x16xf32>
    %1251 = arith.maximumf %1249, %1250 : vector<16x16xf32>
    %1252 = vector.broadcast %1242 : vector<16x1xf32> to vector<16x16xf32>
    %1253 = vector.broadcast %1171 : vector<1x16xf32> to vector<16x16xf32>
    %1254 = arith.subf %1252, %1253 : vector<16x16xf32>
    %1255 = math.absf %1254 : vector<16x16xf32>
    %cst_233 = arith.constant 1.000000e+00 : f32
    %1256 = vector.broadcast %cst_233 : f32 to vector<16x16xf32>
    %1257 = arith.subf %1256, %1255 : vector<16x16xf32>
    %cst_234 = arith.constant 0.000000e+00 : f32
    %1258 = vector.broadcast %cst_234 : f32 to vector<16x16xf32>
    %1259 = arith.maximumf %1257, %1258 : vector<16x16xf32>
    %1260 = arith.mulf %1251, %1259 : vector<16x16xf32>
    %1261 = vector.broadcast %1243 : vector<16x1xf32> to vector<16x16xf32>
    %1262 = arith.mulf %1261, %1260 : vector<16x16xf32>
    %1263 = arith.addf %1240, %1262 : vector<16x16xf32>
    %1264 = vector.extract_strided_slice %1074 {offsets = [64, 0], sizes = [16, 32], strides = [1, 1]} : vector<80x32xf32> to vector<16x32xf32>
    %cst_235 = arith.constant dense<0.000000e+00> : vector<16x32xf32>
    %1265 = tpu.matmul %1263, %1264, %cst_235 {dimension_numbers = #tpu.dot_dimension_numbers<[1], [0], [0], [1], [0, 0, 1, 1], [], []>} : vector<16x16xf32>, vector<16x32xf32>, vector<16x32xf32> -> vector<16x32xf32>
    %1266 = arith.addf %1170, %1265 : vector<16x32xf32>
    %1267 = vector.extract_strided_slice %849 {offsets = [0, 16], sizes = [16, 8], strides = [1, 1]} : vector<16x32xf32> to vector<16x8xf32>
    %cst_236 = arith.constant dense<0xFF800000> : vector<16xf32>
    %1268 = vector.multi_reduction <maximumf>, %1267, %cst_236 [1] : vector<16x8xf32> to vector<16xf32>
    %1269 = vector.shape_cast %1268 : vector<16xf32> to vector<16x1xf32>
    %1270 = vector.broadcast %1269 : vector<16x1xf32> to vector<16x8xf32>
    %1271 = arith.subf %1267, %1270 : vector<16x8xf32>
    %1272 = math.exp %1271 : vector<16x8xf32>
    %cst_237 = arith.constant dense<0.000000e+00> : vector<16xf32>
    %1273 = vector.multi_reduction <add>, %1272, %cst_237 [1] : vector<16x8xf32> to vector<16xf32>
    %1274 = vector.shape_cast %1273 : vector<16xf32> to vector<16x1xf32>
    %1275 = tpu.reciprocal %1274 {approx = true} : vector<16x1xf32> -> vector<16x1xf32>
    %1276 = arith.mulf %1274, %1275 : vector<16x1xf32>
    %cst_238 = arith.constant 2.000000e+00 : f32
    %1277 = vector.broadcast %cst_238 : f32 to vector<16x1xf32>
    %1278 = arith.subf %1277, %1276 : vector<16x1xf32>
    %1279 = arith.mulf %1275, %1278 : vector<16x1xf32>
    %1280 = vector.broadcast %1279 : vector<16x1xf32> to vector<16x8xf32>
    %1281 = arith.mulf %1272, %1280 : vector<16x8xf32>
    %1282 = vector.extract_strided_slice %850 {offsets = [0, 64], sizes = [80, 32], strides = [1, 1]} : vector<80x128xf32> to vector<80x32xf32>
    %1283 = vector.extract_strided_slice %6 {offsets = [0, 0], sizes = [1, 64], strides = [1, 1]} : vector<4x64xf32> to vector<1x64xf32>
    %1284 = vector.extract_strided_slice %6 {offsets = [1, 0], sizes = [1, 64], strides = [1, 1]} : vector<4x64xf32> to vector<1x64xf32>
    %1285 = vector.extract_strided_slice %847 {offsets = [0, 16], sizes = [16, 1], strides = [1, 1]} : vector<16x32xf32> to vector<16x1xf32>
    %1286 = vector.extract_strided_slice %848 {offsets = [0, 16], sizes = [16, 1], strides = [1, 1]} : vector<16x32xf32> to vector<16x1xf32>
    %1287 = vector.extract_strided_slice %1281 {offsets = [0, 0], sizes = [16, 1], strides = [1, 1]} : vector<16x8xf32> to vector<16x1xf32>
    %1288 = vector.broadcast %1285 : vector<16x1xf32> to vector<16x64xf32>
    %1289 = vector.broadcast %1284 : vector<1x64xf32> to vector<16x64xf32>
    %1290 = arith.subf %1288, %1289 : vector<16x64xf32>
    %1291 = math.absf %1290 : vector<16x64xf32>
    %cst_239 = arith.constant 1.000000e+00 : f32
    %1292 = vector.broadcast %cst_239 : f32 to vector<16x64xf32>
    %1293 = arith.subf %1292, %1291 : vector<16x64xf32>
    %cst_240 = arith.constant 0.000000e+00 : f32
    %1294 = vector.broadcast %cst_240 : f32 to vector<16x64xf32>
    %1295 = arith.maximumf %1293, %1294 : vector<16x64xf32>
    %1296 = vector.broadcast %1286 : vector<16x1xf32> to vector<16x64xf32>
    %1297 = vector.broadcast %1283 : vector<1x64xf32> to vector<16x64xf32>
    %1298 = arith.subf %1296, %1297 : vector<16x64xf32>
    %1299 = math.absf %1298 : vector<16x64xf32>
    %cst_241 = arith.constant 1.000000e+00 : f32
    %1300 = vector.broadcast %cst_241 : f32 to vector<16x64xf32>
    %1301 = arith.subf %1300, %1299 : vector<16x64xf32>
    %cst_242 = arith.constant 0.000000e+00 : f32
    %1302 = vector.broadcast %cst_242 : f32 to vector<16x64xf32>
    %1303 = arith.maximumf %1301, %1302 : vector<16x64xf32>
    %1304 = arith.mulf %1295, %1303 : vector<16x64xf32>
    %1305 = vector.broadcast %1287 : vector<16x1xf32> to vector<16x64xf32>
    %1306 = arith.mulf %1305, %1304 : vector<16x64xf32>
    %1307 = vector.extract_strided_slice %847 {offsets = [0, 17], sizes = [16, 1], strides = [1, 1]} : vector<16x32xf32> to vector<16x1xf32>
    %1308 = vector.extract_strided_slice %848 {offsets = [0, 17], sizes = [16, 1], strides = [1, 1]} : vector<16x32xf32> to vector<16x1xf32>
    %1309 = vector.extract_strided_slice %1281 {offsets = [0, 1], sizes = [16, 1], strides = [1, 1]} : vector<16x8xf32> to vector<16x1xf32>
    %1310 = vector.broadcast %1307 : vector<16x1xf32> to vector<16x64xf32>
    %1311 = vector.broadcast %1284 : vector<1x64xf32> to vector<16x64xf32>
    %1312 = arith.subf %1310, %1311 : vector<16x64xf32>
    %1313 = math.absf %1312 : vector<16x64xf32>
    %cst_243 = arith.constant 1.000000e+00 : f32
    %1314 = vector.broadcast %cst_243 : f32 to vector<16x64xf32>
    %1315 = arith.subf %1314, %1313 : vector<16x64xf32>
    %cst_244 = arith.constant 0.000000e+00 : f32
    %1316 = vector.broadcast %cst_244 : f32 to vector<16x64xf32>
    %1317 = arith.maximumf %1315, %1316 : vector<16x64xf32>
    %1318 = vector.broadcast %1308 : vector<16x1xf32> to vector<16x64xf32>
    %1319 = vector.broadcast %1283 : vector<1x64xf32> to vector<16x64xf32>
    %1320 = arith.subf %1318, %1319 : vector<16x64xf32>
    %1321 = math.absf %1320 : vector<16x64xf32>
    %cst_245 = arith.constant 1.000000e+00 : f32
    %1322 = vector.broadcast %cst_245 : f32 to vector<16x64xf32>
    %1323 = arith.subf %1322, %1321 : vector<16x64xf32>
    %cst_246 = arith.constant 0.000000e+00 : f32
    %1324 = vector.broadcast %cst_246 : f32 to vector<16x64xf32>
    %1325 = arith.maximumf %1323, %1324 : vector<16x64xf32>
    %1326 = arith.mulf %1317, %1325 : vector<16x64xf32>
    %1327 = vector.broadcast %1309 : vector<16x1xf32> to vector<16x64xf32>
    %1328 = arith.mulf %1327, %1326 : vector<16x64xf32>
    %1329 = arith.addf %1306, %1328 : vector<16x64xf32>
    %1330 = vector.extract_strided_slice %847 {offsets = [0, 18], sizes = [16, 1], strides = [1, 1]} : vector<16x32xf32> to vector<16x1xf32>
    %1331 = vector.extract_strided_slice %848 {offsets = [0, 18], sizes = [16, 1], strides = [1, 1]} : vector<16x32xf32> to vector<16x1xf32>
    %1332 = vector.extract_strided_slice %1281 {offsets = [0, 2], sizes = [16, 1], strides = [1, 1]} : vector<16x8xf32> to vector<16x1xf32>
    %1333 = vector.broadcast %1330 : vector<16x1xf32> to vector<16x64xf32>
    %1334 = vector.broadcast %1284 : vector<1x64xf32> to vector<16x64xf32>
    %1335 = arith.subf %1333, %1334 : vector<16x64xf32>
    %1336 = math.absf %1335 : vector<16x64xf32>
    %cst_247 = arith.constant 1.000000e+00 : f32
    %1337 = vector.broadcast %cst_247 : f32 to vector<16x64xf32>
    %1338 = arith.subf %1337, %1336 : vector<16x64xf32>
    %cst_248 = arith.constant 0.000000e+00 : f32
    %1339 = vector.broadcast %cst_248 : f32 to vector<16x64xf32>
    %1340 = arith.maximumf %1338, %1339 : vector<16x64xf32>
    %1341 = vector.broadcast %1331 : vector<16x1xf32> to vector<16x64xf32>
    %1342 = vector.broadcast %1283 : vector<1x64xf32> to vector<16x64xf32>
    %1343 = arith.subf %1341, %1342 : vector<16x64xf32>
    %1344 = math.absf %1343 : vector<16x64xf32>
    %cst_249 = arith.constant 1.000000e+00 : f32
    %1345 = vector.broadcast %cst_249 : f32 to vector<16x64xf32>
    %1346 = arith.subf %1345, %1344 : vector<16x64xf32>
    %cst_250 = arith.constant 0.000000e+00 : f32
    %1347 = vector.broadcast %cst_250 : f32 to vector<16x64xf32>
    %1348 = arith.maximumf %1346, %1347 : vector<16x64xf32>
    %1349 = arith.mulf %1340, %1348 : vector<16x64xf32>
    %1350 = vector.broadcast %1332 : vector<16x1xf32> to vector<16x64xf32>
    %1351 = arith.mulf %1350, %1349 : vector<16x64xf32>
    %1352 = arith.addf %1329, %1351 : vector<16x64xf32>
    %1353 = vector.extract_strided_slice %847 {offsets = [0, 19], sizes = [16, 1], strides = [1, 1]} : vector<16x32xf32> to vector<16x1xf32>
    %1354 = vector.extract_strided_slice %848 {offsets = [0, 19], sizes = [16, 1], strides = [1, 1]} : vector<16x32xf32> to vector<16x1xf32>
    %1355 = vector.extract_strided_slice %1281 {offsets = [0, 3], sizes = [16, 1], strides = [1, 1]} : vector<16x8xf32> to vector<16x1xf32>
    %1356 = vector.broadcast %1353 : vector<16x1xf32> to vector<16x64xf32>
    %1357 = vector.broadcast %1284 : vector<1x64xf32> to vector<16x64xf32>
    %1358 = arith.subf %1356, %1357 : vector<16x64xf32>
    %1359 = math.absf %1358 : vector<16x64xf32>
    %cst_251 = arith.constant 1.000000e+00 : f32
    %1360 = vector.broadcast %cst_251 : f32 to vector<16x64xf32>
    %1361 = arith.subf %1360, %1359 : vector<16x64xf32>
    %cst_252 = arith.constant 0.000000e+00 : f32
    %1362 = vector.broadcast %cst_252 : f32 to vector<16x64xf32>
    %1363 = arith.maximumf %1361, %1362 : vector<16x64xf32>
    %1364 = vector.broadcast %1354 : vector<16x1xf32> to vector<16x64xf32>
    %1365 = vector.broadcast %1283 : vector<1x64xf32> to vector<16x64xf32>
    %1366 = arith.subf %1364, %1365 : vector<16x64xf32>
    %1367 = math.absf %1366 : vector<16x64xf32>
    %cst_253 = arith.constant 1.000000e+00 : f32
    %1368 = vector.broadcast %cst_253 : f32 to vector<16x64xf32>
    %1369 = arith.subf %1368, %1367 : vector<16x64xf32>
    %cst_254 = arith.constant 0.000000e+00 : f32
    %1370 = vector.broadcast %cst_254 : f32 to vector<16x64xf32>
    %1371 = arith.maximumf %1369, %1370 : vector<16x64xf32>
    %1372 = arith.mulf %1363, %1371 : vector<16x64xf32>
    %1373 = vector.broadcast %1355 : vector<16x1xf32> to vector<16x64xf32>
    %1374 = arith.mulf %1373, %1372 : vector<16x64xf32>
    %1375 = arith.addf %1352, %1374 : vector<16x64xf32>
    %1376 = vector.extract_strided_slice %1282 {offsets = [0, 0], sizes = [64, 32], strides = [1, 1]} : vector<80x32xf32> to vector<64x32xf32>
    %cst_255 = arith.constant dense<0.000000e+00> : vector<16x32xf32>
    %1377 = tpu.matmul %1375, %1376, %cst_255 {dimension_numbers = #tpu.dot_dimension_numbers<[1], [0], [0], [1], [0, 0, 1, 1], [], []>} : vector<16x64xf32>, vector<64x32xf32>, vector<16x32xf32> -> vector<16x32xf32>
    %1378 = arith.addf %1266, %1377 : vector<16x32xf32>
    %1379 = vector.extract_strided_slice %6 {offsets = [2, 0], sizes = [1, 16], strides = [1, 1]} : vector<4x64xf32> to vector<1x16xf32>
    %1380 = vector.extract_strided_slice %6 {offsets = [3, 0], sizes = [1, 16], strides = [1, 1]} : vector<4x64xf32> to vector<1x16xf32>
    %1381 = vector.extract_strided_slice %847 {offsets = [0, 20], sizes = [16, 1], strides = [1, 1]} : vector<16x32xf32> to vector<16x1xf32>
    %1382 = vector.extract_strided_slice %848 {offsets = [0, 20], sizes = [16, 1], strides = [1, 1]} : vector<16x32xf32> to vector<16x1xf32>
    %1383 = vector.extract_strided_slice %1281 {offsets = [0, 4], sizes = [16, 1], strides = [1, 1]} : vector<16x8xf32> to vector<16x1xf32>
    %1384 = vector.broadcast %1381 : vector<16x1xf32> to vector<16x16xf32>
    %1385 = vector.broadcast %1380 : vector<1x16xf32> to vector<16x16xf32>
    %1386 = arith.subf %1384, %1385 : vector<16x16xf32>
    %1387 = math.absf %1386 : vector<16x16xf32>
    %cst_256 = arith.constant 1.000000e+00 : f32
    %1388 = vector.broadcast %cst_256 : f32 to vector<16x16xf32>
    %1389 = arith.subf %1388, %1387 : vector<16x16xf32>
    %cst_257 = arith.constant 0.000000e+00 : f32
    %1390 = vector.broadcast %cst_257 : f32 to vector<16x16xf32>
    %1391 = arith.maximumf %1389, %1390 : vector<16x16xf32>
    %1392 = vector.broadcast %1382 : vector<16x1xf32> to vector<16x16xf32>
    %1393 = vector.broadcast %1379 : vector<1x16xf32> to vector<16x16xf32>
    %1394 = arith.subf %1392, %1393 : vector<16x16xf32>
    %1395 = math.absf %1394 : vector<16x16xf32>
    %cst_258 = arith.constant 1.000000e+00 : f32
    %1396 = vector.broadcast %cst_258 : f32 to vector<16x16xf32>
    %1397 = arith.subf %1396, %1395 : vector<16x16xf32>
    %cst_259 = arith.constant 0.000000e+00 : f32
    %1398 = vector.broadcast %cst_259 : f32 to vector<16x16xf32>
    %1399 = arith.maximumf %1397, %1398 : vector<16x16xf32>
    %1400 = arith.mulf %1391, %1399 : vector<16x16xf32>
    %1401 = vector.broadcast %1383 : vector<16x1xf32> to vector<16x16xf32>
    %1402 = arith.mulf %1401, %1400 : vector<16x16xf32>
    %1403 = vector.extract_strided_slice %847 {offsets = [0, 21], sizes = [16, 1], strides = [1, 1]} : vector<16x32xf32> to vector<16x1xf32>
    %1404 = vector.extract_strided_slice %848 {offsets = [0, 21], sizes = [16, 1], strides = [1, 1]} : vector<16x32xf32> to vector<16x1xf32>
    %1405 = vector.extract_strided_slice %1281 {offsets = [0, 5], sizes = [16, 1], strides = [1, 1]} : vector<16x8xf32> to vector<16x1xf32>
    %1406 = vector.broadcast %1403 : vector<16x1xf32> to vector<16x16xf32>
    %1407 = vector.broadcast %1380 : vector<1x16xf32> to vector<16x16xf32>
    %1408 = arith.subf %1406, %1407 : vector<16x16xf32>
    %1409 = math.absf %1408 : vector<16x16xf32>
    %cst_260 = arith.constant 1.000000e+00 : f32
    %1410 = vector.broadcast %cst_260 : f32 to vector<16x16xf32>
    %1411 = arith.subf %1410, %1409 : vector<16x16xf32>
    %cst_261 = arith.constant 0.000000e+00 : f32
    %1412 = vector.broadcast %cst_261 : f32 to vector<16x16xf32>
    %1413 = arith.maximumf %1411, %1412 : vector<16x16xf32>
    %1414 = vector.broadcast %1404 : vector<16x1xf32> to vector<16x16xf32>
    %1415 = vector.broadcast %1379 : vector<1x16xf32> to vector<16x16xf32>
    %1416 = arith.subf %1414, %1415 : vector<16x16xf32>
    %1417 = math.absf %1416 : vector<16x16xf32>
    %cst_262 = arith.constant 1.000000e+00 : f32
    %1418 = vector.broadcast %cst_262 : f32 to vector<16x16xf32>
    %1419 = arith.subf %1418, %1417 : vector<16x16xf32>
    %cst_263 = arith.constant 0.000000e+00 : f32
    %1420 = vector.broadcast %cst_263 : f32 to vector<16x16xf32>
    %1421 = arith.maximumf %1419, %1420 : vector<16x16xf32>
    %1422 = arith.mulf %1413, %1421 : vector<16x16xf32>
    %1423 = vector.broadcast %1405 : vector<16x1xf32> to vector<16x16xf32>
    %1424 = arith.mulf %1423, %1422 : vector<16x16xf32>
    %1425 = arith.addf %1402, %1424 : vector<16x16xf32>
    %1426 = vector.extract_strided_slice %847 {offsets = [0, 22], sizes = [16, 1], strides = [1, 1]} : vector<16x32xf32> to vector<16x1xf32>
    %1427 = vector.extract_strided_slice %848 {offsets = [0, 22], sizes = [16, 1], strides = [1, 1]} : vector<16x32xf32> to vector<16x1xf32>
    %1428 = vector.extract_strided_slice %1281 {offsets = [0, 6], sizes = [16, 1], strides = [1, 1]} : vector<16x8xf32> to vector<16x1xf32>
    %1429 = vector.broadcast %1426 : vector<16x1xf32> to vector<16x16xf32>
    %1430 = vector.broadcast %1380 : vector<1x16xf32> to vector<16x16xf32>
    %1431 = arith.subf %1429, %1430 : vector<16x16xf32>
    %1432 = math.absf %1431 : vector<16x16xf32>
    %cst_264 = arith.constant 1.000000e+00 : f32
    %1433 = vector.broadcast %cst_264 : f32 to vector<16x16xf32>
    %1434 = arith.subf %1433, %1432 : vector<16x16xf32>
    %cst_265 = arith.constant 0.000000e+00 : f32
    %1435 = vector.broadcast %cst_265 : f32 to vector<16x16xf32>
    %1436 = arith.maximumf %1434, %1435 : vector<16x16xf32>
    %1437 = vector.broadcast %1427 : vector<16x1xf32> to vector<16x16xf32>
    %1438 = vector.broadcast %1379 : vector<1x16xf32> to vector<16x16xf32>
    %1439 = arith.subf %1437, %1438 : vector<16x16xf32>
    %1440 = math.absf %1439 : vector<16x16xf32>
    %cst_266 = arith.constant 1.000000e+00 : f32
    %1441 = vector.broadcast %cst_266 : f32 to vector<16x16xf32>
    %1442 = arith.subf %1441, %1440 : vector<16x16xf32>
    %cst_267 = arith.constant 0.000000e+00 : f32
    %1443 = vector.broadcast %cst_267 : f32 to vector<16x16xf32>
    %1444 = arith.maximumf %1442, %1443 : vector<16x16xf32>
    %1445 = arith.mulf %1436, %1444 : vector<16x16xf32>
    %1446 = vector.broadcast %1428 : vector<16x1xf32> to vector<16x16xf32>
    %1447 = arith.mulf %1446, %1445 : vector<16x16xf32>
    %1448 = arith.addf %1425, %1447 : vector<16x16xf32>
    %1449 = vector.extract_strided_slice %847 {offsets = [0, 23], sizes = [16, 1], strides = [1, 1]} : vector<16x32xf32> to vector<16x1xf32>
    %1450 = vector.extract_strided_slice %848 {offsets = [0, 23], sizes = [16, 1], strides = [1, 1]} : vector<16x32xf32> to vector<16x1xf32>
    %1451 = vector.extract_strided_slice %1281 {offsets = [0, 7], sizes = [16, 1], strides = [1, 1]} : vector<16x8xf32> to vector<16x1xf32>
    %1452 = vector.broadcast %1449 : vector<16x1xf32> to vector<16x16xf32>
    %1453 = vector.broadcast %1380 : vector<1x16xf32> to vector<16x16xf32>
    %1454 = arith.subf %1452, %1453 : vector<16x16xf32>
    %1455 = math.absf %1454 : vector<16x16xf32>
    %cst_268 = arith.constant 1.000000e+00 : f32
    %1456 = vector.broadcast %cst_268 : f32 to vector<16x16xf32>
    %1457 = arith.subf %1456, %1455 : vector<16x16xf32>
    %cst_269 = arith.constant 0.000000e+00 : f32
    %1458 = vector.broadcast %cst_269 : f32 to vector<16x16xf32>
    %1459 = arith.maximumf %1457, %1458 : vector<16x16xf32>
    %1460 = vector.broadcast %1450 : vector<16x1xf32> to vector<16x16xf32>
    %1461 = vector.broadcast %1379 : vector<1x16xf32> to vector<16x16xf32>
    %1462 = arith.subf %1460, %1461 : vector<16x16xf32>
    %1463 = math.absf %1462 : vector<16x16xf32>
    %cst_270 = arith.constant 1.000000e+00 : f32
    %1464 = vector.broadcast %cst_270 : f32 to vector<16x16xf32>
    %1465 = arith.subf %1464, %1463 : vector<16x16xf32>
    %cst_271 = arith.constant 0.000000e+00 : f32
    %1466 = vector.broadcast %cst_271 : f32 to vector<16x16xf32>
    %1467 = arith.maximumf %1465, %1466 : vector<16x16xf32>
    %1468 = arith.mulf %1459, %1467 : vector<16x16xf32>
    %1469 = vector.broadcast %1451 : vector<16x1xf32> to vector<16x16xf32>
    %1470 = arith.mulf %1469, %1468 : vector<16x16xf32>
    %1471 = arith.addf %1448, %1470 : vector<16x16xf32>
    %1472 = vector.extract_strided_slice %1282 {offsets = [64, 0], sizes = [16, 32], strides = [1, 1]} : vector<80x32xf32> to vector<16x32xf32>
    %cst_272 = arith.constant dense<0.000000e+00> : vector<16x32xf32>
    %1473 = tpu.matmul %1471, %1472, %cst_272 {dimension_numbers = #tpu.dot_dimension_numbers<[1], [0], [0], [1], [0, 0, 1, 1], [], []>} : vector<16x16xf32>, vector<16x32xf32>, vector<16x32xf32> -> vector<16x32xf32>
    %1474 = arith.addf %1378, %1473 : vector<16x32xf32>
    %1475 = vector.extract_strided_slice %849 {offsets = [0, 24], sizes = [16, 8], strides = [1, 1]} : vector<16x32xf32> to vector<16x8xf32>
    %cst_273 = arith.constant dense<0xFF800000> : vector<16xf32>
    %1476 = vector.multi_reduction <maximumf>, %1475, %cst_273 [1] : vector<16x8xf32> to vector<16xf32>
    %1477 = vector.shape_cast %1476 : vector<16xf32> to vector<16x1xf32>
    %1478 = vector.broadcast %1477 : vector<16x1xf32> to vector<16x8xf32>
    %1479 = arith.subf %1475, %1478 : vector<16x8xf32>
    %1480 = math.exp %1479 : vector<16x8xf32>
    %cst_274 = arith.constant dense<0.000000e+00> : vector<16xf32>
    %1481 = vector.multi_reduction <add>, %1480, %cst_274 [1] : vector<16x8xf32> to vector<16xf32>
    %1482 = vector.shape_cast %1481 : vector<16xf32> to vector<16x1xf32>
    %1483 = tpu.reciprocal %1482 {approx = true} : vector<16x1xf32> -> vector<16x1xf32>
    %1484 = arith.mulf %1482, %1483 : vector<16x1xf32>
    %cst_275 = arith.constant 2.000000e+00 : f32
    %1485 = vector.broadcast %cst_275 : f32 to vector<16x1xf32>
    %1486 = arith.subf %1485, %1484 : vector<16x1xf32>
    %1487 = arith.mulf %1483, %1486 : vector<16x1xf32>
    %1488 = vector.broadcast %1487 : vector<16x1xf32> to vector<16x8xf32>
    %1489 = arith.mulf %1480, %1488 : vector<16x8xf32>
    %1490 = vector.extract_strided_slice %850 {offsets = [0, 96], sizes = [80, 32], strides = [1, 1]} : vector<80x128xf32> to vector<80x32xf32>
    %1491 = vector.extract_strided_slice %6 {offsets = [0, 0], sizes = [1, 64], strides = [1, 1]} : vector<4x64xf32> to vector<1x64xf32>
    %1492 = vector.extract_strided_slice %6 {offsets = [1, 0], sizes = [1, 64], strides = [1, 1]} : vector<4x64xf32> to vector<1x64xf32>
    %1493 = vector.extract_strided_slice %847 {offsets = [0, 24], sizes = [16, 1], strides = [1, 1]} : vector<16x32xf32> to vector<16x1xf32>
    %1494 = vector.extract_strided_slice %848 {offsets = [0, 24], sizes = [16, 1], strides = [1, 1]} : vector<16x32xf32> to vector<16x1xf32>
    %1495 = vector.extract_strided_slice %1489 {offsets = [0, 0], sizes = [16, 1], strides = [1, 1]} : vector<16x8xf32> to vector<16x1xf32>
    %1496 = vector.broadcast %1493 : vector<16x1xf32> to vector<16x64xf32>
    %1497 = vector.broadcast %1492 : vector<1x64xf32> to vector<16x64xf32>
    %1498 = arith.subf %1496, %1497 : vector<16x64xf32>
    %1499 = math.absf %1498 : vector<16x64xf32>
    %cst_276 = arith.constant 1.000000e+00 : f32
    %1500 = vector.broadcast %cst_276 : f32 to vector<16x64xf32>
    %1501 = arith.subf %1500, %1499 : vector<16x64xf32>
    %cst_277 = arith.constant 0.000000e+00 : f32
    %1502 = vector.broadcast %cst_277 : f32 to vector<16x64xf32>
    %1503 = arith.maximumf %1501, %1502 : vector<16x64xf32>
    %1504 = vector.broadcast %1494 : vector<16x1xf32> to vector<16x64xf32>
    %1505 = vector.broadcast %1491 : vector<1x64xf32> to vector<16x64xf32>
    %1506 = arith.subf %1504, %1505 : vector<16x64xf32>
    %1507 = math.absf %1506 : vector<16x64xf32>
    %cst_278 = arith.constant 1.000000e+00 : f32
    %1508 = vector.broadcast %cst_278 : f32 to vector<16x64xf32>
    %1509 = arith.subf %1508, %1507 : vector<16x64xf32>
    %cst_279 = arith.constant 0.000000e+00 : f32
    %1510 = vector.broadcast %cst_279 : f32 to vector<16x64xf32>
    %1511 = arith.maximumf %1509, %1510 : vector<16x64xf32>
    %1512 = arith.mulf %1503, %1511 : vector<16x64xf32>
    %1513 = vector.broadcast %1495 : vector<16x1xf32> to vector<16x64xf32>
    %1514 = arith.mulf %1513, %1512 : vector<16x64xf32>
    %1515 = vector.extract_strided_slice %847 {offsets = [0, 25], sizes = [16, 1], strides = [1, 1]} : vector<16x32xf32> to vector<16x1xf32>
    %1516 = vector.extract_strided_slice %848 {offsets = [0, 25], sizes = [16, 1], strides = [1, 1]} : vector<16x32xf32> to vector<16x1xf32>
    %1517 = vector.extract_strided_slice %1489 {offsets = [0, 1], sizes = [16, 1], strides = [1, 1]} : vector<16x8xf32> to vector<16x1xf32>
    %1518 = vector.broadcast %1515 : vector<16x1xf32> to vector<16x64xf32>
    %1519 = vector.broadcast %1492 : vector<1x64xf32> to vector<16x64xf32>
    %1520 = arith.subf %1518, %1519 : vector<16x64xf32>
    %1521 = math.absf %1520 : vector<16x64xf32>
    %cst_280 = arith.constant 1.000000e+00 : f32
    %1522 = vector.broadcast %cst_280 : f32 to vector<16x64xf32>
    %1523 = arith.subf %1522, %1521 : vector<16x64xf32>
    %cst_281 = arith.constant 0.000000e+00 : f32
    %1524 = vector.broadcast %cst_281 : f32 to vector<16x64xf32>
    %1525 = arith.maximumf %1523, %1524 : vector<16x64xf32>
    %1526 = vector.broadcast %1516 : vector<16x1xf32> to vector<16x64xf32>
    %1527 = vector.broadcast %1491 : vector<1x64xf32> to vector<16x64xf32>
    %1528 = arith.subf %1526, %1527 : vector<16x64xf32>
    %1529 = math.absf %1528 : vector<16x64xf32>
    %cst_282 = arith.constant 1.000000e+00 : f32
    %1530 = vector.broadcast %cst_282 : f32 to vector<16x64xf32>
    %1531 = arith.subf %1530, %1529 : vector<16x64xf32>
    %cst_283 = arith.constant 0.000000e+00 : f32
    %1532 = vector.broadcast %cst_283 : f32 to vector<16x64xf32>
    %1533 = arith.maximumf %1531, %1532 : vector<16x64xf32>
    %1534 = arith.mulf %1525, %1533 : vector<16x64xf32>
    %1535 = vector.broadcast %1517 : vector<16x1xf32> to vector<16x64xf32>
    %1536 = arith.mulf %1535, %1534 : vector<16x64xf32>
    %1537 = arith.addf %1514, %1536 : vector<16x64xf32>
    %1538 = vector.extract_strided_slice %847 {offsets = [0, 26], sizes = [16, 1], strides = [1, 1]} : vector<16x32xf32> to vector<16x1xf32>
    %1539 = vector.extract_strided_slice %848 {offsets = [0, 26], sizes = [16, 1], strides = [1, 1]} : vector<16x32xf32> to vector<16x1xf32>
    %1540 = vector.extract_strided_slice %1489 {offsets = [0, 2], sizes = [16, 1], strides = [1, 1]} : vector<16x8xf32> to vector<16x1xf32>
    %1541 = vector.broadcast %1538 : vector<16x1xf32> to vector<16x64xf32>
    %1542 = vector.broadcast %1492 : vector<1x64xf32> to vector<16x64xf32>
    %1543 = arith.subf %1541, %1542 : vector<16x64xf32>
    %1544 = math.absf %1543 : vector<16x64xf32>
    %cst_284 = arith.constant 1.000000e+00 : f32
    %1545 = vector.broadcast %cst_284 : f32 to vector<16x64xf32>
    %1546 = arith.subf %1545, %1544 : vector<16x64xf32>
    %cst_285 = arith.constant 0.000000e+00 : f32
    %1547 = vector.broadcast %cst_285 : f32 to vector<16x64xf32>
    %1548 = arith.maximumf %1546, %1547 : vector<16x64xf32>
    %1549 = vector.broadcast %1539 : vector<16x1xf32> to vector<16x64xf32>
    %1550 = vector.broadcast %1491 : vector<1x64xf32> to vector<16x64xf32>
    %1551 = arith.subf %1549, %1550 : vector<16x64xf32>
    %1552 = math.absf %1551 : vector<16x64xf32>
    %cst_286 = arith.constant 1.000000e+00 : f32
    %1553 = vector.broadcast %cst_286 : f32 to vector<16x64xf32>
    %1554 = arith.subf %1553, %1552 : vector<16x64xf32>
    %cst_287 = arith.constant 0.000000e+00 : f32
    %1555 = vector.broadcast %cst_287 : f32 to vector<16x64xf32>
    %1556 = arith.maximumf %1554, %1555 : vector<16x64xf32>
    %1557 = arith.mulf %1548, %1556 : vector<16x64xf32>
    %1558 = vector.broadcast %1540 : vector<16x1xf32> to vector<16x64xf32>
    %1559 = arith.mulf %1558, %1557 : vector<16x64xf32>
    %1560 = arith.addf %1537, %1559 : vector<16x64xf32>
    %1561 = vector.extract_strided_slice %847 {offsets = [0, 27], sizes = [16, 1], strides = [1, 1]} : vector<16x32xf32> to vector<16x1xf32>
    %1562 = vector.extract_strided_slice %848 {offsets = [0, 27], sizes = [16, 1], strides = [1, 1]} : vector<16x32xf32> to vector<16x1xf32>
    %1563 = vector.extract_strided_slice %1489 {offsets = [0, 3], sizes = [16, 1], strides = [1, 1]} : vector<16x8xf32> to vector<16x1xf32>
    %1564 = vector.broadcast %1561 : vector<16x1xf32> to vector<16x64xf32>
    %1565 = vector.broadcast %1492 : vector<1x64xf32> to vector<16x64xf32>
    %1566 = arith.subf %1564, %1565 : vector<16x64xf32>
    %1567 = math.absf %1566 : vector<16x64xf32>
    %cst_288 = arith.constant 1.000000e+00 : f32
    %1568 = vector.broadcast %cst_288 : f32 to vector<16x64xf32>
    %1569 = arith.subf %1568, %1567 : vector<16x64xf32>
    %cst_289 = arith.constant 0.000000e+00 : f32
    %1570 = vector.broadcast %cst_289 : f32 to vector<16x64xf32>
    %1571 = arith.maximumf %1569, %1570 : vector<16x64xf32>
    %1572 = vector.broadcast %1562 : vector<16x1xf32> to vector<16x64xf32>
    %1573 = vector.broadcast %1491 : vector<1x64xf32> to vector<16x64xf32>
    %1574 = arith.subf %1572, %1573 : vector<16x64xf32>
    %1575 = math.absf %1574 : vector<16x64xf32>
    %cst_290 = arith.constant 1.000000e+00 : f32
    %1576 = vector.broadcast %cst_290 : f32 to vector<16x64xf32>
    %1577 = arith.subf %1576, %1575 : vector<16x64xf32>
    %cst_291 = arith.constant 0.000000e+00 : f32
    %1578 = vector.broadcast %cst_291 : f32 to vector<16x64xf32>
    %1579 = arith.maximumf %1577, %1578 : vector<16x64xf32>
    %1580 = arith.mulf %1571, %1579 : vector<16x64xf32>
    %1581 = vector.broadcast %1563 : vector<16x1xf32> to vector<16x64xf32>
    %1582 = arith.mulf %1581, %1580 : vector<16x64xf32>
    %1583 = arith.addf %1560, %1582 : vector<16x64xf32>
    %1584 = vector.extract_strided_slice %1490 {offsets = [0, 0], sizes = [64, 32], strides = [1, 1]} : vector<80x32xf32> to vector<64x32xf32>
    %cst_292 = arith.constant dense<0.000000e+00> : vector<16x32xf32>
    %1585 = tpu.matmul %1583, %1584, %cst_292 {dimension_numbers = #tpu.dot_dimension_numbers<[1], [0], [0], [1], [0, 0, 1, 1], [], []>} : vector<16x64xf32>, vector<64x32xf32>, vector<16x32xf32> -> vector<16x32xf32>
    %1586 = arith.addf %1474, %1585 : vector<16x32xf32>
    %1587 = vector.extract_strided_slice %6 {offsets = [2, 0], sizes = [1, 16], strides = [1, 1]} : vector<4x64xf32> to vector<1x16xf32>
    %1588 = vector.extract_strided_slice %6 {offsets = [3, 0], sizes = [1, 16], strides = [1, 1]} : vector<4x64xf32> to vector<1x16xf32>
    %1589 = vector.extract_strided_slice %847 {offsets = [0, 28], sizes = [16, 1], strides = [1, 1]} : vector<16x32xf32> to vector<16x1xf32>
    %1590 = vector.extract_strided_slice %848 {offsets = [0, 28], sizes = [16, 1], strides = [1, 1]} : vector<16x32xf32> to vector<16x1xf32>
    %1591 = vector.extract_strided_slice %1489 {offsets = [0, 4], sizes = [16, 1], strides = [1, 1]} : vector<16x8xf32> to vector<16x1xf32>
    %1592 = vector.broadcast %1589 : vector<16x1xf32> to vector<16x16xf32>
    %1593 = vector.broadcast %1588 : vector<1x16xf32> to vector<16x16xf32>
    %1594 = arith.subf %1592, %1593 : vector<16x16xf32>
    %1595 = math.absf %1594 : vector<16x16xf32>
    %cst_293 = arith.constant 1.000000e+00 : f32
    %1596 = vector.broadcast %cst_293 : f32 to vector<16x16xf32>
    %1597 = arith.subf %1596, %1595 : vector<16x16xf32>
    %cst_294 = arith.constant 0.000000e+00 : f32
    %1598 = vector.broadcast %cst_294 : f32 to vector<16x16xf32>
    %1599 = arith.maximumf %1597, %1598 : vector<16x16xf32>
    %1600 = vector.broadcast %1590 : vector<16x1xf32> to vector<16x16xf32>
    %1601 = vector.broadcast %1587 : vector<1x16xf32> to vector<16x16xf32>
    %1602 = arith.subf %1600, %1601 : vector<16x16xf32>
    %1603 = math.absf %1602 : vector<16x16xf32>
    %cst_295 = arith.constant 1.000000e+00 : f32
    %1604 = vector.broadcast %cst_295 : f32 to vector<16x16xf32>
    %1605 = arith.subf %1604, %1603 : vector<16x16xf32>
    %cst_296 = arith.constant 0.000000e+00 : f32
    %1606 = vector.broadcast %cst_296 : f32 to vector<16x16xf32>
    %1607 = arith.maximumf %1605, %1606 : vector<16x16xf32>
    %1608 = arith.mulf %1599, %1607 : vector<16x16xf32>
    %1609 = vector.broadcast %1591 : vector<16x1xf32> to vector<16x16xf32>
    %1610 = arith.mulf %1609, %1608 : vector<16x16xf32>
    %1611 = vector.extract_strided_slice %847 {offsets = [0, 29], sizes = [16, 1], strides = [1, 1]} : vector<16x32xf32> to vector<16x1xf32>
    %1612 = vector.extract_strided_slice %848 {offsets = [0, 29], sizes = [16, 1], strides = [1, 1]} : vector<16x32xf32> to vector<16x1xf32>
    %1613 = vector.extract_strided_slice %1489 {offsets = [0, 5], sizes = [16, 1], strides = [1, 1]} : vector<16x8xf32> to vector<16x1xf32>
    %1614 = vector.broadcast %1611 : vector<16x1xf32> to vector<16x16xf32>
    %1615 = vector.broadcast %1588 : vector<1x16xf32> to vector<16x16xf32>
    %1616 = arith.subf %1614, %1615 : vector<16x16xf32>
    %1617 = math.absf %1616 : vector<16x16xf32>
    %cst_297 = arith.constant 1.000000e+00 : f32
    %1618 = vector.broadcast %cst_297 : f32 to vector<16x16xf32>
    %1619 = arith.subf %1618, %1617 : vector<16x16xf32>
    %cst_298 = arith.constant 0.000000e+00 : f32
    %1620 = vector.broadcast %cst_298 : f32 to vector<16x16xf32>
    %1621 = arith.maximumf %1619, %1620 : vector<16x16xf32>
    %1622 = vector.broadcast %1612 : vector<16x1xf32> to vector<16x16xf32>
    %1623 = vector.broadcast %1587 : vector<1x16xf32> to vector<16x16xf32>
    %1624 = arith.subf %1622, %1623 : vector<16x16xf32>
    %1625 = math.absf %1624 : vector<16x16xf32>
    %cst_299 = arith.constant 1.000000e+00 : f32
    %1626 = vector.broadcast %cst_299 : f32 to vector<16x16xf32>
    %1627 = arith.subf %1626, %1625 : vector<16x16xf32>
    %cst_300 = arith.constant 0.000000e+00 : f32
    %1628 = vector.broadcast %cst_300 : f32 to vector<16x16xf32>
    %1629 = arith.maximumf %1627, %1628 : vector<16x16xf32>
    %1630 = arith.mulf %1621, %1629 : vector<16x16xf32>
    %1631 = vector.broadcast %1613 : vector<16x1xf32> to vector<16x16xf32>
    %1632 = arith.mulf %1631, %1630 : vector<16x16xf32>
    %1633 = arith.addf %1610, %1632 : vector<16x16xf32>
    %1634 = vector.extract_strided_slice %847 {offsets = [0, 30], sizes = [16, 1], strides = [1, 1]} : vector<16x32xf32> to vector<16x1xf32>
    %1635 = vector.extract_strided_slice %848 {offsets = [0, 30], sizes = [16, 1], strides = [1, 1]} : vector<16x32xf32> to vector<16x1xf32>
    %1636 = vector.extract_strided_slice %1489 {offsets = [0, 6], sizes = [16, 1], strides = [1, 1]} : vector<16x8xf32> to vector<16x1xf32>
    %1637 = vector.broadcast %1634 : vector<16x1xf32> to vector<16x16xf32>
    %1638 = vector.broadcast %1588 : vector<1x16xf32> to vector<16x16xf32>
    %1639 = arith.subf %1637, %1638 : vector<16x16xf32>
    %1640 = math.absf %1639 : vector<16x16xf32>
    %cst_301 = arith.constant 1.000000e+00 : f32
    %1641 = vector.broadcast %cst_301 : f32 to vector<16x16xf32>
    %1642 = arith.subf %1641, %1640 : vector<16x16xf32>
    %cst_302 = arith.constant 0.000000e+00 : f32
    %1643 = vector.broadcast %cst_302 : f32 to vector<16x16xf32>
    %1644 = arith.maximumf %1642, %1643 : vector<16x16xf32>
    %1645 = vector.broadcast %1635 : vector<16x1xf32> to vector<16x16xf32>
    %1646 = vector.broadcast %1587 : vector<1x16xf32> to vector<16x16xf32>
    %1647 = arith.subf %1645, %1646 : vector<16x16xf32>
    %1648 = math.absf %1647 : vector<16x16xf32>
    %cst_303 = arith.constant 1.000000e+00 : f32
    %1649 = vector.broadcast %cst_303 : f32 to vector<16x16xf32>
    %1650 = arith.subf %1649, %1648 : vector<16x16xf32>
    %cst_304 = arith.constant 0.000000e+00 : f32
    %1651 = vector.broadcast %cst_304 : f32 to vector<16x16xf32>
    %1652 = arith.maximumf %1650, %1651 : vector<16x16xf32>
    %1653 = arith.mulf %1644, %1652 : vector<16x16xf32>
    %1654 = vector.broadcast %1636 : vector<16x1xf32> to vector<16x16xf32>
    %1655 = arith.mulf %1654, %1653 : vector<16x16xf32>
    %1656 = arith.addf %1633, %1655 : vector<16x16xf32>
    %1657 = vector.extract_strided_slice %847 {offsets = [0, 31], sizes = [16, 1], strides = [1, 1]} : vector<16x32xf32> to vector<16x1xf32>
    %1658 = vector.extract_strided_slice %848 {offsets = [0, 31], sizes = [16, 1], strides = [1, 1]} : vector<16x32xf32> to vector<16x1xf32>
    %1659 = vector.extract_strided_slice %1489 {offsets = [0, 7], sizes = [16, 1], strides = [1, 1]} : vector<16x8xf32> to vector<16x1xf32>
    %1660 = vector.broadcast %1657 : vector<16x1xf32> to vector<16x16xf32>
    %1661 = vector.broadcast %1588 : vector<1x16xf32> to vector<16x16xf32>
    %1662 = arith.subf %1660, %1661 : vector<16x16xf32>
    %1663 = math.absf %1662 : vector<16x16xf32>
    %cst_305 = arith.constant 1.000000e+00 : f32
    %1664 = vector.broadcast %cst_305 : f32 to vector<16x16xf32>
    %1665 = arith.subf %1664, %1663 : vector<16x16xf32>
    %cst_306 = arith.constant 0.000000e+00 : f32
    %1666 = vector.broadcast %cst_306 : f32 to vector<16x16xf32>
    %1667 = arith.maximumf %1665, %1666 : vector<16x16xf32>
    %1668 = vector.broadcast %1658 : vector<16x1xf32> to vector<16x16xf32>
    %1669 = vector.broadcast %1587 : vector<1x16xf32> to vector<16x16xf32>
    %1670 = arith.subf %1668, %1669 : vector<16x16xf32>
    %1671 = math.absf %1670 : vector<16x16xf32>
    %cst_307 = arith.constant 1.000000e+00 : f32
    %1672 = vector.broadcast %cst_307 : f32 to vector<16x16xf32>
    %1673 = arith.subf %1672, %1671 : vector<16x16xf32>
    %cst_308 = arith.constant 0.000000e+00 : f32
    %1674 = vector.broadcast %cst_308 : f32 to vector<16x16xf32>
    %1675 = arith.maximumf %1673, %1674 : vector<16x16xf32>
    %1676 = arith.mulf %1667, %1675 : vector<16x16xf32>
    %1677 = vector.broadcast %1659 : vector<16x1xf32> to vector<16x16xf32>
    %1678 = arith.mulf %1677, %1676 : vector<16x16xf32>
    %1679 = arith.addf %1656, %1678 : vector<16x16xf32>
    %1680 = vector.extract_strided_slice %1490 {offsets = [64, 0], sizes = [16, 32], strides = [1, 1]} : vector<80x32xf32> to vector<16x32xf32>
    %cst_309 = arith.constant dense<0.000000e+00> : vector<16x32xf32>
    %1681 = tpu.matmul %1679, %1680, %cst_309 {dimension_numbers = #tpu.dot_dimension_numbers<[1], [0], [0], [1], [0, 0, 1, 1], [], []>} : vector<16x16xf32>, vector<16x32xf32>, vector<16x32xf32> -> vector<16x32xf32>
    %1682 = arith.addf %1586, %1681 : vector<16x32xf32>
    %c16 = arith.constant 16 : index
    %c0_310 = arith.constant 0 : index
    %1683 = vector.load %arg8[%c16, %c0_310] : memref<32x32xf32, #tpu.memory_space<vmem>>, vector<16x32xf32>
    tpu.vector_store %arg8[%c16, %c0_310], %1682 {strides = array<i32>} : memref<32x32xf32, #tpu.memory_space<vmem>>, vector<16x32xf32>,
    return
  }
  func.func @transform_0(%arg0: i32, %arg1: i32) -> (i32, i32) {
    %c1_i32 = arith.constant 1 : i32
    %0 = arith.muli %arg0, %c1_i32 : i32
    %1 = arith.addi %0, %arg1 : i32
    %c0_i32 = arith.constant 0 : i32
    %c0_i32_0 = arith.constant 0 : i32
    return %1, %c0_i32 : i32, i32
  }
  func.func @transform_1(%arg0: i32, %arg1: i32) -> (i32, i32) {
    %c0_i32 = arith.constant 0 : i32
    %c0_i32_0 = arith.constant 0 : i32
    return %arg0, %c0_i32 : i32, i32
  }
  func.func @transform_2(%arg0: i32, %arg1: i32) -> (i32, i32) {
    %c0_i32 = arith.constant 0 : i32
    %c0_i32_0 = arith.constant 0 : i32
    %c0_i32_1 = arith.constant 0 : i32
    return %c0_i32, %c0_i32_0 : i32, i32
  }
  func.func @transform_3(%arg0: i32, %arg1: i32) -> (i32, i32) {
    %c0_i32 = arith.constant 0 : i32
    %c0_i32_0 = arith.constant 0 : i32
    %c0_i32_1 = arith.constant 0 : i32
    return %c0_i32, %c0_i32_0 : i32, i32
  }
  func.func @transform_4(%arg0: i32, %arg1: i32) -> (i32, i32) {
    %c0_i32 = arith.constant 0 : i32
    %c0_i32_0 = arith.constant 0 : i32
    %c0_i32_1 = arith.constant 0 : i32
    return %c0_i32, %c0_i32_0 : i32, i32
  }
  func.func @transform_5(%arg0: i32, %arg1: i32) -> (i32, i32) {
    %c0_i32 = arith.constant 0 : i32
    %c0_i32_0 = arith.constant 0 : i32
    %c0_i32_1 = arith.constant 0 : i32
    return %c0_i32, %c0_i32_0 : i32, i32
  }
  func.func @transform_6(%arg0: i32, %arg1: i32) -> (i32, i32) {
    %c1_i32 = arith.constant 1 : i32
    %0 = arith.muli %arg0, %c1_i32 : i32
    %1 = arith.addi %0, %arg1 : i32
    %c0_i32 = arith.constant 0 : i32
    %c0_i32_0 = arith.constant 0 : i32
    return %1, %c0_i32 : i32, i32
  }
}

</mosaic_0001>

<bundles_post_ra>
// kernel: tpu_custom_call.1
= control target key start
LH: loop header
LB: loop body
LE: loop exit
PB: predicated region body
PF: predicated region fallthrough
CT: control target
= control target key end

     0   :  { %vm72_vm0 = vcmask 1040384   ;;  %s9187_s0 = inlined_call_operand.vmem [shape: f32[32,49], index: 0, kind: input, shape index: {}]   ;;  %s9188_s1 = inlined_call_operand.vmem [shape: f32[160,33], index: 1, kind: input, shape index: {}]   ;;  %s9189_s2 = inlined_call_operand.vmem [shape: f32[4,64], index: 2, kind: input, shape index: {}]   ;;  %s9190_s3 = inlined_call_operand.vmem [shape: f32[49,96], index: 3, kind: input, shape index: {}]   ;;  %s9191_s4 = inlined_call_operand.vmem [shape: f32[33,128], index: 4, kind: input, shape index: {}]   ;;  %s9192_s5 = inlined_call_operand.vmem [shape: f32[1,32], index: 5, kind: input, shape index: {}]   ;;  %s9193_s6 = inlined_call_operand.hbm [shape: f32[32,32], index: 6, kind: output, shape index: {}]  }
   0x1   :  { %v58_v0 = vld [vmem:[%s9190_s3 + $0x30] sm:$0x1]  ;;  %v185_v1 = vld [vmem:[%s9191_s4 + $0x20] sm:$0x1]  ;;  %v57_v2 = vld [vmem:[%s9190_s3 + $0x28] sm:$0xff] }
   0x2   :  { %5432 = vmatprep.subr.msk.mxu0 %vm72_vm0, %v58_v0  ;;  %5452 = vmatprep.subr.msk.mxu1 %vm72_vm0, %v185_v1  ;;  %v184_v3 = vld [vmem:[%s9191_s4 + $0x18] sm:$0xff]  ;;  %v56_v4 = vld [vmem:[%s9190_s3 + $0x20] sm:$0xff]  ;;  %v183_v5 = vld [vmem:[%s9191_s4 + $0x10] sm:$0xff] }
   0x3   :  { %5433 = vmatpush3.msk.msra.mxu0 %vm72_vm0, %v58_v0  ;;  %5453 = vmatpush3.msk.msra.mxu1 %vm72_vm0, %v185_v1  ;;  %v55_v6 = vld [vmem:[%s9190_s3 + $0x18] sm:$0xff]  ;;  %v182_v7 = vld [vmem:[%s9191_s4 + $0x8] sm:$0xff]  ;;  %v54_v8 = vld [vmem:[%s9190_s3 + $0x10] sm:$0xff] }
   0x4   :  { %5434 = vmatprep.subr.mxu0 %v57_v2  ;;  %5454 = vmatprep.subr.mxu1 %v184_v3  ;;  %v181_v9 = vld [vmem:[%s9191_s4] sm:$0xff] }
   0x5   :  { %5435 = vmatpush3.msra.mxu0 %v57_v2  ;;  %5455 = vmatpush3.msra.mxu1 %v184_v3 }
   0x6   :  { %5436 = vmatprep.subr.mxu0 %v56_v4  ;;  %5456 = vmatprep.subr.mxu1 %v183_v5 }
   0x7   :  { %5437 = vmatpush3.msra.mxu0 %v56_v4  ;;  %5457 = vmatpush3.msra.mxu1 %v183_v5 }
   0x8   :  { %5438 = vmatprep.subr.mxu0 %v55_v6  ;;  %5458 = vmatprep.subr.mxu1 %v182_v7 }
   0x9   :  { %11 = vsyncpa [#allocation3], 0  ;;  %5439 = vmatpush3.msra.mxu0 %v55_v6  ;;  %5459 = vmatpush3.msra.mxu1 %v182_v7  ;;  %v161_v10 = vld [vmem:[%s9188_s1] sm:$0xff]  ;;  %vm186_vm1 = vcmask 269312   ;;  %v53_v11 = vld [vmem:[%s9190_s3 + $0x8] sm:$0xff]  ;;  %vm59_vm2 = vcmask 400384   ;;  %v471_v33 = vlaneseq }
   0xa   :  { %5440 = vmatprep.subr.mxu0 %v54_v8  ;;  %5460 = vmatprep.subr.mxu1 %v181_v9  ;;  %v162_v12 = vld [vmem:[%s9188_s1 + $0x8] sm:$0xff]  ;;  %v52_v13 = vld [vmem:[%s9190_s3] sm:$0xff]  ;;  %v163_v15 = vld [vmem:[%s9188_s1 + $0x10] sm:$0xff]  ;;  %v9230_v22 = vmov 32   ;;  %s6172_s19 = smov 96   ;;  %v9229_v31 = vmov 33  }
   0xb   :  { %5441 = vmatpush3.msra.mxu0 %v54_v8  ;;  %5461 = vmatpush3.msra.mxu1 %v181_v9  ;;  %v48_v14 = vld [vmem:[%s9187_s0] sm:$0xff]  ;;  %v49_v16 = vld [vmem:[%s9187_s0 + $0x8] sm:$0xff]  ;;  %v164_v17 = vld [vmem:[%s9188_s1 + $0x18] sm:$0xff]  ;;  %v9228_v36 = vmov 34   ;;  %v6427_v37 = vshrl.u32 %v471_v33, 7  ;;  %v9227_v40 = vmov 35  }
   0xc   :  { %5462 = vmatprep.mubr.msk.f32.mxu1 %vm186_vm1, %v161_v10  ;;  %5442 = vmatprep.subr.mxu0 %v53_v11  ;;  %v165_v18 = vld [vmem:[%s9188_s1 + $0x20] sm:$0xff]  ;;  %v166_v19 = vld [vmem:[%s9188_s1 + $0x28] sm:$0xff]  ;;  %v167_v20 = vld [vmem:[%s9188_s1 + $0x30] sm:$0xff]  ;;  %v9226_v42 = vmov 36   ;;  %v9225_v43 = vmov 37   ;;  %vm423_vm3 = vcmask 589312  }
   0xd   :  { %5463 = vmatmul.mubr.msk.f32.vlgmr.msra.gmra.mxu1 %vm186_vm1, %v162_v12  ;;  %5443 = vmatpush3.msra.mxu0 %v53_v11  ;;  %v168_v21 = vld [vmem:[%s9188_s1 + $0x38] sm:$0xff]  ;;  %v169_v23 = vld [vmem:[%s9188_s1 + $0x40] sm:$0xff]  ;;  %v170_v24 = vld [vmem:[%s9188_s1 + $0x48] sm:$0xff]  ;;  %v769_v38 = vsub.s32 2, %v6427_v37  ;;  %v9224_v45 = vmov 38   ;;  %vm1013_vm4 = vcmask 654912  }
   0xe   :  { %5444 = vmatprep.subr.mxu0 %v52_v13  ;;  %5446 = vmatprep.mubr.msk.f32.mxu0 %vm59_vm2, %v48_v14  ;;  %v415_v39 = vld [vmem:[%s9189_s2] sm:$0xf]  ;;  %v9223_v47 = vmov 39   ;;  %v9206_v48 = vmov 40   ;;  %v9194_v49 = vmov 9   ;;  %v9219_v50 = vmov 10  }
   0xf   :  { %5445 = vmatpush3.msra.mxu0 %v52_v13  ;;  %5465 = vmatprep.mubr.msk.f32.mxu1 %vm186_vm1, %v163_v15  ;;  %v6438_v41 = vrot.slane %v415_v39, %v769_v38  ;;  %v9215_v52 = vmov 11   ;;  %v749_v53 = vsub.s32 3, %v6427_v37  ;;  %v9211_v55 = vmov 12   ;;  %s6194_s22 = smov 64   ;;  %s6213_s4 = smov 56  }
  0x10   :  { %5447 = vmatmul.mubr.msk.f32.vlgmr.msra.gmra.mxu0 %vm59_vm2, %v49_v16  ;;  %5805 = vset.pattern.permute.xlu1 %v9230_v22  ;;  %v9237_v56 = vmov 17   ;;  %v9207_v57 = vmov 13   ;;  %v9201_v58 = vmov 14   ;;  %v9195_v59 = vmov 15   ;;  %s6214_s23 = smov 48   ;;  %s6247_s28 = smov 32  }
  0x11   :  { %5466 = vmatmul.mubr.msk.f32.gmra.mxu1 %vm186_vm1, %v164_v17  ;;  %5821 = vset.pattern.permute.xlu0 %v9230_v22  ;;  %v6474_v54 = vrot.slane %v415_v39, %v749_v53  ;;  %v9246_v60 = vmov 1   ;;  %v9242_v62 = vmov 2   ;;  %vm1622_vm5 = vcmask 720512  }
  0x12   :  { %5468 = vmatprep.mubr.msk.f32.mxu1 %vm186_vm1, %v165_v18  ;;  %v9240_v0 = vmov 3   ;;  %v9238_v1 = vmov 4   ;;  %v9235_v2 = vmov 5   ;;  %v9248_v6 = vmov 21  }
  0x13   :  { %v9233_v7 = vmov 6   ;;  %v9231_v10 = vmov 7   ;;  %v9221_v15 = vmov 41   ;;  %v9217_v17 = vmov 42  }
  0x14   :  { %v9199_v33 = vmov 46   ;;  %v9197_v39 = vmov 47   ;;  %v9244_v22 = vmov 49   ;;  %vm444_vm6 = vcmask 64512  }
  0x15   :  { %5469 = vmatmul.mubr.msk.f32.gmra.mxu1 %vm186_vm1, %v166_v19  ;;  %v9213_v19 = vmov 43   ;;  %vm2221_vm7 = vcmask 786112   ;;  %vm655_vm8 = vcmask 523264   ;;  %vm929_vm9 = vcmask 130048  }
  0x16   :  { %5471 = vmatprep.mubr.msk.f32.mxu1 %vm186_vm1, %v167_v20  ;;  %vm2820_vm10 = vcmask 261120  }
  0x19   :  { %5472 = vmatmul.mubr.msk.f32.gmra.mxu1 %vm186_vm1, %v168_v21  ;;  %v9209_v21 = vmov 44  }
  0x1a   :  { %5474 = vmatprep.mubr.msk.f32.mxu1 %vm186_vm1, %v169_v23 }
  0x1d   :  { %5475 = vmatmul.mubr.msk.f32.gmra.mxu1 %vm186_vm1, %v170_v24  ;;  %v9203_v24 = vmov 45  }
  0xcd   :  { %v6397_v25 = vpop.f32.mrf.mxu1 }
  0xce   :  { %1244 = vrot.lane.b32.xlu1 %v6397_v25, %s6172_s19 }
  0xcf   :  { %v6401_v26 = vpop.f32.mrf.mxu1 }
  0xd0   :  { %1242 = vrot.lane.b32.xlu0 %v6401_v26, %s6172_s19  ;;  %v6405_v27 = vpop.f32.mrf.mxu0 }
  0xd1   :  { %v6407_v28 = vpop.f32.mrf.mxu1  ;;  %v427_v44 = vsel %vm423_vm3, %v6405_v27, -inf  ;;  %v1017_v46 = vsel %vm1013_vm4, %v6405_v27, -inf }
  0xd2   :  { %488 = vperm.xlu1 %5805, %v6405_v27   ;;  %v6468_v51 = vpop.f32.mrf.mxu0 }
  0xd3   :  { %v6410_v29 = vpop.f32.mrf.mxu1  ;;  %9427 = vst [vmem:[#allocation5_spill] sm:$0xff] %v6468_v51  ;;  %v424_v61 = vsel %vm423_vm3, %v6468_v51, -inf  ;;  %v1623_v63 = vsel %vm1622_vm5, %v6468_v51, -inf }
  0xd5   :  { %v6412_v30 = vpop.f32.mrf.mxu1 }
  0xd6   :  { %5806 = vset.pattern.permute.xlu1 %v9229_v31 }
  0xd7   :  { %v6415_v32 = vpop.f32.mrf.mxu1  ;;  %538 = vperm.xlu1 %5806, %v6405_v27  }
  0xd9   :  { %v6418_v34 = vpop.f32.mrf.mxu1 }
  0xda   :  { %5492 = vmatprep.subr.mxu0 %v6418_v34 }
  0xdb   :  { %v6421_v35 = vpop.f32.mrf.mxu1  ;;  %5493 = vmatpush3.msra.mxu0 %v6418_v34  ;;  %5807 = vset.pattern.permute.xlu1 %v9228_v36 }
  0xdc   :  { %5494 = vmatprep.subr.mxu0 %v6421_v35  ;;  %584 = vperm.xlu1 %5807, %v6405_v27  }
  0xdd   :  { %5495 = vmatpush3.msra.mxu0 %v6421_v35  ;;  %v6515_v3 = vpop.f32.mrf.mxu1 }
  0xde   :  { %5496 = vmatprep.subr.mxu0 %v6412_v30  ;;  %9428 = vst [vmem:[#allocation6_spill] sm:$0xff] %v6515_v3 }
  0xdf   :  { %5497 = vmatpush3.msra.mxu0 %v6412_v30  ;;  %v6545_v11 = vpop.f32.mrf.mxu1 }
  0xe0   :  { %5498 = vmatprep.subr.mxu0 %v6415_v32  ;;  %5808 = vset.pattern.permute.xlu1 %v9227_v40  ;;  %9430 = vst [vmem:[#allocation8_spill] sm:$0xff] %v6545_v11 }
  0xe1   :  { %5499 = vmatpush3.msra.mxu0 %v6415_v32  ;;  %630 = vperm.xlu1 %5808, %v6405_v27  }
  0xe2   :  { %5500 = vmatprep.subr.mxu0 %v6407_v28 }
  0xe3   :  { %5501 = vmatpush3.msra.mxu0 %v6407_v28 }
  0xe4   :  { %5502 = vmatprep.subr.mxu0 %v6410_v29 }
  0xe5   :  { %5503 = vmatpush3.msra.mxu0 %v6410_v29  ;;  %5809 = vset.pattern.permute.xlu1 %v9226_v42 }
  0xe6   :  { %5504 = vmatprep.subr.mxu0 %v6397_v25  ;;  %764 = vperm.xlu1 %5809, %v6405_v27  }
  0xe7   :  { %5505 = vmatpush3.msra.mxu0 %v6397_v25 }
  0xe8   :  { %5506 = vmatprep.subr.mxu0 %v6401_v26 }
  0xe9   :  { %5507 = vmatpush3.msra.mxu0 %v6401_v26 }
  0xea   :  { %5810 = vset.pattern.permute.xlu1 %v9225_v43  ;;  %5511 = vmatprep.subr.mxu0 %v6515_v3 }
  0xeb   :  { %812 = vperm.xlu1 %5810, %v6405_v27  }
  0xef   :  { %5811 = vset.pattern.permute.xlu1 %v9224_v45  ;;  %428 = vmax.xlane.f32.xlu0 %v427_v44 }
  0xf0   :  { %858 = vperm.xlu1 %5811, %v6405_v27  }
  0xf3   :  { %1018 = vmax.xlane.f32.xlu0 %v1017_v46  ;;  %v9205_v46 = vmov 48  }
  0xf4   :  { %5812 = vset.pattern.permute.xlu1 %v9223_v47 }
  0xf5   :  { %904 = vperm.xlu1 %5812, %v6405_v27  }
  0xf9   :  { %5813 = vset.pattern.permute.xlu1 %v9206_v48 }
  0xfa   :  { %1071 = vperm.xlu1 %5813, %v6405_v27  }
  0xfe   :  { %5814 = vset.pattern.permute.xlu1 %v9194_v49 }
  0xff   :  { %1101 = vperm.xlu1 %5814, %v6405_v27  }
 0x103   :  { %5815 = vset.pattern.permute.xlu1 %v9219_v50 }
 0x104   :  { %1147 = vperm.xlu1 %5815, %v6405_v27  }
 0x108   :  { %5816 = vset.pattern.permute.xlu1 %v9215_v52  ;;  %v1626_v52 = vsel %vm1622_vm5, %v6405_v27, -inf }
 0x109   :  { %1193 = vperm.xlu1 %5816, %v6405_v27   ;;  %484 = vperm.xlu0 %5821, %v6468_v51  }
 0x10d   :  { %1248 = vrot.lane.b32.xlu1 %v6407_v28, %s6172_s19  ;;  %1246 = vrot.lane.b32.xlu0 %v6410_v29, %s6172_s19 }
 0x10e   :  { %5817 = vset.pattern.permute.xlu1 %v9211_v55  ;;  %5847 = vset.pattern.permute.xlu0 %v9237_v56 }
 0x111   :  { %1354 = vperm.xlu1 %5817, %v6405_v27  }
 0x115   :  { %5818 = vset.pattern.permute.xlu1 %v9207_v57 }
 0x116   :  { %1398 = vperm.xlu1 %5818, %v6405_v27  }
 0x11a   :  { %5819 = vset.pattern.permute.xlu1 %v9201_v58 }
 0x11b   :  { %1444 = vperm.xlu1 %5819, %v6405_v27  }
 0x11f   :  { %5820 = vset.pattern.permute.xlu1 %v9195_v59 }
 0x120   :  { %1490 = vperm.xlu1 %5820, %v6405_v27  }
 0x124   :  { %5822 = vset.pattern.permute.xlu1 %v9246_v60 }
 0x125   :  { %518 = vperm.xlu1 %5822, %v6468_v51  }
 0x129   :  { %5823 = vset.pattern.permute.xlu1 %v9229_v31 }
 0x12a   :  { %534 = vperm.xlu1 %5823, %v6468_v51  }
 0x12c   :  { %425 = vmax.xlane.f32.xlu0 %v424_v61 }
 0x12e   :  { %5824 = vset.pattern.permute.xlu1 %v9242_v62  ;;  %v9252_v62 = vmov 50  }
 0x12f   :  { %564 = vperm.xlu1 %5824, %v6468_v51  }
 0x130   :  { %1624 = vmax.xlane.f32.xlu0 %v1623_v63 }
 0x133   :  { %5825 = vset.pattern.permute.xlu1 %v9228_v36 }
 0x134   :  { %580 = vperm.xlu1 %5825, %v6468_v51  }
 0x138   :  { %5826 = vset.pattern.permute.xlu1 %v9240_v0 }
 0x139   :  { %610 = vperm.xlu1 %5826, %v6468_v51  }
 0x13d   :  { %5827 = vset.pattern.permute.xlu1 %v9227_v40 }
 0x13e   :  { %626 = vperm.xlu1 %5827, %v6468_v51  }
 0x140   :  { %v6517_v4 = vpop.permute.xlu1 %1244 }
 0x141   :  { %9429 = vst [vmem:[#allocation7_spill] sm:$0xff] %v6517_v4 }
 0x142   :  { %5828 = vset.pattern.permute.xlu1 %v9238_v1 }
 0x143   :  { %740 = vperm.xlu1 %5828, %v6468_v51  }
 0x146   :  { %1250 = vrot.lane.b32.xlu0 %v6415_v32, %s6172_s19 }
 0x147   :  { %5829 = vset.pattern.permute.xlu1 %v9226_v42 }
 0x148   :  { %760 = vperm.xlu1 %5829, %v6468_v51  }
 0x14a   :  { %1254 = vrot.lane.b32.xlu0 %v6421_v35, %s6172_s19 }
 0x14c   :  { %5830 = vset.pattern.permute.xlu1 %v9235_v2  ;;  %v9250_v2 = vmov 18  }
 0x14d   :  { %792 = vperm.xlu1 %5830, %v6468_v51   ;;  %v6522_v5 = vpop.permute.xlu1 %488 }
 0x14e   :  { %1710 = vperm.xlu0 %5847, %v6405_v27  }
 0x151   :  { %5831 = vset.pattern.permute.xlu1 %v9225_v43 }
 0x152   :  { %808 = vperm.xlu1 %5831, %v6468_v51   ;;  %1845 = vrot.lane.b32.xlu0 %v6397_v25, %s6194_s22  ;;  %v6532_v8 = vpop.permute.xlu1 %538 }
 0x153   :  { %5855 = vset.pattern.permute.xlu0 %v9248_v6  ;;  %v9254_v6 = vmov 19  }
 0x156   :  { %5832 = vset.pattern.permute.xlu1 %v9233_v7  ;;  %1849 = vrot.lane.b32.xlu0 %v6407_v28, %s6194_s22 }
 0x157   :  { %838 = vperm.xlu1 %5832, %v6468_v51   ;;  %v6538_v9 = vpop.permute.xlu1 %584 }
 0x15a   :  { %1853 = vrot.lane.b32.xlu0 %v6412_v30, %s6194_s22 }
 0x15b   :  { %5833 = vset.pattern.permute.xlu1 %v9224_v45 }
 0x15c   :  { %854 = vperm.xlu1 %5833, %v6468_v51   ;;  %v6547_v12 = vpop.permute.xlu1 %630 }
 0x15e   :  { %1857 = vrot.lane.b32.xlu0 %v6418_v34, %s6194_s22 }
 0x160   :  { %5834 = vset.pattern.permute.xlu1 %v9231_v10 }
 0x161   :  { %884 = vperm.xlu1 %5834, %v6468_v51   ;;  %v6553_v13 = vpop.permute.xlu1 %764 }
 0x162   :  { %1999 = vperm.xlu0 %5855, %v6405_v27  }
 0x165   :  { %5835 = vset.pattern.permute.xlu1 %v9223_v47 }
 0x166   :  { %900 = vperm.xlu1 %5835, %v6468_v51   ;;  %1533 = vrot.lane.b32.xlu0 %v6545_v11, %s6172_s19  ;;  %v6558_v14 = vpop.permute.xlu1 %812 }
 0x16a   :  { %5836 = vset.pattern.permute.xlu1 %v9206_v48 }
 0x16b   :  { %1067 = vperm.xlu1 %5836, %v6468_v51   ;;  %v6563_v16 = vpop.permute.xlu1 %858 }
 0x16f   :  { %5837 = vset.pattern.permute.xlu1 %v9194_v49 }
 0x170   :  { %1097 = vperm.xlu1 %5837, %v6468_v51   ;;  %v6567_v18 = vpop.permute.xlu1 %904 }
 0x174   :  { %5838 = vset.pattern.permute.xlu1 %v9221_v15  ;;  %v6632_v15 = vpop.permute.xlu0 %1242 }
 0x175   :  { %1113 = vperm.xlu1 %5838, %v6468_v51   ;;  %v6571_v20 = vpop.permute.xlu1 %1071  ;;  %9440 = vst [vmem:[#allocation18_spill] sm:$0xff] %v6632_v15 }
 0x176   :  { %9431 = vst [vmem:[#allocation9_spill] sm:$0xff] %v6571_v20 }
 0x178   :  { %v429_v45 = vpop.xlane.xlu0 %428 }
 0x179   :  { %5839 = vset.pattern.permute.xlu1 %v9217_v17 }
 0x17a   :  { %1159 = vperm.xlu1 %5839, %v6468_v51   ;;  %v6575_v23 = vpop.permute.xlu1 %1101 }
 0x17b   :  { %9432 = vst [vmem:[#allocation10_spill] sm:$0xff] %v6575_v23 }
 0x17c   :  { %v6639_v42 = vpop.xlane.xlu0 %1018 }
 0x17d   :  { %v1021_v20 = vsub.f32 %v6405_v27, %v6639_v42  ;;  %v9262_v42 = vmov 53  }
 0x17e   :  { %5840 = vset.pattern.permute.xlu1 %v9213_v19 }
 0x17f   :  { %1205 = vperm.xlu1 %5840, %v6468_v51   ;;  %v6580_v38 = vpop.permute.xlu1 %1147 }
 0x180   :  { %9433 = vst [vmem:[#allocation11_spill] sm:$0xff] %v6580_v38 }
 0x183   :  { %5841 = vset.pattern.permute.xlu1 %v9209_v21 }
 0x184   :  { %1366 = vperm.xlu1 %5841, %v6468_v51   ;;  %v6585_v44 = vpop.permute.xlu1 %1193  ;;  %v6642_v40 = vpop.permute.xlu0 %484 }
 0x185   :  { %9434 = vst [vmem:[#allocation12_spill] sm:$0xff] %v6585_v44 }
 0x188   :  { %5842 = vset.pattern.permute.xlu1 %v9203_v24  ;;  %v6588_v53 = vpop.permute.xlu1 %1248 }
 0x189   :  { %1410 = vperm.xlu1 %5842, %v6468_v51   ;;  %9435 = vst [vmem:[#allocation13_spill] sm:$0xff] %v6588_v53 }
 0x18c   :  { %v6590_v61 = vpop.permute.xlu1 %1354 }
 0x18d   :  { %5843 = vset.pattern.permute.xlu1 %v9199_v33  ;;  %9436 = vst [vmem:[#allocation14_spill] sm:$0xff] %v6590_v61 }
 0x18e   :  { %1456 = vperm.xlu1 %5843, %v6468_v51  }
 0x191   :  { %v6592_v63 = vpop.permute.xlu1 %1398 }
 0x192   :  { %5844 = vset.pattern.permute.xlu1 %v9197_v39  ;;  %9437 = vst [vmem:[#allocation15_spill] sm:$0xff] %v6592_v63  ;;  %v1014_v39 = vsel %vm1013_vm4, %v6468_v51, -inf }
 0x193   :  { %1502 = vperm.xlu1 %5844, %v6468_v51  }
 0x196   :  { %v6594_v49 = vpop.permute.xlu1 %1444 }
 0x197   :  { %5845 = vset.pattern.permute.xlu1 %v9205_v46  ;;  %9438 = vst [vmem:[#allocation16_spill] sm:$0xff] %v6594_v49  ;;  %v9256_v49 = vmov 51  }
 0x19b   :  { %v6596_v59 = vpop.permute.xlu1 %1490 }
 0x19c   :  { %9439 = vst [vmem:[#allocation17_spill] sm:$0xff] %v6596_v59 }
 0x1a0   :  { %v6600_v33 = vpop.permute.xlu1 %518 }
 0x1a5   :  { %v6602_v58 = vpop.permute.xlu1 %534 }
 0x1aa   :  { %v6604_v24 = vpop.permute.xlu1 %564 }
 0x1af   :  { %v6608_v46 = vpop.permute.xlu1 %580 }
 0x1b4   :  { %v6612_v48 = vpop.permute.xlu1 %610 }
 0x1b7   :  { %1015 = vmax.xlane.f32.xlu1 %v1014_v39 }
 0x1b9   :  { %v6616_v39 = vpop.permute.xlu1 %626 }
 0x1be   :  { %v6618_v57 = vpop.permute.xlu1 %740 }
 0x1c3   :  { %v6620_v21 = vpop.permute.xlu1 %760 }
 0x1c8   :  { %1252 = vrot.lane.b32.xlu1 %v6412_v30, %s6172_s19  ;;  %v6622_v55 = vpop.permute.xlu1 %792 }
 0x1cc   :  { %1256 = vrot.lane.b32.xlu1 %v6418_v34, %s6172_s19 }
 0x1cd   :  { %v6624_v19 = vpop.permute.xlu1 %808 }
 0x1d0   :  { %1535 = vrot.lane.b32.xlu1 %v6515_v3, %s6172_s19 }
 0x1d2   :  { %v6628_v17 = vpop.permute.xlu1 %838 }
 0x1d7   :  { %v6630_v50 = vpop.permute.xlu1 %854 }
 0x1dc   :  { %v6634_v47 = vpop.permute.xlu1 %884 }
 0x1e1   :  { %v6637_v43 = vpop.permute.xlu1 %900 }
 0x1e6   :  { %v6644_v36 = vpop.permute.xlu1 %1067 }
 0x1e7   :  { %9441 = vst [vmem:[#allocation19_spill] sm:$0xff] %v6644_v36 }
 0x1eb   :  { %v6650_v31 = vpop.permute.xlu1 %1097 }
 0x1ec   :  { %9443 = vst [vmem:[#allocation21_spill] sm:$0xff] %v6650_v31 }
 0x1f0   :  { %v6657_v7 = vpop.permute.xlu1 %1113 }
 0x1f1   :  { %9444 = vst [vmem:[#allocation22_spill] sm:$0xff] %v6657_v7 }
 0x1f4   :  { %1627 = vmax.xlane.f32.xlu1 %v1626_v52  ;;  %v6648_v52 = vpop.permute.xlu0 %1246 }
 0x1f5   :  { %9442 = vst [vmem:[#allocation20_spill] sm:$0xff] %v6648_v52  ;;  %v6661_v1 = vpop.permute.xlu1 %1159 }
 0x1f6   :  { %9445 = vst [vmem:[#allocation23_spill] sm:$0xff] %v6661_v1 }
 0x1f8   :  { %v6654_v10 = vpop.xlane.xlu0 %425 }
 0x205   :  { %1676 = vperm.xlu1 %5845, %v6468_v51  }
 0x209   :  { %1680 = vperm.xlu1 %5845, %v6405_v27  }
 0x20d   :  { %5846 = vset.pattern.permute.xlu1 %v9237_v56  ;;  %v1625_v56 = vpop.xlane.xlu0 %1624 }
 0x20e   :  { %1706 = vperm.xlu1 %5846, %v6468_v51  }
 0x211   :  { %v6663_v0 = vpop.permute.xlu0 %1250 }
 0x212   :  { %5848 = vset.pattern.permute.xlu1 %v9244_v22  ;;  %9446 = vst [vmem:[#allocation24_spill] sm:$0xff] %v6663_v0  ;;  %v6667_v22 = vpop.permute.xlu1 %1205 }
 0x213   :  { %1722 = vperm.xlu1 %5848, %v6468_v51   ;;  %9447 = vst [vmem:[#allocation25_spill] sm:$0xff] %v6667_v22 }
 0x215   :  { %v6670_v60 = vpop.permute.xlu0 %1254 }
 0x216   :  { %9448 = vst [vmem:[#allocation26_spill] sm:$0xff] %v6670_v60 }
 0x217   :  { %1726 = vperm.xlu1 %5848, %v6405_v27  }
 0x219   :  { %v6676_v59 = vpop.permute.xlu0 %1710 }
 0x21a   :  { %9450 = vst [vmem:[#allocation28_spill] sm:$0xff] %v6676_v59 }
 0x21b   :  { %5849 = vset.pattern.permute.xlu1 %v9250_v2  ;;  %v6673_v2 = vpop.permute.xlu1 %1366 }
 0x21c   :  { %1752 = vperm.xlu1 %5849, %v6468_v51   ;;  %9449 = vst [vmem:[#allocation27_spill] sm:$0xff] %v6673_v2  ;;  %v9259_v2 = vmov 20  }
 0x21d   :  { %v6682_v61 = vpop.permute.xlu0 %1845 }
 0x21e   :  { %9452 = vst [vmem:[#allocation30_spill] sm:$0xff] %v6682_v61 }
 0x220   :  { %5850 = vset.pattern.permute.xlu1 %v9252_v62  ;;  %v6680_v62 = vpop.permute.xlu1 %1410 }
 0x221   :  { %1768 = vperm.xlu1 %5850, %v6468_v51   ;;  %9451 = vst [vmem:[#allocation29_spill] sm:$0xff] %v6680_v62 }
 0x224   :  { %v6685_v63 = vpop.permute.xlu1 %1456 }
 0x225   :  { %1772 = vperm.xlu1 %5850, %v6405_v27   ;;  %9453 = vst [vmem:[#allocation31_spill] sm:$0xff] %v6685_v63  ;;  %v1629_v63 = vsub.f32 %v6468_v51, %v1625_v56 }
 0x229   :  { %5851 = vset.pattern.permute.xlu1 %v9254_v6  ;;  %v6689_v6 = vpop.permute.xlu0 %1849 }
 0x22a   :  { %1798 = vperm.xlu1 %5851, %v6468_v51   ;;  %9454 = vst [vmem:[#allocation32_spill] sm:$0xff] %v6689_v6  ;;  %v431_v6 = vsub.f32 %v6405_v27, %v429_v45 }
 0x22d   :  { %v6696_v59 = vpop.permute.xlu0 %1853 }
 0x22e   :  { %5852 = vset.pattern.permute.xlu1 %v9256_v49  ;;  %v6694_v49 = vpop.permute.xlu1 %1502  ;;  %9456 = vst [vmem:[#allocation34_spill] sm:$0xff] %v6696_v59  ;;  %v434_v59 = vmul.f32 1.442695, %v431_v6 }
 0x22f   :  { %1814 = vperm.xlu1 %5852, %v6468_v51   ;;  %9455 = vst [vmem:[#allocation33_spill] sm:$0xff] %v6694_v49  ;;  %v1631_v49 = vmul.f32 1.442695, %v1629_v63 }
 0x233   :  { %1818 = vperm.xlu1 %5852, %v6405_v27  }
 0x237   :  { %1843 = vrot.lane.b32.xlu1 %v6401_v26, %s6194_s22 }
 0x238   :  { %5853 = vset.pattern.permute.xlu1 %v9259_v2  ;;  %v6705_v2 = vpop.permute.xlu0 %1857 }
 0x239   :  { %9457 = vst [vmem:[#allocation35_spill] sm:$0xff] %v6705_v2  ;;  %v9277_v2 = vmov 65  }
 0x23b   :  { %1847 = vrot.lane.b32.xlu1 %v6410_v29, %s6194_s22 }
 0x23c   :  { %v6714_v45 = vpop.permute.xlu0 %1999 }
 0x23d   :  { %9460 = vst [vmem:[#allocation38_spill] sm:$0xff] %v6714_v45  ;;  %v430_v45 = vsub.f32 %v6468_v51, %v6654_v10 }
 0x23f   :  { %1851 = vrot.lane.b32.xlu1 %v6415_v32, %s6194_s22  ;;  %v432_v22 = vmul.f32 1.442695, %v430_v45  ;;  %v9266_v45 = vmov 23  }
 0x240   :  { %v1016_v61 = vpop.xlane.xlu1 %1015  ;;  %5860 = vset.pattern.permute.xlu0 %v9266_v45 }
 0x241   :  { %v1020_v62 = vsub.f32 %v6468_v51, %v1016_v61  ;;  %v9461_v61 = vmov 21  }
 0x243   :  { %v1022_v44 = vmul.f32 1.442695, %v1020_v62  ;;  %1855 = vrot.lane.b32.xlu1 %v6421_v35, %s6194_s22  ;;  %v1024_v62 = vmul.f32 1.442695, %v1021_v20  ;;  %v9263_v20 = vmov 22  }
 0x244   :  { %v6707_v38 = vpop.permute.xlu1 %1252 }
 0x245   :  { %9458 = vst [vmem:[#allocation36_spill] sm:$0xff] %v6707_v38  ;;  %6084 = vpow2.f32 %v1022_v44  ;;  %v1534_v44 = vpop.permute.xlu0 %1533 }
 0x246   :  { %6086 = vpow2.f32 %v1631_v49 }
 0x247   :  { %1951 = vperm.xlu1 %5853, %v6468_v51   ;;  %6088 = vpow2.f32 %v434_v59 }
 0x248   :  { %v6712_v56 = vpop.permute.xlu1 %1256  ;;  %6090 = vpow2.f32 %v1024_v62 }
 0x249   :  { %9459 = vst [vmem:[#allocation37_spill] sm:$0xff] %v6712_v56 }
 0x24b   :  { %5854 = vset.pattern.permute.xlu1 %v9461_v61 }
 0x24c   :  { %1995 = vperm.xlu1 %5854, %v6468_v51   ;;  %v1536_v23 = vpop.permute.xlu1 %1535 }
 0x24d   :  { %5537 = vmatprep.subr.mxu1 %v1536_v23 }
 0x24e   :  { %5538 = vmatpush3.msra.mxu1 %v1536_v23 }
 0x24f   :  { %5539 = vmatprep.subr.mxu1 %v1534_v44 }
 0x250   :  { %5856 = vset.pattern.permute.xlu1 %v9262_v42  ;;  %5540 = vmatpush3.msra.mxu1 %v1534_v44 }
 0x251   :  { %2011 = vperm.xlu1 %5856, %v6468_v51  }
 0x252   :  { %v6720_v49 = vpop.eup %6084 }
 0x253   :  { %1028 = vrot.lane.b32.xlu0 %v6720_v49, %s6213_s4  ;;  %v6725_v59 = vpop.eup %6086 }
 0x254   :  { %v6729_v6 = vpop.eup %6088 }
 0x255   :  { %2015 = vperm.xlu1 %5856, %v6405_v27   ;;  %v6734_v23 = vpop.eup %6090 }
 0x257   :  { %1637 = vrot.lane.b32.xlu0 %v6725_v59, %s6214_s23 }
 0x259   :  { %440 = vrot.lane.b32.xlu1 %v6729_v6, %s6194_s22 }
 0x25a   :  { %5857 = vset.pattern.permute.xlu1 %v9263_v20 }
 0x25d   :  { %1030 = vrot.lane.b32.xlu1 %v6734_v23, %s6213_s4 }
 0x27d   :  { %v1628_v63 = vpop.xlane.xlu1 %1627 }
 0x27e   :  { %v1630_v62 = vsub.f32 %v6405_v27, %v1628_v63 }
 0x280   :  { %v1633_v44 = vmul.f32 1.442695, %v1630_v62 }
 0x281   :  { %v6739_v42 = vpop.permute.xlu1 %1676 }
 0x282   :  { %9462 = vst [vmem:[#allocation39_spill] sm:$0xff] %v6739_v42  ;;  %6092 = vpow2.f32 %v1633_v44 }
 0x283   :  { %6094 = vpow2.f32 %v432_v22  ;;  %v9265_v22 = vmov 54  }
 0x285   :  { %v6743_v61 = vpop.permute.xlu1 %1680 }
 0x286   :  { %9463 = vst [vmem:[#allocation40_spill] sm:$0xff] %v6743_v61 }
 0x289   :  { %v6745_v31 = vpop.permute.xlu1 %1706 }
 0x28a   :  { %9464 = vst [vmem:[#allocation41_spill] sm:$0xff] %v6745_v31 }
 0x28e   :  { %v6747_v20 = vpop.permute.xlu1 %1722 }
 0x28f   :  { %9465 = vst [vmem:[#allocation42_spill] sm:$0xff] %v6747_v20  ;;  %v6749_v1 = vpop.eup %6092 }
 0x290   :  { %1639 = vrot.lane.b32.xlu1 %v6749_v1, %s6214_s23  ;;  %v6756_v62 = vpop.eup %6094 }
 0x292   :  { %v6753_v63 = vpop.permute.xlu1 %1726 }
 0x293   :  { %9466 = vst [vmem:[#allocation43_spill] sm:$0xff] %v6753_v63 }
 0x294   :  { %2041 = vperm.xlu1 %5857, %v6468_v51  }
 0x297   :  { %v6758_v10 = vpop.permute.xlu1 %1752 }
 0x298   :  { %9467 = vst [vmem:[#allocation44_spill] sm:$0xff] %v6758_v10  ;;  %438 = vrot.lane.b32.xlu1 %v6756_v62, %s6194_s22 }
 0x299   :  { %5858 = vset.pattern.permute.xlu1 %v9265_v22 }
 0x29c   :  { %v6764_v44 = vpop.permute.xlu1 %1768  ;;  %2057 = vperm.xlu1 %5858, %v6468_v51  }
 0x29d   :  { %9468 = vst [vmem:[#allocation45_spill] sm:$0xff] %v6764_v44 }
 0x2a0   :  { %v6767_v31 = vpop.permute.xlu1 %1772  ;;  %2061 = vperm.xlu1 %5858, %v6405_v27  }
 0x2a1   :  { %9469 = vst [vmem:[#allocation46_spill] sm:$0xff] %v6767_v31 }
 0x2a4   :  { %5859 = vset.pattern.permute.xlu1 %v9266_v45 }
 0x2a5   :  { %v6771_v10 = vpop.permute.xlu1 %1798 }
 0x2a6   :  { %9470 = vst [vmem:[#allocation47_spill] sm:$0xff] %v6771_v10 }
 0x2aa   :  { %v6773_v63 = vpop.permute.xlu1 %1814 }
 0x2ab   :  { %9471 = vst [vmem:[#allocation48_spill] sm:$0xff] %v6773_v63 }
 0x2ae   :  { %v6775_v20 = vpop.permute.xlu1 %1818 }
 0x2af   :  { %9472 = vst [vmem:[#allocation49_spill] sm:$0xff] %v6775_v20 }
 0x2b2   :  { %v6777_v61 = vpop.permute.xlu1 %1843 }
 0x2b3   :  { %9473 = vst [vmem:[#allocation50_spill] sm:$0xff] %v6777_v61 }
 0x2b6   :  { %v6779_v42 = vpop.permute.xlu1 %1847 }
 0x2b7   :  { %9474 = vst [vmem:[#allocation51_spill] sm:$0xff] %v6779_v42 }
 0x2ba   :  { %v6781_v22 = vpop.permute.xlu1 %1851 }
 0x2bb   :  { %9475 = vst [vmem:[#allocation52_spill] sm:$0xff] %v6781_v22 }
 0x2be   :  { %v6783_v44 = vpop.permute.xlu1 %1855 }
 0x2bf   :  { %9476 = vst [vmem:[#allocation53_spill] sm:$0xff] %v6783_v44 }
 0x2c2   :  { %v6785_v7 = vpop.permute.xlu1 %1951 }
 0x2c3   :  { %9477 = vst [vmem:[#allocation54_spill] sm:$0xff] %v6785_v7 }
 0x2c5   :  { %v1029_v44 = vpop.permute.xlu0 %1028 }
 0x2c6   :  { %v1034_v7 = vsel %vm444_vm6, %v1029_v44, 0.0 }
 0x2c7   :  { %v6787_v31 = vpop.permute.xlu1 %1995 }
 0x2c8   :  { %9478 = vst [vmem:[#allocation55_spill] sm:$0xff] %v6787_v31 }
 0x2cc   :  { %v6789_v36 = vpop.permute.xlu1 %2011 }
 0x2cd   :  { %9479 = vst [vmem:[#allocation56_spill] sm:$0xff] %v6789_v36 }
 0x2d0   :  { %v6791_v45 = vpop.permute.xlu1 %2015 }
 0x2d1   :  { %9480 = vst [vmem:[#allocation57_spill] sm:$0xff] %v6791_v45 }
 0x2d4   :  { %v441_v10 = vpop.permute.xlu1 %440 }
 0x2d5   :  { %v448_v20 = vsel %vm444_vm6, %v441_v10, 0.0 }
 0x2d6   :  { %449 = vadd.xlane.f32.xlu1 %v448_v20  ;;  %v9271_v20 = vmov 55  }
 0x2d8   :  { %v1031_v63 = vpop.permute.xlu1 %1030 }
 0x2d9   :  { %v1037_v61 = vsel %vm444_vm6, %v1031_v63, 0.0 }
 0x2da   :  { %1038 = vadd.xlane.f32.xlu0 %v1037_v61  ;;  %v9274_v61 = vmov 64  }
 0x302   :  { %v1640_v42 = vpop.permute.xlu1 %1639 }
 0x303   :  { %v1646_v22 = vsel %vm444_vm6, %v1640_v42, 0.0 }
 0x304   :  { %1647 = vadd.xlane.f32.xlu1 %v1646_v22 }
 0x308   :  { %1035 = vadd.xlane.f32.xlu1 %v1034_v7 }
 0x30f   :  { %v6797_v31 = vpop.permute.xlu1 %2041 }
 0x310   :  { %9481 = vst [vmem:[#allocation58_spill] sm:$0xff] %v6797_v31 }
 0x313   :  { %v439_v45 = vpop.permute.xlu1 %438 }
 0x314   :  { %v445_v36 = vsel %vm444_vm6, %v439_v45, 0.0 }
 0x315   :  { %446 = vadd.xlane.f32.xlu0 %v445_v36  ;;  %v1638_v36 = vpop.permute.xlu0 %1637 }
 0x316   :  { %v1643_v7 = vsel %vm444_vm6, %v1638_v36, 0.0  ;;  %v9275_v36 = vmov 66  }
 0x317   :  { %v6812_v42 = vpop.permute.xlu1 %2057 }
 0x318   :  { %9482 = vst [vmem:[#allocation59_spill] sm:$0xff] %v6812_v42 }
 0x319   :  { %2087 = vperm.xlu1 %5859, %v6468_v51  }
 0x31b   :  { %v6814_v63 = vpop.permute.xlu1 %2061 }
 0x31c   :  { %9483 = vst [vmem:[#allocation60_spill] sm:$0xff] %v6814_v63 }
 0x31d   :  { %5861 = vset.pattern.permute.xlu1 %v9271_v20 }
 0x31e   :  { %2103 = vperm.xlu1 %5861, %v6468_v51  }
 0x322   :  { %2107 = vperm.xlu1 %5861, %v6405_v27  }
 0x326   :  { %2132 = vrot.lane.b32.xlu1 %v6545_v11, %s6194_s22 }
 0x327   :  { %5862 = vset.pattern.permute.xlu1 %v9274_v61 }
 0x32b   :  { %2091 = vperm.xlu0 %5860, %v6405_v27  }
 0x32f   :  { %2134 = vrot.lane.b32.xlu0 %v6515_v3, %s6194_s22 }
 0x330   :  { %5886 = vset.pattern.permute.xlu0 %v9274_v61 }
 0x34e   :  { %1644 = vadd.xlane.f32.xlu0 %v1643_v7  ;;  %v9279_v7 = vmov 67  }
 0x35f   :  { %v450_v10 = vpop.xlane.xlu1 %449 }
 0x360   :  { %6096 = vrcp.f32 %v450_v10 }
 0x363   :  { %v1039_v61 = vpop.xlane.xlu0 %1038 }
 0x364   :  { %6098 = vrcp.f32 %v1039_v61 }
 0x36d   :  { %v6097_v45 = vpop.eup %6096 }
 0x36e   :  { %v454_v22 = vmul.f32 %v6097_v45, %v450_v10  ;;  %v9281_v10 = vmov 68  }
 0x370   :  { %v456_v44 = vsub.f32 2.0, %v454_v22  ;;  %v9287_v22 = vmov 70  }
 0x372   :  { %v458_v20 = vmul.f32 %v6097_v45, %v456_v44 }
 0x374   :  { %v460_v31 = vmul.f32 %v6729_v6, %v458_v20  ;;  %v6099_v6 = vpop.eup %6098  ;;  %v9283_v20 = vmov 69  }
 0x375   :  { %v1043_v45 = vmul.f32 %v6099_v6, %v1039_v61 }
 0x376   :  { %512 = vperm.xlu1 %5862, %v460_v31  }
 0x377   :  { %v1045_v44 = vsub.f32 2.0, %v1043_v45 }
 0x37a   :  { %5863 = vset.pattern.permute.xlu1 %v9277_v2  ;;  %v9285_v2 = vmov 71  }
 0x37b   :  { %556 = vperm.xlu1 %5863, %v460_v31  }
 0x37f   :  { %5864 = vset.pattern.permute.xlu1 %v9275_v36  ;;  %v1047_v36 = vmul.f32 %v6099_v6, %v1045_v44  ;;  %v9291_v6 = vmov 74  }
 0x380   :  { %602 = vperm.xlu1 %5864, %v460_v31  }
 0x384   :  { %5865 = vset.pattern.permute.xlu1 %v9279_v7  ;;  %v1049_v7 = vmul.f32 %v6734_v23, %v1047_v36  ;;  %v9295_v36 = vmov 75  }
 0x385   :  { %648 = vperm.xlu1 %5865, %v460_v31  }
 0x389   :  { %5866 = vset.pattern.permute.xlu1 %v9281_v10  ;;  %v9293_v10 = vmov 72  }
 0x38a   :  { %786 = vperm.xlu1 %5866, %v460_v31  }
 0x38d   :  { %v1648_v61 = vpop.xlane.xlu1 %1647 }
 0x38e   :  { %5867 = vset.pattern.permute.xlu1 %v9283_v20  ;;  %v9289_v20 = vmov 73  }
 0x38f   :  { %830 = vperm.xlu1 %5867, %v460_v31  }
 0x393   :  { %5868 = vset.pattern.permute.xlu1 %v9287_v22 }
 0x394   :  { %876 = vperm.xlu1 %5868, %v460_v31  }
 0x398   :  { %5869 = vset.pattern.permute.xlu1 %v9285_v2 }
 0x399   :  { %922 = vperm.xlu1 %5869, %v460_v31  }
 0x39d   :  { %5870 = vset.pattern.permute.xlu1 %v9293_v10 }
 0x39e   :  { %1091 = vperm.xlu1 %5870, %v1049_v7   ;;  %v447_v63 = vpop.xlane.xlu0 %446 }
 0x39f   :  { %6100 = vrcp.f32 %v447_v63 }
 0x3a0   :  { %6102 = vrcp.f32 %v1648_v61 }
 0x3a2   :  { %5871 = vset.pattern.permute.xlu1 %v9289_v20  ;;  %v9320_v20 = vmov 76  }
 0x3a3   :  { %1135 = vperm.xlu1 %5871, %v1049_v7  }
 0x3a6   :  { %v6827_v45 = vpop.permute.xlu0 %2091 }
 0x3a7   :  { %9484 = vst [vmem:[#allocation61_spill] sm:$0xff] %v6827_v45  ;;  %5872 = vset.pattern.permute.xlu1 %v9291_v6  ;;  %v9297_v45 = vmov 77  }
 0x3a8   :  { %1181 = vperm.xlu1 %5872, %v1049_v7  }
 0x3aa   :  { %v6830_v31 = vpop.permute.xlu0 %2134 }
 0x3ab   :  { %9485 = vst [vmem:[#allocation62_spill] sm:$0xff] %v6830_v31  ;;  %5563 = vmatprep.subr.mxu1 %v6830_v31  ;;  %v9496_v31 = vmov 79  }
 0x3ac   :  { %v6101_v23 = vpop.eup %6100  ;;  %5873 = vset.pattern.permute.xlu1 %v9295_v36  ;;  %v9299_v36 = vmov 81  }
 0x3ad   :  { %v453_v44 = vmul.f32 %v6101_v23, %v447_v63  ;;  %1227 = vperm.xlu1 %5873, %v1049_v7   ;;  %v6103_v10 = vpop.eup %6102  ;;  %v9316_v63 = vmov 78  }
 0x3ae   :  { %v1652_v42 = vmul.f32 %v6103_v10, %v1648_v61  ;;  %v1036_v61 = vpop.xlane.xlu1 %1035 }
 0x3af   :  { %v455_v2 = vsub.f32 2.0, %v453_v44  ;;  %v9304_v44 = vmov 79   ;;  %6104 = vrcp.f32 %v1036_v61 }
 0x3b1   :  { %v457_v22 = vmul.f32 %v6101_v23, %v455_v2  ;;  %5874 = vset.pattern.permute.xlu1 %v9320_v20  ;;  %v1654_v2 = vsub.f32 2.0, %v1652_v42  ;;  %v2225_v42 = vsel %vm2221_vm7, %v6405_v27, -inf }
 0x3b2   :  { %1388 = vperm.xlu1 %5874, %v1049_v7  }
 0x3b3   :  { %v6836_v6 = vmul.f32 %v6756_v62, %v457_v22  ;;  %v1656_v23 = vmul.f32 %v6103_v10, %v1654_v2  ;;  %v9302_v22 = vmov 80   ;;  %v9310_v2 = vmov 85  }
 0x3b5   :  { %507 = vperm.xlu0 %5886, %v6836_v6   ;;  %v1658_v62 = vmul.f32 %v6749_v1, %v1656_v23  ;;  %v9308_v1 = vmov 84  }
 0x3b6   :  { %5875 = vset.pattern.permute.xlu1 %v9297_v45  ;;  %v9300_v45 = vmov 82  }
 0x3b7   :  { %1432 = vperm.xlu1 %5875, %v1049_v7  }
 0x3b9   :  { %5898 = vset.pattern.permute.xlu0 %v9299_v36 }
 0x3bb   :  { %5876 = vset.pattern.permute.xlu1 %v9316_v63  ;;  %v9494_v63 = vmov 77  }
 0x3bc   :  { %1478 = vperm.xlu1 %5876, %v1049_v7   ;;  %v6105_v10 = vpop.eup %6104 }
 0x3bd   :  { %v1042_v23 = vmul.f32 %v6105_v10, %v1036_v61  ;;  %v9489_v61 = vmov 73  }
 0x3c0   :  { %5877 = vset.pattern.permute.xlu1 %v9304_v44  ;;  %v9314_v44 = vmov 87  }
 0x3c1   :  { %1524 = vperm.xlu1 %5877, %v1049_v7   ;;  %v9306_v7 = vmov 83  }
 0x3c5   :  { %5878 = vset.pattern.permute.xlu1 %v9302_v22 }
 0x3c6   :  { %1700 = vperm.xlu1 %5878, %v1658_v62  }
 0x3ca   :  { %5879 = vset.pattern.permute.xlu1 %v9299_v36  ;;  %v9312_v36 = vmov 86  }
 0x3cb   :  { %1744 = vperm.xlu1 %5879, %v1658_v62  }
 0x3cf   :  { %5880 = vset.pattern.permute.xlu1 %v9300_v45  ;;  %v1044_v45 = vsub.f32 2.0, %v1042_v23 }
 0x3d0   :  { %1790 = vperm.xlu1 %5880, %v1658_v62  }
 0x3d1   :  { %v1046_v22 = vmul.f32 %v6105_v10, %v1044_v45  ;;  %v9491_v45 = vmov 74  }
 0x3d4   :  { %5881 = vset.pattern.permute.xlu1 %v9306_v7  ;;  %2226 = vmax.xlane.f32.xlu0 %v2225_v42  ;;  %v6854_v42 = vpop.permute.xlu1 %2087  ;;  %v1048_v7 = vmul.f32 %v6720_v49, %v1046_v22 }
 0x3d5   :  { %1836 = vperm.xlu1 %5881, %v1658_v62   ;;  %9486 = vst [vmem:[#allocation63_spill] sm:$0xff] %v6854_v42 }
 0x3d7   :  { %v1645_v23 = vpop.xlane.xlu0 %1644 }
 0x3d8   :  { %6106 = vrcp.f32 %v1645_v23 }
 0x3d9   :  { %5882 = vset.pattern.permute.xlu1 %v9308_v1  ;;  %v9487_v1 = vmov 72  }
 0x3da   :  { %1989 = vperm.xlu1 %5882, %v1658_v62  }
 0x3de   :  { %5883 = vset.pattern.permute.xlu1 %v9310_v2  ;;  %v6858_v2 = vpop.permute.xlu1 %2103 }
 0x3df   :  { %2033 = vperm.xlu1 %5883, %v1658_v62   ;;  %9488 = vst [vmem:[#allocation64_spill] sm:$0xff] %v6858_v2  ;;  %v9495_v2 = vmov 78  }
 0x3e3   :  { %5884 = vset.pattern.permute.xlu1 %v9312_v36  ;;  %v6861_v36 = vpop.permute.xlu1 %2107 }
 0x3e4   :  { %2079 = vperm.xlu1 %5884, %v1658_v62   ;;  %9490 = vst [vmem:[#allocation65_spill] sm:$0xff] %v6861_v36 }
 0x3e5   :  { %v6107_v22 = vpop.eup %6106 }
 0x3e6   :  { %v1651_v42 = vmul.f32 %v6107_v22, %v1645_v23  ;;  %v51_v23 = vld [vmem:[%s9187_s0 + $0x18] sm:$0xff] }
 0x3e7   :  { %v6864_v10 = vpop.permute.xlu1 %2132 }
 0x3e8   :  { %5885 = vset.pattern.permute.xlu1 %v9314_v44  ;;  %9492 = vst [vmem:[#allocation66_spill] sm:$0xff] %v6864_v10  ;;  %v1653_v10 = vsub.f32 2.0, %v1651_v42 }
 0x3e9   :  { %2125 = vperm.xlu1 %5885, %v1658_v62   ;;  %v9493_v62 = vmov 75  }
 0x3ed   :  { %5887 = vset.pattern.permute.xlu1 %v9487_v1 }
 0x3ee   :  { %1086 = vperm.xlu1 %5887, %v1048_v7  }
 0x3f1   :  { %v6867_v49 = vpop.permute.xlu1 %512 }
 0x3f2   :  { %5888 = vset.pattern.permute.xlu1 %v9489_v61 }
 0x3f3   :  { %1131 = vperm.xlu1 %5888, %v1048_v7  }
 0x3f6   :  { %v6870_v44 = vpop.permute.xlu1 %556 }
 0x3f7   :  { %5889 = vset.pattern.permute.xlu1 %v9491_v45 }
 0x3f8   :  { %1177 = vperm.xlu1 %5889, %v1048_v7  }
 0x3fb   :  { %v6873_v36 = vpop.permute.xlu1 %602 }
 0x3fc   :  { %5890 = vset.pattern.permute.xlu1 %v9493_v62  ;;  %v1655_v62 = vmul.f32 %v6107_v22, %v1653_v10  ;;  %v9498_v10 = vmov 80  }
 0x3fd   :  { %1223 = vperm.xlu1 %5890, %v1048_v7  }
 0x3fe   :  { %v6888_v42 = vmul.f32 %v6725_v59, %v1655_v62  ;;  %v2222_v59 = vsel %vm2221_vm7, %v6468_v51, -inf }
 0x400   :  { %v6877_v45 = vpop.permute.xlu1 %648  ;;  %9497 = vst [vmem:[#allocation67_spill] sm:$0xff] %v6888_v42 }
 0x401   :  { %5891 = vset.pattern.permute.xlu1 %v9320_v20  ;;  %v50_v20 = vld [vmem:[%s9187_s0 + $0x10] sm:$0xff]  ;;  %s6243_s0 = smov 40  }
 0x402   :  { %1384 = vperm.xlu1 %5891, %v1048_v7   ;;  %5449 = vmatprep.mubr.msk.f32.mxu0 %vm59_vm2, %v50_v20 }
 0x403   :  { %5450 = vmatmul.mubr.msk.f32.gmra.mxu0 %vm59_vm2, %v51_v23 }
 0x406   :  { %5892 = vset.pattern.permute.xlu1 %v9494_v63 }
 0x407   :  { %1428 = vperm.xlu1 %5892, %v1048_v7  }
 0x40b   :  { %5893 = vset.pattern.permute.xlu1 %v9495_v2 }
 0x40c   :  { %1474 = vperm.xlu1 %5893, %v1048_v7  }
 0x410   :  { %5894 = vset.pattern.permute.xlu1 %v9496_v31 }
 0x411   :  { %1520 = vperm.xlu1 %5894, %v1048_v7   ;;  %v6892_v7 = vpop.permute.xlu1 %786 }
 0x415   :  { %5895 = vset.pattern.permute.xlu1 %v9498_v10  ;;  %v6894_v22 = vpop.permute.xlu1 %830 }
 0x416   :  { %1695 = vperm.xlu1 %5895, %v6888_v42  }
 0x419   :  { %v6896_v31 = vpop.permute.xlu1 %876 }
 0x41d   :  { %v6898_v2 = vpop.permute.xlu1 %922 }
 0x41e   :  { %9499 = vst [vmem:[#allocation68_spill] sm:$0xff] %v6898_v2 }
 0x421   :  { %v6900_v63 = vpop.permute.xlu1 %1091 }
 0x422   :  { %9500 = vst [vmem:[#allocation69_spill] sm:$0xff] %v6900_v63 }
 0x425   :  { %v6902_v20 = vpop.permute.xlu1 %1135 }
 0x426   :  { %9501 = vst [vmem:[#allocation70_spill] sm:$0xff] %v6902_v20 }
 0x429   :  { %v6906_v62 = vpop.permute.xlu1 %1181 }
 0x42a   :  { %9502 = vst [vmem:[#allocation71_spill] sm:$0xff] %v6906_v62 }
 0x42d   :  { %v6908_v23 = vpop.permute.xlu1 %1227 }
 0x42e   :  { %9503 = vst [vmem:[#allocation72_spill] sm:$0xff] %v6908_v23 }
 0x430   :  { %v6916_v15 = vpop.permute.xlu0 %507 }
 0x431   :  { %v6910_v10 = vpop.permute.xlu1 %1388 }
 0x432   :  { %9504 = vst [vmem:[#allocation73_spill] sm:$0xff] %v6910_v10 }
 0x435   :  { %v6912_v61 = vpop.permute.xlu1 %1432 }
 0x436   :  { %9505 = vst [vmem:[#allocation74_spill] sm:$0xff] %v6912_v61 }
 0x439   :  { %v6914_v1 = vpop.permute.xlu1 %1478 }
 0x43a   :  { %2223 = vmax.xlane.f32.xlu1 %v2222_v59  ;;  %9506 = vst [vmem:[#allocation75_spill] sm:$0xff] %v6914_v1 }
 0x43d   :  { %v6918_v4 = vpop.permute.xlu1 %1524 }
 0x43e   :  { %9507 = vst [vmem:[#allocation76_spill] sm:$0xff] %v6918_v4 }
 0x441   :  { %v6921_v52 = vpop.permute.xlu1 %1700 }
 0x442   :  { %9508 = vst [vmem:[#allocation77_spill] sm:$0xff] %v6921_v52 }
 0x446   :  { %v6923_v62 = vpop.permute.xlu1 %1744 }
 0x447   :  { %9509 = vst [vmem:[#allocation78_spill] sm:$0xff] %v6923_v62 }
 0x44b   :  { %v6925_v23 = vpop.permute.xlu1 %1790 }
 0x44c   :  { %9510 = vst [vmem:[#allocation79_spill] sm:$0xff] %v6925_v23 }
 0x450   :  { %v6931_v1 = vpop.permute.xlu1 %1836 }
 0x451   :  { %9511 = vst [vmem:[#allocation80_spill] sm:$0xff] %v6931_v1 }
 0x455   :  { %v6933_v4 = vpop.permute.xlu1 %1989 }
 0x456   :  { %9512 = vst [vmem:[#allocation81_spill] sm:$0xff] %v6933_v4 }
 0x45a   :  { %v6935_v61 = vpop.permute.xlu1 %2033 }
 0x45b   :  { %9513 = vst [vmem:[#allocation82_spill] sm:$0xff] %v6935_v61 }
 0x45d   :  { %v2227_v63 = vpop.xlane.xlu0 %2226 }
 0x45e   :  { %v2229_v20 = vsub.f32 %v6405_v27, %v2227_v63 }
 0x45f   :  { %v6937_v63 = vpop.permute.xlu1 %2079 }
 0x460   :  { %v2232_v59 = vmul.f32 1.442695, %v2229_v20  ;;  %9514 = vst [vmem:[#allocation83_spill] sm:$0xff] %v6937_v63 }
 0x462   :  { %6108 = vpow2.f32 %v2232_v59 }
 0x464   :  { %v6939_v20 = vpop.permute.xlu1 %2125 }
 0x465   :  { %9515 = vst [vmem:[#allocation84_spill] sm:$0xff] %v6939_v20 }
 0x469   :  { %v6941_v59 = vpop.permute.xlu1 %1086 }
 0x46a   :  { %9516 = vst [vmem:[#allocation85_spill] sm:$0xff] %v6941_v59 }
 0x46e   :  { %v6943_v62 = vpop.permute.xlu1 %1131 }
 0x46f   :  { %v6927_v10 = vpop.eup %6108  ;;  %9517 = vst [vmem:[#allocation86_spill] sm:$0xff] %v6943_v62  ;;  %v9326_v62 = vmov 24  }
 0x470   :  { %2238 = vrot.lane.b32.xlu1 %v6927_v10, %s6243_s0 }
 0x471   :  { %5896 = vset.pattern.permute.xlu1 %v9326_v62 }
 0x473   :  { %v6945_v23 = vpop.permute.xlu1 %1177 }
 0x474   :  { %9518 = vst [vmem:[#allocation87_spill] sm:$0xff] %v6945_v23 }
 0x478   :  { %v6947_v52 = vpop.permute.xlu1 %1223 }
 0x479   :  { %9519 = vst [vmem:[#allocation88_spill] sm:$0xff] %v6947_v52 }
 0x47d   :  { %v6949_v53 = vpop.permute.xlu1 %1384 }
 0x47e   :  { %9520 = vst [vmem:[#allocation89_spill] sm:$0xff] %v6949_v53 }
 0x482   :  { %v6951_v0 = vpop.permute.xlu1 %1428 }
 0x483   :  { %9521 = vst [vmem:[#allocation90_spill] sm:$0xff] %v6951_v0 }
 0x487   :  { %v6953_v1 = vpop.permute.xlu1 %1474 }
 0x488   :  { %9522 = vst [vmem:[#allocation91_spill] sm:$0xff] %v6953_v1 }
 0x48c   :  { %v6955_v4 = vpop.permute.xlu1 %1520 }
 0x48d   :  { %9523 = vst [vmem:[#allocation92_spill] sm:$0xff] %v6955_v4 }
 0x491   :  { %v6957_v61 = vpop.permute.xlu1 %1695 }
 0x492   :  { %9524 = vst [vmem:[#allocation93_spill] sm:$0xff] %v6957_v61  ;;  %v9525_v61 = vmov 84  }
 0x4c3   :  { %v2224_v63 = vpop.xlane.xlu1 %2223 }
 0x4c4   :  { %v2228_v20 = vsub.f32 %v6468_v51, %v2224_v63  ;;  %v9526_v63 = vmov 87  }
 0x4c6   :  { %v2230_v59 = vmul.f32 1.442695, %v2228_v20  ;;  %v9336_v20 = vmov 26  }
 0x4c8   :  { %6110 = vpow2.f32 %v2230_v59  ;;  %v9334_v59 = vmov 59  }
 0x4d5   :  { %v6961_v23 = vpop.eup %6110 }
 0x4d6   :  { %2236 = vrot.lane.b32.xlu0 %v6961_v23, %s6243_s0 }
 0x4e2   :  { %v2239_v53 = vpop.permute.xlu1 %2238 }
 0x4e3   :  { %v2245_v1 = vsel %vm444_vm6, %v2239_v53, 0.0  ;;  %v9330_v53 = vmov 28  }
 0x4f5   :  { %2246 = vadd.xlane.f32.xlu0 %v2245_v1  ;;  %v9328_v1 = vmov 60  }
 0x50b   :  { %1740 = vperm.xlu0 %5898, %v6888_v42  }
 0x50f   :  { %5899 = vset.pattern.permute.xlu0 %v9525_v61 }
 0x510   :  { %1985 = vperm.xlu0 %5899, %v6888_v42  }
 0x514   :  { %5900 = vset.pattern.permute.xlu0 %v9526_v63 }
 0x515   :  { %2121 = vperm.xlu0 %5900, %v6888_v42  }
 0x519   :  { %5905 = vset.pattern.permute.xlu0 %v9336_v20 }
 0x51a   :  { %2351 = vperm.xlu0 %5905, %v6468_v51  }
 0x51e   :  { %5911 = vset.pattern.permute.xlu0 %v9334_v59 }
 0x51f   :  { %2417 = vperm.xlu0 %5911, %v6405_v27  }
 0x523   :  { %2442 = vrot.lane.b32.xlu0 %v6401_v26, %s6247_s28  ;;  %v9332_v26 = vmov 61  }
 0x524   :  { %5913 = vset.pattern.permute.xlu0 %v9330_v53  ;;  %v9338_v53 = vmov 56  }
 0x527   :  { %2446 = vrot.lane.b32.xlu0 %v6410_v29, %s6247_s28 }
 0x52b   :  { %2450 = vrot.lane.b32.xlu0 %v6415_v32, %s6247_s28 }
 0x52f   :  { %2454 = vrot.lane.b32.xlu0 %v6421_v35, %s6247_s28  ;;  %v6992_v35 = vpop.f32.mrf.mxu0 }
 0x531   :  { %v6994_v62 = vpop.f32.mrf.mxu0 }
 0x533   :  { %2550 = vperm.xlu0 %5913, %v6468_v51  }
 0x537   :  { %5916 = vset.pattern.permute.xlu0 %v9328_v1  ;;  %v2823_v1 = vsel %vm423_vm3, %v6994_v62, -inf }
 0x538   :  { %2570 = vperm.xlu0 %5916, %v6405_v27  }
 0x53c   :  { %5920 = vset.pattern.permute.xlu0 %v9332_v26  ;;  %v9342_v26 = vmov 88  }
 0x53d   :  { %2614 = vperm.xlu0 %5920, %v6405_v27  }
 0x541   :  { %2731 = vrot.lane.b32.xlu0 %v6545_v11, %s6247_s28 }
 0x548   :  { %v2237_v29 = vpop.permute.xlu0 %2236 }
 0x549   :  { %v2242_v32 = vsel %vm444_vm6, %v2237_v29, 0.0 }
 0x54a   :  { %2243 = vadd.xlane.f32.xlu1 %v2242_v32 }
 0x55b   :  { %2263 = vperm.xlu1 %5896, %v6405_v27  }
 0x55f   :  { %5897 = vset.pattern.permute.xlu1 %v9338_v53 }
 0x560   :  { %2275 = vperm.xlu1 %5897, %v6468_v51   ;;  %2824 = vmax.xlane.f32.xlu0 %v2823_v1 }
 0x564   :  { %2279 = vperm.xlu1 %5897, %v6405_v27  }
 0x568   :  { %5901 = vset.pattern.permute.xlu1 %v9342_v26 }
 0x57e   :  { %v2247_v29 = vpop.xlane.xlu0 %2246 }
 0x57f   :  { %6112 = vrcp.f32 %v2247_v29 }
 0x586   :  { %v7003_v32 = vpop.permute.xlu0 %1740 }
 0x587   :  { %9527 = vst [vmem:[#allocation94_spill] sm:$0xff] %v7003_v32 }
 0x58b   :  { %v7005_v59 = vpop.permute.xlu0 %1985 }
 0x58c   :  { %9528 = vst [vmem:[#allocation95_spill] sm:$0xff] %v7005_v59 }
 0x590   :  { %v7007_v20 = vpop.permute.xlu0 %2121 }
 0x591   :  { %9529 = vst [vmem:[#allocation96_spill] sm:$0xff] %v7007_v20  ;;  %v6113_v20 = vpop.eup %6112 }
 0x595   :  { %v7009_v63 = vpop.permute.xlu0 %2351 }
 0x596   :  { %9530 = vst [vmem:[#allocation97_spill] sm:$0xff] %v7009_v63  ;;  %v2251_v63 = vmul.f32 %v6113_v20, %v2247_v29 }
 0x59a   :  { %v7011_v61 = vpop.permute.xlu0 %2417 }
 0x59b   :  { %9531 = vst [vmem:[#allocation98_spill] sm:$0xff] %v7011_v61 }
 0x59e   :  { %v7013_v53 = vpop.permute.xlu0 %2442 }
 0x59f   :  { %9532 = vst [vmem:[#allocation99_spill] sm:$0xff] %v7013_v53  ;;  %v2253_v53 = vsub.f32 2.0, %v2251_v63  ;;  %v9350_v63 = vmov 90  }
 0x5a1   :  { %v2255_v60 = vmul.f32 %v6113_v20, %v2253_v53  ;;  %v9357_v20 = vmov 27   ;;  %v9541_v53 = vmov 59  }
 0x5a2   :  { %v7015_v42 = vpop.permute.xlu0 %2446 }
 0x5a3   :  { %9533 = vst [vmem:[#allocation100_spill] sm:$0xff] %v7015_v42 }
 0x5a6   :  { %v7017_v1 = vpop.permute.xlu0 %2450 }
 0x5a7   :  { %9534 = vst [vmem:[#allocation101_spill] sm:$0xff] %v7017_v1 }
 0x5aa   :  { %v7019_v4 = vpop.permute.xlu0 %2454 }
 0x5ab   :  { %9535 = vst [vmem:[#allocation102_spill] sm:$0xff] %v7019_v4 }
 0x5ae   :  { %v7021_v26 = vpop.permute.xlu0 %2550 }
 0x5af   :  { %9536 = vst [vmem:[#allocation103_spill] sm:$0xff] %v7021_v26 }
 0x5b3   :  { %v7023_v59 = vpop.permute.xlu0 %2570 }
 0x5b4   :  { %9537 = vst [vmem:[#allocation104_spill] sm:$0xff] %v7023_v59  ;;  %v7035_v59 = vmul.f32 %v6927_v10, %v2255_v60  ;;  %v9356_v60 = vmov 89   ;;  %v9540_v10 = vmov 26  }
 0x5b8   :  { %v7025_v0 = vpop.permute.xlu0 %2614 }
 0x5b9   :  { %9538 = vst [vmem:[#allocation105_spill] sm:$0xff] %v7025_v0 }
 0x5bc   :  { %v7027_v42 = vpop.permute.xlu0 %2731 }
 0x5bd   :  { %9539 = vst [vmem:[#allocation106_spill] sm:$0xff] %v7027_v42 }
 0x5d3   :  { %v2244_v32 = vpop.xlane.xlu1 %2243 }
 0x5d4   :  { %6114 = vrcp.f32 %v2244_v32 }
 0x5e1   :  { %v6115_v61 = vpop.eup %6114 }
 0x5e2   :  { %v2250_v52 = vmul.f32 %v6115_v61, %v2244_v32  ;;  %v9542_v32 = vmov 28  }
 0x5e4   :  { %v2252_v38 = vsub.f32 2.0, %v2250_v52  ;;  %v9362_v52 = vmov 25  }
 0x5e6   :  { %v2254_v1 = vmul.f32 %v6115_v61, %v2252_v38  ;;  %v9366_v61 = vmov 57  }
 0x5e8   :  { %v7030_v4 = vmul.f32 %v6961_v23, %v2254_v1  ;;  %v9361_v23 = vmov 58   ;;  %v9543_v1 = vmov 60  }
 0x5e9   :  { %v2825_v26 = vpop.xlane.xlu0 %2824 }
 0x5ea   :  { %v2829_v56 = vsub.f32 %v6994_v62, %v2825_v26  ;;  %2294 = vperm.xlu1 %5901, %v7030_v4   ;;  %v9354_v26 = vmov 91  }
 0x5ec   :  { %v2831_v29 = vmul.f32 1.442695, %v2829_v56  ;;  %v9370_v56 = vmov 0  }
 0x5ed   :  { %5928 = vset.pattern.permute.xlu0 %v9370_v56 }
 0x5ee   :  { %6116 = vpow2.f32 %v2831_v29  ;;  %2299 = vperm.xlu1 %5901, %v7035_v59   ;;  %v9352_v29 = vmov 92  }
 0x5f2   :  { %5902 = vset.pattern.permute.xlu1 %v9362_v52 }
 0x5f3   :  { %2305 = vperm.xlu1 %5902, %v6468_v51  }
 0x5f7   :  { %2309 = vperm.xlu1 %5902, %v6405_v27  }
 0x5fb   :  { %v7041_v38 = vpop.eup %6116  ;;  %5903 = vset.pattern.permute.xlu1 %v9366_v61 }
 0x5fc   :  { %2321 = vperm.xlu1 %5903, %v6468_v51   ;;  %2837 = vrot.lane.b32.xlu0 %v7041_v38, %s6194_s22 }
 0x600   :  { %5904 = vset.pattern.permute.xlu1 %v9356_v60 }
 0x601   :  { %2339 = vperm.xlu1 %5904, %v7030_v4  }
 0x605   :  { %2343 = vperm.xlu1 %5904, %v7035_v59  }
 0x609   :  { %5906 = vset.pattern.permute.xlu1 %v9540_v10 }
 0x60a   :  { %2355 = vperm.xlu1 %5906, %v6405_v27  }
 0x60e   :  { %5907 = vset.pattern.permute.xlu1 %v9361_v23 }
 0x60f   :  { %2367 = vperm.xlu1 %5907, %v6468_v51  }
 0x613   :  { %5908 = vset.pattern.permute.xlu1 %v9350_v63  ;;  %v9360_v63 = vmov 93  }
 0x614   :  { %2385 = vperm.xlu1 %5908, %v7030_v4  }
 0x618   :  { %2389 = vperm.xlu1 %5908, %v7035_v59  }
 0x61c   :  { %5909 = vset.pattern.permute.xlu1 %v9357_v20  ;;  %v9368_v20 = vmov 62  }
 0x61d   :  { %2401 = vperm.xlu1 %5909, %v6405_v27  }
 0x621   :  { %5910 = vset.pattern.permute.xlu1 %v9541_v53  ;;  %v9557_v53 = vmov 1  }
 0x622   :  { %2413 = vperm.xlu1 %5910, %v6468_v51  }
 0x626   :  { %5912 = vset.pattern.permute.xlu1 %v9354_v26  ;;  %v9364_v26 = vmov 30  }
 0x627   :  { %2431 = vperm.xlu1 %5912, %v7030_v4  }
 0x62b   :  { %2435 = vperm.xlu1 %5912, %v7035_v59  }
 0x62f   :  { %2444 = vrot.lane.b32.xlu1 %v6397_v25, %s6247_s28  ;;  %v9359_v25 = vmov 29  }
 0x630   :  { %5914 = vset.pattern.permute.xlu1 %v9542_v32  ;;  %v2826_v32 = vsel %vm423_vm3, %v6992_v35, -inf }
 0x633   :  { %2448 = vrot.lane.b32.xlu1 %v6407_v28, %s6247_s28  ;;  %v7082_v28 = vpop.permute.xlu1 %2263 }
 0x634   :  { %9544 = vst [vmem:[#allocation107_spill] sm:$0xff] %v7082_v28 }
 0x637   :  { %2452 = vrot.lane.b32.xlu1 %v6412_v30, %s6247_s28  ;;  %v9545_v30 = vmov 61  }
 0x63b   :  { %2456 = vrot.lane.b32.xlu1 %v6418_v34, %s6247_s28  ;;  %v7086_v34 = vpop.permute.xlu1 %2275 }
 0x63c   :  { %9546 = vst [vmem:[#allocation108_spill] sm:$0xff] %v7086_v34 }
 0x63f   :  { %2554 = vperm.xlu1 %5914, %v6405_v27  }
 0x643   :  { %5915 = vset.pattern.permute.xlu1 %v9543_v1 }
 0x644   :  { %2566 = vperm.xlu1 %5915, %v6468_v51  }
 0x648   :  { %5917 = vset.pattern.permute.xlu1 %v9352_v29  ;;  %v7091_v29 = vpop.permute.xlu1 %2279 }
 0x649   :  { %2584 = vperm.xlu1 %5917, %v7030_v4   ;;  %9547 = vst [vmem:[#allocation109_spill] sm:$0xff] %v7091_v29 }
 0x64d   :  { %2588 = vperm.xlu1 %5917, %v7035_v59  }
 0x651   :  { %5918 = vset.pattern.permute.xlu1 %v9359_v25 }
 0x652   :  { %2598 = vperm.xlu1 %5918, %v6405_v27  }
 0x656   :  { %5919 = vset.pattern.permute.xlu1 %v9545_v30  ;;  %v9562_v30 = vmov 65  }
 0x657   :  { %2610 = vperm.xlu1 %5919, %v6468_v51  }
 0x65b   :  { %5921 = vset.pattern.permute.xlu1 %v9360_v63  ;;  %v9371_v63 = vmov 94  }
 0x65c   :  { %2628 = vperm.xlu1 %5921, %v7030_v4  }
 0x660   :  { %2632 = vperm.xlu1 %5921, %v7035_v59  }
 0x664   :  { %5922 = vset.pattern.permute.xlu1 %v9364_v26 }
 0x665   :  { %v7094_v60 = vpop.permute.xlu1 %2294  ;;  %2644 = vperm.xlu1 %5922, %v6405_v27  }
 0x666   :  { %9548 = vst [vmem:[#allocation110_spill] sm:$0xff] %v7094_v60 }
 0x669   :  { %5923 = vset.pattern.permute.xlu1 %v9368_v20  ;;  %v7098_v25 = vpop.permute.xlu1 %2299  ;;  %v9374_v20 = vmov 31  }
 0x66a   :  { %9549 = vst [vmem:[#allocation111_spill] sm:$0xff] %v7098_v25  ;;  %2656 = vperm.xlu1 %5923, %v6468_v51  }
 0x66e   :  { %5924 = vset.pattern.permute.xlu1 %v9371_v63  ;;  %v7102_v23 = vpop.permute.xlu1 %2305  ;;  %v2838_v52 = vpop.permute.xlu0 %2837  ;;  %v9372_v63 = vmov 63  }
 0x66f   :  { %9550 = vst [vmem:[#allocation112_spill] sm:$0xff] %v7102_v23  ;;  %2674 = vperm.xlu1 %5924, %v7030_v4   ;;  %v2843_v26 = vsel %vm444_vm6, %v2838_v52, 0.0  ;;  %v9376_v52 = vmov 95  }
 0x670   :  { %2844 = vadd.xlane.f32.xlu0 %v2843_v26 }
 0x672   :  { %v7106_v61 = vpop.permute.xlu1 %2309 }
 0x673   :  { %9551 = vst [vmem:[#allocation113_spill] sm:$0xff] %v7106_v61  ;;  %2678 = vperm.xlu1 %5924, %v7035_v59  }
 0x677   :  { %5925 = vset.pattern.permute.xlu1 %v9374_v20  ;;  %v7111_v56 = vpop.permute.xlu1 %2321  ;;  %v9556_v20 = vmov 0  }
 0x678   :  { %2690 = vperm.xlu1 %5925, %v6405_v27   ;;  %9552 = vst [vmem:[#allocation114_spill] sm:$0xff] %v7111_v56  ;;  %v9599_v56 = vmov 71  }
 0x67c   :  { %5926 = vset.pattern.permute.xlu1 %v9372_v63  ;;  %v7115_v60 = vpop.permute.xlu1 %2339 }
 0x67d   :  { %2702 = vperm.xlu1 %5926, %v6468_v51   ;;  %9553 = vst [vmem:[#allocation115_spill] sm:$0xff] %v7115_v60 }
 0x680   :  { %v7119_v26 = vpop.permute.xlu1 %2343 }
 0x681   :  { %5927 = vset.pattern.permute.xlu1 %v9376_v52  ;;  %9554 = vst [vmem:[#allocation116_spill] sm:$0xff] %v7119_v26  ;;  %v9560_v52 = vmov 2  }
 0x682   :  { %2720 = vperm.xlu1 %5927, %v7030_v4  }
 0x685   :  { %v7126_v63 = vpop.permute.xlu1 %2355 }
 0x686   :  { %2724 = vperm.xlu1 %5927, %v7035_v59   ;;  %463 = vperm.xlu0 %5928, %v6468_v51   ;;  %9555 = vst [vmem:[#allocation117_spill] sm:$0xff] %v7126_v63  ;;  %v493_v51 = vsub.s32 0, %v6427_v37 }
 0x68a   :  { %2733 = vrot.lane.b32.xlu1 %v6515_v3, %s6247_s28  ;;  %2861 = vperm.xlu0 %5928, %v6994_v62   ;;  %v7131_v4 = vpop.permute.xlu1 %2367 }
 0x68b   :  { %5929 = vset.pattern.permute.xlu1 %v9556_v20  ;;  %9558 = vst [vmem:[#allocation118_spill] sm:$0xff] %v7131_v4  ;;  %v9597_v4 = vmov 7  }
 0x68e   :  { %5930 = vset.pattern.permute.xlu0 %v9557_v53 }
 0x68f   :  { %522 = vperm.xlu0 %5930, %v6405_v27   ;;  %v7134_v59 = vpop.permute.xlu1 %2385 }
 0x690   :  { %9559 = vst [vmem:[#allocation119_spill] sm:$0xff] %v7134_v59 }
 0x693   :  { %2912 = vperm.xlu0 %5930, %v6992_v35   ;;  %v7139_v26 = vpop.permute.xlu1 %2389 }
 0x694   :  { %9561 = vst [vmem:[#allocation120_spill] sm:$0xff] %v7139_v26 }
 0x697   :  { %5934 = vset.pattern.permute.xlu0 %v9560_v52 }
 0x698   :  { %568 = vperm.xlu0 %5934, %v6405_v27   ;;  %v7143_v20 = vpop.permute.xlu1 %2401 }
 0x699   :  { %9563 = vst [vmem:[#allocation121_spill] sm:$0xff] %v7143_v20 }
 0x69c   :  { %2958 = vperm.xlu0 %5934, %v6992_v35  }
 0x69d   :  { %v7145_v1 = vpop.permute.xlu1 %2413 }
 0x69e   :  { %9564 = vst [vmem:[#allocation122_spill] sm:$0xff] %v7145_v1 }
 0x6a0   :  { %5938 = vset.pattern.permute.xlu0 %v9562_v30 }
 0x6a1   :  { %552 = vperm.xlu0 %5938, %v6836_v6  }
 0x6a2   :  { %v7149_v10 = vpop.permute.xlu1 %2431 }
 0x6a3   :  { %9565 = vst [vmem:[#allocation123_spill] sm:$0xff] %v7149_v10 }
 0x6a6   :  { %v7151_v59 = vpop.permute.xlu1 %2435 }
 0x6a7   :  { %9566 = vst [vmem:[#allocation124_spill] sm:$0xff] %v7151_v59 }
 0x6aa   :  { %v7153_v60 = vpop.permute.xlu1 %2444 }
 0x6ab   :  { %9567 = vst [vmem:[#allocation125_spill] sm:$0xff] %v7153_v60 }
 0x6ae   :  { %2827 = vmax.xlane.f32.xlu1 %v2826_v32  ;;  %v7155_v25 = vpop.permute.xlu1 %2448 }
 0x6af   :  { %9568 = vst [vmem:[#allocation126_spill] sm:$0xff] %v7155_v25 }
 0x6b2   :  { %v7157_v26 = vpop.permute.xlu1 %2452 }
 0x6b3   :  { %9569 = vst [vmem:[#allocation127_spill] sm:$0xff] %v7157_v26 }
 0x6b6   :  { %v7159_v63 = vpop.permute.xlu1 %2456 }
 0x6b7   :  { %9570 = vst [vmem:[#allocation128_spill] sm:$0xff] %v7159_v63 }
 0x6ba   :  { %v7161_v61 = vpop.permute.xlu1 %2554 }
 0x6bb   :  { %9571 = vst [vmem:[#allocation129_spill] sm:$0xff] %v7161_v61 }
 0x6bf   :  { %v7163_v20 = vpop.permute.xlu1 %2566 }
 0x6c0   :  { %9572 = vst [vmem:[#allocation130_spill] sm:$0xff] %v7163_v20 }
 0x6c4   :  { %v7165_v1 = vpop.permute.xlu1 %2584 }
 0x6c5   :  { %9573 = vst [vmem:[#allocation131_spill] sm:$0xff] %v7165_v1 }
 0x6c8   :  { %v7167_v34 = vpop.permute.xlu1 %2588 }
 0x6c9   :  { %9574 = vst [vmem:[#allocation132_spill] sm:$0xff] %v7167_v34 }
 0x6cd   :  { %v7169_v32 = vpop.permute.xlu1 %2598 }
 0x6ce   :  { %9575 = vst [vmem:[#allocation133_spill] sm:$0xff] %v7169_v32 }
 0x6d2   :  { %v7171_v10 = vpop.permute.xlu1 %2610 }
 0x6d3   :  { %9576 = vst [vmem:[#allocation134_spill] sm:$0xff] %v7171_v10 }
 0x6d7   :  { %v7173_v59 = vpop.permute.xlu1 %2628 }
 0x6d8   :  { %9577 = vst [vmem:[#allocation135_spill] sm:$0xff] %v7173_v59  ;;  %v9582_v59 = vmov 66  }
 0x6db   :  { %v7175_v25 = vpop.permute.xlu1 %2632 }
 0x6dc   :  { %9578 = vst [vmem:[#allocation136_spill] sm:$0xff] %v7175_v25  ;;  %v9585_v25 = vmov 3  }
 0x6e0   :  { %v7177_v26 = vpop.permute.xlu1 %2644 }
 0x6e1   :  { %9579 = vst [vmem:[#allocation137_spill] sm:$0xff] %v7177_v26 }
 0x6e5   :  { %v7179_v23 = vpop.permute.xlu1 %2656 }
 0x6e6   :  { %9580 = vst [vmem:[#allocation138_spill] sm:$0xff] %v7179_v23 }
 0x6ea   :  { %v7184_v32 = vpop.permute.xlu1 %2674 }
 0x6eb   :  { %9581 = vst [vmem:[#allocation139_spill] sm:$0xff] %v7184_v32 }
 0x6ee   :  { %v7188_v10 = vpop.permute.xlu1 %2678 }
 0x6ef   :  { %9583 = vst [vmem:[#allocation140_spill] sm:$0xff] %v7188_v10 }
 0x6f9   :  { %v2845_v60 = vpop.xlane.xlu0 %2844 }
 0x6fa   :  { %6118 = vrcp.f32 %v2845_v60 }
 0x701   :  { %v464_v26 = vpop.permute.xlu0 %463 }
 0x705   :  { %v7233_v29 = vpop.permute.xlu0 %2861 }
 0x706   :  { %9598 = vst [vmem:[#allocation146_spill] sm:$0xff] %v7233_v29  ;;  %v473_v29 = vsub.s32 1, %v6427_v37 }
 0x707   :  { %v6119_v28 = vpop.eup %6118 }
 0x708   :  { %v2851_v61 = vmul.f32 %v6119_v28, %v2845_v60  ;;  %v7192_v60 = vpop.permute.xlu1 %2690 }
 0x709   :  { %9584 = vst [vmem:[#allocation141_spill] sm:$0xff] %v7192_v60  ;;  %v9592_v60 = vmov 68  }
 0x70a   :  { %v2853_v20 = vsub.f32 2.0, %v2851_v61  ;;  %v9587_v61 = vmov 67   ;;  %v7237_v0 = vpop.permute.xlu0 %522 }
 0x70c   :  { %v2855_v1 = vmul.f32 %v6119_v28, %v2853_v20  ;;  %v9590_v20 = vmov 4  }
 0x70e   :  { %v7182_v34 = vmul.f32 %v7041_v38, %v2855_v1  ;;  %v7196_v38 = vpop.permute.xlu1 %2702  ;;  %v7241_v42 = vpop.permute.xlu0 %2912 }
 0x70f   :  { %9586 = vst [vmem:[#allocation142_spill] sm:$0xff] %v7196_v38  ;;  %9600 = vst [vmem:[#allocation147_spill] sm:$0xff] %v7241_v42 }
 0x710   :  { %2942 = vperm.xlu0 %5938, %v7182_v34  }
 0x712   :  { %v7200_v1 = vpop.permute.xlu1 %2720 }
 0x713   :  { %9588 = vst [vmem:[#allocation143_spill] sm:$0xff] %v7200_v1  ;;  %v7243_v63 = vpop.permute.xlu0 %568 }
 0x714   :  { %5939 = vset.pattern.permute.xlu0 %v9582_v59 }
 0x715   :  { %598 = vperm.xlu0 %5939, %v6836_v6  }
 0x716   :  { %v7204_v28 = vpop.permute.xlu1 %2724 }
 0x717   :  { %9589 = vst [vmem:[#allocation144_spill] sm:$0xff] %v7204_v28  ;;  %v9593_v28 = vmov 5  }
 0x719   :  { %2988 = vperm.xlu0 %5939, %v7182_v34  }
 0x71a   :  { %v7208_v10 = vpop.permute.xlu1 %2733 }
 0x71b   :  { %9591 = vst [vmem:[#allocation145_spill] sm:$0xff] %v7208_v10  ;;  %v7245_v10 = vpop.permute.xlu0 %2958 }
 0x71c   :  { %9601 = vst [vmem:[#allocation148_spill] sm:$0xff] %v7245_v10 }
 0x71d   :  { %5941 = vset.pattern.permute.xlu0 %v9585_v25 }
 0x71e   :  { %614 = vperm.xlu0 %5941, %v6405_v27  }
 0x722   :  { %3004 = vperm.xlu0 %5941, %v6992_v35  }
 0x726   :  { %5944 = vset.pattern.permute.xlu0 %v9587_v61 }
 0x727   :  { %644 = vperm.xlu0 %5944, %v6836_v6  }
 0x72b   :  { %3034 = vperm.xlu0 %5944, %v7182_v34  }
 0x72f   :  { %5946 = vset.pattern.permute.xlu0 %v9590_v20 }
 0x730   :  { %744 = vperm.xlu0 %5946, %v6405_v27  }
 0x734   :  { %3133 = vperm.xlu0 %5946, %v6992_v35  }
 0x737   :  { %v2828_v32 = vpop.xlane.xlu1 %2827 }
 0x738   :  { %v2830_v38 = vsub.f32 %v6992_v35, %v2828_v32  ;;  %5949 = vset.pattern.permute.xlu0 %v9592_v60  ;;  %v9594_v32 = vmov 69  }
 0x739   :  { %782 = vperm.xlu0 %5949, %v6836_v6  }
 0x73a   :  { %v2833_v1 = vmul.f32 1.442695, %v2830_v38  ;;  %v9595_v38 = vmov 6  }
 0x73c   :  { %6120 = vpow2.f32 %v2833_v1  ;;  %v9596_v1 = vmov 70  }
 0x73d   :  { %3163 = vperm.xlu0 %5949, %v7182_v34  }
 0x741   :  { %5951 = vset.pattern.permute.xlu0 %v9593_v28 }
 0x742   :  { %796 = vperm.xlu0 %5951, %v6405_v27  }
 0x746   :  { %3177 = vperm.xlu0 %5951, %v6992_v35  }
 0x749   :  { %v7218_v23 = vpop.eup %6120 }
 0x74a   :  { %2839 = vrot.lane.b32.xlu1 %v7218_v23, %s6194_s22  ;;  %5954 = vset.pattern.permute.xlu0 %v9594_v32 }
 0x74b   :  { %826 = vperm.xlu0 %5954, %v6836_v6  }
 0x74f   :  { %3207 = vperm.xlu0 %5954, %v7182_v34  }
 0x753   :  { %5956 = vset.pattern.permute.xlu0 %v9595_v38 }
 0x754   :  { %842 = vperm.xlu0 %5956, %v6405_v27  }
 0x758   :  { %3223 = vperm.xlu0 %5956, %v6992_v35  }
 0x75c   :  { %5959 = vset.pattern.permute.xlu0 %v9596_v1 }
 0x75d   :  { %872 = vperm.xlu0 %5959, %v6836_v6  }
 0x761   :  { %3253 = vperm.xlu0 %5959, %v7182_v34  }
 0x765   :  { %5961 = vset.pattern.permute.xlu0 %v9597_v4  ;;  %v553_v4 = vpop.permute.xlu0 %552 }
 0x766   :  { %888 = vperm.xlu0 %5961, %v6405_v27  }
 0x76a   :  { %3269 = vperm.xlu0 %5961, %v6992_v35  }
 0x76e   :  { %5964 = vset.pattern.permute.xlu0 %v9599_v56  ;;  %v6148_v56 = vld [vmem:[%s9189_s2] sm:$0xf] }
 0x76f   :  { %918 = vperm.xlu0 %5964, %v6836_v6   ;;  %v7252_v1 = vrot.slane %v6148_v56, %v493_v51  ;;  %v7254_v6 = vrot.slane %v6148_v56, %v473_v29 }
 0x771   :  { %v541_v42 = vsub.f32 %v6602_v58, %v7252_v1  ;;  %v475_v38 = vsub.f32 %v464_v26, %v7254_v6  ;;  %v495_v10 = vsub.f32 %v6642_v40, %v7252_v1  ;;  %v525_v37 = vsub.f32 %v6600_v33, %v7254_v6 }
 0x772   :  { %v587_v28 = vsub.f32 %v6608_v46, %v7252_v1  ;;  %v571_v56 = vsub.f32 %v6604_v24, %v7254_v6  ;;  %v3396_v40 = vsel %vm1013_vm4, %v6992_v35, -inf  ;;  %v617_v46 = vsub.f32 %v6612_v48, %v7254_v6 }
 0x773   :  { %3299 = vperm.xlu0 %5964, %v7182_v34   ;;  %v543_v51 = vand.u32 2147483647, %v541_v42  ;;  %v477_v29 = vand.u32 2147483647, %v475_v38  ;;  %v497_v60 = vand.u32 2147483647, %v495_v10 }
 0x774   :  { %v527_v20 = vand.u32 2147483647, %v525_v37  ;;  %v589_v26 = vand.u32 2147483647, %v587_v28  ;;  %v573_v61 = vand.u32 2147483647, %v571_v56 }
 0x775   :  { %v545_v33 = vsub.f32 1.0, %v543_v51  ;;  %v479_v42 = vsub.f32 1.0, %v477_v29  ;;  %v499_v24 = vsub.f32 1.0, %v497_v60  ;;  %v619_v52 = vand.u32 2147483647, %v617_v46 }
 0x776   :  { %v529_v10 = vsub.f32 1.0, %v527_v20  ;;  %v591_v38 = vsub.f32 1.0, %v589_v26  ;;  %v575_v59 = vsub.f32 1.0, %v573_v61 }
 0x777   :  { %v547_v28 = vmax.f32 %v545_v33, 0.0  ;;  %v501_v30 = vmax.f32 %v499_v24, 0.0  ;;  %v621_v3 = vsub.f32 1.0, %v619_v52 }
 0x778   :  { %v531_v53 = vmax.f32 %v529_v10, 0.0  ;;  %v593_v11 = vmax.f32 %v591_v38, 0.0  ;;  %v577_v56 = vmax.f32 %v575_v59, 0.0 }
 0x77a   :  { %v549_v29 = vmul.f32 %v547_v28, %v531_v53  ;;  %v595_v60 = vmul.f32 %v593_v11, %v577_v56  ;;  %v9606_v11 = vmov 64   ;;  %v542_v56 = vsub.f32 %v6532_v8, %v7252_v1 }
 0x77c   :  { %v544_v8 = vand.u32 2147483647, %v542_v56 }
 0x78b   :  { %v7259_v32 = vpop.permute.xlu0 %2942 }
 0x78c   :  { %9602 = vst [vmem:[#allocation149_spill] sm:$0xff] %v7259_v32  ;;  %v633_v32 = vsub.f32 %v6616_v39, %v7252_v1  ;;  %v481_v39 = vmax.f32 %v479_v42, 0.0 }
 0x78e   :  { %v635_v37 = vand.u32 2147483647, %v633_v32  ;;  %v503_v48 = vmul.f32 %v501_v30, %v481_v39  ;;  %v623_v32 = vmax.f32 %v621_v3, 0.0  ;;  %v9605_v3 = vmov 32  }
 0x790   :  { %v599_v58 = vpop.permute.xlu0 %598  ;;  %v515_v61 = vmul.f32 %v6916_v15, %v503_v48  ;;  %v588_v48 = vsub.f32 %v6538_v9, %v7252_v1 }
 0x791   :  { %v605_v26 = vmul.f32 %v599_v58, %v595_v60  ;;  %v772_v60 = vsub.f32 %v6553_v13, %v6438_v41  ;;  %v751_v13 = vsub.f32 %v6618_v57, %v6474_v54  ;;  %v815_v57 = vsub.f32 %v6624_v19, %v6438_v41 }
 0x792   :  { %3397 = vmax.xlane.f32.xlu0 %v3396_v40  ;;  %v637_v40 = vsub.f32 1.0, %v635_v37  ;;  %v572_v19 = vsub.f32 %v7243_v63, %v7254_v6 }
 0x794   :  { %v7275_v25 = vpop.permute.xlu0 %2988  ;;  %v639_v2 = vmax.f32 %v637_v40, 0.0  ;;  %v496_v40 = vsub.f32 %v6522_v5, %v7252_v1  ;;  %v908_v5 = vsub.f32 %v6567_v18, %v6438_v41 }
 0x795   :  { %9603 = vst [vmem:[#allocation150_spill] sm:$0xff] %v7275_v25  ;;  %v559_v25 = vmul.f32 %v553_v4, %v549_v29  ;;  %v634_v29 = vsub.f32 %v6547_v12, %v7252_v1 }
 0x796   :  { %v641_v46 = vmul.f32 %v639_v2, %v623_v32  ;;  %v816_v32 = vsub.f32 %v6558_v14, %v6438_v41  ;;  %v910_v14 = vand.u32 2147483647, %v908_v5 }
 0x797   :  { %v561_v33 = vadd.f32 %v559_v25, %v515_v61  ;;  %v862_v61 = vsub.f32 %v6563_v16, %v6438_v41  ;;  %v636_v9 = vand.u32 2147483647, %v634_v29 }
 0x798   :  { %v818_v12 = vand.u32 2147483647, %v816_v32  ;;  %v526_v32 = vsub.f32 %v7237_v0, %v7254_v6  ;;  %v799_v0 = vsub.f32 %v6622_v55, %v6474_v54 }
 0x799   :  { %v7277_v51 = vpop.permute.xlu0 %614  ;;  %v607_v24 = vadd.f32 %v605_v26, %v561_v33  ;;  %v498_v26 = vand.u32 2147483647, %v496_v40  ;;  %v590_v33 = vand.u32 2147483647, %v588_v48  ;;  %v638_v16 = vsub.f32 1.0, %v636_v9 }
 0x79a   :  { %v912_v48 = vsub.f32 1.0, %v910_v14  ;;  %v771_v9 = vsub.f32 %v6620_v21, %v6438_v41  ;;  %v845_v21 = vsub.f32 %v6628_v17, %v6474_v54  ;;  %v528_v14 = vand.u32 2147483647, %v526_v32 }
 0x79b   :  { %v801_v17 = vand.u32 2147483647, %v799_v0 }
 0x79c   :  { %v530_v32 = vsub.f32 1.0, %v528_v14 }
 0x79d   :  { %v7279_v20 = vpop.permute.xlu0 %3004 }
 0x79e   :  { %9604 = vst [vmem:[#allocation151_spill] sm:$0xff] %v7279_v20 }
 0x7a2   :  { %v645_v42 = vpop.permute.xlu0 %644 }
 0x7a3   :  { %v651_v10 = vmul.f32 %v645_v42, %v641_v46  ;;  %v774_v42 = vand.u32 2147483647, %v772_v60 }
 0x7a5   :  { %v653_v38 = vadd.f32 %v651_v10, %v607_v24  ;;  %v864_v24 = vand.u32 2147483647, %v862_v61  ;;  %v500_v10 = vsub.f32 1.0, %v498_v26  ;;  %v7345_v61 = vmax.f32 %v638_v16, 0.0 }
 0x7a6   :  { %v7291_v15 = vpop.permute.xlu0 %3034  ;;  %v773_v16 = vand.u32 2147483647, %v771_v9 }
 0x7a7   :  { %5508 = vmatprep.mubr.msk.f32.mxu0 %vm655_vm8, %v653_v38  ;;  %9607 = vst [vmem:[#allocation152_spill] sm:$0xff] %v7291_v15  ;;  %v546_v38 = vsub.f32 1.0, %v544_v8  ;;  %v866_v18 = vsub.f32 1.0, %v864_v24  ;;  %v7335_v56 = vmax.f32 %v500_v10, 0.0  ;;  %v817_v10 = vand.u32 2147483647, %v815_v57 }
 0x7a8   :  { %v847_v57 = vand.u32 2147483647, %v845_v21 }
 0x7a9   :  { %v7337_v29 = vmax.f32 %v546_v38, 0.0 }
 0x7ab   :  { %v7293_v2 = vpop.permute.xlu0 %744 }
 0x7ac   :  { %v752_v55 = vsub.f32 %v7293_v2, %v6474_v54 }
 0x7af   :  { %v7295_v25 = vpop.permute.xlu0 %3133 }
 0x7b0   :  { %9608 = vst [vmem:[#allocation153_spill] sm:$0xff] %v7295_v25 }
 0x7b4   :  { %v7297_v52 = vpop.permute.xlu0 %782 }
 0x7b8   :  { %v7299_v4 = vpop.permute.xlu0 %3163 }
 0x7b9   :  { %9609 = vst [vmem:[#allocation154_spill] sm:$0xff] %v7299_v4  ;;  %v775_v4 = vsub.f32 1.0, %v773_v16 }
 0x7bc   :  { %v2840_v30 = vpop.permute.xlu1 %2839 }
 0x7bd   :  { %v2846_v53 = vsel %vm444_vm6, %v2840_v30, 0.0  ;;  %v7301_v59 = vpop.permute.xlu0 %796  ;;  %v592_v30 = vsub.f32 1.0, %v590_v33  ;;  %v7351_v33 = vmax.f32 %v866_v18, 0.0 }
 0x7be   :  { %2847 = vadd.xlane.f32.xlu1 %v2846_v53  ;;  %v776_v53 = vsub.f32 1.0, %v774_v42  ;;  %v861_v42 = vsub.f32 %v6630_v50, %v6438_v41  ;;  %v800_v24 = vsub.f32 %v7301_v59, %v6474_v54  ;;  %v618_v50 = vsub.f32 %v7277_v51, %v7254_v6 }
 0x7bf   :  { %v7339_v60 = vmax.f32 %v592_v30, 0.0  ;;  %v891_v30 = vsub.f32 %v6634_v47, %v6474_v54 }
 0x7c0   :  { %v7347_v26 = vmax.f32 %v776_v53, 0.0  ;;  %v863_v53 = vand.u32 2147483647, %v861_v42  ;;  %v802_v18 = vand.u32 2147483647, %v800_v24  ;;  %v803_v42 = vsub.f32 1.0, %v801_v17 }
 0x7c1   :  { %v7303_v58 = vpop.permute.xlu0 %3177  ;;  %v620_v47 = vand.u32 2147483647, %v618_v50  ;;  %v849_v24 = vsub.f32 1.0, %v847_v57 }
 0x7c2   :  { %9610 = vst [vmem:[#allocation155_spill] sm:$0xff] %v7303_v58  ;;  %v804_v0 = vsub.f32 1.0, %v802_v18 }
 0x7c3   :  { %v851_v18 = vmax.f32 %v849_v24, 0.0 }
 0x7c4   :  { %v806_v17 = vmax.f32 %v804_v0, 0.0 }
 0x7c6   :  { %v7305_v37 = vpop.permute.xlu0 %826 }
 0x7ca   :  { %v7307_v28 = vpop.permute.xlu0 %3207 }
 0x7cb   :  { %9611 = vst [vmem:[#allocation156_spill] sm:$0xff] %v7307_v28 }
 0x7cf   :  { %468 = vperm.xlu1 %5929, %v6405_v27   ;;  %v7309_v39 = vpop.permute.xlu0 %842 }
 0x7d3   :  { %2866 = vperm.xlu1 %5929, %v6992_v35  }
 0x7d7   :  { %5931 = vset.pattern.permute.xlu1 %v9605_v3  ;;  %v820_v3 = vsub.f32 1.0, %v818_v12  ;;  %v7359_v12 = vmax.f32 %v912_v48, 0.0  ;;  %v819_v48 = vsub.f32 1.0, %v817_v10 }
 0x7d8   :  { %2878 = vperm.xlu1 %5931, %v6994_v62  }
 0x7d9   :  { %v7349_v5 = vmax.f32 %v820_v3, 0.0  ;;  %v574_v3 = vand.u32 2147483647, %v572_v19  ;;  %v821_v21 = vmax.f32 %v819_v48, 0.0 }
 0x7db   :  { %v576_v15 = vsub.f32 1.0, %v574_v3  ;;  %v805_v3 = vmax.f32 %v803_v42, 0.0  ;;  %v824_v42 = vmul.f32 %v7349_v5, %v806_v17  ;;  %v9621_v17 = vld [vmem:[#allocation36_spill] sm:$0xff] }
 0x7dc   :  { %2882 = vperm.xlu1 %5931, %v6992_v35  }
 0x7dd   :  { %v578_v58 = vmax.f32 %v576_v15, 0.0 }
 0x7e0   :  { %5932 = vset.pattern.permute.xlu1 %v9606_v11  ;;  %v753_v11 = vand.u32 2147483647, %v751_v13  ;;  %v907_v13 = vsub.f32 %v6637_v43, %v6438_v41  ;;  %v846_v43 = vsub.f32 %v7309_v39, %v6474_v54  ;;  %v865_v39 = vsub.f32 1.0, %v863_v53 }
 0x7e1   :  { %2897 = vperm.xlu1 %5932, %v7182_v34   ;;  %v7311_v34 = vpop.permute.xlu0 %3223 }
 0x7e2   :  { %9612 = vst [vmem:[#allocation157_spill] sm:$0xff] %v7311_v34  ;;  %v755_v8 = vsub.f32 1.0, %v753_v11  ;;  %v909_v11 = vand.u32 2147483647, %v907_v13  ;;  %v848_v2 = vand.u32 2147483647, %v846_v43 }
 0x7e3   :  { %v532_v34 = vmax.f32 %v530_v32, 0.0  ;;  %v867_v43 = vmax.f32 %v865_v39, 0.0 }
 0x7e4   :  { %v757_v38 = vmax.f32 %v755_v8, 0.0  ;;  %v893_v8 = vand.u32 2147483647, %v891_v30  ;;  %v911_v19 = vsub.f32 1.0, %v909_v11  ;;  %v850_v30 = vsub.f32 1.0, %v848_v2 }
 0x7e5   :  { %v7329_v46 = vpop.permute.xlu0 %872  ;;  %v869_v15 = vmul.f32 %v867_v43, %v851_v18  ;;  %v9623_v18 = vld [vmem:[#allocation24_spill] sm:$0xff] }
 0x7e6   :  { %v895_v14 = vsub.f32 1.0, %v893_v8  ;;  %v823_v8 = vmul.f32 %v821_v21, %v805_v3  ;;  %v9619_v3 = vmov 1  }
 0x7e7   :  { %v879_v5 = vmul.f32 %v7329_v46, %v869_v15  ;;  %v9633_v15 = vmov 3  }
 0x7e9   :  { %v7333_v40 = vpop.permute.xlu0 %3253 }
 0x7ea   :  { %9613 = vst [vmem:[#allocation158_spill] sm:$0xff] %v7333_v40  ;;  %v754_v40 = vand.u32 2147483647, %v752_v55  ;;  %v777_v55 = vmax.f32 %v775_v4, 0.0  ;;  %v596_v4 = vmul.f32 %v7339_v60, %v578_v58 }
 0x7ec   :  { %v756_v50 = vsub.f32 1.0, %v754_v40  ;;  %v852_v40 = vmax.f32 %v850_v30, 0.0  ;;  %v779_v2 = vmul.f32 %v777_v55, %v757_v38 }
 0x7ed   :  { %v889_v63 = vpop.permute.xlu0 %888 }
 0x7ee   :  { %v892_v51 = vsub.f32 %v889_v63, %v6474_v54  ;;  %v622_v63 = vsub.f32 1.0, %v620_v47  ;;  %v897_v47 = vmax.f32 %v895_v14, 0.0  ;;  %v758_v48 = vmax.f32 %v756_v50, 0.0 }
 0x7ef   :  { %v789_v60 = vmul.f32 %v7297_v52, %v779_v2  ;;  %v9632_v2 = vmov 66  }
 0x7f0   :  { %v894_v13 = vand.u32 2147483647, %v892_v51  ;;  %v550_v51 = vmul.f32 %v7337_v29, %v532_v34  ;;  %v624_v57 = vmax.f32 %v622_v63, 0.0  ;;  %v780_v58 = vmul.f32 %v7347_v26, %v758_v48  ;;  %v9628_v48 = vld [vmem:[#allocation18_spill] sm:$0xff] }
 0x7f1   :  { %v7379_v16 = vpop.permute.xlu0 %3269 }
 0x7f2   :  { %9614 = vst [vmem:[#allocation159_spill] sm:$0xff] %v7379_v16  ;;  %v896_v11 = vsub.f32 1.0, %v894_v13  ;;  %v560_v34 = vmul.f32 %v6870_v44, %v550_v51  ;;  %v642_v29 = vmul.f32 %v7345_v61, %v624_v57  ;;  %v834_v44 = vmul.f32 %v6894_v22, %v824_v42  ;;  %v9615_v22 = vld [vmem:[#allocation68_spill] sm:$0xff]  ;;  %v9624_v51 = vld [vmem:[#allocation13_spill] sm:$0xff] }
 0x7f3   :  { %v790_v52 = vmul.f32 %v6892_v7, %v780_v58  ;;  %v9625_v57 = vld [vmem:[#allocation20_spill] sm:$0xff]  ;;  %v9636_v42 = vmov 4   ;;  %v9645_v58 = vmov 70  }
 0x7f4   :  { %v898_v0 = vmax.f32 %v896_v11, 0.0  ;;  %v9622_v11 = vmov 33  }
 0x7f5   :  { %v919_v24 = vpop.permute.xlu0 %918  ;;  %v836_v55 = vadd.f32 %v834_v44, %v790_v52  ;;  %v175_v44 = vld [vmem:[%s9188_s1 + $0x70] sm:$0xff]  ;;  %v9651_v52 = vmov 71  }
 0x7f6   :  { %v916_v61 = vmul.f32 %v7359_v12, %v898_v0  ;;  %v9616_v12 = vld [vmem:[#allocation6_spill] sm:$0xff]  ;;  %v9638_v0 = vmov 68  }
 0x7f8   :  { %v926_v43 = vmul.f32 %v9615_v22, %v916_v61  ;;  %v9648_v61 = vmov 39  }
 0x7f9   :  { %v7524_v22 = vpop.permute.xlu0 %3299 }
 0x7fa   :  { %9656 = vst [vmem:[#allocation20_spill] sm:$0xff] %v7524_v22  ;;  %v9700_v22 = vmov 45  }
 0x847   :  { %v2848_v59 = vpop.xlane.xlu1 %2847 }
 0x848   :  { %6122 = vrcp.f32 %v2848_v59 }
 0x84b   :  { %v469_v28 = vpop.permute.xlu1 %468 }
 0x84c   :  { %v476_v9 = vsub.f32 %v469_v28, %v7254_v6  ;;  %v913_v28 = vmax.f32 %v911_v19, 0.0  ;;  %v833_v19 = vmul.f32 %v7305_v37, %v823_v8  ;;  %v606_v37 = vmul.f32 %v6873_v36, %v596_v4  ;;  %v9629_v8 = vld [vmem:[#allocation35_spill] sm:$0xff] }
 0x84d   :  { %v9631_v4 = vmov 34  }
 0x84e   :  { %v478_v10 = vand.u32 2147483647, %v476_v9  ;;  %v915_v13 = vmul.f32 %v913_v28, %v897_v47  ;;  %v835_v14 = vadd.f32 %v833_v19, %v789_v60  ;;  %v9620_v28 = vld [vmem:[#allocation26_spill] sm:$0xff]  ;;  %v9627_v47 = vmov 65   ;;  %v171_v60 = vld [vmem:[%s9188_s1 + $0x50] sm:$0xff] }
 0x84f   :  { %v9637_v19 = vmov 36   ;;  %5477 = vmatprep.mubr.msk.f32.mxu1 %vm186_vm1, %v171_v60 }
 0x850   :  { %v480_v53 = vsub.f32 1.0, %v478_v10  ;;  %v881_v30 = vadd.f32 %v879_v5, %v835_v14  ;;  %v173_v5 = vld [vmem:[%s9188_s1 + $0x60] sm:$0xff]  ;;  %v176_v14 = vld [vmem:[%s9188_s1 + $0x78] sm:$0xff] }
 0x852   :  { %v482_v32 = vmax.f32 %v480_v53, 0.0 }
 0x854   :  { %v504_v39 = vmul.f32 %v7335_v56, %v482_v32  ;;  %v870_v56 = vmul.f32 %v7351_v33, %v852_v40  ;;  %v9626_v32 = vld [vmem:[#allocation7_spill] sm:$0xff]  ;;  %v9630_v40 = vmov 2  }
 0x855   :  { %v6123_v9 = vpop.eup %6122 }
 0x856   :  { %v2852_v63 = vmul.f32 %v6123_v9, %v2848_v59  ;;  %v516_v10 = vmul.f32 %v6867_v49, %v504_v39  ;;  %v925_v59 = vmul.f32 %v919_v24, %v915_v13  ;;  %v652_v49 = vmul.f32 %v6877_v45, %v642_v29 }
 0x857   :  { %v880_v33 = vmul.f32 %v6896_v31, %v870_v56  ;;  %v9617_v31 = vld [vmem:[#allocation8_spill] sm:$0xff]  ;;  %v9634_v39 = vmov 35   ;;  %v9639_v13 = vmov 5   ;;  %v9641_v29 = vmov 69  }
 0x858   :  { %v2854_v38 = vsub.f32 2.0, %v2852_v63  ;;  %v562_v21 = vadd.f32 %v560_v34, %v516_v10  ;;  %v927_v53 = vadd.f32 %v925_v59, %v881_v30  ;;  %v9640_v34 = vmov 37   ;;  %v7467_v10 = vpop.permute.xlu1 %2866  ;;  %v172_v56 = vld [vmem:[%s9188_s1 + $0x58] sm:$0xff] }
 0x859   :  { %v882_v45 = vadd.f32 %v880_v33, %v836_v55  ;;  %v9642_v24 = vmov 6   ;;  %v9643_v63 = vmov 38   ;;  %9644 = vst [vmem:[#allocation68_spill] sm:$0xff] %v7467_v10  ;;  %5478 = vmatmul.mubr.msk.f32.gmra.mxu1 %vm186_vm1, %v172_v56 }
 0x85a   :  { %v2856_v50 = vmul.f32 %v6123_v9, %v2854_v38  ;;  %v608_v26 = vadd.f32 %v606_v37, %v562_v21  ;;  %v9635_v9 = vmov 67   ;;  %v9647_v38 = vmov 7   ;;  %5480 = vmatprep.mubr.msk.f32.mxu1 %vm186_vm1, %v173_v5  ;;  %v174_v21 = vld [vmem:[%s9188_s1 + $0x68] sm:$0xff] }
 0x85b   :  { %v928_v7 = vadd.f32 %v926_v43, %v882_v45 }
 0x85c   :  { %v7400_v46 = vmul.f32 %v7218_v23, %v2856_v50  ;;  %v654_v36 = vadd.f32 %v652_v49, %v608_v26  ;;  %v9618_v23 = vld [vmem:[#allocation37_spill] sm:$0xff]  ;;  %v7482_v37 = vpop.permute.xlu1 %2878  ;;  %v178_v50 = vld [vmem:[%s9188_s1 + $0x88] sm:$0xff] }
 0x85d   :  { %9646 = vst [vmem:[#allocation6_spill] sm:$0xff] %v7482_v37  ;;  %5481 = vmatmul.mubr.msk.f32.gmra.mxu1 %vm186_vm1, %v174_v21  ;;  %v177_v49 = vld [vmem:[%s9188_s1 + $0x80] sm:$0xff] }
 0x85e   :  { %2902 = vperm.xlu1 %5932, %v7400_v46   ;;  %5509 = vmatmul.mubr.msk.f32.vlgmr.msra.gmra.mxu0 %vm655_vm8, %v654_v36 }
 0x85f   :  { %5512 = vmatpush3.msra.mxu0 %v9616_v12  ;;  %5515 = vmatprep.mubr.msk.f32.mxu0 %vm929_vm9, %v927_v53  ;;  %v3398_v53 = vpop.xlane.xlu0 %3397 }
 0x860   :  { %5513 = vmatprep.subr.mxu0 %v9617_v31  ;;  %5483 = vmatprep.mubr.msk.f32.mxu1 %vm186_vm1, %v175_v44  ;;  %v7500_v59 = vpop.permute.xlu1 %2882  ;;  %v3400_v45 = vsub.f32 %v6992_v35, %v3398_v53 }
 0x861   :  { %5514 = vmatpush3.msra.mxu0 %v9617_v31  ;;  %5484 = vmatmul.mubr.msk.f32.gmra.mxu1 %vm186_vm1, %v176_v14  ;;  %9649 = vst [vmem:[#allocation8_spill] sm:$0xff] %v7500_v59  ;;  %v9682_v14 = vld [vmem:[#allocation5_spill] sm:$0xff] }
 0x862   :  { %5518 = vmatprep.subr.mxu0 %v9618_v23  ;;  %5933 = vset.pattern.permute.xlu1 %v9619_v3  ;;  %v3403_v31 = vmul.f32 1.442695, %v3400_v45 }
 0x863   :  { %5516 = vmatmul.mubr.msk.f32.vlgmr.msra.gmra.mxu0 %vm929_vm9, %v928_v7  ;;  %2908 = vperm.xlu1 %5933, %v6994_v62  }
 0x864   :  { %5519 = vmatpush3.msra.mxu0 %v9618_v23  ;;  %5486 = vmatprep.mubr.msk.f32.mxu1 %vm186_vm1, %v177_v49  ;;  %v7512_v26 = vpop.permute.xlu1 %2897  ;;  %6124 = vpow2.f32 %v3403_v31  ;;  %v9684_v49 = vmov 10   ;;  %v9689_v31 = vmov 43  }
 0x865   :  { %5520 = vmatprep.subr.mxu0 %v9620_v28  ;;  %5487 = vmatmul.mubr.msk.f32.gmra.mxu1 %vm186_vm1, %v178_v50  ;;  %9650 = vst [vmem:[#allocation37_spill] sm:$0xff] %v7512_v26  ;;  %v9685_v50 = vmov 42  }
 0x866   :  { %5521 = vmatpush3.msra.mxu0 %v9620_v28  ;;  %v179_v28 = vld [vmem:[%s9188_s1 + $0x90] sm:$0xff] }
 0x867   :  { %5522 = vmatprep.subr.mxu0 %v9621_v17  ;;  %5935 = vset.pattern.permute.xlu1 %v9622_v11 }
 0x868   :  { %5523 = vmatpush3.msra.mxu0 %v9621_v17  ;;  %2924 = vperm.xlu1 %5935, %v6994_v62   ;;  %v180_v17 = vld [vmem:[%s9188_s1 + $0x98] sm:$0xff] }
 0x869   :  { %5524 = vmatprep.subr.mxu0 %v9623_v18  ;;  %5489 = vmatprep.mubr.msk.f32.mxu1 %vm186_vm1, %v179_v28 }
 0x86a   :  { %5525 = vmatpush3.msra.mxu0 %v9623_v18  ;;  %5490 = vmatmul.mubr.msk.f32.gmra.mxu1 %vm186_vm1, %v180_v17  ;;  %v9692_v17 = vmov 12  }
 0x86b   :  { %5526 = vmatprep.subr.mxu0 %v9624_v51 }
 0x86c   :  { %5527 = vmatpush3.msra.mxu0 %v9624_v51  ;;  %2928 = vperm.xlu1 %5935, %v6992_v35  }
 0x86d   :  { %5528 = vmatprep.subr.mxu0 %v9625_v57 }
 0x86e   :  { %5529 = vmatpush3.msra.mxu0 %v9625_v57 }
 0x86f   :  { %5530 = vmatprep.subr.mxu0 %v9626_v32 }
 0x870   :  { %5531 = vmatpush3.msra.mxu0 %v9626_v32  ;;  %5936 = vset.pattern.permute.xlu1 %v9627_v47 }
 0x871   :  { %5532 = vmatprep.subr.mxu0 %v9628_v48  ;;  %2946 = vperm.xlu1 %5936, %v7400_v46   ;;  %v7546_v11 = vpop.eup %6124 }
 0x872   :  { %5533 = vmatpush3.msra.mxu0 %v9628_v48 }
 0x873   :  { %5544 = vmatprep.subr.mxu0 %v9629_v8 }
 0x875   :  { %5937 = vset.pattern.permute.xlu1 %v9630_v40 }
 0x876   :  { %2954 = vperm.xlu1 %5937, %v6994_v62  }
 0x87a   :  { %5940 = vset.pattern.permute.xlu1 %v9631_v4  ;;  %v6270_v4 = vmov 8  }
 0x87b   :  { %2970 = vperm.xlu1 %5940, %v6994_v62   ;;  %5968 = vset.pattern.permute.xlu0 %v6270_v4 }
 0x87f   :  { %2974 = vperm.xlu1 %5940, %v6992_v35  }
 0x883   :  { %5942 = vset.pattern.permute.xlu1 %v9632_v2 }
 0x884   :  { %2992 = vperm.xlu1 %5942, %v7400_v46  }
 0x888   :  { %5943 = vset.pattern.permute.xlu1 %v9633_v15 }
 0x889   :  { %3000 = vperm.xlu1 %5943, %v6994_v62  }
 0x88d   :  { %5945 = vset.pattern.permute.xlu1 %v9634_v39 }
 0x88e   :  { %3016 = vperm.xlu1 %5945, %v6994_v62  }
 0x892   :  { %3020 = vperm.xlu1 %5945, %v6992_v35  }
 0x896   :  { %5947 = vset.pattern.permute.xlu1 %v9635_v9 }
 0x897   :  { %3038 = vperm.xlu1 %5947, %v7400_v46  }
 0x89b   :  { %5948 = vset.pattern.permute.xlu1 %v9636_v42 }
 0x89c   :  { %3129 = vperm.xlu1 %5948, %v6994_v62  }
 0x8a0   :  { %5950 = vset.pattern.permute.xlu1 %v9637_v19 }
 0x8a1   :  { %3145 = vperm.xlu1 %5950, %v6994_v62  }
 0x8a5   :  { %3149 = vperm.xlu1 %5950, %v6992_v35  }
 0x8a9   :  { %5952 = vset.pattern.permute.xlu1 %v9638_v0 }
 0x8aa   :  { %3167 = vperm.xlu1 %5952, %v7400_v46  }
 0x8ae   :  { %5953 = vset.pattern.permute.xlu1 %v9639_v13 }
 0x8af   :  { %3173 = vperm.xlu1 %5953, %v6994_v62  }
 0x8b3   :  { %5955 = vset.pattern.permute.xlu1 %v9640_v34 }
 0x8b4   :  { %3189 = vperm.xlu1 %5955, %v6994_v62  }
 0x8b8   :  { %3193 = vperm.xlu1 %5955, %v6992_v35  }
 0x8bc   :  { %5957 = vset.pattern.permute.xlu1 %v9641_v29 }
 0x8bd   :  { %3211 = vperm.xlu1 %5957, %v7400_v46  }
 0x8c1   :  { %5958 = vset.pattern.permute.xlu1 %v9642_v24 }
 0x8c2   :  { %3219 = vperm.xlu1 %5958, %v6994_v62  }
 0x8c6   :  { %5960 = vset.pattern.permute.xlu1 %v9643_v63 }
 0x8c7   :  { %3235 = vperm.xlu1 %5960, %v6994_v62  }
 0x8cb   :  { %3239 = vperm.xlu1 %5960, %v6992_v35  }
 0x8cf   :  { %5962 = vset.pattern.permute.xlu1 %v9645_v58 }
 0x8d0   :  { %3257 = vperm.xlu1 %5962, %v7400_v46  }
 0x8d4   :  { %5963 = vset.pattern.permute.xlu1 %v9647_v38 }
 0x8d5   :  { %3265 = vperm.xlu1 %5963, %v6994_v62  }
 0x8d9   :  { %5965 = vset.pattern.permute.xlu1 %v9648_v61  ;;  %v7516_v33 = vpop.permute.xlu1 %2902  ;;  %v9683_v61 = vmov 41  }
 0x8da   :  { %3281 = vperm.xlu1 %5965, %v6994_v62   ;;  %9652 = vst [vmem:[#allocation26_spill] sm:$0xff] %v7516_v33 }
 0x8de   :  { %3285 = vperm.xlu1 %5965, %v6992_v35   ;;  %v7518_v30 = vpop.permute.xlu1 %2908 }
 0x8df   :  { %9653 = vst [vmem:[#allocation36_spill] sm:$0xff] %v7518_v30 }
 0x8e2   :  { %5966 = vset.pattern.permute.xlu1 %v9651_v52  ;;  %v9686_v52 = vmov 11  }
 0x8e3   :  { %3303 = vperm.xlu1 %5966, %v7400_v46   ;;  %v7520_v36 = vpop.permute.xlu1 %2924  ;;  %v3393_v46 = vsel %vm1013_vm4, %v6994_v62, -inf }
 0x8e4   :  { %9654 = vst [vmem:[#allocation24_spill] sm:$0xff] %v7520_v36 }
 0x8e7   :  { %v7522_v55 = vpop.permute.xlu1 %2928  ;;  %5967 = vset.pattern.permute.xlu1 %v6270_v4 }
 0x8e8   :  { %9655 = vst [vmem:[#allocation13_spill] sm:$0xff] %v7522_v55 }
 0x8ec   :  { %v7526_v43 = vpop.permute.xlu1 %2946 }
 0x8ed   :  { %9657 = vst [vmem:[#allocation7_spill] sm:$0xff] %v7526_v43 }
 0x8f1   :  { %v7529_v12 = vpop.permute.xlu1 %2954 }
 0x8f2   :  { %9658 = vst [vmem:[#allocation18_spill] sm:$0xff] %v7529_v12 }
 0x8f6   :  { %v7533_v7 = vpop.permute.xlu1 %2970 }
 0x8f7   :  { %9659 = vst [vmem:[#allocation35_spill] sm:$0xff] %v7533_v7 }
 0x8fa   :  { %v7535_v23 = vpop.permute.xlu1 %2974 }
 0x8fb   :  { %9660 = vst [vmem:[#allocation160_spill] sm:$0xff] %v7535_v23 }
 0x8ff   :  { %v7537_v3 = vpop.permute.xlu1 %2992 }
 0x900   :  { %9661 = vst [vmem:[#allocation161_spill] sm:$0xff] %v7537_v3 }
 0x904   :  { %v7551_v18 = vpop.permute.xlu1 %3000 }
 0x905   :  { %9662 = vst [vmem:[#allocation162_spill] sm:$0xff] %v7551_v18 }
 0x907   :  { %3394 = vmax.xlane.f32.xlu1 %v3393_v46 }
 0x909   :  { %v7553_v51 = vpop.permute.xlu1 %3016 }
 0x90a   :  { %9663 = vst [vmem:[#allocation163_spill] sm:$0xff] %v7553_v51 }
 0x90d   :  { %v7555_v57 = vpop.permute.xlu1 %3020 }
 0x90e   :  { %9664 = vst [vmem:[#allocation164_spill] sm:$0xff] %v7555_v57 }
 0x912   :  { %v7557_v32 = vpop.permute.xlu1 %3038 }
 0x913   :  { %9665 = vst [vmem:[#allocation165_spill] sm:$0xff] %v7557_v32  ;;  %v9701_v32 = vmov 72  }
 0x917   :  { %v7559_v47 = vpop.permute.xlu1 %3129 }
 0x918   :  { %3409 = vrot.lane.b32.xlu1 %v7546_v11, %s6213_s4  ;;  %9666 = vst [vmem:[#allocation166_spill] sm:$0xff] %v7559_v47  ;;  %v9713_v47 = vld [vmem:[#allocation23_spill] sm:$0xff] }
 0x919   :  { %v7610_v53 = vpop.f32.mrf.mxu1  ;;  %v1166_v57 = vsub.f32 %v9713_v47, %v7252_v1 }
 0x91a   :  { %9687 = vst [vmem:[#allocation5_spill] sm:$0xff] %v7610_v53 }
 0x91b   :  { %v7613_v45 = vpop.f32.mrf.mxu1 }
 0x91c   :  { %v7561_v48 = vpop.permute.xlu1 %3145  ;;  %9688 = vst [vmem:[#allocation182_spill] sm:$0xff] %v7613_v45 }
 0x91d   :  { %9667 = vst [vmem:[#allocation167_spill] sm:$0xff] %v7561_v48  ;;  %v7617_v46 = vpop.f32.mrf.mxu1  ;;  %v9712_v48 = vld [vmem:[#allocation22_spill] sm:$0xff] }
 0x91e   :  { %9690 = vst [vmem:[#allocation183_spill] sm:$0xff] %v7617_v46 }
 0x91f   :  { %v7620_v28 = vpop.f32.mrf.mxu1 }
 0x920   :  { %v7563_v40 = vpop.permute.xlu1 %3149  ;;  %9691 = vst [vmem:[#allocation184_spill] sm:$0xff] %v7620_v28 }
 0x921   :  { %9668 = vst [vmem:[#allocation168_spill] sm:$0xff] %v7563_v40  ;;  %v7624_v4 = vpop.f32.mrf.mxu1 }
 0x922   :  { %9693 = vst [vmem:[#allocation185_spill] sm:$0xff] %v7624_v4 }
 0x925   :  { %v7565_v2 = vpop.permute.xlu1 %3167 }
 0x926   :  { %9669 = vst [vmem:[#allocation169_spill] sm:$0xff] %v7565_v2  ;;  %v9704_v2 = vmov 15  }
 0x92a   :  { %v7567_v15 = vpop.permute.xlu1 %3173 }
 0x92b   :  { %9670 = vst [vmem:[#allocation170_spill] sm:$0xff] %v7567_v15 }
 0x92f   :  { %v7569_v39 = vpop.permute.xlu1 %3189 }
 0x930   :  { %9671 = vst [vmem:[#allocation171_spill] sm:$0xff] %v7569_v39  ;;  %v9711_v39 = vld [vmem:[#allocation19_spill] sm:$0xff] }
 0x931   :  { %v1074_v15 = vsub.f32 %v9711_v39, %v7252_v1 }
 0x933   :  { %v7571_v9 = vpop.permute.xlu1 %3193  ;;  %v1076_v26 = vand.u32 2147483647, %v1074_v15 }
 0x934   :  { %9672 = vst [vmem:[#allocation172_spill] sm:$0xff] %v7571_v9 }
 0x935   :  { %v1078_v23 = vsub.f32 1.0, %v1076_v26 }
 0x937   :  { %v1080_v15 = vmax.f32 %v1078_v23, 0.0 }
 0x938   :  { %v7573_v42 = vpop.permute.xlu1 %3211 }
 0x939   :  { %9673 = vst [vmem:[#allocation173_spill] sm:$0xff] %v7573_v42 }
 0x93d   :  { %v7575_v19 = vpop.permute.xlu1 %3219 }
 0x93e   :  { %9674 = vst [vmem:[#allocation174_spill] sm:$0xff] %v7575_v19 }
 0x942   :  { %v7577_v0 = vpop.permute.xlu1 %3235 }
 0x943   :  { %9675 = vst [vmem:[#allocation175_spill] sm:$0xff] %v7577_v0 }
 0x946   :  { %v7579_v13 = vpop.permute.xlu1 %3239 }
 0x947   :  { %9676 = vst [vmem:[#allocation176_spill] sm:$0xff] %v7579_v13 }
 0x94b   :  { %v7581_v34 = vpop.permute.xlu1 %3257 }
 0x94c   :  { %9677 = vst [vmem:[#allocation177_spill] sm:$0xff] %v7581_v34  ;;  %v9702_v34 = vmov 14  }
 0x950   :  { %v7583_v29 = vpop.permute.xlu1 %3265 }
 0x951   :  { %9678 = vst [vmem:[#allocation178_spill] sm:$0xff] %v7583_v29  ;;  %v9706_v29 = vmov 47  }
 0x955   :  { %v7585_v24 = vpop.permute.xlu1 %3281 }
 0x956   :  { %9679 = vst [vmem:[#allocation179_spill] sm:$0xff] %v7585_v24 }
 0x959   :  { %v7587_v63 = vpop.permute.xlu1 %3285 }
 0x95a   :  { %9680 = vst [vmem:[#allocation180_spill] sm:$0xff] %v7587_v63 }
 0x95e   :  { %v7589_v58 = vpop.permute.xlu1 %3303 }
 0x95f   :  { %9681 = vst [vmem:[#allocation181_spill] sm:$0xff] %v7589_v58  ;;  %v9697_v58 = vmov 44  }
 0x990   :  { %v3395_v60 = vpop.xlane.xlu1 %3394 }
 0x991   :  { %v3399_v56 = vsub.f32 %v6994_v62, %v3395_v60  ;;  %v7628_v60 = vpop.f32.mrf.mxu1 }
 0x992   :  { %9694 = vst [vmem:[#allocation186_spill] sm:$0xff] %v7628_v60 }
 0x993   :  { %v3401_v5 = vmul.f32 1.442695, %v3399_v56 }
 0x994   :  { %v3410_v21 = vpop.permute.xlu1 %3409 }
 0x995   :  { %6126 = vpow2.f32 %v3401_v5  ;;  %v3416_v44 = vsel %vm444_vm6, %v3410_v21, 0.0  ;;  %v7633_v21 = vpop.f32.mrf.mxu1 }
 0x996   :  { %9695 = vst [vmem:[#allocation187_spill] sm:$0xff] %v7633_v21 }
 0x9a2   :  { %v7592_v38 = vpop.eup %6126 }
 0x9a3   :  { %3407 = vrot.lane.b32.xlu0 %v7592_v38, %s6213_s4 }
 0x9c2   :  { %3417 = vadd.xlane.f32.xlu0 %v3416_v44  ;;  %v7637_v44 = vpop.f32.mrf.mxu1 }
 0x9c3   :  { %9696 = vst [vmem:[#allocation188_spill] sm:$0xff] %v7637_v44 }
 0x9c4   :  { %v7674_v24 = vpop.f32.mrf.mxu1 }
 0x9c5   :  { %9707 = vst [vmem:[#allocation190_spill] sm:$0xff] %v7674_v24 }
 0x9c6   :  { %v7679_v13 = vpop.f32.mrf.mxu1 }
 0x9c7   :  { %9709 = vst [vmem:[#allocation192_spill] sm:$0xff] %v7679_v13 }
 0x9d8   :  { %1051 = vperm.xlu0 %5968, %v9682_v14  }
 0x9dc   :  { %3430 = vperm.xlu0 %5968, %v6994_v62  }
 0x9e0   :  { %5969 = vset.pattern.permute.xlu0 %v9683_v61 }
 0x9e1   :  { %1117 = vperm.xlu0 %5969, %v6405_v27  }
 0x9e5   :  { %3496 = vperm.xlu0 %5969, %v6992_v35  }
 0x9e9   :  { %5974 = vset.pattern.permute.xlu0 %v9684_v49 }
 0x9ea   :  { %1143 = vperm.xlu0 %5974, %v9682_v14  }
 0x9ee   :  { %3522 = vperm.xlu0 %5974, %v6994_v62  }
 0x9f2   :  { %5976 = vset.pattern.permute.xlu0 %v9685_v50 }
 0x9f3   :  { %1163 = vperm.xlu0 %5976, %v6405_v27  }
 0x9f7   :  { %3542 = vperm.xlu0 %5976, %v6992_v35  }
 0x9fb   :  { %5979 = vset.pattern.permute.xlu0 %v9686_v52 }
 0x9fc   :  { %1189 = vperm.xlu0 %5979, %v9682_v14  }
 0xa00   :  { %3568 = vperm.xlu0 %5979, %v6994_v62  }
 0xa04   :  { %5981 = vset.pattern.permute.xlu0 %v9689_v31 }
 0xa05   :  { %1209 = vperm.xlu0 %5981, %v6405_v27  }
 0xa09   :  { %3588 = vperm.xlu0 %5981, %v6992_v35  }
 0xa0d   :  { %5984 = vset.pattern.permute.xlu0 %v9692_v17 }
 0xa0e   :  { %1350 = vperm.xlu0 %5984, %v9682_v14  }
 0xa12   :  { %3621 = vrot.lane.b32.xlu0 %v7613_v45, %s6172_s19 }
 0xa15   :  { %v3408_v56 = vpop.permute.xlu0 %3407 }
 0xa16   :  { %3625 = vrot.lane.b32.xlu0 %v7620_v28, %s6172_s19  ;;  %v3413_v5 = vsel %vm444_vm6, %v3408_v56, 0.0  ;;  %v9698_v56 = vmov 13  }
 0xa17   :  { %3414 = vadd.xlane.f32.xlu1 %v3413_v5  ;;  %v9699_v5 = vmov 40  }
 0xa1a   :  { %3629 = vrot.lane.b32.xlu0 %v7628_v60, %s6172_s19 }
 0xa1e   :  { %3633 = vrot.lane.b32.xlu0 %v7637_v44, %s6172_s19 }
 0xa22   :  { %3729 = vperm.xlu0 %5984, %v6994_v62  }
 0xa26   :  { %5986 = vset.pattern.permute.xlu0 %v9697_v58 }
 0xa27   :  { %1370 = vperm.xlu0 %5986, %v6405_v27  }
 0xa28   :  { %1055 = vperm.xlu1 %5967, %v6405_v27  }
 0xa2b   :  { %3749 = vperm.xlu0 %5986, %v6992_v35  }
 0xa2c   :  { %3434 = vperm.xlu1 %5967, %v6992_v35  }
 0xa2f   :  { %5989 = vset.pattern.permute.xlu0 %v9698_v56 }
 0xa30   :  { %1394 = vperm.xlu0 %5989, %v9682_v14   ;;  %5970 = vset.pattern.permute.xlu1 %v9699_v5  ;;  %v9703_v5 = vmov 46  }
 0xa31   :  { %3446 = vperm.xlu1 %5970, %v6994_v62  }
 0xa34   :  { %3773 = vperm.xlu0 %5989, %v6994_v62  }
 0xa35   :  { %3450 = vperm.xlu1 %5970, %v6992_v35  }
 0xa38   :  { %5991 = vset.pattern.permute.xlu0 %v9700_v22 }
 0xa39   :  { %1414 = vperm.xlu0 %5991, %v6405_v27   ;;  %5971 = vset.pattern.permute.xlu1 %v9701_v32 }
 0xa3d   :  { %3793 = vperm.xlu0 %5991, %v6992_v35  }
 0xa41   :  { %5994 = vset.pattern.permute.xlu0 %v9702_v34 }
 0xa42   :  { %1440 = vperm.xlu0 %5994, %v9682_v14  }
 0xa46   :  { %3819 = vperm.xlu0 %5994, %v6994_v62  }
 0xa4a   :  { %5996 = vset.pattern.permute.xlu0 %v9703_v5 }
 0xa4b   :  { %1460 = vperm.xlu0 %5996, %v6405_v27   ;;  %v7662_v42 = vpop.xlane.xlu0 %3417 }
 0xa4c   :  { %6128 = vrcp.f32 %v7662_v42 }
 0xa4f   :  { %3839 = vperm.xlu0 %5996, %v6992_v35  }
 0xa53   :  { %5999 = vset.pattern.permute.xlu0 %v9704_v2  ;;  %v1052_v3 = vpop.permute.xlu0 %1051 }
 0xa54   :  { %1486 = vperm.xlu0 %5999, %v9682_v14   ;;  %v1058_v0 = vsub.f32 %v1052_v3, %v7254_v6 }
 0xa56   :  { %v1060_v33 = vand.u32 2147483647, %v1058_v0 }
 0xa57   :  { %v7667_v32 = vpop.permute.xlu0 %3430 }
 0xa58   :  { %9705 = vst [vmem:[#allocation189_spill] sm:$0xff] %v7667_v32  ;;  %3865 = vperm.xlu0 %5999, %v6994_v62   ;;  %v1062_v18 = vsub.f32 1.0, %v1060_v33 }
 0xa5a   :  { %v1064_v0 = vmax.f32 %v1062_v18, 0.0 }
 0xa5c   :  { %6001 = vset.pattern.permute.xlu0 %v9706_v29  ;;  %v7671_v63 = vpop.permute.xlu0 %1117 }
 0xa5d   :  { %1506 = vperm.xlu0 %6001, %v6405_v27  }
 0xa60   :  { %v7676_v19 = vpop.permute.xlu0 %3496 }
 0xa61   :  { %9708 = vst [vmem:[#allocation191_spill] sm:$0xff] %v7676_v19  ;;  %3885 = vperm.xlu0 %6001, %v6992_v35   ;;  %v1120_v19 = vsub.f32 %v9712_v48, %v7252_v1 }
 0xa63   :  { %v1122_v16 = vand.u32 2147483647, %v1120_v19 }
 0xa65   :  { %3912 = vrot.lane.b32.xlu0 %v7679_v13, %s6172_s19  ;;  %v1144_v32 = vpop.permute.xlu0 %1143  ;;  %v9714_v13 = vld [vmem:[#allocation21_spill] sm:$0xff]  ;;  %v1124_v12 = vsub.f32 1.0, %v1122_v16 }
 0xa66   :  { %v1150_v40 = vsub.f32 %v1144_v32, %v7254_v6  ;;  %v1104_v43 = vsub.f32 %v9714_v13, %v7254_v6  ;;  %v9715_v32 = vld [vmem:[#allocation25_spill] sm:$0xff] }
 0xa67   :  { %v1212_v25 = vsub.f32 %v9715_v32, %v7252_v1  ;;  %v1126_v59 = vmax.f32 %v1124_v12, 0.0  ;;  %v9718_v16 = vld [vmem:[#allocation85_spill] sm:$0xff] }
 0xa68   :  { %v1152_v51 = vand.u32 2147483647, %v1150_v40  ;;  %v1106_v39 = vand.u32 2147483647, %v1104_v43 }
 0xa69   :  { %v7684_v9 = vpop.permute.xlu0 %3522  ;;  %v1214_v7 = vand.u32 2147483647, %v1212_v25 }
 0xa6a   :  { %9710 = vst [vmem:[#allocation193_spill] sm:$0xff] %v7684_v9  ;;  %v1168_v9 = vand.u32 2147483647, %v1166_v57  ;;  %v1154_v20 = vsub.f32 1.0, %v1152_v51  ;;  %v1108_v10 = vsub.f32 1.0, %v1106_v39  ;;  %v1082_v57 = vmul.f32 %v1080_v15, %v1064_v0  ;;  %v9719_v39 = vld [vmem:[#allocation86_spill] sm:$0xff] }
 0xa6b   :  { %v1216_v43 = vsub.f32 1.0, %v1214_v7 }
 0xa6c   :  { %v1170_v47 = vsub.f32 1.0, %v1168_v9  ;;  %v1156_v13 = vmax.f32 %v1154_v20, 0.0  ;;  %v1110_v33 = vmax.f32 %v1108_v10, 0.0  ;;  %v1094_v9 = vmul.f32 %v9718_v16, %v1082_v57  ;;  %v9720_v20 = vld [vmem:[#allocation87_spill] sm:$0xff]  ;;  %v9721_v10 = vld [vmem:[#allocation88_spill] sm:$0xff] }
 0xa6d   :  { %v1218_v23 = vmax.f32 %v1216_v43, 0.0  ;;  %v9727_v43 = vld [vmem:[#allocation10_spill] sm:$0xff] }
 0xa6e   :  { %v1164_v3 = vpop.permute.xlu0 %1163  ;;  %v1172_v19 = vmax.f32 %v1170_v47, 0.0 }
 0xa6f   :  { %v1167_v16 = vsub.f32 %v1164_v3, %v7252_v1 }
 0xa70   :  { %v1174_v30 = vmul.f32 %v1172_v19, %v1156_v13  ;;  %v4001_v13 = vsel %vm1622_vm5, %v6994_v62, -inf }
 0xa72   :  { %v7697_v48 = vpop.permute.xlu0 %3542  ;;  %v1184_v37 = vmul.f32 %v9720_v20, %v1174_v30 }
 0xa73   :  { %9716 = vst [vmem:[#allocation19_spill] sm:$0xff] %v7697_v48  ;;  %v1128_v48 = vmul.f32 %v1126_v59, %v1110_v33  ;;  %v1121_v33 = vsub.f32 %v7671_v63, %v7252_v1 }
 0xa75   :  { %v1138_v25 = vmul.f32 %v9719_v39, %v1128_v48  ;;  %v9730_v39 = vld [vmem:[#allocation11_spill] sm:$0xff]  ;;  %v1123_v20 = vand.u32 2147483647, %v1121_v33 }
 0xa77   :  { %v1190_v40 = vpop.permute.xlu0 %1189  ;;  %v1140_v47 = vadd.f32 %v1138_v25, %v1094_v9  ;;  %v1151_v25 = vsub.f32 %v9730_v39, %v7254_v6 }
 0xa78   :  { %v1196_v26 = vsub.f32 %v1190_v40, %v7254_v6 }
 0xa79   :  { %v1186_v40 = vadd.f32 %v1184_v37, %v1140_v47 }
 0xa7a   :  { %v1198_v32 = vand.u32 2147483647, %v1196_v26 }
 0xa7b   :  { %v7700_v51 = vpop.permute.xlu0 %3568 }
 0xa7c   :  { %9717 = vst [vmem:[#allocation22_spill] sm:$0xff] %v7700_v51  ;;  %v1200_v18 = vsub.f32 1.0, %v1198_v32  ;;  %v1105_v32 = vsub.f32 %v9727_v43, %v7254_v6 }
 0xa7e   :  { %v1202_v12 = vmax.f32 %v1200_v18, 0.0  ;;  %v9729_v18 = vld [vmem:[#allocation9_spill] sm:$0xff]  ;;  %v1107_v63 = vand.u32 2147483647, %v1105_v32 }
 0xa80   :  { %v1220_v0 = vmul.f32 %v1218_v23, %v1202_v12  ;;  %v1210_v15 = vpop.permute.xlu0 %1209  ;;  %v1075_v23 = vsub.f32 %v9729_v18, %v7252_v1 }
 0xa81   :  { %v1213_v12 = vsub.f32 %v1210_v15, %v7252_v1 }
 0xa82   :  { %v1230_v7 = vmul.f32 %v9721_v10, %v1220_v0  ;;  %v9731_v0 = vld [vmem:[#allocation12_spill] sm:$0xff]  ;;  %v1169_v10 = vand.u32 2147483647, %v1167_v16 }
 0xa83   :  { %v1215_v43 = vand.u32 2147483647, %v1213_v12 }
 0xa84   :  { %4002 = vmax.xlane.f32.xlu0 %v4001_v13  ;;  %v7708_v59 = vpop.permute.xlu0 %3588  ;;  %v1232_v19 = vadd.f32 %v1230_v7, %v1186_v40  ;;  %v1197_v40 = vsub.f32 %v9731_v0, %v7254_v6  ;;  %v1077_v7 = vand.u32 2147483647, %v1075_v23  ;;  %v1153_v13 = vand.u32 2147483647, %v1151_v25  ;;  %v6129_v25 = vpop.eup %6128 }
 0xa85   :  { %9722 = vst [vmem:[#allocation23_spill] sm:$0xff] %v7708_v59  ;;  %v1171_v39 = vsub.f32 1.0, %v1169_v10  ;;  %v1217_v0 = vsub.f32 1.0, %v1215_v43 }
 0xa86   :  { %5534 = vmatprep.mubr.msk.f32.mxu0 %vm655_vm8, %v1232_v19  ;;  %v1125_v19 = vsub.f32 1.0, %v1123_v20  ;;  %v1079_v15 = vsub.f32 1.0, %v1077_v7  ;;  %v1155_v32 = vsub.f32 1.0, %v1153_v13  ;;  %v3422_v7 = vmul.f32 %v6129_v25, %v7662_v42 }
 0xa87   :  { %v1173_v59 = vmax.f32 %v1171_v39, 0.0 }
 0xa88   :  { %v1081_v20 = vmax.f32 %v1079_v15, 0.0  ;;  %v1157_v12 = vmax.f32 %v1155_v32, 0.0  ;;  %v3424_v15 = vsub.f32 2.0, %v3422_v7  ;;  %v9736_v32 = vld [vmem:[#allocation71_spill] sm:$0xff] }
 0xa89   :  { %v7711_v57 = vpop.permute.xlu0 %1350 }
 0xa8d   :  { %v7713_v48 = vpop.permute.xlu0 %3621 }
 0xa8e   :  { %9723 = vst [vmem:[#allocation21_spill] sm:$0xff] %v7713_v48  ;;  %v1109_v48 = vsub.f32 1.0, %v1107_v63  ;;  %v1219_v63 = vmax.f32 %v1217_v0, 0.0  ;;  %v9737_v0 = vld [vmem:[#allocation72_spill] sm:$0xff] }
 0xa91   :  { %v7715_v30 = vpop.permute.xlu0 %3625 }
 0xa92   :  { %9724 = vst [vmem:[#allocation25_spill] sm:$0xff] %v7715_v30  ;;  %v1199_v30 = vand.u32 2147483647, %v1197_v40 }
 0xa94   :  { %v1201_v23 = vsub.f32 1.0, %v1199_v30  ;;  %v9734_v30 = vld [vmem:[#allocation69_spill] sm:$0xff] }
 0xa95   :  { %v7717_v26 = vpop.permute.xlu0 %3629 }
 0xa96   :  { %9725 = vst [vmem:[#allocation85_spill] sm:$0xff] %v7717_v26  ;;  %v1203_v36 = vmax.f32 %v1201_v23, 0.0 }
 0xa99   :  { %v7719_v37 = vpop.permute.xlu0 %3633 }
 0xa9a   :  { %9726 = vst [vmem:[#allocation86_spill] sm:$0xff] %v7719_v37  ;;  %v1127_v37 = vmax.f32 %v1125_v19, 0.0  ;;  %v9733_v19 = vld [vmem:[#allocation70_spill] sm:$0xff] }
 0xa9d   :  { %v7727_v9 = vpop.permute.xlu0 %3729 }
 0xa9e   :  { %9728 = vst [vmem:[#allocation87_spill] sm:$0xff] %v7727_v9  ;;  %v1111_v9 = vmax.f32 %v1109_v48, 0.0 }
 0xaa0   :  { %v3415_v47 = vpop.xlane.xlu1 %3414  ;;  %v1129_v55 = vmul.f32 %v1127_v37, %v1111_v9 }
 0xaa1   :  { %6130 = vrcp.f32 %v3415_v47 }
 0xaa2   :  { %v7736_v3 = vpop.permute.xlu0 %1370  ;;  %v1139_v43 = vmul.f32 %v9733_v19, %v1129_v55  ;;  %v1357_v19 = vsub.f32 %v7711_v57, %v6474_v54 }
 0xaa4   :  { %v1056_v18 = vpop.permute.xlu1 %1055 }
 0xaa5   :  { %v1059_v33 = vsub.f32 %v1056_v18, %v7254_v6  ;;  %v1175_v18 = vmul.f32 %v1173_v59, %v1157_v12 }
 0xaa6   :  { %v7739_v26 = vpop.permute.xlu0 %3749 }
 0xaa7   :  { %9732 = vst [vmem:[#allocation88_spill] sm:$0xff] %v7739_v26  ;;  %v1061_v16 = vand.u32 2147483647, %v1059_v33  ;;  %v1221_v33 = vmul.f32 %v1219_v63, %v1203_v36  ;;  %v1185_v37 = vmul.f32 %v9736_v32, %v1175_v18  ;;  %v9743_v63 = vmov 9   ;;  %v9746_v18 = vld [vmem:[#allocation29_spill] sm:$0xff]  ;;  %v9750_v32 = vld [vmem:[#allocation50_spill] sm:$0xff] }
 0xaa9   :  { %v1063_v51 = vsub.f32 1.0, %v1061_v16  ;;  %v1231_v23 = vmul.f32 %v9737_v0, %v1221_v33  ;;  %v9747_v33 = vld [vmem:[#allocation30_spill] sm:$0xff]  ;;  %v9751_v0 = vld [vmem:[#allocation145_spill] sm:$0xff] }
 0xaab   :  { %v1065_v40 = vmax.f32 %v1063_v51, 0.0  ;;  %v1395_v10 = vpop.permute.xlu0 %1394 }
 0xaad   :  { %v1083_v26 = vmul.f32 %v1081_v20, %v1065_v40  ;;  %v3426_v20 = vmul.f32 %v6129_v25, %v3424_v15  ;;  %v9740_v25 = vld [vmem:[#allocation34_spill] sm:$0xff]  ;;  %v9744_v40 = vld [vmem:[#allocation51_spill] sm:$0xff] }
 0xaae   :  { %v6131_v13 = vpop.eup %6130 }
 0xaaf   :  { %v3421_v48 = vmul.f32 %v6131_v13, %v3415_v47  ;;  %v1095_v39 = vmul.f32 %v9734_v30, %v1083_v26  ;;  %v7744_v16 = vpop.permute.xlu0 %3773  ;;  %v7757_v26 = vmul.f32 %v7546_v11, %v3426_v20  ;;  %v9739_v47 = vld [vmem:[#allocation53_spill] sm:$0xff]  ;;  %v1401_v11 = vsub.f32 %v1395_v10, %v6474_v54  ;;  %v9748_v10 = vld [vmem:[#allocation27_spill] sm:$0xff] }
 0xab0   :  { %9735 = vst [vmem:[#allocation10_spill] sm:$0xff] %v7744_v16  ;;  %v9749_v30 = vld [vmem:[#allocation31_spill] sm:$0xff]  ;;  %v9984_v16 = vld [vmem:[#allocation162_spill] sm:$0xff] }
 0xab1   :  { %v3423_v9 = vsub.f32 2.0, %v3421_v48  ;;  %v1141_v51 = vadd.f32 %v1139_v43, %v1095_v39  ;;  %v1373_v48 = vsub.f32 %v9748_v10, %v6438_v41  ;;  %v1463_v39 = vsub.f32 %v9749_v30, %v6438_v41  ;;  %v9756_v10 = vld [vmem:[#allocation16_spill] sm:$0xff] }
 0xab2   :  { %v1403_v15 = vand.u32 2147483647, %v1401_v11  ;;  %v9754_v11 = vld [vmem:[#allocation15_spill] sm:$0xff] }
 0xab3   :  { %v3425_v44 = vmul.f32 %v6131_v13, %v3423_v9  ;;  %v1187_v42 = vadd.f32 %v1185_v37, %v1141_v51  ;;  %v1417_v13 = vsub.f32 %v9746_v18, %v6438_v41  ;;  %v1359_v37 = vand.u32 2147483647, %v1357_v19 }
 0xab4   :  { %v1415_v59 = vpop.permute.xlu0 %1414  ;;  %v1405_v20 = vsub.f32 1.0, %v1403_v15  ;;  %v1374_v18 = vsub.f32 %v7736_v3, %v6438_v41 }
 0xab5   :  { %v7749_v12 = vmul.f32 %v7592_v38, %v3425_v44  ;;  %v1233_v36 = vadd.f32 %v1231_v23, %v1187_v42  ;;  %v9741_v38 = vld [vmem:[#allocation52_spill] sm:$0xff]  ;;  %v1419_v57 = vand.u32 2147483647, %v1417_v13  ;;  %v1375_v23 = vand.u32 2147483647, %v1373_v48 }
 0xab6   :  { %v1465_v42 = vand.u32 2147483647, %v1463_v39  ;;  %v1407_v19 = vmax.f32 %v1405_v20, 0.0  ;;  %v1448_v48 = vsub.f32 %v9756_v10, %v6474_v54  ;;  %v9757_v39 = vmov 73  }
 0xab7   :  { %3465 = vperm.xlu1 %5971, %v7749_v12   ;;  %5535 = vmatmul.mubr.msk.f32.vlgmr.msra.gmra.mxu0 %vm655_vm8, %v1233_v36  ;;  %v1418_v36 = vsub.f32 %v1415_v59, %v6438_v41  ;;  %v1377_v13 = vsub.f32 1.0, %v1375_v23 }
 0xab8   :  { %5545 = vmatpush3.msra.mxu0 %v9629_v8  ;;  %v7754_v55 = vpop.permute.xlu0 %3793  ;;  %v9742_v8 = vld [vmem:[#allocation32_spill] sm:$0xff]  ;;  %v1467_v59 = vsub.f32 1.0, %v1465_v42  ;;  %v1450_v10 = vand.u32 2147483647, %v1448_v48 }
 0xab9   :  { %9738 = vst [vmem:[#allocation9_spill] sm:$0xff] %v7754_v55  ;;  %5546 = vmatprep.subr.mxu0 %v9739_v47  ;;  %v1420_v30 = vand.u32 2147483647, %v1418_v36  ;;  %v1379_v42 = vmax.f32 %v1377_v13, 0.0 }
 0xaba   :  { %5547 = vmatpush3.msra.mxu0 %v9739_v47  ;;  %v1421_v47 = vsub.f32 1.0, %v1419_v57  ;;  %v1469_v20 = vmax.f32 %v1467_v59, 0.0  ;;  %v9760_v59 = vld [vmem:[#allocation90_spill] sm:$0xff]  ;;  %v1452_v48 = vsub.f32 1.0, %v1450_v10 }
 0xabb   :  { %5548 = vmatprep.subr.mxu0 %v9740_v25  ;;  %3470 = vperm.xlu1 %5971, %v7757_v26   ;;  %v1422_v36 = vsub.f32 1.0, %v1420_v30 }
 0xabc   :  { %5549 = vmatpush3.msra.mxu0 %v9740_v25  ;;  %v9752_v25 = vld [vmem:[#allocation33_spill] sm:$0xff]  ;;  %v1423_v15 = vmax.f32 %v1421_v47, 0.0  ;;  %v1454_v10 = vmax.f32 %v1452_v48, 0.0 }
 0xabd   :  { %5550 = vmatprep.subr.mxu0 %v9741_v38  ;;  %v1441_v44 = vpop.permute.xlu0 %1440  ;;  %v1424_v30 = vmax.f32 %v1422_v36, 0.0  ;;  %v9765_v48 = vld [vmem:[#allocation73_spill] sm:$0xff] }
 0xabe   :  { %5551 = vmatpush3.msra.mxu0 %v9741_v38  ;;  %v1447_v43 = vsub.f32 %v1441_v44, %v6474_v54  ;;  %v1509_v38 = vsub.f32 %v9752_v25, %v6438_v41  ;;  %v1361_v44 = vsub.f32 1.0, %v1359_v37  ;;  %v1425_v25 = vmul.f32 %v1423_v15, %v1407_v19 }
 0xabf   :  { %5552 = vmatprep.subr.mxu0 %v9742_v8  ;;  %5972 = vset.pattern.permute.xlu1 %v9743_v63 }
 0xac0   :  { %5553 = vmatpush3.msra.mxu0 %v9742_v8  ;;  %3476 = vperm.xlu1 %5972, %v6994_v62   ;;  %v1449_v9 = vand.u32 2147483647, %v1447_v43  ;;  %v9755_v43 = vld [vmem:[#allocation14_spill] sm:$0xff]  ;;  %v1363_v57 = vmax.f32 %v1361_v44, 0.0  ;;  %v1435_v19 = vmul.f32 %v9760_v59, %v1425_v25  ;;  %v9763_v59 = vld [vmem:[#allocation92_spill] sm:$0xff] }
 0xac1   :  { %5554 = vmatprep.subr.mxu0 %v9744_v40  ;;  %v7772_v7 = vpop.permute.xlu0 %3819 }
 0xac2   :  { %9745 = vst [vmem:[#allocation11_spill] sm:$0xff] %v7772_v7  ;;  %5555 = vmatpush3.msra.mxu0 %v9744_v40  ;;  %v1451_v8 = vsub.f32 1.0, %v1449_v9  ;;  %v1402_v40 = vsub.f32 %v9754_v11, %v6474_v54  ;;  %v1376_v9 = vand.u32 2147483647, %v1374_v18 }
 0xac3   :  { %5556 = vmatprep.subr.mxu0 %v9747_v33 }
 0xac4   :  { %5557 = vmatpush3.msra.mxu0 %v9747_v33  ;;  %3480 = vperm.xlu1 %5972, %v6992_v35   ;;  %v1358_v33 = vsub.f32 %v9755_v43, %v6474_v54  ;;  %v1453_v37 = vmax.f32 %v1451_v8, 0.0  ;;  %v1404_v3 = vand.u32 2147483647, %v1402_v40  ;;  %v9758_v8 = vld [vmem:[#allocation17_spill] sm:$0xff]  ;;  %v1378_v18 = vsub.f32 1.0, %v1376_v9 }
 0xac5   :  { %5558 = vmatprep.subr.mxu0 %v9750_v32  ;;  %v1494_v40 = vsub.f32 %v9758_v8, %v6474_v54 }
 0xac6   :  { %5559 = vmatpush3.msra.mxu0 %v9750_v32  ;;  %v1461_v51 = vpop.permute.xlu0 %1460  ;;  %v1511_v32 = vand.u32 2147483647, %v1509_v38  ;;  %v1360_v43 = vand.u32 2147483647, %v1358_v33  ;;  %v1471_v47 = vmul.f32 %v1469_v20, %v1453_v37  ;;  %v1406_v44 = vsub.f32 1.0, %v1404_v3 }
 0xac7   :  { %5589 = vmatprep.subr.mxu0 %v9751_v0  ;;  %v1380_v9 = vmax.f32 %v1378_v18, 0.0  ;;  %v9764_v18 = vld [vmem:[#allocation74_spill] sm:$0xff] }
 0xac8   :  { %5973 = vset.pattern.permute.xlu1 %v9683_v61  ;;  %v1464_v61 = vsub.f32 %v1461_v51, %v6438_v41  ;;  %v1362_v33 = vsub.f32 1.0, %v1360_v43  ;;  %v1408_v3 = vmax.f32 %v1406_v44, 0.0 }
 0xac9   :  { %3492 = vperm.xlu1 %5973, %v6994_v62  }
 0xaca   :  { %v7795_v63 = vpop.permute.xlu0 %3839  ;;  %v1466_v51 = vand.u32 2147483647, %v1464_v61  ;;  %v1364_v43 = vmax.f32 %v1362_v33, 0.0  ;;  %v1426_v36 = vmul.f32 %v1424_v30, %v1408_v3 }
 0xacb   :  { %9753 = vst [vmem:[#allocation12_spill] sm:$0xff] %v7795_v63  ;;  %v1513_v63 = vsub.f32 1.0, %v1511_v32 }
 0xacc   :  { %v1468_v61 = vsub.f32 1.0, %v1466_v51 }
 0xacd   :  { %5975 = vset.pattern.permute.xlu1 %v9757_v39  ;;  %v1381_v39 = vmul.f32 %v1379_v42, %v1363_v57  ;;  %v1515_v32 = vmax.f32 %v1513_v63, 0.0  ;;  %v9761_v57 = vld [vmem:[#allocation89_spill] sm:$0xff] }
 0xace   :  { %3510 = vperm.xlu1 %5975, %v7749_v12   ;;  %v1470_v51 = vmax.f32 %v1468_v61, 0.0  ;;  %v1436_v61 = vmul.f32 %v9764_v18, %v1426_v36 }
 0xacf   :  { %v1487_v23 = vpop.permute.xlu0 %1486  ;;  %v1391_v37 = vmul.f32 %v9761_v57, %v1381_v39  ;;  %v1382_v57 = vmul.f32 %v1380_v9, %v1364_v43  ;;  %v9772_v43 = vmov 75  }
 0xad0   :  { %v1493_v11 = vsub.f32 %v1487_v23, %v6474_v54  ;;  %v9762_v23 = vld [vmem:[#allocation91_spill] sm:$0xff] }
 0xad1   :  { %v1481_v42 = vmul.f32 %v9762_v23, %v1471_v47  ;;  %v1437_v8 = vadd.f32 %v1435_v19, %v1391_v37  ;;  %v1392_v30 = vmul.f32 %v9765_v48, %v1382_v57  ;;  %v9782_v57 = vmov 78  }
 0xad2   :  { %v1495_v38 = vand.u32 2147483647, %v1493_v11  ;;  %3514 = vperm.xlu1 %5975, %v7757_v26   ;;  %v1496_v11 = vand.u32 2147483647, %v1494_v40 }
 0xad3   :  { %v7812_v13 = vpop.permute.xlu0 %3865  ;;  %v1483_v39 = vadd.f32 %v1481_v42, %v1437_v8  ;;  %v9767_v42 = vmov 74   ;;  %v9769_v8 = vld [vmem:[#allocation62_spill] sm:$0xff] }
 0xad4   :  { %9759 = vst [vmem:[#allocation70_spill] sm:$0xff] %v7812_v13  ;;  %v1497_v15 = vsub.f32 1.0, %v1495_v38 }
 0xad6   :  { %v1499_v20 = vmax.f32 %v1497_v15, 0.0  ;;  %5977 = vset.pattern.permute.xlu1 %v9684_v49  ;;  %v1498_v15 = vsub.f32 1.0, %v1496_v11  ;;  %v1472_v49 = vmul.f32 %v1470_v51, %v1454_v10  ;;  %v9768_v11 = vld [vmem:[#allocation76_spill] sm:$0xff] }
 0xad7   :  { %3526 = vperm.xlu1 %5977, %v6992_v35  }
 0xad8   :  { %v1517_v25 = vmul.f32 %v1515_v32, %v1499_v20  ;;  %v1507_v38 = vpop.permute.xlu0 %1506  ;;  %v1500_v33 = vmax.f32 %v1498_v15, 0.0  ;;  %v9766_v32 = vld [vmem:[#allocation75_spill] sm:$0xff]  ;;  %v1438_v20 = vadd.f32 %v1436_v61, %v1392_v30 }
 0xad9   :  { %v1510_v63 = vsub.f32 %v1507_v38, %v6438_v41  ;;  %v1482_v37 = vmul.f32 %v9766_v32, %v1472_v49  ;;  %v9771_v38 = vld [vmem:[#allocation128_spill] sm:$0xff] }
 0xada   :  { %v1527_v47 = vmul.f32 %v9763_v59, %v1517_v25  ;;  %v9770_v25 = vld [vmem:[#allocation66_spill] sm:$0xff]  ;;  %v7869_v59 = vpop.permute.xlu1 %3434 }
 0xadb   :  { %v1512_v44 = vand.u32 2147483647, %v1510_v63  ;;  %5978 = vset.pattern.permute.xlu1 %v9685_v50  ;;  %v1484_v50 = vadd.f32 %v1482_v37, %v1438_v20  ;;  %9776 = vst [vmem:[#allocation72_spill] sm:$0xff] %v7869_v59 }
 0xadc   :  { %3538 = vperm.xlu1 %5978, %v6994_v62   ;;  %v1529_v40 = vadd.f32 %v1527_v47, %v1483_v39  ;;  %v9778_v47 = vmov 77  }
 0xadd   :  { %v1514_v19 = vsub.f32 1.0, %v1512_v44 }
 0xade   :  { %5541 = vmatprep.mubr.msk.f32.mxu1 %vm929_vm9, %v1529_v40  ;;  %v9787_v40 = vmov 79  }
 0xadf   :  { %v1516_v23 = vmax.f32 %v1514_v19, 0.0 }
 0xae0   :  { %5980 = vset.pattern.permute.xlu1 %v9767_v42 }
 0xae1   :  { %v1518_v3 = vmul.f32 %v1516_v23, %v1500_v33  ;;  %3556 = vperm.xlu1 %5980, %v7749_v12  }
 0xae3   :  { %v1528_v9 = vmul.f32 %v9768_v11, %v1518_v3  ;;  %v4602_v3 = vsel %vm2221_vm7, %v6992_v35, -inf }
 0xae5   :  { %v1530_v51 = vadd.f32 %v1528_v9, %v1484_v50  ;;  %3560 = vperm.xlu1 %5980, %v7757_v26  }
 0xae7   :  { %5542 = vmatmul.mubr.msk.f32.vlgmr.msra.gmra.mxu1 %vm929_vm9, %v1530_v51 }
 0xae8   :  { %5564 = vmatpush3.msra.mxu1 %v9769_v8 }
 0xae9   :  { %5565 = vmatprep.subr.mxu1 %v9770_v25  ;;  %5982 = vset.pattern.permute.xlu1 %v9686_v52  ;;  %v7848_v52 = vpop.permute.xlu0 %3885 }
 0xaea   :  { %5566 = vmatpush3.msra.mxu1 %v9770_v25  ;;  %3572 = vperm.xlu1 %5982, %v6992_v35   ;;  %9773 = vst [vmem:[#allocation69_spill] sm:$0xff] %v7848_v52 }
 0xaeb   :  { %5570 = vmatprep.subr.mxu1 %v9771_v38  ;;  %v9988_v38 = vld [vmem:[#allocation149_spill] sm:$0xff] }
 0xaee   :  { %5983 = vset.pattern.permute.xlu1 %v9689_v31  ;;  %v7852_v31 = vpop.permute.xlu0 %3912 }
 0xaef   :  { %3584 = vperm.xlu1 %5983, %v6994_v62   ;;  %9774 = vst [vmem:[#allocation71_spill] sm:$0xff] %v7852_v31 }
 0xaf3   :  { %5985 = vset.pattern.permute.xlu1 %v9772_v43  ;;  %v6271_v43 = vmov 16  }
 0xaf4   :  { %3602 = vperm.xlu1 %5985, %v7749_v12   ;;  %6006 = vset.pattern.permute.xlu0 %v6271_v43 }
 0xaf8   :  { %3606 = vperm.xlu1 %5985, %v7757_v26  }
 0xafc   :  { %3623 = vrot.lane.b32.xlu1 %v7610_v53, %s6172_s19 }
 0xafd   :  { %5987 = vset.pattern.permute.xlu1 %v9692_v17  ;;  %v9775_v17 = vmov 76  }
 0xb00   :  { %3627 = vrot.lane.b32.xlu1 %v7617_v46, %s6172_s19 }
 0xb04   :  { %3631 = vrot.lane.b32.xlu1 %v7624_v4, %s6172_s19 }
 0xb08   :  { %3635 = vrot.lane.b32.xlu1 %v7633_v21, %s6172_s19 }
 0xb0c   :  { %3733 = vperm.xlu1 %5987, %v6992_v35  }
 0xb0d   :  { %v4003_v10 = vpop.xlane.xlu0 %4002 }
 0xb0e   :  { %v4007_v36 = vsub.f32 %v6994_v62, %v4003_v10 }
 0xb10   :  { %v4009_v63 = vmul.f32 1.442695, %v4007_v36  ;;  %5988 = vset.pattern.permute.xlu1 %v9697_v58  ;;  %v7873_v58 = vpop.permute.xlu1 %3446 }
 0xb11   :  { %3745 = vperm.xlu1 %5988, %v6994_v62   ;;  %9777 = vst [vmem:[#allocation53_spill] sm:$0xff] %v7873_v58 }
 0xb12   :  { %6132 = vpow2.f32 %v4009_v63 }
 0xb15   :  { %5990 = vset.pattern.permute.xlu1 %v9775_v17 }
 0xb16   :  { %3763 = vperm.xlu1 %5990, %v7749_v12  }
 0xb1a   :  { %3767 = vperm.xlu1 %5990, %v7757_v26  }
 0xb1e   :  { %5992 = vset.pattern.permute.xlu1 %v9698_v56  ;;  %v7878_v56 = vpop.permute.xlu1 %3450 }
 0xb1f   :  { %v7864_v39 = vpop.eup %6132  ;;  %3777 = vperm.xlu1 %5992, %v6992_v35   ;;  %9779 = vst [vmem:[#allocation34_spill] sm:$0xff] %v7878_v56 }
 0xb20   :  { %4015 = vrot.lane.b32.xlu0 %v7864_v39, %s6214_s23 }
 0xb23   :  { %5993 = vset.pattern.permute.xlu1 %v9700_v22 }
 0xb24   :  { %3789 = vperm.xlu1 %5993, %v6994_v62  }
 0xb28   :  { %5995 = vset.pattern.permute.xlu1 %v9778_v47 }
 0xb29   :  { %3807 = vperm.xlu1 %5995, %v7749_v12  }
 0xb2d   :  { %3811 = vperm.xlu1 %5995, %v7757_v26  }
 0xb31   :  { %5997 = vset.pattern.permute.xlu1 %v9702_v34 }
 0xb32   :  { %v7881_v15 = vpop.permute.xlu1 %3465  ;;  %3823 = vperm.xlu1 %5997, %v6992_v35  }
 0xb33   :  { %9780 = vst [vmem:[#allocation52_spill] sm:$0xff] %v7881_v15 }
 0xb36   :  { %5998 = vset.pattern.permute.xlu1 %v9703_v5  ;;  %v7885_v22 = vpop.permute.xlu1 %3470 }
 0xb37   :  { %9781 = vst [vmem:[#allocation32_spill] sm:$0xff] %v7885_v22  ;;  %3835 = vperm.xlu1 %5998, %v6994_v62  }
 0xb3b   :  { %6000 = vset.pattern.permute.xlu1 %v9782_v57  ;;  %v7889_v49 = vpop.permute.xlu1 %3476 }
 0xb3c   :  { %9783 = vst [vmem:[#allocation51_spill] sm:$0xff] %v7889_v49  ;;  %3853 = vperm.xlu1 %6000, %v7749_v12  }
 0xb3f   :  { %v7892_v44 = vpop.permute.xlu1 %3480 }
 0xb40   :  { %9784 = vst [vmem:[#allocation29_spill] sm:$0xff] %v7892_v44  ;;  %3857 = vperm.xlu1 %6000, %v7757_v26  }
 0xb44   :  { %6002 = vset.pattern.permute.xlu1 %v9704_v2  ;;  %v7897_v34 = vpop.permute.xlu1 %3492 }
 0xb45   :  { %3869 = vperm.xlu1 %6002, %v6992_v35   ;;  %9785 = vst [vmem:[#allocation30_spill] sm:$0xff] %v7897_v34 }
 0xb49   :  { %6003 = vset.pattern.permute.xlu1 %v9706_v29  ;;  %v7901_v5 = vpop.permute.xlu1 %3510 }
 0xb4a   :  { %3881 = vperm.xlu1 %6003, %v6994_v62   ;;  %9786 = vst [vmem:[#allocation27_spill] sm:$0xff] %v7901_v5 }
 0xb4d   :  { %v7905_v18 = vpop.permute.xlu1 %3514 }
 0xb4e   :  { %6004 = vset.pattern.permute.xlu1 %v9787_v40  ;;  %9788 = vst [vmem:[#allocation31_spill] sm:$0xff] %v7905_v18 }
 0xb4f   :  { %3899 = vperm.xlu1 %6004, %v7749_v12   ;;  %v4004_v12 = vsel %vm1622_vm5, %v6992_v35, -inf }
 0xb52   :  { %v7910_v2 = vpop.permute.xlu1 %3526 }
 0xb53   :  { %3903 = vperm.xlu1 %6004, %v7757_v26   ;;  %9789 = vst [vmem:[#allocation50_spill] sm:$0xff] %v7910_v2 }
 0xb57   :  { %3914 = vrot.lane.b32.xlu1 %v7674_v24, %s6172_s19  ;;  %v7912_v61 = vpop.permute.xlu1 %3538 }
 0xb58   :  { %9790 = vst [vmem:[#allocation145_spill] sm:$0xff] %v7912_v61  ;;  %6005 = vset.pattern.permute.xlu1 %v6271_v43 }
 0xb5c   :  { %v7914_v29 = vpop.permute.xlu1 %3556 }
 0xb5d   :  { %9791 = vst [vmem:[#allocation33_spill] sm:$0xff] %v7914_v29  ;;  %v9837_v29 = vld [vmem:[#allocation43_spill] sm:$0xff] }
 0xb60   :  { %v7916_v19 = vpop.permute.xlu1 %3560 }
 0xb61   :  { %9792 = vst [vmem:[#allocation15_spill] sm:$0xff] %v7916_v19  ;;  %v1730_v19 = vsub.f32 %v9837_v29, %v7252_v1  ;;  %v9841_v29 = vld [vmem:[#allocation44_spill] sm:$0xff] }
 0xb63   :  { %v1732_v52 = vand.u32 2147483647, %v1730_v19 }
 0xb65   :  { %v7918_v33 = vpop.permute.xlu1 %3572 }
 0xb66   :  { %9793 = vst [vmem:[#allocation14_spill] sm:$0xff] %v7918_v33 }
 0xb6a   :  { %v7920_v48 = vpop.permute.xlu1 %3584 }
 0xb6b   :  { %9794 = vst [vmem:[#allocation16_spill] sm:$0xff] %v7920_v48  ;;  %v1759_v48 = vsub.f32 %v9841_v29, %v7254_v6 }
 0xb6f   :  { %v7924_v26 = vpop.permute.xlu1 %3602 }
 0xb70   :  { %9795 = vst [vmem:[#allocation17_spill] sm:$0xff] %v7924_v26 }
 0xb73   :  { %v7926_v30 = vpop.permute.xlu1 %3606 }
 0xb74   :  { %9796 = vst [vmem:[#allocation90_spill] sm:$0xff] %v7926_v30 }
 0xb77   :  { %v7928_v32 = vpop.permute.xlu1 %3623 }
 0xb78   :  { %9797 = vst [vmem:[#allocation89_spill] sm:$0xff] %v7928_v32 }
 0xb7b   :  { %4005 = vmax.xlane.f32.xlu1 %v4004_v12  ;;  %v7930_v37 = vpop.permute.xlu1 %3627 }
 0xb7c   :  { %9798 = vst [vmem:[#allocation91_spill] sm:$0xff] %v7930_v37 }
 0xb7f   :  { %v7933_v20 = vpop.permute.xlu1 %3631 }
 0xb80   :  { %9799 = vst [vmem:[#allocation92_spill] sm:$0xff] %v7933_v20 }
 0xb83   :  { %v7937_v50 = vpop.permute.xlu1 %3635 }
 0xb84   :  { %9800 = vst [vmem:[#allocation74_spill] sm:$0xff] %v7937_v50 }
 0xb87   :  { %v7939_v11 = vpop.permute.xlu1 %3733 }
 0xb88   :  { %9801 = vst [vmem:[#allocation73_spill] sm:$0xff] %v7939_v11 }
 0xb8c   :  { %v7941_v9 = vpop.permute.xlu1 %3745 }
 0xb8d   :  { %9802 = vst [vmem:[#allocation75_spill] sm:$0xff] %v7941_v9 }
 0xb91   :  { %v7943_v51 = vpop.permute.xlu1 %3763 }
 0xb92   :  { %v4016_v23 = vpop.permute.xlu0 %4015  ;;  %9803 = vst [vmem:[#allocation76_spill] sm:$0xff] %v7943_v51 }
 0xb93   :  { %v4021_v42 = vsel %vm444_vm6, %v4016_v23, 0.0 }
 0xb94   :  { %4022 = vadd.xlane.f32.xlu0 %v4021_v42 }
 0xb95   :  { %v7945_v8 = vpop.permute.xlu1 %3767 }
 0xb96   :  { %9804 = vst [vmem:[#allocation62_spill] sm:$0xff] %v7945_v8 }
 0xb98   :  { %4603 = vmax.xlane.f32.xlu0 %v4602_v3 }
 0xb9a   :  { %v7947_v25 = vpop.permute.xlu1 %3777 }
 0xb9b   :  { %9805 = vst [vmem:[#allocation66_spill] sm:$0xff] %v7947_v25  ;;  %v9831_v25 = vmov 17  }
 0xb9f   :  { %v7949_v10 = vpop.permute.xlu1 %3789 }
 0xba0   :  { %9806 = vst [vmem:[#allocation194_spill] sm:$0xff] %v7949_v10 }
 0xba4   :  { %v7951_v36 = vpop.permute.xlu1 %3807 }
 0xba5   :  { %9807 = vst [vmem:[#allocation195_spill] sm:$0xff] %v7951_v36 }
 0xba8   :  { %v7953_v63 = vpop.permute.xlu1 %3811 }
 0xba9   :  { %9808 = vst [vmem:[#allocation196_spill] sm:$0xff] %v7953_v63 }
 0xbad   :  { %v7955_v17 = vpop.permute.xlu1 %3823 }
 0xbae   :  { %9809 = vst [vmem:[#allocation197_spill] sm:$0xff] %v7955_v17 }
 0xbb2   :  { %v7957_v47 = vpop.permute.xlu1 %3835 }
 0xbb3   :  { %9810 = vst [vmem:[#allocation198_spill] sm:$0xff] %v7957_v47 }
 0xbb7   :  { %v7959_v57 = vpop.permute.xlu1 %3853 }
 0xbb8   :  { %9811 = vst [vmem:[#allocation199_spill] sm:$0xff] %v7959_v57  ;;  %v4599_v57 = vsel %vm2221_vm7, %v6994_v62, -inf }
 0xbbb   :  { %v7961_v40 = vpop.permute.xlu1 %3857 }
 0xbbc   :  { %9812 = vst [vmem:[#allocation200_spill] sm:$0xff] %v7961_v40 }
 0xbc0   :  { %v7963_v12 = vpop.permute.xlu1 %3869 }
 0xbc1   :  { %9813 = vst [vmem:[#allocation201_spill] sm:$0xff] %v7963_v12 }
 0xbc5   :  { %v7965_v23 = vpop.permute.xlu1 %3881 }
 0xbc6   :  { %9814 = vst [vmem:[#allocation202_spill] sm:$0xff] %v7965_v23  ;;  %v9818_v23 = vmov 48  }
 0xbca   :  { %v7967_v42 = vpop.permute.xlu1 %3899 }
 0xbcb   :  { %9815 = vst [vmem:[#allocation203_spill] sm:$0xff] %v7967_v42 }
 0xbce   :  { %v7969_v3 = vpop.permute.xlu1 %3903 }
 0xbcf   :  { %9816 = vst [vmem:[#allocation204_spill] sm:$0xff] %v7969_v3 }
 0xbd2   :  { %v7971_v43 = vpop.permute.xlu1 %3914 }
 0xbd3   :  { %9817 = vst [vmem:[#allocation205_spill] sm:$0xff] %v7971_v43 }
 0xc04   :  { %v4006_v31 = vpop.xlane.xlu1 %4005 }
 0xc05   :  { %v4008_v32 = vsub.f32 %v6992_v35, %v4006_v31 }
 0xc07   :  { %v4011_v37 = vmul.f32 1.442695, %v4008_v32 }
 0xc09   :  { %6134 = vpow2.f32 %v4011_v37  ;;  %v9819_v37 = vmov 80  }
 0xc16   :  { %v6135_v36 = vpop.eup %6134 }
 0xc17   :  { %4017 = vrot.lane.b32.xlu1 %v6135_v36, %s6214_s23 }
 0xc1d   :  { %v4023_v40 = vpop.xlane.xlu0 %4022 }
 0xc1e   :  { %6136 = vrcp.f32 %v4023_v40 }
 0xc2b   :  { %v6137_v42 = vpop.eup %6136 }
 0xc2c   :  { %v4029_v3 = vmul.f32 %v6137_v42, %v4023_v40 }
 0xc2e   :  { %v4031_v43 = vsub.f32 2.0, %v4029_v3  ;;  %v9823_v3 = vmov 82  }
 0xc30   :  { %v4033_v31 = vmul.f32 %v6137_v42, %v4031_v43  ;;  %v9821_v42 = vmov 18   ;;  %v9824_v43 = vld [vmem:[#allocation67_spill] sm:$0xff] }
 0xc32   :  { %v7983_v32 = vmul.f32 %v7864_v39, %v4033_v31  ;;  %v9822_v39 = vmov 50   ;;  %v9825_v31 = vmov 19  }
 0xc3b   :  { %4600 = vmax.xlane.f32.xlu1 %v4599_v57 }
 0xc4c   :  { %1664 = vperm.xlu1 %6005, %v6405_v27  }
 0xc50   :  { %4042 = vperm.xlu1 %6005, %v6992_v35  }
 0xc54   :  { %6007 = vset.pattern.permute.xlu1 %v9818_v23  ;;  %v9820_v23 = vmov 49  }
 0xc55   :  { %4054 = vperm.xlu1 %6007, %v6994_v62  }
 0xc59   :  { %4058 = vperm.xlu1 %6007, %v6992_v35  }
 0xc5d   :  { %6008 = vset.pattern.permute.xlu1 %v9819_v37  ;;  %v9826_v37 = vmov 83  }
 0xc5e   :  { %4073 = vperm.xlu1 %6008, %v7983_v32  }
 0xc89   :  { %v4018_v57 = vpop.permute.xlu1 %4017 }
 0xc8a   :  { %v4024_v40 = vsel %vm444_vm6, %v4018_v57, 0.0  ;;  %v9827_v57 = vmov 20  }
 0xc8b   :  { %4025 = vadd.xlane.f32.xlu0 %v4024_v40  ;;  %v8017_v40 = vpop.xlane.xlu0 %4603 }
 0xca1   :  { %1660 = vperm.xlu0 %6006, %v9682_v14  }
 0xca5   :  { %4038 = vperm.xlu0 %6006, %v6994_v62  }
 0xca9   :  { %6011 = vset.pattern.permute.xlu0 %v9820_v23 }
 0xcaa   :  { %4104 = vperm.xlu0 %6011, %v6992_v35  }
 0xcae   :  { %6012 = vset.pattern.permute.xlu0 %v9821_v42 }
 0xcaf   :  { %1756 = vperm.xlu0 %6012, %v6405_v27  }
 0xcb3   :  { %4130 = vperm.xlu0 %6012, %v6994_v62  }
 0xcb7   :  { %6016 = vset.pattern.permute.xlu0 %v9822_v39 }
 0xcb8   :  { %4150 = vperm.xlu0 %6016, %v6992_v35  }
 0xcbc   :  { %6017 = vset.pattern.permute.xlu0 %v9823_v3 }
 0xcbd   :  { %1786 = vperm.xlu0 %6017, %v9824_v43  }
 0xcc1   :  { %4164 = vperm.xlu0 %6017, %v7983_v32  }
 0xcc4   :  { %v4601_v50 = vpop.xlane.xlu1 %4600 }
 0xcc5   :  { %6018 = vset.pattern.permute.xlu0 %v9825_v31 }
 0xcc6   :  { %1802 = vperm.xlu0 %6018, %v6405_v27  }
 0xcc8   :  { %v1665_v10 = vpop.permute.xlu1 %1664 }
 0xcca   :  { %4180 = vperm.xlu0 %6018, %v6992_v35  }
 0xcce   :  { %6021 = vset.pattern.permute.xlu0 %v9826_v37 }
 0xccf   :  { %1832 = vperm.xlu0 %6021, %v9824_v43  }
 0xcd3   :  { %4210 = vperm.xlu0 %6021, %v7983_v32  }
 0xcd7   :  { %6023 = vset.pattern.permute.xlu0 %v9827_v57 }
 0xcd8   :  { %1955 = vperm.xlu0 %6023, %v6405_v27  }
 0xcdc   :  { %4223 = vrot.lane.b32.xlu0 %v7610_v53, %s6194_s22 }
 0xce0   :  { %4227 = vrot.lane.b32.xlu0 %v7617_v46, %s6194_s22 }
 0xce4   :  { %4231 = vrot.lane.b32.xlu0 %v7624_v4, %s6194_s22 }
 0xce8   :  { %4235 = vrot.lane.b32.xlu0 %v7633_v21, %s6194_s22 }
 0xcec   :  { %4333 = vperm.xlu0 %6023, %v6992_v35  }
 0xd14   :  { %v4026_v12 = vpop.xlane.xlu0 %4025 }
 0xd15   :  { %6138 = vrcp.f32 %v4026_v12 }
 0xd1c   :  { %v1661_v8 = vpop.permute.xlu0 %1660 }
 0xd20   :  { %v8019_v51 = vpop.permute.xlu0 %4038 }
 0xd21   :  { %9828 = vst [vmem:[#allocation67_spill] sm:$0xff] %v8019_v51  ;;  %v1667_v51 = vsub.f32 %v1661_v8, %v7254_v6 }
 0xd22   :  { %v6139_v63 = vpop.eup %6138 }
 0xd23   :  { %v4030_v20 = vmul.f32 %v6139_v63, %v4026_v12  ;;  %v1669_v5 = vand.u32 2147483647, %v1667_v51  ;;  %v9842_v51 = vld [vmem:[#allocation48_spill] sm:$0xff] }
 0xd25   :  { %v4032_v47 = vsub.f32 2.0, %v4030_v20  ;;  %v8021_v17 = vpop.permute.xlu0 %4104  ;;  %v9832_v20 = vld [vmem:[#allocation28_spill] sm:$0xff] }
 0xd26   :  { %9829 = vst [vmem:[#allocation206_spill] sm:$0xff] %v8021_v17  ;;  %v1714_v12 = vsub.f32 %v9832_v20, %v7254_v6  ;;  %v9838_v20 = vld [vmem:[#allocation45_spill] sm:$0xff] }
 0xd27   :  { %v4034_v46 = vmul.f32 %v6139_v63, %v4032_v47  ;;  %v9833_v63 = vld [vmem:[#allocation39_spill] sm:$0xff] }
 0xd28   :  { %v1683_v47 = vsub.f32 %v9833_v63, %v7252_v1  ;;  %v1775_v63 = vsub.f32 %v9838_v20, %v7252_v1 }
 0xd29   :  { %v8023_v30 = vmul.f32 %v6135_v36, %v4034_v46  ;;  %v1668_v46 = vsub.f32 %v1665_v10, %v7254_v6  ;;  %v9834_v36 = vld [vmem:[#allocation40_spill] sm:$0xff]  ;;  %v9839_v10 = vld [vmem:[#allocation46_spill] sm:$0xff] }
 0xd2a   :  { %v1757_v26 = vpop.permute.xlu0 %1756  ;;  %v1684_v17 = vsub.f32 %v9834_v36, %v7252_v1  ;;  %v1776_v22 = vsub.f32 %v9839_v10, %v7252_v1  ;;  %v1716_v36 = vand.u32 2147483647, %v1714_v12  ;;  %v1685_v18 = vand.u32 2147483647, %v1683_v47 }
 0xd2b   :  { %4078 = vperm.xlu1 %6008, %v8023_v30   ;;  %v1760_v8 = vsub.f32 %v1757_v26, %v7254_v6  ;;  %v1777_v2 = vand.u32 2147483647, %v1775_v63  ;;  %v1821_v12 = vsub.f32 %v9842_v51, %v7252_v1  ;;  %v1671_v47 = vsub.f32 1.0, %v1669_v5 }
 0xd2c   :  { %v1686_v33 = vand.u32 2147483647, %v1684_v17  ;;  %v1778_v10 = vand.u32 2147483647, %v1776_v22  ;;  %v1718_v17 = vsub.f32 1.0, %v1716_v36  ;;  %v1734_v63 = vsub.f32 1.0, %v1732_v52 }
 0xd2d   :  { %v1762_v61 = vand.u32 2147483647, %v1760_v8  ;;  %v1761_v8 = vand.u32 2147483647, %v1759_v48  ;;  %v9844_v22 = vld [vmem:[#allocation49_spill] sm:$0xff]  ;;  %v1779_v44 = vsub.f32 1.0, %v1777_v2 }
 0xd2e   :  { %v8026_v11 = vpop.permute.xlu0 %4130  ;;  %v1822_v34 = vsub.f32 %v9844_v22, %v7252_v1  ;;  %v1780_v36 = vsub.f32 1.0, %v1778_v10  ;;  %v1673_v7 = vmax.f32 %v1671_v47, 0.0 }
 0xd2f   :  { %9830 = vst [vmem:[#allocation207_spill] sm:$0xff] %v8026_v11  ;;  %6009 = vset.pattern.permute.xlu1 %v9831_v25  ;;  %v9836_v11 = vld [vmem:[#allocation42_spill] sm:$0xff]  ;;  %v1764_v51 = vsub.f32 1.0, %v1762_v61 }
 0xd30   :  { %4084 = vperm.xlu1 %6009, %v6994_v62   ;;  %v1729_v25 = vsub.f32 %v9836_v11, %v7252_v1  ;;  %v9840_v11 = vld [vmem:[#allocation41_spill] sm:$0xff]  ;;  %v1824_v2 = vand.u32 2147483647, %v1822_v34  ;;  %v1782_v47 = vmax.f32 %v1780_v36, 0.0 }
 0xd31   :  { %v1713_v15 = vsub.f32 %v9840_v11, %v7254_v6  ;;  %v4605_v11 = vsub.f32 %v6994_v62, %v4601_v50  ;;  %v9846_v50 = vmov 81   ;;  %v1766_v10 = vmax.f32 %v1764_v51, 0.0  ;;  %v9847_v51 = vld [vmem:[#allocation93_spill] sm:$0xff] }
 0xd32   :  { %v1731_v26 = vand.u32 2147483647, %v1729_v25  ;;  %v1688_v25 = vsub.f32 1.0, %v1686_v33 }
 0xd33   :  { %v8038_v9 = vpop.permute.xlu0 %4150  ;;  %v1715_v19 = vand.u32 2147483647, %v1713_v15  ;;  %v4606_v15 = vsub.f32 %v6992_v35, %v8017_v40  ;;  %v4607_v48 = vmul.f32 1.442695, %v4605_v11 }
 0xd34   :  { %9835 = vst [vmem:[#allocation28_spill] sm:$0xff] %v8038_v9  ;;  %4088 = vperm.xlu1 %6009, %v6992_v35   ;;  %v1670_v9 = vand.u32 2147483647, %v1668_v46  ;;  %v1687_v46 = vsub.f32 1.0, %v1685_v18  ;;  %v1733_v49 = vsub.f32 1.0, %v1731_v26  ;;  %v1690_v52 = vmax.f32 %v1688_v25, 0.0 }
 0xd35   :  { %v1823_v18 = vand.u32 2147483647, %v1821_v12  ;;  %v1717_v26 = vsub.f32 1.0, %v1715_v19  ;;  %v1781_v12 = vmax.f32 %v1779_v44, 0.0  ;;  %v4609_v56 = vmul.f32 1.442695, %v4606_v15 }
 0xd36   :  { %v1672_v29 = vsub.f32 1.0, %v1670_v9  ;;  %v1689_v33 = vmax.f32 %v1687_v46, 0.0  ;;  %v1735_v22 = vmax.f32 %v1733_v49, 0.0  ;;  %6140 = vpow2.f32 %v4607_v48  ;;  %v9849_v15 = vld [vmem:[#allocation77_spill] sm:$0xff] }
 0xd37   :  { %v1825_v55 = vsub.f32 1.0, %v1823_v18  ;;  %v1826_v49 = vsub.f32 1.0, %v1824_v2  ;;  %6142 = vpow2.f32 %v4609_v56  ;;  %v9852_v2 = vld [vmem:[#allocation79_spill] sm:$0xff] }
 0xd38   :  { %6010 = vset.pattern.permute.xlu1 %v9820_v23  ;;  %v8055_v20 = vpop.permute.xlu0 %1786  ;;  %v9843_v23 = vld [vmem:[#allocation47_spill] sm:$0xff]  ;;  %v1674_v9 = vmax.f32 %v1672_v29, 0.0  ;;  %v1719_v29 = vmax.f32 %v1717_v26, 0.0  ;;  %v9850_v26 = vld [vmem:[#allocation94_spill] sm:$0xff] }
 0xd39   :  { %4100 = vperm.xlu1 %6010, %v6994_v62   ;;  %v1805_v13 = vsub.f32 %v9843_v23, %v7254_v6  ;;  %v1763_v23 = vsub.f32 1.0, %v1761_v8  ;;  %v1784_v8 = vmul.f32 %v1782_v47, %v1766_v10 }
 0xd3a   :  { %v1692_v40 = vmul.f32 %v1690_v52, %v1674_v9  ;;  %v1737_v44 = vmul.f32 %v1735_v22, %v1719_v29  ;;  %v9853_v29 = vld [vmem:[#allocation80_spill] sm:$0xff] }
 0xd3b   :  { %v1807_v61 = vand.u32 2147483647, %v1805_v13  ;;  %v1765_v25 = vmax.f32 %v1763_v23, 0.0  ;;  %v1720_v13 = vmax.f32 %v1718_v17, 0.0  ;;  %v1794_v10 = vmul.f32 %v9852_v2, %v1784_v8 }
 0xd3c   :  { %v8065_v5 = vpop.permute.xlu0 %4164  ;;  %v1704_v48 = vmul.f32 %v9849_v15, %v1692_v40  ;;  %v1747_v17 = vmul.f32 %v9850_v26, %v1737_v44  ;;  %v9873_v2 = vmov 85  }
 0xd3d   :  { %9845 = vst [vmem:[#allocation39_spill] sm:$0xff] %v8065_v5  ;;  %6013 = vset.pattern.permute.xlu1 %v9846_v50  ;;  %v1736_v5 = vmax.f32 %v1734_v63, 0.0  ;;  %v1691_v50 = vmul.f32 %v1689_v33, %v1673_v7  ;;  %v1809_v19 = vsub.f32 1.0, %v1807_v61  ;;  %v1827_v63 = vmax.f32 %v1825_v55, 0.0  ;;  %v9851_v61 = vld [vmem:[#allocation78_spill] sm:$0xff] }
 0xd3e   :  { %4118 = vperm.xlu1 %6013, %v7983_v32   ;;  %v1783_v7 = vmul.f32 %v1781_v12, %v1765_v25  ;;  %v1828_v55 = vmax.f32 %v1826_v49, 0.0 }
 0xd3f   :  { %v1703_v36 = vmul.f32 %v9847_v51, %v1691_v50  ;;  %v1738_v33 = vmul.f32 %v1736_v5, %v1720_v13  ;;  %v1811_v52 = vmax.f32 %v1809_v19, 0.0 }
 0xd40   :  { %v1793_v23 = vmul.f32 %v8055_v20, %v1783_v7 }
 0xd41   :  { %v1803_v46 = vpop.permute.xlu0 %1802  ;;  %v1748_v22 = vmul.f32 %v9851_v61, %v1738_v33  ;;  %v1749_v5 = vadd.f32 %v1747_v17, %v1703_v36  ;;  %v1829_v56 = vmul.f32 %v1827_v63, %v1811_v52  ;;  %v9871_v61 = vmov 21  }
 0xd42   :  { %v1806_v11 = vsub.f32 %v1803_v46, %v7254_v6  ;;  %4122 = vperm.xlu1 %6013, %v8023_v30  }
 0xd43   :  { %v1750_v47 = vadd.f32 %v1748_v22, %v1704_v48  ;;  %v1795_v40 = vadd.f32 %v1793_v23, %v1749_v5  ;;  %v8086_v13 = vpop.eup %6140  ;;  %v9869_v23 = vmov 84   ;;  %v9872_v22 = vmov 55  }
 0xd44   :  { %v1808_v34 = vand.u32 2147483647, %v1806_v11  ;;  %v8095_v49 = vpop.eup %6142  ;;  %v9876_v5 = vmov 54  }
 0xd45   :  { %v8074_v18 = vpop.permute.xlu0 %4180  ;;  %v1796_v11 = vadd.f32 %v1794_v10, %v1750_v47  ;;  %v9874_v10 = vmov 53   ;;  %v9878_v47 = vmov 23  }
 0xd46   :  { %9848 = vst [vmem:[#allocation40_spill] sm:$0xff] %v8074_v18  ;;  %v1810_v9 = vsub.f32 1.0, %v1808_v34  ;;  %6014 = vset.pattern.permute.xlu1 %v9821_v42 }
 0xd47   :  { %4134 = vperm.xlu1 %6014, %v6992_v35  }
 0xd48   :  { %v1812_v12 = vmax.f32 %v1810_v9, 0.0 }
 0xd4a   :  { %v1830_v50 = vmul.f32 %v1828_v55, %v1812_v12  ;;  %v1833_v46 = vpop.permute.xlu0 %1832  ;;  %v9870_v55 = vmov 22   ;;  %v9875_v12 = vmov 86  }
 0xd4b   :  { %v1839_v42 = vmul.f32 %v1833_v46, %v1829_v56  ;;  %6015 = vset.pattern.permute.xlu1 %v9822_v39  ;;  %v9854_v39 = vld [vmem:[#allocation106_spill] sm:$0xff]  ;;  %v9877_v56 = vmov 24   ;;  %v9881_v46 = vmov 25  }
 0xd4c   :  { %v1840_v20 = vmul.f32 %v9853_v29, %v1830_v50  ;;  %4146 = vperm.xlu1 %6015, %v6994_v62  }
 0xd4d   :  { %v1841_v25 = vadd.f32 %v1839_v42, %v1795_v40  ;;  %v9883_v42 = vmov 58  }
 0xd4e   :  { %v1842_v19 = vadd.f32 %v1840_v20, %v1796_v11  ;;  %v9884_v11 = vld [vmem:[#allocation56_spill] sm:$0xff]  ;;  %v9885_v20 = vld [vmem:[#allocation57_spill] sm:$0xff] }
 0xd4f   :  { %5560 = vmatprep.mubr.msk.f32.mxu0 %vm655_vm8, %v1841_v25  ;;  %v2018_v29 = vsub.f32 %v9884_v11, %v6438_v41  ;;  %v2019_v25 = vsub.f32 %v9885_v20, %v6438_v41  ;;  %v9893_v11 = vld [vmem:[#allocation65_spill] sm:$0xff] }
 0xd50   :  { %4613 = vrot.lane.b32.xlu1 %v8086_v13, %s6243_s0  ;;  %5561 = vmatmul.mubr.msk.f32.vlgmr.msra.gmra.mxu0 %vm655_vm8, %v1842_v19  ;;  %v9886_v19 = vld [vmem:[#allocation59_spill] sm:$0xff]  ;;  %v2111_v20 = vsub.f32 %v9893_v11, %v6438_v41 }
 0xd51   :  { %5590 = vmatpush3.msra.mxu0 %v9751_v0  ;;  %6019 = vset.pattern.permute.xlu1 %v9823_v3  ;;  %v6272_v0 = vmov 52   ;;  %v9855_v3 = vmov 51  }
 0xd52   :  { %5591 = vmatprep.subr.mxu0 %v9854_v39  ;;  %6027 = vset.pattern.permute.xlu0 %v6272_v0 }
 0xd53   :  { %5592 = vmatpush3.msra.mxu0 %v9854_v39  ;;  %v2064_v39 = vsub.f32 %v9886_v19, %v6438_v41 }
 0xd54   :  { %5596 = vmatprep.subr.mxu0 %v7633_v21  ;;  %4615 = vrot.lane.b32.xlu1 %v8095_v49, %s6243_s0  ;;  %v9983_v21 = vld [vmem:[#allocation160_spill] sm:$0xff] }
 0xd58   :  { %4168 = vperm.xlu1 %6019, %v8023_v30  }
 0xd5c   :  { %6020 = vset.pattern.permute.xlu1 %v9825_v31  ;;  %v9856_v31 = vld [vmem:[#allocation188_spill] sm:$0xff] }
 0xd5d   :  { %4176 = vperm.xlu1 %6020, %v6994_v62  }
 0xd61   :  { %6022 = vset.pattern.permute.xlu1 %v9855_v3 }
 0xd62   :  { %4192 = vperm.xlu1 %6022, %v6994_v62  }
 0xd66   :  { %4196 = vperm.xlu1 %6022, %v6992_v35  }
 0xd6a   :  { %6024 = vset.pattern.permute.xlu1 %v9826_v37  ;;  %v8119_v37 = vpop.permute.xlu1 %4042 }
 0xd6b   :  { %4214 = vperm.xlu1 %6024, %v8023_v30   ;;  %9857 = vst [vmem:[#allocation42_spill] sm:$0xff] %v8119_v37  ;;  %v9900_v37 = vmov 29  }
 0xd6e   :  { %v8121_v8 = vpop.permute.xlu1 %4054 }
 0xd6f   :  { %4221 = vrot.lane.b32.xlu1 %v7613_v45, %s6194_s22  ;;  %9858 = vst [vmem:[#allocation43_spill] sm:$0xff] %v8121_v8 }
 0xd70   :  { %6025 = vset.pattern.permute.xlu1 %v9827_v57 }
 0xd72   :  { %v8123_v34 = vpop.permute.xlu1 %4058 }
 0xd73   :  { %4225 = vrot.lane.b32.xlu1 %v7620_v28, %s6194_s22  ;;  %9859 = vst [vmem:[#allocation45_spill] sm:$0xff] %v8123_v34 }
 0xd76   :  { %v8125_v63 = vpop.permute.xlu1 %4073 }
 0xd77   :  { %4229 = vrot.lane.b32.xlu1 %v7628_v60, %s6194_s22  ;;  %9860 = vst [vmem:[#allocation46_spill] sm:$0xff] %v8125_v63  ;;  %v2113_v63 = vand.u32 2147483647, %v2111_v20 }
 0xd79   :  { %v2115_v20 = vsub.f32 1.0, %v2113_v63 }
 0xd7b   :  { %4233 = vrot.lane.b32.xlu1 %v9856_v31, %s6194_s22 }
 0xd7f   :  { %4329 = vperm.xlu1 %6025, %v6994_v62  }
 0xd83   :  { %6026 = vset.pattern.permute.xlu1 %v6272_v0  ;;  %v9887_v0 = vld [vmem:[#allocation38_spill] sm:$0xff] }
 0xd84   :  { %v2003_v3 = vsub.f32 %v9887_v0, %v6474_v54 }
 0xd86   :  { %v2005_v0 = vand.u32 2147483647, %v2003_v3  ;;  %v9898_v3 = vld [vmem:[#allocation97_spill] sm:$0xff] }
 0xda6   :  { %v8127_v57 = vpop.permute.xlu1 %4078 }
 0xda7   :  { %9861 = vst [vmem:[#allocation41_spill] sm:$0xff] %v8127_v57 }
 0xdab   :  { %v8129_v44 = vpop.permute.xlu1 %4084 }
 0xdac   :  { %9862 = vst [vmem:[#allocation44_spill] sm:$0xff] %v8129_v44 }
 0xdaf   :  { %v8131_v51 = vpop.permute.xlu1 %4088 }
 0xdb0   :  { %9863 = vst [vmem:[#allocation48_spill] sm:$0xff] %v8131_v51 }
 0xdb4   :  { %v8133_v36 = vpop.permute.xlu1 %4100 }
 0xdb5   :  { %9864 = vst [vmem:[#allocation47_spill] sm:$0xff] %v8133_v36 }
 0xdb9   :  { %v8135_v7 = vpop.permute.xlu1 %4118 }
 0xdba   :  { %9865 = vst [vmem:[#allocation49_spill] sm:$0xff] %v8135_v7 }
 0xdbd   :  { %v8137_v33 = vpop.permute.xlu1 %4122 }
 0xdbe   :  { %9866 = vst [vmem:[#allocation93_spill] sm:$0xff] %v8137_v33 }
 0xdc2   :  { %v8139_v15 = vpop.permute.xlu1 %4134 }
 0xdc3   :  { %9867 = vst [vmem:[#allocation77_spill] sm:$0xff] %v8139_v15 }
 0xdc7   :  { %v8141_v48 = vpop.permute.xlu1 %4146 }
 0xdc8   :  { %9868 = vst [vmem:[#allocation94_spill] sm:$0xff] %v8141_v48 }
 0xdcb   :  { %v4614_v9 = vpop.permute.xlu1 %4613 }
 0xdcc   :  { %v4619_v52 = vsel %vm444_vm6, %v4614_v9, 0.0  ;;  %v9888_v9 = vld [vmem:[#allocation55_spill] sm:$0xff] }
 0xdcd   :  { %4620 = vadd.xlane.f32.xlu1 %v4619_v52  ;;  %v2002_v52 = vsub.f32 %v9888_v9, %v6474_v54 }
 0xdcf   :  { %v4616_v26 = vpop.permute.xlu1 %4615  ;;  %v2004_v9 = vand.u32 2147483647, %v2002_v52  ;;  %v2358_v52 = vsub.f32 %v9898_v3, %v7254_v6  ;;  %v9903_v3 = vld [vmem:[#allocation103_spill] sm:$0xff] }
 0xdd0   :  { %v4622_v17 = vsel %vm444_vm6, %v4616_v26, 0.0  ;;  %v9889_v26 = vld [vmem:[#allocation54_spill] sm:$0xff] }
 0xdd1   :  { %4623 = vadd.xlane.f32.xlu0 %v4622_v17  ;;  %v1958_v17 = vsub.f32 %v9889_v26, %v6474_v54  ;;  %v9895_v26 = vld [vmem:[#allocation63_spill] sm:$0xff]  ;;  %v2360_v15 = vand.u32 2147483647, %v2358_v52  ;;  %v2557_v52 = vsub.f32 %v9903_v3, %v6474_v54 }
 0xdd3   :  { %v8183_v50 = vpop.permute.xlu1 %4168 }
 0xdd4   :  { %9880 = vst [vmem:[#allocation78_spill] sm:$0xff] %v8183_v50 }
 0xdd8   :  { %v8190_v40 = vpop.permute.xlu1 %4176 }
 0xdd9   :  { %9882 = vst [vmem:[#allocation79_spill] sm:$0xff] %v8190_v40  ;;  %v9924_v40 = vmov 27  }
 0xddd   :  { %v8218_v19 = vpop.permute.xlu1 %4192 }
 0xdde   :  { %1967 = vperm.xlu1 %6026, %v9682_v14   ;;  %9894 = vst [vmem:[#allocation80_spill] sm:$0xff] %v8218_v19 }
 0xde2   :  { %1971 = vperm.xlu1 %6026, %v6405_v27  }
 0xde6   :  { %4345 = vperm.xlu1 %6026, %v6994_v62  }
 0xde7   :  { %4349 = vperm.xlu0 %6027, %v6992_v35  }
 0xdea   :  { %6029 = vset.pattern.permute.xlu1 %v9869_v23  ;;  %v9890_v23 = vld [vmem:[#allocation58_spill] sm:$0xff] }
 0xdeb   :  { %4363 = vperm.xlu1 %6029, %v7983_v32   ;;  %6028 = vset.pattern.permute.xlu0 %v9870_v55 }
 0xdec   :  { %2045 = vperm.xlu0 %6028, %v6405_v27  }
 0xdef   :  { %4367 = vperm.xlu1 %6029, %v8023_v30  }
 0xdf0   :  { %4423 = vperm.xlu0 %6028, %v6992_v35  }
 0xdf3   :  { %6030 = vset.pattern.permute.xlu1 %v9871_v61  ;;  %v9891_v61 = vld [vmem:[#allocation61_spill] sm:$0xff] }
 0xdf4   :  { %4373 = vperm.xlu1 %6030, %v6994_v62   ;;  %6035 = vset.pattern.permute.xlu0 %v9872_v22 }
 0xdf5   :  { %4481 = vperm.xlu0 %6035, %v6994_v62  }
 0xdf8   :  { %4377 = vperm.xlu1 %6030, %v6992_v35  }
 0xdf9   :  { %6036 = vset.pattern.permute.xlu0 %v9873_v2 }
 0xdfa   :  { %2029 = vperm.xlu0 %6036, %v9824_v43  }
 0xdfc   :  { %6031 = vset.pattern.permute.xlu1 %v9874_v10  ;;  %v2021_v10 = vand.u32 2147483647, %v2019_v25 }
 0xdfd   :  { %4389 = vperm.xlu1 %6031, %v6994_v62  }
 0xdfe   :  { %4407 = vperm.xlu0 %6036, %v7983_v32   ;;  %v2023_v57 = vsub.f32 1.0, %v2021_v10  ;;  %v8229_v10 = vpop.permute.xlu1 %4196 }
 0xdff   :  { %9899 = vst [vmem:[#allocation106_spill] sm:$0xff] %v8229_v10 }
 0xe01   :  { %4393 = vperm.xlu1 %6031, %v6992_v35  }
 0xe02   :  { %6038 = vset.pattern.permute.xlu0 %v9875_v12 }
 0xe03   :  { %2075 = vperm.xlu0 %6038, %v9824_v43   ;;  %v9879_v43 = vmov 57  }
 0xe05   :  { %6032 = vset.pattern.permute.xlu1 %v9870_v55  ;;  %v2048_v55 = vsub.f32 %v9890_v23, %v6474_v54  ;;  %v9896_v23 = vld [vmem:[#allocation60_spill] sm:$0xff] }
 0xe06   :  { %4419 = vperm.xlu1 %6032, %v6994_v62  }
 0xe07   :  { %4457 = vperm.xlu0 %6038, %v8023_v30   ;;  %v2050_v25 = vand.u32 2147483647, %v2048_v55  ;;  %v2006_v55 = vsub.f32 1.0, %v2004_v9 }
 0xe0a   :  { %6033 = vset.pattern.permute.xlu1 %v9876_v5  ;;  %v9892_v5 = vld [vmem:[#allocation64_spill] sm:$0xff] }
 0xe0b   :  { %4435 = vperm.xlu1 %6033, %v6994_v62   ;;  %6041 = vset.pattern.permute.xlu0 %v9877_v56 }
 0xe0c   :  { %2259 = vperm.xlu0 %6041, %v9682_v14  }
 0xe0f   :  { %4439 = vperm.xlu1 %6033, %v6992_v35  }
 0xe10   :  { %4636 = vperm.xlu0 %6041, %v6994_v62  }
 0xe13   :  { %6034 = vset.pattern.permute.xlu1 %v9878_v47  ;;  %v2110_v47 = vsub.f32 %v9892_v5, %v6438_v41 }
 0xe14   :  { %4465 = vperm.xlu1 %6034, %v6994_v62   ;;  %6043 = vset.pattern.permute.xlu0 %v9879_v43 }
 0xe15   :  { %2325 = vperm.xlu0 %6043, %v6405_v27   ;;  %v2112_v33 = vand.u32 2147483647, %v2110_v47 }
 0xe17   :  { %v2114_v7 = vsub.f32 1.0, %v2112_v33 }
 0xe18   :  { %4469 = vperm.xlu1 %6034, %v6992_v35  }
 0xe19   :  { %4698 = vperm.xlu0 %6043, %v6994_v62  }
 0xe1c   :  { %6037 = vset.pattern.permute.xlu1 %v9872_v22  ;;  %v2095_v22 = vsub.f32 %v9891_v61, %v6474_v54  ;;  %v2065_v61 = vsub.f32 %v9896_v23, %v6438_v41  ;;  %v2052_v23 = vsub.f32 1.0, %v2050_v25 }
 0xe1d   :  { %4485 = vperm.xlu1 %6037, %v6992_v35   ;;  %6048 = vset.pattern.permute.xlu0 %v9881_v46 }
 0xe1e   :  { %4686 = vperm.xlu0 %6048, %v6992_v35   ;;  %v2097_v5 = vand.u32 2147483647, %v2095_v22  ;;  %v2067_v22 = vand.u32 2147483647, %v2065_v61 }
 0xe20   :  { %v2069_v25 = vsub.f32 1.0, %v2067_v22  ;;  %v9907_v22 = vld [vmem:[#allocation105_spill] sm:$0xff] }
 0xe21   :  { %6039 = vset.pattern.permute.xlu1 %v9873_v2  ;;  %v2020_v2 = vand.u32 2147483647, %v2018_v29  ;;  %v1960_v29 = vand.u32 2147483647, %v1958_v17  ;;  %v2007_v17 = vsub.f32 1.0, %v2005_v0  ;;  %v2008_v0 = vmax.f32 %v2006_v55, 0.0 }
 0xe22   :  { %4411 = vperm.xlu1 %6039, %v8023_v30   ;;  %6049 = vset.pattern.permute.xlu0 %v9883_v42  ;;  %v2066_v42 = vand.u32 2147483647, %v2064_v39  ;;  %v9897_v39 = vmov 87  }
 0xe23   :  { %2371 = vperm.xlu0 %6049, %v6405_v27   ;;  %v2022_v50 = vsub.f32 1.0, %v2020_v2  ;;  %v1962_v18 = vsub.f32 1.0, %v1960_v29  ;;  %v2099_v2 = vsub.f32 1.0, %v2097_v5  ;;  %v2054_v29 = vmax.f32 %v2052_v23, 0.0 }
 0xe24   :  { %v2068_v11 = vsub.f32 1.0, %v2066_v42 }
 0xe25   :  { %v2024_v47 = vmax.f32 %v2022_v50, 0.0  ;;  %v2101_v61 = vmax.f32 %v2099_v2, 0.0  ;;  %v8236_v50 = vpop.permute.xlu0 %4210  ;;  %v2618_v2 = vsub.f32 %v9907_v22, %v6438_v41  ;;  %v9912_v22 = vld [vmem:[#allocation112_spill] sm:$0xff] }
 0xe26   :  { %6040 = vset.pattern.permute.xlu1 %v9875_v12  ;;  %v2094_v12 = vsub.f32 %v9895_v26, %v6474_v54  ;;  %v2070_v42 = vmax.f32 %v2068_v11, 0.0  ;;  %9901 = vst [vmem:[#allocation56_spill] sm:$0xff] %v8236_v50  ;;  %v2362_v11 = vsub.f32 1.0, %v2360_v15  ;;  %v9908_v15 = vld [vmem:[#allocation114_spill] sm:$0xff] }
 0xe27   :  { %4453 = vperm.xlu1 %6040, %v7983_v32   ;;  %4744 = vperm.xlu0 %6049, %v6994_v62   ;;  %v8240_v5 = vmul.f32 %v2024_v47, %v2008_v0  ;;  %v2328_v47 = vsub.f32 %v9908_v15, %v7252_v1  ;;  %v9913_v15 = vld [vmem:[#allocation84_spill] sm:$0xff] }
 0xe28   :  { %v2096_v26 = vand.u32 2147483647, %v2094_v12  ;;  %v8234_v12 = vmax.f32 %v1962_v18, 0.0  ;;  %v9905_v18 = vmov 56   ;;  %v8248_v55 = vmul.f32 %v2070_v42, %v2054_v29  ;;  %v9910_v42 = vld [vmem:[#allocation118_spill] sm:$0xff] }
 0xe29   :  { %v9911_v29 = vld [vmem:[#allocation82_spill] sm:$0xff]  ;;  %v8275_v10 = vpop.permute.xlu0 %1955 }
 0xe2a   :  { %v2098_v9 = vsub.f32 1.0, %v2096_v26  ;;  %v9906_v26 = vld [vmem:[#allocation104_spill] sm:$0xff] }
 0xe2b   :  { %6042 = vset.pattern.permute.xlu1 %v9897_v39  ;;  %4748 = vperm.xlu0 %6049, %v6992_v35   ;;  %v2025_v39 = vmax.f32 %v2023_v57, 0.0  ;;  %v2116_v57 = vmax.f32 %v2114_v7, 0.0  ;;  %v2574_v23 = vsub.f32 %v9906_v26, %v6438_v41 }
 0xe2c   :  { %4499 = vperm.xlu1 %6042, %v7983_v32   ;;  %v2009_v32 = vmax.f32 %v2007_v17, 0.0  ;;  %v8244_v17 = vpop.permute.xlu1 %4214  ;;  %v2100_v7 = vmax.f32 %v2098_v9, 0.0  ;;  %v2374_v9 = vsub.f32 %v9910_v42, %v7252_v1 }
 0xe2d   :  { %9904 = vst [vmem:[#allocation57_spill] sm:$0xff] %v8244_v17  ;;  %v2312_v17 = vsub.f32 %v9912_v22, %v7254_v6  ;;  %v9918_v22 = vld [vmem:[#allocation133_spill] sm:$0xff]  ;;  %v8301_v48 = vpop.permute.xlu0 %4223 }
 0xe2e   :  { %v2027_v33 = vmul.f32 %v2025_v39, %v2009_v32  ;;  %v8257_v39 = vmax.f32 %v2069_v25, 0.0  ;;  %v9909_v32 = vld [vmem:[#allocation109_spill] sm:$0xff]  ;;  %v2118_v3 = vmul.f32 %v2116_v57, %v2100_v7  ;;  %v8271_v25 = vmax.f32 %v2362_v11, 0.0  ;;  %9926 = vst [vmem:[#allocation55_spill] sm:$0xff] %v8301_v48 }
 0xe2f   :  { %6056 = vset.pattern.permute.xlu0 %v9900_v37  ;;  %v9902_v37 = vld [vmem:[#allocation98_spill] sm:$0xff]  ;;  %v2283_v0 = vsub.f32 %v9909_v32, %v7252_v1  ;;  %v2576_v57 = vand.u32 2147483647, %v2574_v23  ;;  %v2330_v7 = vand.u32 2147483647, %v2328_v47  ;;  %v9920_v23 = vld [vmem:[#allocation129_spill] sm:$0xff] }
 0xe30   :  { %4503 = vperm.xlu1 %6042, %v8023_v30   ;;  %2594 = vperm.xlu0 %6056, %v9682_v14   ;;  %v2421_v63 = vsub.f32 %v9902_v37, %v7252_v1  ;;  %v2117_v30 = vmax.f32 %v2115_v20, 0.0  ;;  %v8264_v37 = vmul.f32 %v9911_v29, %v2027_v33  ;;  %v9916_v33 = vld [vmem:[#allocation96_spill] sm:$0xff]  ;;  %v9921_v47 = vld [vmem:[#allocation130_spill] sm:$0xff] }
 0xe31   :  { %v8279_v42 = vmul.f32 %v9916_v33, %v2118_v3  ;;  %v2285_v29 = vand.u32 2147483647, %v2283_v0  ;;  %v2314_v3 = vand.u32 2147483647, %v2312_v17  ;;  %v9922_v0 = vld [vmem:[#allocation113_spill] sm:$0xff] }
 0xe32   :  { %v2119_v20 = vmul.f32 %v2117_v30, %v2101_v61  ;;  %v2423_v26 = vand.u32 2147483647, %v2421_v63  ;;  %v2559_v61 = vand.u32 2147483647, %v2557_v52  ;;  %v9915_v30 = vld [vmem:[#allocation107_spill] sm:$0xff]  ;;  %v9925_v17 = vld [vmem:[#allocation117_spill] sm:$0xff] }
 0xe33   :  { %v2267_v32 = vsub.f32 %v9915_v30, %v7254_v6  ;;  %v2620_v63 = vand.u32 2147483647, %v2618_v2  ;;  %v2376_v52 = vand.u32 2147483647, %v2374_v9  ;;  %v8286_v30 = vpop.permute.xlu1 %4221  ;;  %v2558_v2 = vsub.f32 %v9920_v23, %v6474_v54 }
 0xe34   :  { %6044 = vset.pattern.permute.xlu1 %v9905_v18  ;;  %4971 = vperm.xlu0 %6056, %v6994_v62   ;;  %v8269_v50 = vmul.f32 %v9913_v15, %v2119_v20  ;;  %v9917_v20 = vld [vmem:[#allocation108_spill] sm:$0xff]  ;;  %v2602_v15 = vsub.f32 %v9918_v22, %v6474_v54  ;;  %9919 = vst [vmem:[#allocation38_spill] sm:$0xff] %v8286_v30  ;;  %v2425_v51 = vsub.f32 1.0, %v2423_v26  ;;  %v2561_v33 = vsub.f32 1.0, %v2559_v61 }
 0xe35   :  { %4652 = vperm.xlu1 %6044, %v6994_v62   ;;  %v2282_v11 = vsub.f32 %v9917_v20, %v7252_v1  ;;  %v2269_v34 = vand.u32 2147483647, %v2267_v32  ;;  %v2313_v9 = vsub.f32 %v9922_v0, %v7254_v6  ;;  %v9923_v20 = vld [vmem:[#allocation121_spill] sm:$0xff]  ;;  %v2578_v30 = vsub.f32 1.0, %v2576_v57 }
 0xe36   :  { %9914 = vst [vmem:[#allocation59_spill] sm:$0xff] %v8269_v50  ;;  %v2405_v22 = vsub.f32 %v9923_v20, %v7254_v6  ;;  %v2622_v19 = vsub.f32 1.0, %v2620_v63  ;;  %v2332_v26 = vsub.f32 1.0, %v2330_v7  ;;  %v2359_v8 = vsub.f32 %v9925_v17, %v7254_v6 }
 0xe37   :  { %v2284_v23 = vand.u32 2147483647, %v2282_v11  ;;  %v2378_v61 = vsub.f32 1.0, %v2376_v52  ;;  %v2604_v32 = vand.u32 2147483647, %v2602_v15  ;;  %v8304_v0 = vmax.f32 %v2425_v51, 0.0  ;;  %v8307_v45 = vpop.permute.xlu1 %4225 }
 0xe38   :  { %4975 = vperm.xlu0 %6056, %v6992_v35   ;;  %v2316_v20 = vsub.f32 1.0, %v2314_v3  ;;  %v2560_v44 = vand.u32 2147483647, %v2558_v2  ;;  %v2563_v63 = vmax.f32 %v2561_v33, 0.0  ;;  %v2271_v7 = vsub.f32 1.0, %v2269_v34  ;;  %9927 = vst [vmem:[#allocation54_spill] sm:$0xff] %v8307_v45  ;;  %v8315_v45 = vpop.permute.xlu0 %4227 }
 0xe39   :  { %6045 = vset.pattern.permute.xlu1 %v9881_v46  ;;  %v2573_v46 = vsub.f32 %v9921_v47, %v6438_v41  ;;  %v2287_v47 = vsub.f32 1.0, %v2285_v29  ;;  %v2315_v17 = vand.u32 2147483647, %v2313_v9  ;;  %v2407_v36 = vand.u32 2147483647, %v2405_v22  ;;  %v9928_v15 = vld [vmem:[#allocation122_spill] sm:$0xff] }
 0xe3a   :  { %4682 = vperm.xlu1 %6045, %v6994_v62   ;;  %v2580_v11 = vmax.f32 %v2578_v30, 0.0  ;;  %v2334_v29 = vmax.f32 %v2332_v26, 0.0  ;;  %v2361_v52 = vand.u32 2147483647, %v2359_v8  ;;  %v2420_v48 = vsub.f32 %v9928_v15, %v7252_v1  ;;  %v9929_v8 = vld [vmem:[#allocation134_spill] sm:$0xff]  ;;  %9930 = vst [vmem:[#allocation58_spill] sm:$0xff] %v8315_v45 }
 0xe3b   :  { %v2575_v57 = vand.u32 2147483647, %v2573_v46  ;;  %v2624_v51 = vmax.f32 %v2622_v19, 0.0  ;;  %v2380_v3 = vmax.f32 %v2378_v61, 0.0  ;;  %v2606_v2 = vsub.f32 1.0, %v2604_v32 }
 0xe3c   :  { %6059 = vset.pattern.permute.xlu0 %v9924_v40  ;;  %v2286_v46 = vsub.f32 1.0, %v2284_v23  ;;  %v2318_v28 = vmax.f32 %v2316_v20, 0.0  ;;  %v2562_v33 = vsub.f32 1.0, %v2560_v44  ;;  %v2273_v9 = vmax.f32 %v2271_v7, 0.0  ;;  %v9931_v23 = vld [vmem:[#allocation137_spill] sm:$0xff] }
 0xe3d   :  { %2397 = vperm.xlu0 %6059, %v9682_v14   ;;  %v2577_v34 = vsub.f32 1.0, %v2575_v57  ;;  %v2317_v22 = vsub.f32 1.0, %v2315_v17  ;;  %v2409_v30 = vsub.f32 1.0, %v2407_v36  ;;  %v2617_v26 = vsub.f32 %v9929_v8, %v6438_v41  ;;  %v9933_v36 = vld [vmem:[#allocation138_spill] sm:$0xff]  ;;  %v8324_v17 = vpop.permute.xlu1 %4229  ;;  %v9937_v8 = vld [vmem:[#allocation111_spill] sm:$0xff] }
 0xe3e   :  { %6046 = vset.pattern.permute.xlu1 %v9877_v56  ;;  %v2289_v56 = vmax.f32 %v2287_v47, 0.0  ;;  %v2336_v19 = vmul.f32 %v2334_v29, %v2318_v28  ;;  %v2363_v47 = vsub.f32 1.0, %v2361_v52  ;;  %v2422_v61 = vand.u32 2147483647, %v2420_v48  ;;  %9934 = vst [vmem:[#allocation61_spill] sm:$0xff] %v8324_v17  ;;  %v9936_v29 = vld [vmem:[#allocation141_spill] sm:$0xff] }
 0xe3f   :  { %4640 = vperm.xlu1 %6046, %v6992_v35   ;;  %v2648_v32 = vsub.f32 %v9931_v23, %v6474_v54  ;;  %v9932_v44 = vmov 62   ;;  %v2608_v57 = vmax.f32 %v2606_v2, 0.0  ;;  %v2663_v7 = vsub.f32 %v9933_v36, %v6438_v41  ;;  %v9940_v2 = vld [vmem:[#allocation115_spill] sm:$0xff]  ;;  %v9952_v17 = vld [vmem:[#allocation132_spill] sm:$0xff] }
 0xe40   :  { %v2291_v20 = vmul.f32 %v2289_v56, %v2273_v9  ;;  %v8327_v15 = vmax.f32 %v2286_v46, 0.0  ;;  %v2564_v28 = vmax.f32 %v2562_v33, 0.0  ;;  %v2579_v48 = vmax.f32 %v2577_v34, 0.0  ;;  %v9943_v34 = vld [vmem:[#allocation119_spill] sm:$0xff] }
 0xe41   :  { %4774 = vperm.xlu0 %6059, %v6994_v62   ;;  %v2694_v52 = vsub.f32 %v9936_v29, %v6474_v54  ;;  %v8334_v56 = vmax.f32 %v2317_v22, 0.0  ;;  %v8338_v9 = vmul.f32 %v9940_v2, %v2336_v19  ;;  %v8340_v36 = vmax.f32 %v2363_v47, 0.0  ;;  %v9945_v22 = vld [vmem:[#allocation146_spill] sm:$0xff] }
 0xe42   :  { %9935 = vst [vmem:[#allocation64_spill] sm:$0xff] %v8327_v15  ;;  %v8332_v23 = vmul.f32 %v9937_v8, %v2291_v20  ;;  %v2424_v46 = vsub.f32 1.0, %v2422_v61  ;;  %v2650_v33 = vand.u32 2147483647, %v2648_v32  ;;  %v2626_v20 = vmul.f32 %v2624_v51, %v2608_v57  ;;  %v9947_v61 = vld [vmem:[#allocation147_spill] sm:$0xff]  ;;  %v9949_v51 = vld [vmem:[#allocation24_spill] sm:$0xff] }
 0xe43   :  { %6047 = vset.pattern.permute.xlu1 %v9905_v18  ;;  %v2382_v18 = vmul.f32 %v2380_v3, %v8271_v25  ;;  %9939 = vst [vmem:[#allocation63_spill] sm:$0xff] %v8334_v56  ;;  %v2411_v25 = vmax.f32 %v2409_v30, 0.0  ;;  %v2619_v3 = vand.u32 2147483647, %v2617_v26  ;;  %9941 = vst [vmem:[#allocation60_spill] sm:$0xff] %v8338_v9  ;;  %v2869_v30 = vsub.f32 %v9945_v22, %v7254_v6  ;;  %v8348_v26 = vpop.permute.xlu0 %4231 }
 0xe44   :  { %4656 = vperm.xlu1 %6047, %v6992_v35   ;;  %9938 = vst [vmem:[#allocation65_spill] sm:$0xff] %v8332_v23  ;;  %9942 = vst [vmem:[#allocation97_spill] sm:$0xff] %v8340_v36  ;;  %v2665_v8 = vand.u32 2147483647, %v2663_v7  ;;  %v2582_v19 = vmul.f32 %v2580_v11, %v2564_v28  ;;  %v2696_v47 = vand.u32 2147483647, %v2694_v52  ;;  %v2916_v32 = vsub.f32 %v9947_v61, %v7254_v6  ;;  %v8357_v7 = vpop.permute.xlu1 %4233 }
 0xe45   :  { %6061 = vset.pattern.permute.xlu0 %v9932_v44  ;;  %v8344_v29 = vmul.f32 %v9943_v34, %v2382_v18  ;;  %9946 = vst [vmem:[#allocation103_spill] sm:$0xff] %v8348_v26  ;;  %v2429_v2 = vmul.f32 %v8304_v0, %v2411_v25  ;;  %v2621_v45 = vsub.f32 1.0, %v2619_v3  ;;  %v9948_v18 = vld [vmem:[#allocation136_spill] sm:$0xff]  ;;  %v2931_v57 = vsub.f32 %v9949_v51, %v7252_v1  ;;  %v9953_v11 = vld [vmem:[#allocation13_spill] sm:$0xff]  ;;  %v9955_v25 = vld [vmem:[#allocation6_spill] sm:$0xff] }
 0xe46   :  { %2660 = vperm.xlu0 %6061, %v6405_v27   ;;  %v2636_v34 = vmul.f32 %v9948_v18, %v2626_v20  ;;  %9950 = vst [vmem:[#allocation104_spill] sm:$0xff] %v8357_v7  ;;  %v8359_v22 = vmax.f32 %v2424_v46, 0.0  ;;  %v2592_v26 = vmul.f32 %v9952_v17, %v2582_v19  ;;  %v2932_v28 = vsub.f32 %v9953_v11, %v7252_v1  ;;  %v9956_v20 = vld [vmem:[#allocation36_spill] sm:$0xff] }
 0xe47   :  { %9944 = vst [vmem:[#allocation98_spill] sm:$0xff] %v8344_v29  ;;  %v2667_v52 = vsub.f32 1.0, %v2665_v8  ;;  %v2871_v0 = vand.u32 2147483647, %v2869_v30  ;;  %v2885_v3 = vsub.f32 %v9955_v25, %v7252_v1  ;;  %v2915_v61 = vsub.f32 %v9956_v20, %v7254_v6  ;;  %v9958_v18 = vld [vmem:[#allocation124_spill] sm:$0xff]  ;;  %v9964_v25 = vld [vmem:[#allocation142_spill] sm:$0xff]  ;;  %v8384_v29 = vpop.permute.xlu0 %4235 }
 0xe48   :  { %6050 = vset.pattern.permute.xlu1 %v9879_v43  ;;  %v2581_v43 = vmul.f32 %v2579_v48, %v2563_v63  ;;  %9951 = vst [vmem:[#allocation105_spill] sm:$0xff] %v8359_v22  ;;  %v2652_v63 = vsub.f32 1.0, %v2650_v33  ;;  %v9954_v48 = vmov 26   ;;  %v9957_v46 = vmov 30   ;;  %v9960_v33 = vld [vmem:[#allocation131_spill] sm:$0xff]  ;;  %9965 = vst [vmem:[#allocation112_spill] sm:$0xff] %v8384_v29 }
 0xe49   :  { %4702 = vperm.xlu1 %6050, %v6992_v35   ;;  %v8372_v17 = vmul.f32 %v9958_v18, %v2429_v2  ;;  %v2698_v51 = vsub.f32 1.0, %v2696_v47  ;;  %v2918_v11 = vand.u32 2147483647, %v2916_v32  ;;  %v8378_v8 = vmax.f32 %v2621_v45, 0.0  ;;  %v9967_v2 = vld [vmem:[#allocation8_spill] sm:$0xff]  ;;  %v9968_v47 = vld [vmem:[#allocation35_spill] sm:$0xff] }
 0xe4a   :  { %5033 = vperm.xlu0 %6061, %v6994_v62   ;;  %v8375_v19 = vmul.f32 %v9960_v33, %v2581_v43  ;;  %v8380_v30 = vadd.f32 %v2636_v34, %v2592_v26  ;;  %v2709_v20 = vsub.f32 %v9964_v25, %v6438_v41  ;;  %v2933_v7 = vand.u32 2147483647, %v2931_v57  ;;  %v9973_v29 = vld [vmem:[#allocation68_spill] sm:$0xff] }
 0xe4b   :  { %9959 = vst [vmem:[#allocation114_spill] sm:$0xff] %v8372_v17  ;;  %9962 = vst [vmem:[#allocation118_spill] sm:$0xff] %v8378_v8  ;;  %v8386_v22 = vmax.f32 %v2652_v63, 0.0  ;;  %v2886_v43 = vsub.f32 %v9967_v2, %v7252_v1  ;;  %v2934_v18 = vand.u32 2147483647, %v2932_v28  ;;  %v2977_v32 = vsub.f32 %v9968_v47, %v7252_v1  ;;  %v9974_v28 = vld [vmem:[#allocation18_spill] sm:$0xff]  ;;  %v8415_v9 = vpop.permute.xlu0 %4333 }
 0xe4c   :  { %9961 = vst [vmem:[#allocation109_spill] sm:$0xff] %v8375_v19  ;;  %9963 = vst [vmem:[#allocation82_spill] sm:$0xff] %v8380_v30  ;;  %v8392_v33 = vmax.f32 %v2667_v52, 0.0  ;;  %v2873_v45 = vsub.f32 1.0, %v2871_v0  ;;  %v2887_v26 = vand.u32 2147483647, %v2885_v3  ;;  %v8394_v30 = vpop.permute.xlu1 %4329  ;;  %v2961_v2 = vsub.f32 %v9974_v28, %v7254_v6 }
 0xe4d   :  { %6051 = vset.pattern.permute.xlu1 %v9954_v48  ;;  %9966 = vst [vmem:[#allocation84_spill] sm:$0xff] %v8386_v22  ;;  %v2917_v34 = vand.u32 2147483647, %v2915_v61  ;;  %9970 = vst [vmem:[#allocation96_spill] sm:$0xff] %v8394_v30  ;;  %v9971_v25 = vmov 28   ;;  %v8397_v57 = vmax.f32 %v2698_v51, 0.0  ;;  %v2870_v22 = vsub.f32 %v9973_v29, %v7254_v6 }
 0xe4e   :  { %4728 = vperm.xlu1 %6051, %v6994_v62   ;;  %6064 = vset.pattern.permute.xlu0 %v9957_v46  ;;  %9969 = vst [vmem:[#allocation107_spill] sm:$0xff] %v8392_v33  ;;  %v2920_v63 = vsub.f32 1.0, %v2918_v11  ;;  %v8405_v52 = vand.u32 2147483647, %v2709_v20  ;;  %v9975_v0 = vld [vmem:[#allocation148_spill] sm:$0xff]  ;;  %v9976_v61 = vld [vmem:[#allocation151_spill] sm:$0xff]  ;;  %v3007_v30 = vsub.f32 %v9984_v16, %v7254_v6 }
 0xe4f   :  { %2640 = vperm.xlu0 %6064, %v9682_v14   ;;  %9972 = vst [vmem:[#allocation108_spill] sm:$0xff] %v8397_v57  ;;  %v2962_v3 = vsub.f32 %v9975_v0, %v7254_v6  ;;  %v3008_v51 = vsub.f32 %v9976_v61, %v7254_v6  ;;  %v2935_v47 = vsub.f32 1.0, %v2933_v7  ;;  %v9977_v11 = vld [vmem:[#allocation153_spill] sm:$0xff]  ;;  %v2888_v29 = vand.u32 2147483647, %v2886_v43  ;;  %v9978_v8 = vld [vmem:[#allocation155_spill] sm:$0xff] }
 0xe50   :  { %v3137_v57 = vsub.f32 %v9977_v11, %v6474_v54  ;;  %v2936_v19 = vsub.f32 1.0, %v2934_v18  ;;  %v2979_v33 = vand.u32 2147483647, %v2977_v32  ;;  %v2875_v28 = vmax.f32 %v2873_v45, 0.0  ;;  %9979 = vst [vmem:[#allocation133_spill] sm:$0xff] %v8415_v9  ;;  %v9982_v45 = vld [vmem:[#allocation157_spill] sm:$0xff] }
 0xe51   :  { %v3181_v17 = vsub.f32 %v9978_v8, %v6474_v54  ;;  %v2889_v23 = vsub.f32 1.0, %v2887_v26  ;;  %v2919_v20 = vsub.f32 1.0, %v2917_v34  ;;  %v2922_v0 = vmax.f32 %v2920_v63, 0.0 }
 0xe52   :  { %6052 = vset.pattern.permute.xlu1 %v9971_v25  ;;  %v2872_v56 = vand.u32 2147483647, %v2870_v22  ;;  %v2963_v61 = vand.u32 2147483647, %v2961_v2  ;;  %v9980_v7 = vmov 60   ;;  %v9981_v43 = vmov 31  }
 0xe53   :  { %4927 = vperm.xlu1 %6052, %v6994_v62   ;;  %5021 = vperm.xlu0 %6064, %v6992_v35   ;;  %v2964_v18 = vand.u32 2147483647, %v2962_v3  ;;  %v3010_v32 = vand.u32 2147483647, %v3008_v51  ;;  %v3227_v8 = vsub.f32 %v9982_v45, %v6474_v54  ;;  %v2937_v26 = vmax.f32 %v2935_v47, 0.0 }
 0xe54   :  { %v3139_v34 = vand.u32 2147483647, %v3137_v57  ;;  %v2890_v63 = vsub.f32 1.0, %v2888_v29  ;;  %v2938_v22 = vmax.f32 %v2936_v19, 0.0  ;;  %v2981_v2 = vsub.f32 1.0, %v2979_v33  ;;  %v9985_v19 = vld [vmem:[#allocation159_spill] sm:$0xff] }
 0xe55   :  { %v3183_v11 = vand.u32 2147483647, %v3181_v17  ;;  %v2891_v15 = vmax.f32 %v2889_v23, 0.0  ;;  %v2921_v31 = vmax.f32 %v2919_v20, 0.0  ;;  %v2874_v45 = vsub.f32 1.0, %v2872_v56  ;;  %v9986_v33 = vld [vmem:[#allocation163_spill] sm:$0xff] }
 0xe56   :  { %v8417_v36 = vpop.xlane.xlu1 %4620  ;;  %v2965_v47 = vsub.f32 1.0, %v2963_v61  ;;  %v3273_v17 = vsub.f32 %v9985_v19, %v6474_v54  ;;  %v3023_v57 = vsub.f32 %v9986_v33, %v7252_v1  ;;  %v2966_v29 = vsub.f32 1.0, %v2964_v18 }
 0xe57   :  { %6144 = vrcp.f32 %v8417_v36  ;;  %6053 = vset.pattern.permute.xlu1 %v9980_v7  ;;  %6067 = vset.pattern.permute.xlu0 %v9981_v43  ;;  %v2978_v43 = vsub.f32 %v9983_v21, %v7252_v1  ;;  %v2939_v23 = vmul.f32 %v2937_v26, %v2921_v31  ;;  %v9987_v21 = vmov 61  }
 0xe58   :  { %4943 = vperm.xlu1 %6053, %v6994_v62   ;;  %2686 = vperm.xlu0 %6067, %v9682_v14   ;;  %v3229_v14 = vand.u32 2147483647, %v3227_v8  ;;  %v2892_v56 = vmax.f32 %v2890_v63, 0.0  ;;  %v2940_v20 = vmul.f32 %v2938_v22, %v2922_v0  ;;  %v2983_v61 = vmax.f32 %v2981_v2, 0.0 }
 0xe59   :  { %v3012_v16 = vsub.f32 1.0, %v3010_v32  ;;  %v3141_v58 = vsub.f32 1.0, %v3139_v34  ;;  %v2893_v8 = vmul.f32 %v2891_v15, %v2875_v28  ;;  %v2980_v59 = vand.u32 2147483647, %v2978_v43  ;;  %v9990_v32 = vld [vmem:[#allocation7_spill] sm:$0xff]  ;;  %v9991_v43 = vld [vmem:[#allocation37_spill] sm:$0xff] }
 0xe5a   :  { %v8428_v3 = vpop.permute.xlu1 %1967  ;;  %v8430_v51 = vpop.xlane.xlu0 %4623  ;;  %v3185_v19 = vsub.f32 1.0, %v3183_v11  ;;  %v2876_v31 = vmax.f32 %v2874_v45, 0.0  ;;  %v2967_v26 = vmax.f32 %v2965_v47, 0.0  ;;  %v3009_v44 = vand.u32 2147483647, %v3007_v30 }
 0xe5b   :  { %6146 = vrcp.f32 %v8430_v51  ;;  %v3231_v33 = vsub.f32 1.0, %v3229_v14  ;;  %v8442_v9 = vand.u32 2147483647, %v3273_v17  ;;  %v2949_v50 = vmul.f32 %v9988_v38, %v2939_v23  ;;  %v9992_v17 = vld [vmem:[#allocation26_spill] sm:$0xff] }
 0xe5c   :  { %6054 = vset.pattern.permute.xlu1 %v9987_v21  ;;  %5063 = vperm.xlu0 %6067, %v6994_v62   ;;  %v3025_v18 = vand.u32 2147483647, %v3023_v57  ;;  %v9989_v63 = vmov 63   ;;  %v2894_v22 = vmul.f32 %v2892_v56, %v2876_v31  ;;  %v2950_v34 = vmul.f32 %v9990_v32, %v2940_v20 }
 0xe5d   :  { %4987 = vperm.xlu1 %6054, %v6994_v62   ;;  %v2985_v15 = vmul.f32 %v2983_v61, %v2967_v26  ;;  %v2968_v28 = vmax.f32 %v2966_v29, 0.0  ;;  %v8450_v30 = vmax.f32 %v3012_v16, 0.0  ;;  %v2905_v2 = vmul.f32 %v9991_v43, %v2893_v8  ;;  %v9993_v61 = vld [vmem:[#allocation150_spill] sm:$0xff]  ;;  %v9994_v8 = vld [vmem:[#allocation164_spill] sm:$0xff] }
 0xe5e   :  { %v1972_v53 = vpop.permute.xlu1 %1971  ;;  %v2982_v11 = vsub.f32 1.0, %v2980_v59  ;;  %v8458_v47 = vmax.f32 %v3141_v58, 0.0  ;;  %v8460_v14 = vmax.f32 %v3185_v19, 0.0  ;;  %v3011_v23 = vsub.f32 1.0, %v3009_v44  ;;  %v9995_v44 = vld [vmem:[#allocation166_spill] sm:$0xff] }
 0xe5f   :  { %v8463_v57 = vmax.f32 %v3231_v33, 0.0  ;;  %v2951_v56 = vadd.f32 %v2949_v50, %v2905_v2  ;;  %v3027_v59 = vsub.f32 1.0, %v3025_v18  ;;  %v2995_v16 = vmul.f32 %v9993_v61, %v2985_v15  ;;  %v9996_v33 = vld [vmem:[#allocation167_spill] sm:$0xff] }
 0xe60   :  { %6069 = vset.pattern.permute.xlu0 %v9989_v63  ;;  %v3024_v58 = vsub.f32 %v9994_v8, %v7252_v1  ;;  %v2984_v31 = vmax.f32 %v2982_v11, 0.0  ;;  %v3136_v26 = vsub.f32 %v9995_v44, %v6474_v54  ;;  %v1975_v50 = vsub.f32 %v1972_v53, %v6438_v41  ;;  %v10000_v61 = vld [vmem:[#allocation171_spill] sm:$0xff] }
 0xe61   :  { %6055 = vset.pattern.permute.xlu1 %v9954_v48  ;;  %2706 = vperm.xlu0 %6069, %v6405_v27   ;;  %v2906_v48 = vmul.f32 %v9992_v17, %v2894_v22  ;;  %v3152_v22 = vsub.f32 %v9996_v33, %v6438_v41  ;;  %v3013_v32 = vmax.f32 %v3011_v23, 0.0  ;;  %v3196_v53 = vsub.f32 %v10000_v61, %v6438_v41 }
 0xe62   :  { %4732 = vperm.xlu1 %6055, %v6992_v35   ;;  %v8454_v38 = vpop.permute.xlu1 %4345  ;;  %v8456_v45 = vpop.permute.xlu0 %4349  ;;  %v8491_v8 = vand.u32 2147483647, %v3024_v58  ;;  %v1974_v33 = vsub.f32 %v8428_v3, %v6438_v41  ;;  %v1977_v61 = vand.u32 2147483647, %v1975_v50 }
 0xe63   :  { %v8466_v20 = vadd.f32 %v2950_v34, %v2906_v48  ;;  %v9998_v34 = vld [vmem:[#allocation168_spill] sm:$0xff]  ;;  %v3029_v48 = vmax.f32 %v3027_v59, 0.0  ;;  %v3138_v59 = vand.u32 2147483647, %v3136_v26  ;;  %v3154_v0 = vand.u32 2147483647, %v3152_v22 }
 0xe64   :  { %v6145_v27 = vpop.eup %6144  ;;  %v3153_v15 = vsub.f32 %v9998_v34, %v6438_v41  ;;  %v10001_v34 = vmov 89   ;;  %v10004_v22 = vld [vmem:[#allocation175_spill] sm:$0xff] }
 0xe65   :  { %v4627_v19 = vmul.f32 %v6145_v27, %v8417_v36  ;;  %5083 = vperm.xlu0 %6069, %v6992_v35   ;;  %v9999_v36 = vld [vmem:[#allocation170_spill] sm:$0xff]  ;;  %v3242_v50 = vsub.f32 %v10004_v22, %v6438_v41  ;;  %v10009_v22 = vld [vmem:[#allocation179_spill] sm:$0xff] }
 0xe66   :  { %6057 = vset.pattern.permute.xlu1 %v9971_v25  ;;  %v8479_v18 = vpop.permute.xlu1 %4363  ;;  %v3180_v43 = vsub.f32 %v9999_v36, %v6474_v54  ;;  %v1959_v25 = vsub.f32 %v8275_v10, %v6474_v54  ;;  %v8497_v36 = vadd.f32 %v2995_v16, %v2951_v56  ;;  %v3155_v10 = vand.u32 2147483647, %v3153_v15  ;;  %v10003_v16 = vld [vmem:[#allocation172_spill] sm:$0xff] }
 0xe67   :  { %9997 = vst [vmem:[#allocation129_spill] sm:$0xff] %v8479_v18  ;;  %v4629_v2 = vsub.f32 2.0, %v4627_v19  ;;  %4931 = vperm.xlu1 %6057, %v6992_v35   ;;  %v2046_v11 = vpop.permute.xlu0 %2045  ;;  %v3197_v26 = vsub.f32 %v10003_v16, %v6438_v41  ;;  %v1976_v15 = vand.u32 2147483647, %v1974_v33 }
 0xe68   :  { %v6147_v17 = vpop.eup %6146  ;;  %v2049_v23 = vsub.f32 %v2046_v11, %v6474_v54  ;;  %v3182_v18 = vand.u32 2147483647, %v3180_v43  ;;  %v1961_v11 = vand.u32 2147483647, %v1959_v25  ;;  %v3031_v43 = vmul.f32 %v3029_v48, %v3013_v32 }
 0xe69   :  { %v4631_v44 = vmul.f32 %v6145_v27, %v4629_v2  ;;  %v4628_v19 = vmul.f32 %v6147_v17, %v8430_v51  ;;  %6073 = vset.pattern.permute.xlu0 %v10001_v34  ;;  %v2986_v51 = vmul.f32 %v2984_v31, %v2968_v28  ;;  %v3198_v2 = vand.u32 2147483647, %v3196_v53 }
 0xe6a   :  { %v8499_v29 = vpop.permute.xlu1 %4367  ;;  %v2051_v56 = vand.u32 2147483647, %v2049_v23  ;;  %v1979_v31 = vsub.f32 1.0, %v1977_v61  ;;  %v3156_v53 = vsub.f32 1.0, %v3154_v0  ;;  %v3157_v25 = vsub.f32 1.0, %v3155_v10  ;;  %v10006_v23 = vld [vmem:[#allocation174_spill] sm:$0xff] }
 0xe6b   :  { %10002 = vst [vmem:[#allocation130_spill] sm:$0xff] %v8499_v29  ;;  %v8502_v58 = vmul.f32 %v8086_v13, %v4631_v44  ;;  %v4630_v27 = vsub.f32 2.0, %v4628_v19  ;;  %6058 = vset.pattern.permute.xlu1 %v9980_v7  ;;  %v8505_v3 = vpop.permute.xlu0 %4423  ;;  %v3140_v7 = vsub.f32 1.0, %v3138_v59  ;;  %v10005_v44 = vld [vmem:[#allocation176_spill] sm:$0xff]  ;;  %v3226_v19 = vsub.f32 %v10006_v23, %v6474_v54 }
 0xe6c   :  { %4947 = vperm.xlu1 %6058, %v6992_v35   ;;  %v3243_v28 = vsub.f32 %v10005_v44, %v6438_v41  ;;  %v3200_v33 = vsub.f32 1.0, %v3198_v2  ;;  %v2053_v32 = vsub.f32 1.0, %v2051_v56  ;;  %v3184_v59 = vsub.f32 1.0, %v3182_v18 }
 0xe6d   :  { %v4632_v13 = vmul.f32 %v6147_v17, %v4630_v27  ;;  %4716 = vperm.xlu0 %6073, %v8502_v58   ;;  %v3028_v17 = vsub.f32 1.0, %v8491_v8  ;;  %v1963_v27 = vsub.f32 1.0, %v1961_v11  ;;  %v3199_v0 = vand.u32 2147483647, %v3197_v26  ;;  %v10010_v8 = vld [vmem:[#allocation180_spill] sm:$0xff] }
 0xe6e   :  { %v3244_v61 = vand.u32 2147483647, %v3242_v50  ;;  %v1978_v10 = vsub.f32 1.0, %v1976_v15  ;;  %v3289_v2 = vsub.f32 %v10010_v8, %v6438_v41  ;;  %v1981_v11 = vmax.f32 %v1979_v31, 0.0  ;;  %v10011_v50 = vld [vmem:[#allocation178_spill] sm:$0xff] }
 0xe6f   :  { %v8518_v34 = vmul.f32 %v8095_v49, %v4632_v13  ;;  %v8520_v16 = vpop.permute.xlu1 %4373  ;;  %v3245_v49 = vand.u32 2147483647, %v3243_v28  ;;  %v3288_v13 = vsub.f32 %v10009_v22, %v6438_v41  ;;  %v3142_v56 = vmax.f32 %v3140_v7, 0.0 }
 0xe70   :  { %10007 = vst [vmem:[#allocation113_spill] sm:$0xff] %v8520_v16  ;;  %6060 = vset.pattern.permute.xlu1 %v9987_v21  ;;  %v8524_v48 = vpop.permute.xlu0 %4481  ;;  %v3158_v21 = vmax.f32 %v3156_v53, 0.0  ;;  %v3159_v44 = vmax.f32 %v3157_v25, 0.0  ;;  %v3228_v23 = vand.u32 2147483647, %v3226_v19  ;;  %v3202_v26 = vmax.f32 %v3200_v33, 0.0 }
 0xe71   :  { %10008 = vst [vmem:[#allocation121_spill] sm:$0xff] %v8524_v48  ;;  %4991 = vperm.xlu1 %6060, %v6992_v35   ;;  %4720 = vperm.xlu0 %6073, %v8518_v34   ;;  %v3272_v15 = vsub.f32 %v10011_v50, %v6474_v54  ;;  %v1965_v29 = vmax.f32 %v1963_v27, 0.0  ;;  %v2055_v48 = vmax.f32 %v2053_v32, 0.0  ;;  %v3186_v28 = vmax.f32 %v3184_v59, 0.0  ;;  %v10014_v27 = vld [vmem:[#allocation161_spill] sm:$0xff] }
 0xe72   :  { %v3201_v63 = vsub.f32 1.0, %v3199_v0  ;;  %v3246_v16 = vsub.f32 1.0, %v3244_v61  ;;  %v1980_v22 = vmax.f32 %v1978_v10, 0.0  ;;  %v3247_v31 = vsub.f32 1.0, %v3245_v49 }
 0xe73   :  { %v8532_v18 = vpop.permute.xlu1 %4377  ;;  %v3290_v53 = vand.u32 2147483647, %v3288_v13  ;;  %v3291_v25 = vand.u32 2147483647, %v3289_v2  ;;  %v1983_v19 = vmul.f32 %v1981_v11, %v1965_v29  ;;  %v10012_v33 = vmov 59   ;;  %v10015_v13 = vld [vmem:[#allocation152_spill] sm:$0xff] }
 0xe74   :  { %v10013_v8 = vmov 93   ;;  %v8543_v32 = vmul.f32 %v10014_v27, %v2986_v51  ;;  %v3030_v59 = vmax.f32 %v3028_v17, 0.0  ;;  %v3160_v0 = vmul.f32 %v3158_v21, %v3142_v56  ;;  %v10016_v21 = vld [vmem:[#allocation81_spill] sm:$0xff] }
 0xe75   :  { %4512 = vrot.lane.b32.xlu1 %v7674_v24, %s6194_s22  ;;  %4829 = vrot.lane.b32.xlu0 %v7624_v4, %s6247_s28  ;;  %v2030_v7 = vpop.permute.xlu0 %2029  ;;  %v3230_v61 = vsub.f32 1.0, %v3228_v23  ;;  %v3161_v10 = vmul.f32 %v3159_v44, %v8458_v47  ;;  %v3204_v50 = vmul.f32 %v3202_v26, %v3186_v28  ;;  %v3274_v24 = vand.u32 2147483647, %v3272_v15  ;;  %v10017_v44 = vld [vmem:[#allocation154_spill] sm:$0xff]  ;;  %v10019_v26 = vld [vmem:[#allocation156_spill] sm:$0xff] }
 0xe76   :  { %6062 = vset.pattern.permute.xlu1 %v10012_v33  ;;  %6076 = vset.pattern.permute.xlu0 %v10013_v8  ;;  %v2073_v4 = vmul.f32 %v8257_v39, %v2055_v48  ;;  %v8550_v29 = vmul.f32 %v10015_v13, %v3031_v43  ;;  %v3203_v2 = vmax.f32 %v3201_v63, 0.0  ;;  %v3248_v11 = vmax.f32 %v3246_v16, 0.0  ;;  %v10018_v16 = vld [vmem:[#allocation169_spill] sm:$0xff] }
 0xe77   :  { %v1982_v8 = vmul.f32 %v1980_v22, %v8234_v12  ;;  %v3249_v47 = vmax.f32 %v3247_v31, 0.0  ;;  %v3292_v17 = vsub.f32 1.0, %v3290_v53  ;;  %v3293_v56 = vsub.f32 1.0, %v3291_v25  ;;  %v10020_v22 = vld [vmem:[#allocation83_spill] sm:$0xff] }
 0xe78   :  { %v8547_v49 = vpop.permute.xlu1 %4389  ;;  %v1993_v39 = vmul.f32 %v10016_v21, %v1983_v19  ;;  %v3032_v48 = vmul.f32 %v3030_v59, %v8450_v30  ;;  %v3170_v43 = vmul.f32 %v10017_v44, %v3160_v0  ;;  %v3232_v23 = vmax.f32 %v3230_v61, 0.0  ;;  %v10022_v19 = vld [vmem:[#allocation95_spill] sm:$0xff]  ;;  %v10028_v21 = vld [vmem:[#allocation158_spill] sm:$0xff] }
 0xe79   :  { %4790 = vperm.xlu1 %6062, %v6994_v62   ;;  %5005 = vperm.xlu0 %6076, %v8502_v58   ;;  %v8555_v51 = vpop.permute.xlu0 %4407  ;;  %v2036_v63 = vmul.f32 %v2030_v7, %v8240_v5  ;;  %v3171_v12 = vmul.f32 %v10018_v16, %v3161_v10  ;;  %v3214_v15 = vmul.f32 %v10019_v26, %v3204_v50  ;;  %v3276_v28 = vsub.f32 1.0, %v3274_v24  ;;  %v10029_v44 = vld [vmem:[#allocation22_spill] sm:$0xff] }
 0xe7a   :  { %v2083_v27 = vmul.f32 %v10020_v22, %v2073_v4  ;;  %v10021_v31 = vsub.f32 1.0, %v8442_v9  ;;  %v3205_v25 = vmul.f32 %v3203_v2, %v8460_v14  ;;  %v3250_v30 = vmul.f32 %v3248_v11, %v3232_v23  ;;  %v10023_v9 = vld [vmem:[#allocation189_spill] sm:$0xff]  ;;  %v10024_v14 = vld [vmem:[#allocation191_spill] sm:$0xff] }
 0xe7b   :  { %v1992_v59 = vmul.f32 %v10022_v19, %v1982_v8  ;;  %v3251_v5 = vmul.f32 %v3249_v47, %v8463_v57  ;;  %v3294_v7 = vmax.f32 %v3292_v17, 0.0  ;;  %v3295_v24 = vmax.f32 %v3293_v56, 0.0  ;;  %v10025_v11 = vld [vmem:[#allocation193_spill] sm:$0xff]  ;;  %v10026_v8 = vld [vmem:[#allocation19_spill] sm:$0xff] }
 0xe7c   :  { %v8564_v13 = vpop.permute.xlu1 %4393  ;;  %v3279_v53 = vmax.f32 %v10021_v31, 0.0  ;;  %v2039_v4 = vadd.f32 %v8264_v37, %v1993_v39  ;;  %v3437_v61 = vsub.f32 %v10023_v9, %v7254_v6  ;;  %v3500_v10 = vsub.f32 %v10024_v14, %v7252_v1  ;;  %v10027_v17 = vld [vmem:[#allocation173_spill] sm:$0xff]  ;;  %v10035_v14 = vld [vmem:[#allocation59_spill] sm:$0xff] }
 0xe7d   :  { %6063 = vset.pattern.permute.xlu1 %v9957_v46  ;;  %5009 = vperm.xlu0 %6076, %v8518_v34   ;;  %v2038_v50 = vadd.f32 %v2036_v63, %v1992_v59  ;;  %v3278_v2 = vmax.f32 %v3276_v28, 0.0  ;;  %v3529_v57 = vsub.f32 %v10025_v11, %v7254_v6  ;;  %v3546_v47 = vsub.f32 %v10026_v8, %v7252_v1  ;;  %v10033_v19 = vld [vmem:[#allocation177_spill] sm:$0xff] }
 0xe7e   :  { %5017 = vperm.xlu1 %6063, %v6994_v62   ;;  %v2076_v0 = vpop.permute.xlu0 %2075  ;;  %v2085_v37 = vadd.f32 %v2083_v27, %v2039_v4  ;;  %v3215_v56 = vmul.f32 %v10027_v17, %v3205_v25  ;;  %v3260_v39 = vmul.f32 %v10028_v21, %v3250_v30  ;;  %v3575_v23 = vsub.f32 %v10029_v44, %v7254_v6  ;;  %v10031_v27 = vld [vmem:[#allocation23_spill] sm:$0xff] }
 0xe7f   :  { %v2082_v46 = vmul.f32 %v2076_v0, %v8248_v55  ;;  %v10030_v55 = vsub.f32 1.0, %v8405_v52  ;;  %v3296_v28 = vmul.f32 %v3294_v7, %v3278_v2  ;;  %v3297_v22 = vmul.f32 %v3295_v24, %v3279_v53  ;;  %v10034_v53 = vld [vmem:[#allocation87_spill] sm:$0xff] }
 0xe80   :  { %v3592_v31 = vsub.f32 %v10031_v27, %v7252_v1  ;;  %v10032_v30 = vmov 91   ;;  %v3261_v59 = vmul.f32 %v10033_v19, %v3251_v5  ;;  %v3439_v4 = vand.u32 2147483647, %v3437_v61  ;;  %v10037_v61 = vld [vmem:[#allocation20_spill] sm:$0xff] }
 0xe81   :  { %v2084_v16 = vadd.f32 %v2082_v46, %v2038_v50  ;;  %v8588_v26 = vpop.permute.xlu1 %4419  ;;  %4827 = vrot.lane.b32.xlu0 %v7628_v60, %s6247_s28  ;;  %v8594_v63 = vmax.f32 %v10030_v55, 0.0  ;;  %v3502_v0 = vand.u32 2147483647, %v3500_v10  ;;  %v3531_v52 = vand.u32 2147483647, %v3529_v57  ;;  %v10038_v57 = vld [vmem:[#allocation181_spill] sm:$0xff] }
 0xe82   :  { %6065 = vset.pattern.permute.xlu1 %v9924_v40  ;;  %v8599_v25 = vpop.permute.xlu0 %4457  ;;  %6081 = vset.pattern.permute.xlu0 %v10032_v30  ;;  %v3548_v7 = vand.u32 2147483647, %v3546_v47  ;;  %v3736_v24 = vsub.f32 %v10034_v53, %v6474_v54  ;;  %v2131_v50 = vadd.f32 %v10035_v14, %v2085_v37  ;;  %v10036_v40 = vld [vmem:[#allocation165_spill] sm:$0xff]  ;;  %v3216_v2 = vadd.f32 %v3214_v15, %v3170_v43  ;;  %v10039_v37 = vld [vmem:[#allocation128_spill] sm:$0xff] }
 0xe83   :  { %v2130_v9 = vadd.f32 %v8279_v42, %v2084_v16  ;;  %4778 = vperm.xlu1 %6065, %v6992_v35   ;;  %v3042_v46 = vmul.f32 %v10036_v40, %v3032_v48  ;;  %v3577_v11 = vand.u32 2147483647, %v3575_v23  ;;  %v4427_v5 = vsub.f32 %v8505_v3, %v6474_v54  ;;  %v10040_v16 = vld [vmem:[#allocation102_spill] sm:$0xff]  ;;  %v10046_v14 = vld [vmem:[#allocation101_spill] sm:$0xff] }
 0xe84   :  { %v3217_v42 = vadd.f32 %v3215_v56, %v3171_v12  ;;  %v3306_v10 = vmul.f32 %v10037_v61, %v3296_v28  ;;  %v3307_v8 = vmul.f32 %v10038_v57, %v3297_v22  ;;  %v3594_v47 = vand.u32 2147483647, %v3592_v31  ;;  %v10044_v31 = vld [vmem:[#allocation127_spill] sm:$0xff]  ;;  %v10049_v57 = vld [vmem:[#allocation126_spill] sm:$0xff] }
 0xe85   :  { %4812 = vperm.xlu0 %6081, %v8518_v34   ;;  %5567 = vmatprep.mubr.msk.f32.mxu1 %vm929_vm9, %v2130_v9  ;;  %v2998_v48 = vadd.f32 %v8543_v32, %v8466_v20  ;;  %v3262_v43 = vadd.f32 %v3260_v39, %v3216_v2  ;;  %v3441_v15 = vsub.f32 1.0, %v3439_v4  ;;  %v3504_v3 = vsub.f32 1.0, %v3502_v0  ;;  %v10045_v0 = vld [vmem:[#allocation133_spill] sm:$0xff] }
 0xe86   :  { %v8615_v17 = vpop.permute.xlu1 %4435  ;;  %5568 = vmatmul.mubr.msk.f32.vlgmr.msra.gmra.mxu1 %vm929_vm9, %v2131_v50  ;;  %v3263_v56 = vadd.f32 %v3261_v59, %v3217_v42  ;;  %v3533_v21 = vsub.f32 1.0, %v3531_v52  ;;  %v3550_v44 = vsub.f32 1.0, %v3548_v7  ;;  %v3738_v23 = vand.u32 2147483647, %v3736_v24  ;;  %v10048_v42 = vld [vmem:[#allocation88_spill] sm:$0xff] }
 0xe87   :  { %5571 = vmatpush3.msra.mxu1 %v10039_v37  ;;  %6066 = vset.pattern.permute.xlu1 %v10012_v33  ;;  %v8622_v12 = vpop.permute.xlu0 %2259  ;;  %v3579_v55 = vsub.f32 1.0, %v3577_v11  ;;  %v4353_v20 = vsub.f32 %v8456_v45, %v6438_v41  ;;  %v4429_v32 = vand.u32 2147483647, %v4427_v5  ;;  %v10041_v39 = vmov 95  }
 0xe88   :  { %5572 = vmatprep.subr.mxu1 %v10040_v16  ;;  %4794 = vperm.xlu1 %6066, %v6992_v35   ;;  %v8632_v33 = vadd.f32 %v8550_v29, %v8497_v36  ;;  %v8634_v28 = vadd.f32 %v3042_v46, %v2998_v48  ;;  %v8636_v22 = vadd.f32 %v3307_v8, %v3263_v56  ;;  %v3596_v27 = vsub.f32 1.0, %v3594_v47  ;;  %v10050_v8 = vld [vmem:[#allocation5_spill] sm:$0xff]  ;;  %v10051_v47 = vld [vmem:[#allocation72_spill] sm:$0xff] }
 0xe89   :  { %5573 = vmatpush3.msra.mxu1 %v10040_v16  ;;  %6082 = vset.pattern.permute.xlu0 %v10041_v39  ;;  %v8640_v45 = vadd.f32 %v3306_v10, %v3262_v43  ;;  %v8642_v59 = vmax.f32 %v3441_v15, 0.0  ;;  %v8644_v4 = vmax.f32 %v3504_v3, 0.0  ;;  %v4337_v36 = vsub.f32 %v10045_v0, %v6474_v54  ;;  %v10054_v16 = vld [vmem:[#allocation100_spill] sm:$0xff] }
 0xe8a   :  { %10042 = vst [vmem:[#allocation117_spill] sm:$0xff] %v8632_v33  ;;  %10043 = vst [vmem:[#allocation122_spill] sm:$0xff] %v8634_v28  ;;  %5574 = vmatprep.subr.mxu1 %v10044_v31  ;;  %v4440_v19 = vpop.permute.xlu1 %4439  ;;  %5097 = vperm.xlu0 %6082, %v8502_v58   ;;  %v8652_v52 = vmax.f32 %v3533_v21, 0.0  ;;  %v8654_v7 = vmax.f32 %v3550_v44, 0.0  ;;  %v3740_v53 = vsub.f32 1.0, %v3738_v23  ;;  %v4397_v24 = vsub.f32 %v8564_v13, %v6438_v41  ;;  %v10053_v21 = vld [vmem:[#allocation113_spill] sm:$0xff] }
 0xe8b   :  { %v4443_v29 = vsub.f32 %v4440_v19, %v6438_v41  ;;  %5575 = vmatpush3.msra.mxu1 %v10044_v31  ;;  %v8650_v9 = vpop.permute.xlu0 %4636  ;;  %v10047_v50 = vmov 62   ;;  %v8660_v40 = vmax.f32 %v3579_v55, 0.0  ;;  %v4355_v46 = vand.u32 2147483647, %v4353_v20  ;;  %v10055_v20 = vld [vmem:[#allocation96_spill] sm:$0xff] }
 0xe8c   :  { %5576 = vmatprep.subr.mxu1 %v10046_v14  ;;  %6068 = vset.pattern.permute.xlu1 %v10047_v50  ;;  %v4431_v2 = vsub.f32 1.0, %v4429_v32  ;;  %v8664_v5 = vmax.f32 %v3596_v27, 0.0  ;;  %v3753_v61 = vsub.f32 %v10048_v42, %v6438_v41  ;;  %v4381_v13 = vsub.f32 %v8532_v18, %v6474_v54  ;;  %v10056_v19 = vld [vmem:[#allocation192_spill] sm:$0xff] }
 0xe8d   :  { %v4445_v11 = vand.u32 2147483647, %v4443_v29  ;;  %5577 = vmatpush3.msra.mxu1 %v10046_v14  ;;  %5037 = vperm.xlu1 %6068, %v6992_v35   ;;  %v4396_v10 = vsub.f32 %v8547_v49, %v6438_v41  ;;  %v3438_v48 = vsub.f32 %v10051_v47, %v7254_v6  ;;  %v4339_v43 = vand.u32 2147483647, %v4337_v36  ;;  %v10052_v49 = vld [vmem:[#allocation53_spill] sm:$0xff]  ;;  %v10058_v14 = vld [vmem:[#allocation190_spill] sm:$0xff] }
 0xe8e   :  { %5578 = vmatprep.subr.mxu1 %v10049_v57  ;;  %4821 = vrot.lane.b32.xlu0 %v10050_v8, %s6247_s28  ;;  %v4352_v15 = vsub.f32 %v8454_v38, %v6438_v41  ;;  %v8680_v18 = vmax.f32 %v3740_v53, 0.0  ;;  %v3453_v56 = vsub.f32 %v10052_v49, %v7252_v1  ;;  %v4380_v44 = vsub.f32 %v10053_v21, %v6474_v54  ;;  %v10060_v47 = vld [vmem:[#allocation99_spill] sm:$0xff]  ;;  %v10065_v8 = vld [vmem:[#allocation130_spill] sm:$0xff] }
 0xe8f   :  { %v4447_v3 = vsub.f32 1.0, %v4445_v11  ;;  %5579 = vmatpush3.msra.mxu1 %v10049_v57  ;;  %v4466_v37 = vpop.permute.xlu1 %4465  ;;  %v4399_v23 = vand.u32 2147483647, %v4397_v24  ;;  %v4336_v38 = vsub.f32 %v10055_v20, %v6474_v54  ;;  %v4357_v32 = vsub.f32 1.0, %v4355_v46  ;;  %v10057_v24 = vld [vmem:[#allocation125_spill] sm:$0xff] }
 0xe90   :  { %5580 = vmatprep.subr.mxu1 %v10054_v16  ;;  %v8687_v55 = vpop.permute.xlu0 %2325  ;;  %v4433_v27 = vmax.f32 %v4431_v2, 0.0  ;;  %v8694_v0 = vand.u32 2147483647, %v3753_v61  ;;  %v4383_v36 = vand.u32 2147483647, %v4381_v13  ;;  %v4442_v53 = vsub.f32 %v8615_v17, %v6438_v41 }
 0xe91   :  { %v4449_v31 = vmax.f32 %v4447_v3, 0.0  ;;  %5581 = vmatpush3.msra.mxu1 %v10054_v16  ;;  %4510 = vrot.lane.b32.xlu1 %v10056_v19, %s6194_s22  ;;  %v4398_v29 = vand.u32 2147483647, %v4396_v10  ;;  %v8701_v50 = vand.u32 2147483647, %v3438_v48  ;;  %v4341_v46 = vsub.f32 1.0, %v4339_v43 }
 0xe92   :  { %5582 = vmatprep.subr.mxu1 %v10057_v24  ;;  %5110 = vrot.lane.b32.xlu0 %v10058_v14, %s6247_s28  ;;  %v4354_v2 = vand.u32 2147483647, %v4352_v15  ;;  %v10059_v61 = vmov 63   ;;  %v4382_v13 = vand.u32 2147483647, %v4380_v44  ;;  %v4401_v10 = vsub.f32 1.0, %v4399_v23 }
 0xe93   :  { %v4451_v11 = vmul.f32 %v4449_v31, %v4433_v27  ;;  %5583 = vmatpush3.msra.mxu1 %v10057_v24  ;;  %v4470_v42 = vpop.permute.xlu1 %4469  ;;  %6070 = vset.pattern.permute.xlu1 %v10059_v61  ;;  %v4426_v17 = vsub.f32 %v8588_v26, %v6474_v54  ;;  %v8711_v48 = vand.u32 2147483647, %v3453_v56  ;;  %v4338_v43 = vand.u32 2147483647, %v4336_v38  ;;  %v10061_v16 = vld [vmem:[#allocation10_spill] sm:$0xff] }
 0xe94   :  { %v4473_v57 = vsub.f32 %v4470_v42, %v6474_v54  ;;  %5584 = vmatprep.subr.mxu1 %v10060_v47  ;;  %v8709_v3 = vpop.permute.xlu0 %4698  ;;  %v4359_v15 = vmax.f32 %v4357_v32, 0.0  ;;  %v4385_v21 = vsub.f32 1.0, %v4383_v36  ;;  %v4400_v44 = vsub.f32 1.0, %v4398_v29  ;;  %v10063_v36 = vld [vmem:[#allocation34_spill] sm:$0xff] }
 0xe95   :  { %v8714_v49 = vmul.f32 %v8599_v25, %v4451_v11  ;;  %5585 = vmatpush3.msra.mxu1 %v10060_v47  ;;  %5079 = vperm.xlu1 %6070, %v6994_v62   ;;  %v4444_v26 = vand.u32 2147483647, %v4442_v53  ;;  %v4472_v23 = vsub.f32 %v4466_v37, %v6474_v54  ;;  %v3780_v56 = vsub.f32 %v10061_v16, %v6474_v54  ;;  %v10062_v25 = vld [vmem:[#allocation121_spill] sm:$0xff] }
 0xe96   :  { %5615 = vmatprep.subr.mxu1 %v10058_v14  ;;  %v4343_v20 = vmax.f32 %v4341_v46, 0.0  ;;  %v4356_v38 = vsub.f32 1.0, %v4354_v2  ;;  %v4475_v32 = vand.u32 2147483647, %v4473_v57  ;;  %v4384_v27 = vsub.f32 1.0, %v4382_v13 }
 0xe97   :  { %v4488_v31 = vsub.f32 %v10062_v25, %v6438_v41  ;;  %v4403_v24 = vmax.f32 %v4401_v10, 0.0  ;;  %v4428_v11 = vand.u32 2147483647, %v4426_v17  ;;  %v3454_v29 = vsub.f32 %v10063_v36, %v7252_v1 }
 0xe98   :  { %v4486_v62 = vpop.permute.xlu1 %4485  ;;  %v4340_v53 = vsub.f32 1.0, %v4338_v43  ;;  %v4361_v37 = vmul.f32 %v4359_v15, %v4343_v20  ;;  %v10064_v61 = vmov 31   ;;  %v4387_v46 = vmax.f32 %v4385_v21, 0.0 }
 0xe99   :  { %v4489_v42 = vsub.f32 %v4486_v62, %v6438_v41  ;;  %6071 = vset.pattern.permute.xlu1 %v10064_v61  ;;  %v8728_v47 = vpop.permute.xlu0 %4686  ;;  %v4402_v2 = vmax.f32 %v4400_v44, 0.0  ;;  %v4446_v13 = vsub.f32 1.0, %v4444_v26  ;;  %v4474_v57 = vand.u32 2147483647, %v4472_v23 }
 0xe9a   :  { %5067 = vperm.xlu1 %6071, %v6992_v35   ;;  %v3782_v10 = vand.u32 2147483647, %v3780_v56  ;;  %v4358_v17 = vmax.f32 %v4356_v38, 0.0  ;;  %v4477_v16 = vsub.f32 1.0, %v4475_v32  ;;  %v4386_v28 = vmax.f32 %v4384_v27, 0.0  ;;  %v10066_v35 = vld [vmem:[#allocation187_spill] sm:$0xff] }
 0xe9b   :  { %v4491_v25 = vand.u32 2147483647, %v4489_v42  ;;  %v4490_v36 = vand.u32 2147483647, %v4488_v31  ;;  %v4430_v43 = vsub.f32 1.0, %v4428_v11  ;;  %v4405_v15 = vmul.f32 %v4403_v24, %v4387_v46 }
 0xe9c   :  { %v3456_v20 = vand.u32 2147483647, %v3454_v29  ;;  %v4342_v62 = vmax.f32 %v4340_v53, 0.0  ;;  %v4371_v61 = vmul.f32 %v10065_v8, %v4361_v37  ;;  %v4404_v21 = vmul.f32 %v4402_v2, %v4386_v28 }
 0xe9d   :  { %v4493_v60 = vsub.f32 1.0, %v4491_v25  ;;  %v4412_v33 = vpop.permute.xlu1 %4411  ;;  %v4448_v44 = vmax.f32 %v4446_v13, 0.0  ;;  %v4476_v26 = vsub.f32 1.0, %v4474_v57  ;;  %v3757_v38 = vsub.f32 1.0, %v8694_v0 }
 0xe9e   :  { %v4415_v23 = vmul.f32 %v4412_v33, %v4405_v15  ;;  %4833 = vrot.lane.b32.xlu1 %v10066_v35, %s6247_s28  ;;  %v8734_v56 = vpop.permute.xlu0 %2371  ;;  %v3457_v32 = vsub.f32 1.0, %v8711_v48  ;;  %v4479_v27 = vmax.f32 %v4477_v16, 0.0  ;;  %v10067_v24 = vmov 88   ;;  %v10068_v16 = vld [vmem:[#allocation9_spill] sm:$0xff] }
 0xe9f   :  { %v4495_v31 = vmax.f32 %v4493_v60, 0.0  ;;  %6072 = vset.pattern.permute.xlu1 %v10067_v24  ;;  %v4360_v8 = vmul.f32 %v4358_v17, %v4342_v62  ;;  %v4492_v11 = vsub.f32 1.0, %v4490_v36  ;;  %v4432_v29 = vmax.f32 %v4430_v43, 0.0  ;;  %v10071_v43 = vld [vmem:[#allocation129_spill] sm:$0xff]  ;;  %v10075_v24 = vld [vmem:[#allocation188_spill] sm:$0xff] }
 0xea0   :  { %v4417_v28 = vadd.f32 %v4415_v23, %v4371_v61  ;;  %v3442_v53 = vsub.f32 1.0, %v8701_v50  ;;  %v3784_v33 = vsub.f32 1.0, %v3782_v10  ;;  %v3458_v37 = vsub.f32 1.0, %v3456_v20  ;;  %v10069_v10 = vld [vmem:[#allocation11_spill] sm:$0xff] }
 0xea1   :  { %v4497_v42 = vmul.f32 %v4495_v31, %v4479_v27  ;;  %v4414_v46 = vmul.f32 %v8555_v51, %v4404_v21  ;;  %v4478_v2 = vmax.f32 %v4476_v26, 0.0  ;;  %v4450_v0 = vmul.f32 %v4448_v44, %v4432_v29  ;;  %v10070_v51 = vld [vmem:[#allocation29_spill] sm:$0xff]  ;;  %v10073_v26 = vld [vmem:[#allocation30_spill] sm:$0xff] }
 0xea2   :  { %4671 = vperm.xlu1 %6072, %v8502_v58   ;;  %v4454_v48 = vpop.permute.xlu1 %4453  ;;  %v8742_v13 = vpop.permute.xlu0 %4744  ;;  %v4463_v60 = vadd.f32 %v8714_v49, %v4417_v28  ;;  %v8745_v57 = vmax.f32 %v3757_v38, 0.0  ;;  %v3459_v17 = vmax.f32 %v3457_v32, 0.0  ;;  %v3797_v50 = vsub.f32 %v10068_v16, %v6438_v41  ;;  %v10072_v49 = vld [vmem:[#allocation12_spill] sm:$0xff]  ;;  %v10074_v32 = vld [vmem:[#allocation51_spill] sm:$0xff] }
 0xea3   :  { %v3826_v25 = vsub.f32 %v10069_v10, %v6474_v54  ;;  %v3484_v36 = vsub.f32 %v10070_v51, %v7254_v6  ;;  %v4370_v15 = vmul.f32 %v10071_v43, %v4360_v8  ;;  %v4494_v20 = vmax.f32 %v4492_v11, 0.0  ;;  %v10076_v51 = vld [vmem:[#allocation70_spill] sm:$0xff] }
 0xea4   :  { %v4460_v62 = vmul.f32 %v4454_v48, %v4450_v0  ;;  %v3444_v61 = vmax.f32 %v3442_v53, 0.0  ;;  %v3460_v21 = vmax.f32 %v3458_v37, 0.0  ;;  %v3843_v44 = vsub.f32 %v10072_v49, %v6438_v41 }
 0xea5   :  { %v3499_v23 = vsub.f32 %v10073_v26, %v7252_v1  ;;  %v8758_v38 = vmax.f32 %v3784_v33, 0.0  ;;  %v3483_v27 = vsub.f32 %v10074_v32, %v7254_v6  ;;  %v4416_v31 = vadd.f32 %v4414_v46, %v4370_v15 }
 0xea6   :  { %4831 = vrot.lane.b32.xlu1 %v10075_v24, %s6247_s28  ;;  %v8764_v8 = vpop.permute.xlu0 %4748  ;;  %v4496_v11 = vmul.f32 %v4494_v20, %v4478_v2  ;;  %v3799_v29 = vand.u32 2147483647, %v3797_v50  ;;  %v3828_v28 = vand.u32 2147483647, %v3826_v25  ;;  %v8767_v53 = vmul.f32 %v3459_v17, %v8642_v59  ;;  %v10077_v59 = vld [vmem:[#allocation50_spill] sm:$0xff] }
 0xea7   :  { %v2266_v37 = vsub.f32 %v8622_v12, %v7254_v6  ;;  %v4500_v33 = vpop.permute.xlu1 %4499  ;;  %v3486_v0 = vand.u32 2147483647, %v3484_v36  ;;  %v2329_v48 = vsub.f32 %v8687_v55, %v7252_v1  ;;  %v4462_v46 = vadd.f32 %v4460_v62, %v4416_v31  ;;  %v10079_v31 = vld [vmem:[#allocation69_spill] sm:$0xff] }
 0xea8   :  { %v4506_v16 = vmul.f32 %v4500_v33, %v4496_v11  ;;  %v3845_v10 = vand.u32 2147483647, %v3843_v44  ;;  %v3872_v43 = vsub.f32 %v10076_v51, %v6474_v54  ;;  %v8775_v2 = vmul.f32 %v3460_v21, %v3444_v61  ;;  %v10078_v44 = vld [vmem:[#allocation145_spill] sm:$0xff] }
 0xea9   :  { %v3501_v50 = vand.u32 2147483647, %v3499_v23  ;;  %v3485_v25 = vand.u32 2147483647, %v3483_v27  ;;  %v3530_v17 = vsub.f32 %v10077_v59, %v7254_v6  ;;  %v2375_v12 = vsub.f32 %v8734_v56, %v7252_v1 }
 0xeaa   :  { %v8781_v36 = vadd.f32 %v4506_v16, %v4462_v46  ;;  %4676 = vperm.xlu1 %6072, %v8518_v34   ;;  %v3801_v55 = vsub.f32 1.0, %v3799_v29  ;;  %v3830_v15 = vsub.f32 1.0, %v3828_v28  ;;  %v2268_v20 = vand.u32 2147483647, %v2266_v37 }
 0xeab   :  { %v4643_v62 = vsub.f32 %v8650_v9, %v7254_v6  ;;  %v4504_v61 = vpop.permute.xlu1 %4503  ;;  %v8786_v21 = vpop.permute.xlu0 %2594  ;;  %v3488_v49 = vsub.f32 1.0, %v3486_v0  ;;  %v3545_v26 = vsub.f32 %v10078_v44, %v7252_v1  ;;  %v2331_v23 = vand.u32 2147483647, %v2329_v48 }
 0xeac   :  { %v4507_v32 = vmul.f32 %v4504_v61, %v4497_v42  ;;  %v3847_v56 = vsub.f32 1.0, %v3845_v10  ;;  %v8790_v27 = vand.u32 2147483647, %v3872_v43  ;;  %v3889_v11 = vsub.f32 %v10079_v31, %v6438_v41 }
 0xead   :  { %v3503_v29 = vsub.f32 1.0, %v3501_v50  ;;  %v3487_v28 = vsub.f32 1.0, %v3485_v25  ;;  %v3532_v37 = vand.u32 2147483647, %v3530_v17  ;;  %v2377_v33 = vand.u32 2147483647, %v2375_v12 }
 0xeae   :  { %v8794_v9 = vadd.f32 %v4507_v32, %v4463_v60  ;;  %v10081_v46 = vmov 90   ;;  %v8797_v0 = vmax.f32 %v3801_v55, 0.0  ;;  %v8799_v16 = vmax.f32 %v3830_v15, 0.0 }
 0xeaf   :  { %6074 = vset.pattern.permute.xlu1 %v10081_v46  ;;  %v2270_v48 = vsub.f32 1.0, %v2268_v20  ;;  %v4645_v42 = vand.u32 2147483647, %v4643_v62  ;;  %v8802_v10 = vpop.permute.xlu0 %4971  ;;  %v3490_v51 = vmax.f32 %v3488_v49, 0.0  ;;  %v3547_v43 = vand.u32 2147483647, %v3545_v26 }
 0xeb0   :  { %10080 = vst [vmem:[#allocation134_spill] sm:$0xff] %v8794_v9  ;;  %10082 = vst [vmem:[#allocation137_spill] sm:$0xff] %v8799_v16  ;;  %4762 = vperm.xlu1 %6074, %v8502_v58   ;;  %v2333_v50 = vsub.f32 1.0, %v2331_v23  ;;  %v4705_v25 = vsub.f32 %v8709_v3, %v7252_v1  ;;  %v4653_v60 = vpop.permute.xlu1 %4652  ;;  %v8806_v59 = vmax.f32 %v3847_v56, 0.0  ;;  %v3505_v12 = vmax.f32 %v3503_v29, 0.0  ;;  %v10084_v49 = vld [vmem:[#allocation16_spill] sm:$0xff] }
 0xeb1   :  { %v4659_v55 = vsub.f32 %v4653_v60, %v7252_v1  ;;  %v8810_v15 = vand.u32 2147483647, %v3889_v11  ;;  %v3489_v20 = vmax.f32 %v3487_v28, 0.0  ;;  %v3534_v62 = vsub.f32 1.0, %v3532_v37  ;;  %v10087_v11 = vld [vmem:[#allocation52_spill] sm:$0xff] }
 0xeb2   :  { %10083 = vst [vmem:[#allocation138_spill] sm:$0xff] %v8806_v59  ;;  %v2379_v61 = vsub.f32 1.0, %v2377_v33  ;;  %v3591_v44 = vsub.f32 %v10084_v49, %v7252_v1  ;;  %v2272_v26 = vmax.f32 %v2270_v48, 0.0  ;;  %v4647_v23 = vsub.f32 1.0, %v4645_v42  ;;  %v10088_v33 = vld [vmem:[#allocation14_spill] sm:$0xff]  ;;  %v10089_v49 = vld [vmem:[#allocation31_spill] sm:$0xff] }
 0xeb3   :  { %v4661_v32 = vand.u32 2147483647, %v4659_v55  ;;  %v10085_v3 = vmov 92   ;;  %v8815_v56 = vpop.permute.xlu0 %4975  ;;  %v3508_v31 = vmul.f32 %v8644_v4, %v3490_v51  ;;  %v3549_v29 = vsub.f32 1.0, %v3547_v43  ;;  %v10090_v43 = vld [vmem:[#allocation64_spill] sm:$0xff]  ;;  %v10091_v59 = vld [vmem:[#allocation63_spill] sm:$0xff] }
 0xeb4   :  { %6075 = vset.pattern.permute.xlu1 %v10085_v3  ;;  %10086 = vst [vmem:[#allocation141_spill] sm:$0xff] %v8815_v56  ;;  %v2335_v17 = vmax.f32 %v2333_v50, 0.0  ;;  %v4707_v60 = vand.u32 2147483647, %v4705_v25  ;;  %v3473_v28 = vmul.f32 %v10087_v11, %v8767_v53  ;;  %v3507_v37 = vmul.f32 %v3505_v12, %v3489_v20  ;;  %v10092_v11 = vld [vmem:[#allocation27_spill] sm:$0xff] }
 0xeb5   :  { %4961 = vperm.xlu1 %6075, %v8502_v58   ;;  %v3576_v48 = vsub.f32 %v10088_v33, %v7254_v6  ;;  %v4663_v42 = vsub.f32 1.0, %v4661_v32  ;;  %v4683_v55 = vpop.permute.xlu1 %4682  ;;  %v3518_v9 = vmul.f32 %v10089_v49, %v3508_v31  ;;  %v3536_v24 = vmax.f32 %v3534_v62, 0.0 }
 0xeb6   :  { %v2381_v35 = vmax.f32 %v2379_v61, 0.0  ;;  %v4689_v4 = vsub.f32 %v4683_v55, %v7254_v6  ;;  %v3593_v51 = vand.u32 2147483647, %v3591_v44  ;;  %v2290_v50 = vmul.f32 %v10090_v43, %v2272_v26  ;;  %v10093_v44 = vld [vmem:[#allocation32_spill] sm:$0xff] }
 0xeb7   :  { %v4649_v25 = vmax.f32 %v4647_v23, 0.0  ;;  %v4665_v56 = vmax.f32 %v4663_v42, 0.0  ;;  %v3551_v16 = vmax.f32 %v3549_v29, 0.0  ;;  %v2337_v53 = vmul.f32 %v2335_v17, %v10091_v59  ;;  %v10094_v59 = vld [vmem:[#allocation97_spill] sm:$0xff]  ;;  %v10095_v42 = vld [vmem:[#allocation110_spill] sm:$0xff] }
 0xeb8   :  { %v4709_v12 = vsub.f32 1.0, %v4707_v60  ;;  %v4691_v20 = vand.u32 2147483647, %v4689_v4  ;;  %v2398_v32 = vpop.permute.xlu0 %2397  ;;  %v3517_v33 = vmul.f32 %v10092_v11, %v3507_v37  ;;  %v3578_v31 = vand.u32 2147483647, %v3576_v48  ;;  %v10096_v4 = vld [vmem:[#allocation116_spill] sm:$0xff] }
 0xeb9   :  { %6077 = vset.pattern.permute.xlu1 %v10081_v46  ;;  %v2404_v62 = vsub.f32 %v2398_v32, %v7254_v6  ;;  %v8831_v61 = vmul.f32 %v4665_v56, %v4649_v25  ;;  %v3474_v26 = vmul.f32 %v10093_v44, %v8775_v2  ;;  %v3554_v23 = vmul.f32 %v8654_v7, %v3536_v24 }
 0xeba   :  { %4766 = vperm.xlu1 %6077, %v8518_v34   ;;  %v2383_v17 = vmul.f32 %v2381_v35, %v10094_v59  ;;  %v4693_v29 = vsub.f32 1.0, %v4691_v20  ;;  %v4641_v60 = vpop.permute.xlu1 %4640  ;;  %v3595_v46 = vsub.f32 1.0, %v3593_v51  ;;  %v2302_v55 = vmul.f32 %v10095_v42, %v2290_v50  ;;  %v10097_v51 = vld [vmem:[#allocation15_spill] sm:$0xff]  ;;  %v10098_v20 = vld [vmem:[#allocation120_spill] sm:$0xff]  ;;  %v10104_v42 = vld [vmem:[#allocation194_spill] sm:$0xff] }
 0xebb   :  { %v2406_v37 = vand.u32 2147483647, %v2404_v62  ;;  %v4644_v48 = vsub.f32 %v4641_v60, %v7254_v6  ;;  %v3553_v49 = vmul.f32 %v3551_v16, %v8652_v52  ;;  %v2347_v56 = vmul.f32 %v10096_v4, %v2337_v53  ;;  %v10099_v53 = vld [vmem:[#allocation60_spill] sm:$0xff]  ;;  %v10103_v60 = vld [vmem:[#allocation66_spill] sm:$0xff] }
 0xebc   :  { %v4711_v43 = vmax.f32 %v4709_v12, 0.0  ;;  %v4695_v25 = vmax.f32 %v4693_v29, 0.0  ;;  %v8841_v32 = vpop.permute.xlu0 %4774  ;;  %v3519_v2 = vadd.f32 %v3517_v33, %v3473_v28  ;;  %v8843_v7 = vadd.f32 %v3518_v9, %v3474_v26 }
 0xebd   :  { %v3580_v35 = vsub.f32 1.0, %v3578_v31  ;;  %v2408_v24 = vsub.f32 1.0, %v2406_v37  ;;  %v3564_v50 = vmul.f32 %v10097_v51, %v3554_v23  ;;  %v2393_v11 = vmul.f32 %v10098_v20, %v2383_v17  ;;  %v10100_v31 = vld [vmem:[#allocation33_spill] sm:$0xff]  ;;  %v10107_v51 = vld [vmem:[#allocation123_spill] sm:$0xff] }
 0xebe   :  { %6078 = vset.pattern.permute.xlu1 %v10085_v3  ;;  %v4646_v62 = vand.u32 2147483647, %v4644_v48  ;;  %v8849_v52 = vmul.f32 %v4711_v43, %v4695_v25  ;;  %v3597_v16 = vmax.f32 %v3595_v46, 0.0  ;;  %v2348_v12 = vadd.f32 %v10099_v53, %v2302_v55  ;;  %v10101_v3 = vld [vmem:[#allocation75_spill] sm:$0xff]  ;;  %v10102_v23 = vld [vmem:[#allocation65_spill] sm:$0xff]  ;;  %v10108_v53 = vld [vmem:[#allocation98_spill] sm:$0xff] }
 0xebf   :  { %4965 = vperm.xlu1 %6078, %v8518_v34   ;;  %v4690_v9 = vsub.f32 %v8728_v47, %v7254_v6  ;;  %v2410_v28 = vmax.f32 %v2408_v24, 0.0  ;;  %v4657_v33 = vpop.permute.xlu1 %4656  ;;  %v3563_v44 = vmul.f32 %v10100_v31, %v3553_v49  ;;  %v3752_v26 = vsub.f32 %v10101_v3, %v6438_v41  ;;  %v10105_v37 = vld [vmem:[#allocation105_spill] sm:$0xff] }
 0xec0   :  { %v2349_v59 = vadd.f32 %v2347_v56, %v10102_v23  ;;  %v4660_v17 = vsub.f32 %v4657_v33, %v7252_v1  ;;  %v3582_v29 = vmax.f32 %v3580_v35, 0.0  ;;  %v3781_v46 = vsub.f32 %v10103_v60, %v6474_v54  ;;  %v10106_v49 = vld [vmem:[#allocation73_spill] sm:$0xff] }
 0xec1   :  { %v3796_v55 = vsub.f32 %v10104_v42, %v6438_v41  ;;  %v2428_v47 = vmul.f32 %v10105_v37, %v2410_v28  ;;  %v8864_v48 = vpop.permute.xlu0 %2660  ;;  %v3737_v4 = vsub.f32 %v10106_v49, %v6474_v54  ;;  %v4648_v25 = vsub.f32 1.0, %v4646_v62  ;;  %v10110_v42 = vld [vmem:[#allocation17_spill] sm:$0xff] }
 0xec2   :  { %v2395_v43 = vadd.f32 %v2393_v11, %v2349_v59  ;;  %v4662_v24 = vand.u32 2147483647, %v4660_v17  ;;  %v3599_v56 = vmul.f32 %v3597_v16, %v8660_v40  ;;  %v4692_v35 = vand.u32 2147483647, %v4690_v9  ;;  %v10109_v17 = vld [vmem:[#allocation114_spill] sm:$0xff] }
 0xec3   :  { %6079 = vset.pattern.permute.xlu1 %v10032_v30  ;;  %v2438_v20 = vmul.f32 %v10107_v51, %v2428_v47  ;;  %v2394_v33 = vadd.f32 %v10108_v53, %v2348_v12  ;;  %v3754_v28 = vand.u32 2147483647, %v3752_v26  ;;  %v4751_v31 = vsub.f32 %v8742_v13, %v7252_v1 }
 0xec4   :  { %4808 = vperm.xlu1 %6079, %v8502_v58   ;;  %v2601_v11 = vsub.f32 %v8786_v21, %v6474_v54  ;;  %v4664_v62 = vsub.f32 1.0, %v4662_v24  ;;  %v4703_v3 = vpop.permute.xlu1 %4702  ;;  %v3783_v23 = vand.u32 2147483647, %v3781_v46  ;;  %v3798_v30 = vand.u32 2147483647, %v3796_v55 }
 0xec5   :  { %v4706_v40 = vsub.f32 %v4703_v3, %v7252_v1  ;;  %v8878_v16 = vpop.permute.xlu0 %5033  ;;  %v2440_v9 = vadd.f32 %v2438_v20, %v2394_v33  ;;  %v3739_v59 = vand.u32 2147483647, %v3737_v4  ;;  %v2441_v60 = vadd.f32 %v10109_v17, %v2395_v43 }
 0xec6   :  { %v4650_v12 = vmax.f32 %v4648_v25, 0.0  ;;  %v4666_v26 = vmax.f32 %v4664_v62, 0.0  ;;  %v3609_v37 = vmul.f32 %v10110_v42, %v3599_v56  ;;  %v3600_v13 = vmul.f32 %v8664_v5, %v3582_v29 }
 0xec7   :  { %v4694_v47 = vsub.f32 1.0, %v4692_v35  ;;  %v4708_v21 = vand.u32 2147483647, %v4706_v40  ;;  %v10111_v49 = vmov 94   ;;  %5586 = vmatprep.mubr.msk.f32.mxu1 %vm655_vm8, %v2440_v9  ;;  %v3756_v46 = vsub.f32 1.0, %v3754_v28  ;;  %v10112_v35 = vld [vmem:[#allocation90_spill] sm:$0xff] }
 0xec8   :  { %6080 = vset.pattern.permute.xlu1 %v10111_v49  ;;  %v4753_v55 = vand.u32 2147483647, %v4751_v31  ;;  %v2603_v24 = vand.u32 2147483647, %v2601_v11  ;;  %5587 = vmatmul.mubr.msk.f32.vlgmr.msra.gmra.mxu1 %vm655_vm8, %v2441_v60  ;;  %v8887_v4 = vmul.f32 %v4666_v26, %v4650_v12  ;;  %v3565_v43 = vadd.f32 %v3563_v44, %v3519_v2  ;;  %v10114_v26 = vld [vmem:[#allocation197_spill] sm:$0xff] }
 0xec9   :  { %5051 = vperm.xlu1 %6080, %v8502_v58   ;;  %v3785_v25 = vsub.f32 1.0, %v3783_v23  ;;  %v3800_v56 = vsub.f32 1.0, %v3798_v30  ;;  %v4710_v51 = vsub.f32 1.0, %v4708_v21  ;;  %5616 = vmatpush3.msra.mxu1 %v10058_v14  ;;  %v4729_v5 = vpop.permute.xlu1 %4728  ;;  %v3566_v29 = vadd.f32 %v3564_v50, %v8843_v7  ;;  %v10113_v7 = vld [vmem:[#allocation74_spill] sm:$0xff] }
 0xeca   :  { %5619 = vmatprep.mubr.msk.f32.mxu1 %vm929_vm9, %v8640_v45  ;;  %v3610_v20 = vmul.f32 %v10112_v35, %v3600_v13  ;;  %v3741_v53 = vsub.f32 1.0, %v3739_v59  ;;  %v4735_v58 = vsub.f32 %v4729_v5, %v7254_v6  ;;  %5617 = vmatprep.subr.mxu1 %v10056_v19  ;;  %v2641_v33 = vpop.permute.xlu0 %2640  ;;  %v3611_v2 = vadd.f32 %v3609_v37, %v3565_v43  ;;  %v10115_v13 = vld [vmem:[#allocation86_spill] sm:$0xff] }
 0xecb   :  { %v4696_v44 = vmax.f32 %v4694_v47, 0.0  ;;  %v4712_v28 = vmax.f32 %v4710_v51, 0.0  ;;  %5618 = vmatpush3.msra.mxu1 %v10056_v19  ;;  %v2647_v14 = vsub.f32 %v2641_v33, %v6474_v54  ;;  %v3758_v31 = vmax.f32 %v3756_v46, 0.0  ;;  %v10121_v33 = vld [vmem:[#allocation85_spill] sm:$0xff] }
 0xecc   :  { %v4755_v11 = vsub.f32 1.0, %v4753_v55  ;;  %v2605_v45 = vsub.f32 1.0, %v2603_v24  ;;  %v4737_v62 = vand.u32 2147483647, %v4735_v58  ;;  %5622 = vmatprep.subr.mxu1 %v10113_v7  ;;  %v3787_v50 = vmax.f32 %v3785_v25, 0.0  ;;  %5620 = vmatmul.mubr.msk.f32.vlgmr.msra.gmra.mxu1 %vm929_vm9, %v8636_v22  ;;  %v10116_v55 = vld [vmem:[#allocation183_spill] sm:$0xff] }
 0xecd   :  { %5055 = vperm.xlu1 %6080, %v8518_v34   ;;  %v3802_v3 = vmax.f32 %v3800_v56, 0.0  ;;  %v2649_v23 = vand.u32 2147483647, %v2647_v14  ;;  %v8902_v30 = vmul.f32 %v4712_v28, %v4696_v44  ;;  %v3893_v40 = vsub.f32 1.0, %v8810_v15  ;;  %5623 = vmatpush3.msra.mxu1 %v10113_v7  ;;  %v10118_v56 = vld [vmem:[#allocation198_spill] sm:$0xff]  ;;  %v10125_v7 = vld [vmem:[#allocation195_spill] sm:$0xff] }
 0xece   :  { %v8905_v9 = vadd.f32 %v3610_v20, %v3566_v29  ;;  %v3743_v59 = vmax.f32 %v3741_v53, 0.0  ;;  %v4739_v17 = vsub.f32 1.0, %v4737_v62  ;;  %5638 = vmatprep.mubr.msk.f32.mxu1 %vm655_vm8, %v3611_v2  ;;  %v4928_v60 = vpop.permute.xlu1 %4927  ;;  %v8909_v12 = vpop.permute.xlu0 %5021  ;;  %v3827_v42 = vsub.f32 %v10114_v26, %v6474_v54  ;;  %5624 = vmatprep.subr.mxu1 %v10115_v13  ;;  %v10120_v20 = vld [vmem:[#allocation196_spill] sm:$0xff] }
 0xecf   :  { %v2664_v22 = vsub.f32 %v8864_v48, %v6438_v41  ;;  %v2651_v37 = vsub.f32 1.0, %v2649_v23  ;;  %v4934_v15 = vsub.f32 %v4928_v60, %v6474_v54  ;;  %v3760_v47 = vmul.f32 %v3758_v31, %v8680_v18  ;;  %5625 = vmatpush3.msra.mxu1 %v10115_v13  ;;  %v10119_v18 = vld [vmem:[#allocation92_spill] sm:$0xff]  ;;  %v10126_v23 = vld [vmem:[#allocation91_spill] sm:$0xff]  ;;  %v10128_v13 = vld [vmem:[#allocation25_spill] sm:$0xff] }
 0xed0   :  { %v4757_v21 = vmax.f32 %v4755_v11, 0.0  ;;  %v2607_v49 = vmax.f32 %v2605_v45, 0.0  ;;  %v4741_v46 = vmax.f32 %v4739_v17, 0.0  ;;  %v10117_v24 = vsub.f32 1.0, %v8790_v27  ;;  %5626 = vmatprep.subr.mxu1 %v10119_v18  ;;  %v10123_v11 = vld [vmem:[#allocation76_spill] sm:$0xff] }
 0xed1   :  { %4825 = vrot.lane.b32.xlu1 %v10116_v55, %s6247_s28  ;;  %v3804_v48 = vmul.f32 %v3802_v3, %v8758_v38  ;;  %v3805_v25 = vmul.f32 %v8797_v0, %v3787_v50  ;;  %v3842_v51 = vsub.f32 %v10118_v56, %v6438_v41  ;;  %v3761_v5 = vmul.f32 %v8745_v57, %v3743_v59  ;;  %v10122_v57 = vld [vmem:[#allocation118_spill] sm:$0xff] }
 0xed2   :  { %v8923_v43 = vmax.f32 %v10117_v24, 0.0  ;;  %6083 = vset.pattern.permute.xlu1 %v10041_v39  ;;  %v2653_v29 = vmax.f32 %v2651_v37, 0.0  ;;  %v4936_v35 = vand.u32 2147483647, %v4934_v15  ;;  %5627 = vmatpush3.msra.mxu1 %v10119_v18  ;;  %v8933_v27 = vmul.f32 %v4757_v21, %v4741_v46  ;;  %v10129_v21 = vld [vmem:[#allocation135_spill] sm:$0xff]  ;;  %v10131_v18 = vld [vmem:[#allocation201_spill] sm:$0xff] }
 0xed3   :  { %v3815_v53 = vmul.f32 %v10120_v20, %v3805_v25  ;;  %v3829_v38 = vand.u32 2147483647, %v3827_v42  ;;  %v4978_v0 = vsub.f32 %v8802_v10, %v6474_v54  ;;  %v2666_v58 = vand.u32 2147483647, %v2664_v22  ;;  %5628 = vmatprep.subr.mxu1 %v10121_v33  ;;  %v4944_v2 = vpop.permute.xlu1 %4943  ;;  %v2687_v44 = vpop.permute.xlu0 %2686  ;;  %v10124_v10 = vld [vmem:[#allocation62_spill] sm:$0xff]  ;;  %v10130_v25 = vld [vmem:[#allocation184_spill] sm:$0xff] }
 0xed4   :  { %v8939_v39 = vmax.f32 %v3893_v40, 0.0  ;;  %v2625_v28 = vmul.f32 %v10122_v57, %v2607_v49  ;;  %5629 = vmatpush3.msra.mxu1 %v10121_v33  ;;  %v4950_v14 = vsub.f32 %v4944_v2, %v6438_v41  ;;  %v2693_v31 = vsub.f32 %v2687_v44, %v6474_v54  ;;  %v10127_v40 = vld [vmem:[#allocation107_spill] sm:$0xff]  ;;  %v10134_v57 = vld [vmem:[#allocation21_spill] sm:$0xff] }
 0xed5   :  { %5101 = vperm.xlu1 %6083, %v8518_v34   ;;  %v3770_v45 = vmul.f32 %v10123_v11, %v3760_v47  ;;  %v3771_v62 = vmul.f32 %v10124_v10, %v3761_v5  ;;  %v3814_v50 = vmul.f32 %v10125_v7, %v3804_v48  ;;  %v3844_v3 = vand.u32 2147483647, %v3842_v51  ;;  %5630 = vmatprep.subr.mxu1 %v10126_v23 }
 0xed6   :  { %v2671_v59 = vmul.f32 %v10127_v40, %v2653_v29  ;;  %v4938_v17 = vsub.f32 1.0, %v4936_v35  ;;  %v4952_v60 = vand.u32 2147483647, %v4950_v14  ;;  %v2695_v26 = vand.u32 2147483647, %v2693_v31  ;;  %5631 = vmatpush3.msra.mxu1 %v10126_v23  ;;  %v10132_v29 = vld [vmem:[#allocation89_spill] sm:$0xff] }
 0xed7   :  { %v8952_v42 = vadd.f32 %v3815_v53, %v3771_v62  ;;  %v3831_v22 = vsub.f32 1.0, %v3829_v38  ;;  %v4980_v34 = vand.u32 2147483647, %v4978_v0  ;;  %v2668_v37 = vsub.f32 1.0, %v2666_v58  ;;  %5632 = vmatprep.subr.mxu1 %v10128_v13  ;;  %v8955_v15 = vpop.permute.xlu0 %5063  ;;  %v10133_v35 = vld [vmem:[#allocation139_spill] sm:$0xff]  ;;  %v10135_v14 = vld [vmem:[#allocation109_spill] sm:$0xff] }
 0xed8   :  { %v4752_v47 = vsub.f32 %v8764_v8, %v7252_v1  ;;  %v2635_v49 = vmul.f32 %v10129_v21, %v2625_v28  ;;  %v4954_v46 = vsub.f32 1.0, %v4952_v60  ;;  %v2697_v24 = vsub.f32 1.0, %v2695_v26  ;;  %5633 = vmatpush3.msra.mxu1 %v10128_v13  ;;  %v4988_v48 = vpop.permute.xlu1 %4987  ;;  %v10138_v60 = vld [vmem:[#allocation143_spill] sm:$0xff] }
 0xed9   :  { %4823 = vrot.lane.b32.xlu1 %v10130_v25, %s6247_s28  ;;  %v8963_v56 = vadd.f32 %v3814_v50, %v3770_v45  ;;  %v3846_v51 = vsub.f32 1.0, %v3844_v3  ;;  %v3873_v5 = vsub.f32 %v10131_v18, %v6474_v54  ;;  %5634 = vmatprep.subr.mxu1 %v10132_v29  ;;  %v4994_v8 = vsub.f32 %v4988_v48, %v6438_v41  ;;  %v10136_v45 = vld [vmem:[#allocation182_spill] sm:$0xff] }
 0xeda   :  { %v2681_v20 = vmul.f32 %v10133_v35, %v2671_v59  ;;  %v4940_v53 = vmax.f32 %v4938_v17, 0.0  ;;  %v4956_v38 = vmax.f32 %v4954_v46, 0.0  ;;  %v2699_v0 = vmax.f32 %v2697_v24, 0.0  ;;  %5635 = vmatpush3.msra.mxu1 %v10132_v29  ;;  %v10137_v50 = vld [vmem:[#allocation202_spill] sm:$0xff] }
 0xedb   :  { %v3833_v58 = vmax.f32 %v3831_v22, 0.0  ;;  %v4982_v33 = vsub.f32 1.0, %v4980_v34  ;;  %v2670_v2 = vmax.f32 %v2668_v37, 0.0  ;;  %v4996_v44 = vand.u32 2147483647, %v4994_v8  ;;  %5636 = vmatprep.subr.mxu1 %v10134_v57  ;;  %v10139_v37 = vld [vmem:[#allocation84_spill] sm:$0xff] }
 0xedc   :  { %v4754_v28 = vand.u32 2147483647, %v4752_v47  ;;  %v2637_v31 = vadd.f32 %v2635_v49, %v10135_v14  ;;  %v2717_v11 = vmul.f32 %v8594_v63, %v2699_v0  ;;  %5637 = vmatpush3.msra.mxu1 %v10134_v57  ;;  %v2707_v10 = vpop.permute.xlu0 %2706  ;;  %v8977_v62 = vmul.f32 %v4956_v38, %v4940_v53  ;;  %v10140_v49 = vld [vmem:[#allocation138_spill] sm:$0xff]  ;;  %v10142_v8 = vld [vmem:[#allocation200_spill] sm:$0xff]  ;;  %v10143_v53 = vld [vmem:[#allocation47_spill] sm:$0xff] }
 0xedd   :  { %4819 = vrot.lane.b32.xlu1 %v10136_v45, %s6247_s28  ;;  %v3848_v7 = vmax.f32 %v3846_v51, 0.0  ;;  %v3888_v3 = vsub.f32 %v10137_v50, %v6438_v41  ;;  %v4998_v23 = vsub.f32 1.0, %v4996_v44  ;;  %5639 = vmatmul.mubr.msk.f32.vlgmr.msra.gmra.mxu1 %vm655_vm8, %v8905_v9  ;;  %v2710_v40 = vsub.f32 %v2707_v10, %v6438_v41  ;;  %v4733_v59 = vpop.permute.xlu1 %4732  ;;  %v10141_v51 = vld [vmem:[#allocation137_spill] sm:$0xff]  ;;  %v10146_v14 = vld [vmem:[#allocation44_spill] sm:$0xff] }
 0xede   :  { %v3875_v63 = vand.u32 2147483647, %v3873_v5  ;;  %v2683_v17 = vadd.f32 %v2681_v20, %v2637_v31  ;;  %v2727_v26 = vmul.f32 %v10138_v60, %v2717_v11  ;;  %5671 = vmatprep.mubr.msk.f32.mxu1 %vm929_vm9, %v8781_v36  ;;  %v4736_v22 = vsub.f32 %v4733_v59, %v7254_v6  ;;  %v10147_v11 = vld [vmem:[#allocation94_spill] sm:$0xff]  ;;  %v10150_v60 = vld [vmem:[#allocation108_spill] sm:$0xff] }
 0xedf   :  { %v4984_v34 = vmax.f32 %v4982_v33, 0.0  ;;  %v2672_v13 = vmul.f32 %v2670_v2, %v10139_v37  ;;  %v5000_v47 = vmax.f32 %v4998_v23, 0.0  ;;  %v2712_v21 = vand.u32 2147483647, %v2710_v40  ;;  %v10145_v2 = vld [vmem:[#allocation140_spill] sm:$0xff]  ;;  %v10148_v40 = vld [vmem:[#allocation43_spill] sm:$0xff] }
 0xee0   :  { %v3851_v46 = vmul.f32 %v10140_v49, %v3833_v58  ;;  %v4756_v9 = vsub.f32 1.0, %v4754_v28  ;;  %v4738_v24 = vand.u32 2147483647, %v4736_v22  ;;  %v2729_v48 = vadd.f32 %v2727_v26, %v2683_v17  ;;  %v10152_v49 = vld [vmem:[#allocation141_spill] sm:$0xff] }
 0xee1   :  { %5108 = vrot.lane.b32.xlu1 %v10056_v19, %s6247_s28  ;;  %v8993_v18 = vmul.f32 %v3848_v7, %v10141_v51  ;;  %v3890_v5 = vand.u32 2147483647, %v3888_v3  ;;  %v2714_v36 = vsub.f32 1.0, %v2712_v21  ;;  %v8995_v29 = vmul.f32 %v5000_v47, %v4984_v34  ;;  %v10144_v19 = vld [vmem:[#allocation67_spill] sm:$0xff]  ;;  %v9011_v3 = vpop.permute.xlu0 %5083  ;;  %v10151_v34 = vld [vmem:[#allocation80_spill] sm:$0xff] }
 0xee2   :  { %v8998_v35 = vmul.f32 %v10142_v8, %v3851_v46  ;;  %v3877_v20 = vsub.f32 1.0, %v3875_v63  ;;  %v4107_v38 = vsub.f32 %v10143_v53, %v7252_v1  ;;  %v4740_v0 = vsub.f32 1.0, %v4738_v24  ;;  %v4932_v58 = vpop.permute.xlu1 %4931  ;;  %5593 = vmatprep.mubr.msk.f32.mxu0 %vm929_vm9, %v2729_v48  ;;  %v10149_v63 = vld [vmem:[#allocation207_spill] sm:$0xff]  ;;  %v10154_v48 = vld [vmem:[#allocation144_spill] sm:$0xff] }
 0xee3   :  { %v4045_v33 = vsub.f32 %v10144_v19, %v7254_v6  ;;  %v2682_v44 = vmul.f32 %v10145_v2, %v2672_v13  ;;  %v2716_v57 = vmax.f32 %v2714_v36, 0.0  ;;  %v4935_v28 = vsub.f32 %v4932_v58, %v6474_v54  ;;  %v10155_v53 = vld [vmem:[#allocation79_spill] sm:$0xff] }
 0xee4   :  { %v4091_v31 = vsub.f32 %v10146_v14, %v7254_v6  ;;  %v4153_v10 = vsub.f32 %v10147_v11, %v7252_v1  ;;  %v4758_v7 = vmax.f32 %v4756_v9, 0.0  ;;  %v4742_v50 = vmax.f32 %v4740_v0, 0.0  ;;  %v10153_v9 = vld [vmem:[#allocation82_spill] sm:$0xff] }
 0xee5   :  { %v3892_v23 = vsub.f32 1.0, %v3890_v5  ;;  %v4061_v59 = vsub.f32 %v10148_v40, %v7252_v1  ;;  %v4137_v17 = vsub.f32 %v10149_v63, %v7254_v6  ;;  %v2718_v26 = vmul.f32 %v2716_v57, %v10150_v60 }
 0xee6   :  { %v4109_v22 = vand.u32 2147483647, %v4107_v38  ;;  %v4199_v37 = vsub.f32 %v10151_v34, %v7252_v1  ;;  %v4937_v13 = vand.u32 2147483647, %v4935_v28  ;;  %v9020_v47 = vmul.f32 %v4758_v7, %v4742_v50  ;;  %v10157_v34 = vld [vmem:[#allocation117_spill] sm:$0xff] }
 0xee7   :  { %v4047_v21 = vand.u32 2147483647, %v4045_v33  ;;  %v4979_v46 = vsub.f32 %v10152_v49, %v6474_v54  ;;  %v2684_v24 = vadd.f32 %v2682_v44, %v10153_v9  ;;  %v2728_v51 = vmul.f32 %v10154_v48, %v2718_v26  ;;  %v4948_v5 = vpop.permute.xlu1 %4947 }
 0xee8   :  { %v4093_v36 = vand.u32 2147483647, %v4091_v31  ;;  %v4155_v8 = vand.u32 2147483647, %v4153_v10  ;;  %v4183_v38 = vsub.f32 %v10155_v53, %v7254_v6  ;;  %v4951_v0 = vsub.f32 %v4948_v5, %v6438_v41  ;;  %v4717_v58 = vpop.permute.xlu0 %4716 }
 0xee9   :  { %v4063_v19 = vand.u32 2147483647, %v4061_v59  ;;  %v4139_v2 = vand.u32 2147483647, %v4137_v17  ;;  %v2730_v57 = vadd.f32 %v2728_v51, %v2684_v24  ;;  %v9030_v33 = vmul.f32 %v4717_v58, %v8849_v52  ;;  %v10156_v59 = vld [vmem:[#allocation187_spill] sm:$0xff] }
 0xeea   :  { %v4111_v28 = vsub.f32 1.0, %v4109_v22  ;;  %v4201_v14 = vand.u32 2147483647, %v4199_v37  ;;  %v4939_v44 = vsub.f32 1.0, %v4937_v13  ;;  %v4953_v11 = vand.u32 2147483647, %v4951_v0 }
 0xeeb   :  { %v3879_v7 = vmax.f32 %v3877_v20, 0.0  ;;  %v3894_v50 = vmax.f32 %v3892_v23, 0.0  ;;  %v4049_v31 = vsub.f32 1.0, %v4047_v21  ;;  %v4981_v10 = vand.u32 2147483647, %v4979_v46  ;;  %5594 = vmatmul.mubr.msk.f32.vlgmr.msra.gmra.mxu0 %vm929_vm9, %v2730_v57  ;;  %v10158_v23 = vld [vmem:[#allocation188_spill] sm:$0xff] }
 0xeec   :  { %v4095_v40 = vsub.f32 1.0, %v4093_v36  ;;  %v4157_v63 = vsub.f32 1.0, %v4155_v8  ;;  %v4185_v60 = vand.u32 2147483647, %v4183_v38  ;;  %v4955_v26 = vsub.f32 1.0, %v4953_v11  ;;  %5597 = vmatpush3.msra.mxu0 %v10156_v59  ;;  %v4992_v17 = vpop.permute.xlu1 %4991  ;;  %5612 = vmatprep.mubr.msk.f32.mxu0 %vm655_vm8, %v10157_v34  ;;  %v4721_v52 = vpop.permute.xlu0 %4720  ;;  %v10159_v24 = vld [vmem:[#allocation199_spill] sm:$0xff] }
 0xeed   :  { %v4065_v22 = vsub.f32 1.0, %v4063_v19  ;;  %v4141_v37 = vsub.f32 1.0, %v4139_v2  ;;  %v4995_v20 = vsub.f32 %v4992_v17, %v6438_v41  ;;  %5598 = vmatprep.subr.mxu0 %v10158_v23  ;;  %v9039_v13 = vmul.f32 %v4721_v52, %v8902_v30  ;;  %v10160_v8 = vld [vmem:[#allocation185_spill] sm:$0xff] }
 0xeee   :  { %v4113_v21 = vmax.f32 %v4111_v28, 0.0  ;;  %v4203_v49 = vsub.f32 1.0, %v4201_v14  ;;  %v4941_v46 = vmax.f32 %v4939_v44, 0.0  ;;  %v4957_v9 = vmax.f32 %v4955_v26, 0.0  ;;  %5599 = vmatpush3.msra.mxu0 %v10158_v23  ;;  %v10161_v14 = vld [vmem:[#allocation186_spill] sm:$0xff]  ;;  %v10165_v52 = vld [vmem:[#allocation77_spill] sm:$0xff] }
 0xeef   :  { %v3860_v48 = vmul.f32 %v10159_v24, %v8993_v18  ;;  %v4051_v51 = vmax.f32 %v4049_v31, 0.0  ;;  %v4983_v5 = vsub.f32 1.0, %v4981_v10  ;;  %v4997_v36 = vand.u32 2147483647, %v4995_v20  ;;  %5600 = vmatprep.subr.mxu0 %v10160_v8  ;;  %v10169_v24 = vld [vmem:[#allocation49_spill] sm:$0xff] }
 0xef0   :  { %v4097_v53 = vmax.f32 %v4095_v40, 0.0  ;;  %v4159_v38 = vmax.f32 %v4157_v63, 0.0  ;;  %v4187_v0 = vsub.f32 1.0, %v4185_v60  ;;  %5601 = vmatpush3.msra.mxu0 %v10160_v8  ;;  %v4513_v30 = vpop.permute.xlu1 %4512  ;;  %v9046_v58 = vpop.permute.xlu0 %4829  ;;  %v9048_v19 = vmul.f32 %v4957_v9, %v4941_v46  ;;  %v10162_v40 = vld [vmem:[#allocation45_spill] sm:$0xff]  ;;  %v10168_v9 = vld [vmem:[#allocation42_spill] sm:$0xff]  ;;  %v10170_v8 = vld [vmem:[#allocation28_spill] sm:$0xff] }
 0xef1   :  { %v3863_v2 = vadd.f32 %v8998_v35, %v8952_v42  ;;  %v3896_v18 = vmul.f32 %v3894_v50, %v8923_v43  ;;  %v3897_v57 = vmul.f32 %v8939_v39, %v3879_v7  ;;  %v4999_v28 = vsub.f32 1.0, %v4997_v36  ;;  %5602 = vmatprep.subr.mxu0 %v10161_v14  ;;  %5667 = vmatprep.subr.mxu1 %v4513_v30  ;;  %v10163_v42 = vld [vmem:[#allocation48_spill] sm:$0xff]  ;;  %v10164_v7 = vld [vmem:[#allocation206_spill] sm:$0xff] }
 0xef2   :  { %v4067_v44 = vmax.f32 %v4065_v22, 0.0  ;;  %v4143_v11 = vmax.f32 %v4141_v37, 0.0  ;;  %v4115_v31 = vmul.f32 %v4113_v21, %v4097_v53  ;;  %v4205_v10 = vmax.f32 %v4203_v49, 0.0  ;;  %5603 = vmatpush3.msra.mxu0 %v10161_v14  ;;  %5668 = vmatpush3.msra.mxu1 %v4513_v30  ;;  %v10166_v37 = vld [vmem:[#allocation106_spill] sm:$0xff]  ;;  %v10167_v49 = vld [vmem:[#allocation203_spill] sm:$0xff]  ;;  %v10172_v30 = vld [vmem:[#allocation5_spill] sm:$0xff] }
 0xef3   :  { %v4062_v63 = vsub.f32 %v10162_v40, %v7252_v1  ;;  %v4092_v35 = vsub.f32 %v10163_v42, %v7254_v6  ;;  %v4985_v43 = vmax.f32 %v4983_v5, 0.0  ;;  %v5001_v50 = vmax.f32 %v4999_v28, 0.0  ;;  %5604 = vmatprep.subr.mxu0 %v10116_v55 }
 0xef4   :  { %v4069_v39 = vmul.f32 %v4067_v44, %v4051_v51  ;;  %v4108_v60 = vsub.f32 %v10164_v7, %v7252_v1  ;;  %v4161_v26 = vmul.f32 %v4159_v38, %v4143_v11  ;;  %v4189_v59 = vmax.f32 %v4187_v0, 0.0  ;;  %5605 = vmatpush3.msra.mxu0 %v10116_v55  ;;  %v9064_v17 = vpop.permute.xlu1 %4790  ;;  %v5006_v34 = vpop.permute.xlu0 %5005  ;;  %v10171_v38 = vld [vmem:[#allocation40_spill] sm:$0xff]  ;;  %v10174_v44 = vld [vmem:[#allocation46_spill] sm:$0xff] }
 0xef5   :  { %v4138_v22 = vsub.f32 %v10165_v52, %v7254_v6  ;;  %v4200_v20 = vsub.f32 %v10166_v37, %v7252_v1  ;;  %5606 = vmatprep.subr.mxu0 %v10130_v25  ;;  %v9072_v23 = vmul.f32 %v5006_v34, %v8995_v29  ;;  %v5003_v21 = vmul.f32 %v5001_v50, %v4985_v43  ;;  %v10177_v34 = vld [vmem:[#allocation122_spill] sm:$0xff] }
 0xef6   :  { %v3906_v46 = vmul.f32 %v10167_v49, %v3896_v18  ;;  %v4046_v55 = vsub.f32 %v10168_v9, %v7254_v6  ;;  %v4125_v51 = vmul.f32 %v10169_v24, %v4115_v31  ;;  %v4207_v5 = vmul.f32 %v4205_v10, %v4189_v59  ;;  %5607 = vmatpush3.msra.mxu0 %v10130_v25  ;;  %v10173_v18 = vld [vmem:[#allocation204_spill] sm:$0xff]  ;;  %v10175_v31 = vld [vmem:[#allocation39_spill] sm:$0xff] }
 0xef7   :  { %v3862_v36 = vadd.f32 %v3860_v48, %v8963_v56  ;;  %v4154_v53 = vsub.f32 %v10170_v8, %v7252_v1  ;;  %v4184_v29 = vsub.f32 %v10171_v38, %v7254_v6  ;;  %v4094_v0 = vand.u32 2147483647, %v4092_v35  ;;  %5608 = vmatprep.subr.mxu0 %v10172_v30  ;;  %v10180_v8 = vld [vmem:[#allocation112_spill] sm:$0xff] }
 0xef8   :  { %v3907_v28 = vmul.f32 %v10173_v18, %v3897_v57  ;;  %v4064_v14 = vand.u32 2147483647, %v4062_v63  ;;  %v4081_v11 = vmul.f32 %v10174_v44, %v4069_v39  ;;  %v4171_v10 = vmul.f32 %v10175_v31, %v4161_v26  ;;  %5609 = vmatpush3.msra.mxu0 %v10172_v30  ;;  %v5010_v25 = vpop.permute.xlu0 %5009  ;;  %v10176_v63 = vld [vmem:[#allocation56_spill] sm:$0xff] }
 0xef9   :  { %v4110_v56 = vand.u32 2147483647, %v4108_v60  ;;  %v4140_v48 = vand.u32 2147483647, %v4138_v22  ;;  %v4202_v40 = vand.u32 2147483647, %v4200_v20  ;;  %5610 = vmatprep.subr.mxu0 %v10136_v45  ;;  %v9090_v42 = vmul.f32 %v5010_v25, %v5003_v21  ;;  %v9092_v35 = vpop.permute.xlu1 %5017 }
 0xefa   :  { %v3908_v43 = vadd.f32 %v3906_v46, %v3862_v36  ;;  %v4048_v50 = vand.u32 2147483647, %v4046_v55  ;;  %v4127_v57 = vadd.f32 %v4125_v51, %v4081_v11  ;;  %v4217_v7 = vmul.f32 %v10176_v63, %v4207_v5  ;;  %5611 = vmatpush3.msra.mxu0 %v10136_v45  ;;  %v10178_v60 = vld [vmem:[#allocation205_spill] sm:$0xff]  ;;  %v10179_v46 = vld [vmem:[#allocation71_spill] sm:$0xff]  ;;  %v10181_v18 = vld [vmem:[#allocation104_spill] sm:$0xff] }
 0xefb   :  { %v4156_v39 = vand.u32 2147483647, %v4154_v53  ;;  %v4186_v26 = vand.u32 2147483647, %v4184_v29  ;;  %v4096_v59 = vsub.f32 1.0, %v4094_v0  ;;  %5613 = vmatmul.mubr.msk.f32.vlgmr.msra.gmra.mxu0 %vm655_vm8, %v10177_v34  ;;  %5641 = vmatprep.subr.mxu0 %v10178_v60  ;;  %v3909_v52 = vadd.f32 %v3907_v28, %v3863_v2  ;;  %v10182_v25 = vld [vmem:[#allocation103_spill] sm:$0xff] }
 0xefc   :  { %v4173_v22 = vadd.f32 %v4171_v10, %v4127_v57  ;;  %5642 = vmatpush3.msra.mxu0 %v10178_v60  ;;  %5645 = vmatprep.mubr.msk.f32.mxu0 %vm929_vm9, %v3908_v43  ;;  %v9101_v37 = vpop.permute.xlu0 %4827  ;;  %v4066_v20 = vsub.f32 1.0, %v4064_v14  ;;  %v4112_v21 = vsub.f32 1.0, %v4110_v56  ;;  %v4142_v49 = vsub.f32 1.0, %v4140_v48  ;;  %v10183_v43 = vld [vmem:[#allocation93_spill] sm:$0xff]  ;;  %v10186_v60 = vld [vmem:[#allocation78_spill] sm:$0xff] }
 0xefd   :  { %v4204_v45 = vsub.f32 1.0, %v4202_v40  ;;  %5643 = vmatprep.subr.mxu0 %v10179_v46  ;;  %v4050_v9 = vsub.f32 1.0, %v4048_v50  ;;  %v4158_v51 = vsub.f32 1.0, %v4156_v39  ;;  %v4188_v2 = vsub.f32 1.0, %v4186_v26 }
 0xefe   :  { %5644 = vmatpush3.msra.mxu0 %v10179_v46  ;;  %v4779_v55 = vpop.permute.xlu1 %4778  ;;  %v4219_v24 = vadd.f32 %v4217_v7, %v4173_v22  ;;  %v4098_v5 = vmax.f32 %v4096_v59, 0.0  ;;  %v4068_v38 = vmax.f32 %v4066_v20, 0.0  ;;  %v4114_v29 = vmax.f32 %v4112_v21, 0.0  ;;  %v10184_v7 = vld [vmem:[#allocation61_spill] sm:$0xff]  ;;  %v10187_v20 = vld [vmem:[#allocation58_spill] sm:$0xff] }
 0xeff   :  { %v4782_v36 = vsub.f32 %v4779_v55, %v7254_v6  ;;  %5646 = vmatmul.mubr.msk.f32.vlgmr.msra.gmra.mxu0 %vm929_vm9, %v3909_v52  ;;  %5648 = vmatprep.subr.mxu0 %v10180_v8  ;;  %v4144_v0 = vmax.f32 %v4142_v49, 0.0  ;;  %v4206_v30 = vmax.f32 %v4204_v45, 0.0  ;;  %v4052_v28 = vmax.f32 %v4050_v9, 0.0  ;;  %v10188_v46 = vld [vmem:[#allocation57_spill] sm:$0xff] }
 0xf00   :  { %5649 = vmatpush3.msra.mxu0 %v10180_v8  ;;  %5664 = vmatprep.mubr.msk.f32.mxu0 %vm655_vm8, %v4219_v24  ;;  %v4813_v53 = vpop.permute.xlu0 %4812  ;;  %v4160_v44 = vmax.f32 %v4158_v51, 0.0  ;;  %v4190_v11 = vmax.f32 %v4188_v2, 0.0  ;;  %v4116_v31 = vmul.f32 %v4114_v29, %v4098_v5  ;;  %v5025_v10 = vsub.f32 %v8909_v12, %v6474_v54  ;;  %v10185_v12 = vld [vmem:[#allocation41_spill] sm:$0xff]  ;;  %v10189_v24 = vld [vmem:[#allocation54_spill] sm:$0xff]  ;;  %v10190_v29 = vld [vmem:[#allocation55_spill] sm:$0xff] }
 0xf01   :  { %5650 = vmatprep.subr.mxu0 %v10181_v18  ;;  %v4784_v14 = vand.u32 2147483647, %v4782_v36  ;;  %v4070_v40 = vmul.f32 %v4068_v38, %v4052_v28 }
 0xf02   :  { %5651 = vmatpush3.msra.mxu0 %v10181_v18  ;;  %v4126_v50 = vmul.f32 %v10183_v43, %v4116_v31  ;;  %v4162_v57 = vmul.f32 %v4160_v44, %v4144_v0  ;;  %v4208_v63 = vmul.f32 %v4206_v30, %v4190_v11  ;;  %v5027_v22 = vand.u32 2147483647, %v5025_v10 }
 0xf03   :  { %5652 = vmatprep.subr.mxu0 %v10182_v25  ;;  %v4795_v56 = vpop.permute.xlu1 %4794  ;;  %v4786_v26 = vsub.f32 1.0, %v4784_v14  ;;  %v4082_v34 = vmul.f32 %v10185_v12, %v4070_v40  ;;  %v10191_v14 = vld [vmem:[#allocation38_spill] sm:$0xff] }
 0xf04   :  { %v4798_v48 = vsub.f32 %v4795_v56, %v7252_v1  ;;  %5653 = vmatpush3.msra.mxu0 %v10182_v25  ;;  %v4172_v52 = vmul.f32 %v10186_v60, %v4162_v57  ;;  %v4218_v9 = vmul.f32 %v10188_v46, %v4208_v63  ;;  %v5029_v8 = vsub.f32 1.0, %v5027_v22  ;;  %v10192_v25 = vld [vmem:[#allocation134_spill] sm:$0xff] }
 0xf05   :  { %5654 = vmatprep.subr.mxu0 %v10184_v7  ;;  %v9119_v39 = vpop.permute.xlu0 %5097  ;;  %v4128_v45 = vadd.f32 %v4126_v50, %v4082_v34  ;;  %v4788_v2 = vmax.f32 %v4786_v26, 0.0  ;;  %v4781_v60 = vsub.f32 %v8841_v32, %v7254_v6  ;;  %v5024_v22 = vsub.f32 %v9092_v35, %v6474_v54 }
 0xf06   :  { %v4800_v59 = vand.u32 2147483647, %v4798_v48  ;;  %5655 = vmatpush3.msra.mxu0 %v10184_v7  ;;  %v5031_v31 = vmax.f32 %v5029_v8, 0.0 }
 0xf07   :  { %5656 = vmatprep.subr.mxu0 %v10187_v20  ;;  %v4174_v36 = vadd.f32 %v4172_v52, %v4128_v45 }
 0xf08   :  { %v4802_v21 = vsub.f32 1.0, %v4800_v59  ;;  %5657 = vmatpush3.msra.mxu0 %v10187_v20  ;;  %v5038_v49 = vpop.permute.xlu1 %5037  ;;  %v4783_v20 = vand.u32 2147483647, %v4781_v60  ;;  %v5510_v60 = vpop.f32.mrf.mxu0 }
 0xf09   :  { %v5041_v55 = vsub.f32 %v5038_v49, %v6438_v41  ;;  %5658 = vmatprep.subr.mxu0 %v10189_v24  ;;  %v9129_v51 = vpop.permute.xlu0 %4821  ;;  %v4220_v18 = vadd.f32 %v4218_v9, %v4174_v36 }
 0xf0a   :  { %v4804_v5 = vmax.f32 %v4802_v21, 0.0  ;;  %5659 = vmatpush3.msra.mxu0 %v10189_v24  ;;  %v4785_v49 = vsub.f32 1.0, %v4783_v20 }
 0xf0b   :  { %v5043_v38 = vand.u32 2147483647, %v5041_v55  ;;  %5660 = vmatprep.subr.mxu0 %v10190_v29 }
 0xf0c   :  { %v4806_v0 = vmul.f32 %v4804_v5, %v4788_v2  ;;  %5661 = vmatpush3.msra.mxu0 %v10190_v29  ;;  %v4511_v30 = vpop.permute.xlu1 %4510  ;;  %v4787_v5 = vmax.f32 %v4785_v49, 0.0 }
 0xf0d   :  { %v5045_v28 = vsub.f32 1.0, %v5043_v38  ;;  %5662 = vmatprep.subr.mxu0 %v10191_v14  ;;  %5669 = vmatprep.subr.mxu1 %v4511_v30  ;;  %v5111_v44 = vpop.permute.xlu0 %5110 }
 0xf0e   :  { %v4816_v11 = vmul.f32 %v4813_v53, %v4806_v0  ;;  %5663 = vmatpush3.msra.mxu0 %v10191_v14  ;;  %5670 = vmatpush3.msra.mxu1 %v4511_v30 }
 0xf0f   :  { %v5047_v10 = vmax.f32 %v5045_v28, 0.0  ;;  %5665 = vmatmul.mubr.msk.f32.vlgmr.msra.gmra.mxu0 %vm655_vm8, %v4220_v18  ;;  %5693 = vmatprep.subr.mxu0 %v5111_v44 }
 0xf10   :  { %5672 = vmatmul.mubr.msk.f32.vlgmr.msra.gmra.mxu1 %vm929_vm9, %v10192_v25  ;;  %5694 = vmatpush3.msra.mxu0 %v5111_v44  ;;  %v5080_v56 = vpop.permute.xlu1 %5079  ;;  %v5087_v44 = vsub.f32 %v9011_v3, %v6438_v41 }
 0xf11   :  { %v9139_v48 = vmul.f32 %v5047_v10, %v5031_v31 }
 0xf15   :  { %v5068_v40 = vpop.permute.xlu1 %5067 }
 0xf16   :  { %v5071_v0 = vsub.f32 %v5068_v40, %v6474_v54 }
 0xf19   :  { %v4834_v43 = vpop.permute.xlu1 %4833 }
 0xf1a   :  { %5674 = vmatprep.subr.mxu1 %v4834_v43 }
 0xf1b   :  { %5675 = vmatpush3.msra.mxu1 %v4834_v43 }
 0xf1d   :  { %v4672_v53 = vpop.permute.xlu1 %4671 }
 0xf1e   :  { %v4679_v50 = vmul.f32 %v4672_v53, %v8831_v61 }
 0xf20   :  { %v4725_v57 = vadd.f32 %v9030_v33, %v4679_v50  ;;  %v4797_v33 = vsub.f32 %v9064_v17, %v7252_v1  ;;  %v5070_v1 = vsub.f32 %v8955_v15, %v6474_v54 }
 0xf21   :  { %v4832_v63 = vpop.permute.xlu1 %4831 }
 0xf22   :  { %5676 = vmatprep.subr.mxu1 %v4832_v63  ;;  %v5072_v46 = vand.u32 2147483647, %v5070_v1 }
 0xf23   :  { %5677 = vmatpush3.msra.mxu1 %v4832_v63 }
 0xf24   :  { %5678 = vmatprep.subr.mxu1 %v9046_v58  ;;  %v5074_v15 = vsub.f32 1.0, %v5072_v46 }
 0xf25   :  { %v4677_v7 = vpop.permute.xlu1 %4676  ;;  %5679 = vmatpush3.msra.mxu1 %v9046_v58 }
 0xf26   :  { %v4680_v26 = vmul.f32 %v4677_v7, %v8887_v4  ;;  %5680 = vmatprep.subr.mxu1 %v9101_v37  ;;  %v4799_v4 = vand.u32 2147483647, %v4797_v33  ;;  %v5076_v14 = vmax.f32 %v5074_v15, 0.0 }
 0xf27   :  { %5681 = vmatpush3.msra.mxu1 %v9101_v37  ;;  %v5086_v37 = vsub.f32 %v5080_v56, %v6438_v41 }
 0xf28   :  { %v4726_v59 = vadd.f32 %v9039_v13, %v4680_v26  ;;  %v4801_v6 = vsub.f32 1.0, %v4799_v4 }
 0xf29   :  { %v5088_v21 = vand.u32 2147483647, %v5086_v37  ;;  %v5251_v37 = vld [vmem:[%s9192_s5] ss:$0 sm:$0xff]  ;;  %s6273_s5 = smov [#allocation2]  }
 0xf2a   :  { %v4803_v9 = vmax.f32 %v4801_v6, 0.0  ;;  %v738_v20 = vadd.f32 %v5510_v60, %v5251_v37  ;;  %s5208_s22 = sshll.u32 %s6273_s5, 4  ;;  %s5209_s22 = int_to_ptr.vmem [resolvable:$true] %s5208_s22 }
 0xf2b   :  { %v4763_v12 = vpop.permute.xlu1 %4762  ;;  %v5090_v2 = vsub.f32 1.0, %v5088_v21  ;;  %s6149_s4 = scalar_lea.vmem %s5209_s22, 512  ;;  %p6154_p1 = scmp.lt.s32.totalorder %s5209_s22, %s5209_s22 }
 0xf2c   :  { %v4769_v61 = vmul.f32 %v4763_v12, %v8933_v27  ;;  %v5040_v27 = vsub.f32 %v8878_v16, %v6438_v41  ;;  %v4805_v38 = vmul.f32 %v4803_v9, %v4787_v5  ;;  %p6150_p0 = scmp.ne.s32.totalorder %s5209_s22, %s6149_s4  ;;  %p6155_p2 = scmp.lt.s32.totalorder %s6149_s4, %s6149_s4 }
 0xf2d   :  { %v5092_v29 = vmax.f32 %v5090_v2, 0.0 }
 0xf2e   :  { %v4771_v34 = vadd.f32 %v4769_v61, %v4725_v57  ;;  %v5042_v35 = vand.u32 2147483647, %v5040_v27  ;;  %p6156_p3 = por %p6155_p2, %p6154_p1 }
 0xf2f   :  { %v5094_v31 = vmul.f32 %v5092_v29, %v5076_v14 }
 0xf30   :  { %v4962_v52 = vpop.permute.xlu1 %4961  ;;  %v5044_v36 = vsub.f32 1.0, %v5042_v35  ;;  %p6157_p4 = pnand %p6156_p3, %p6150_p0 }
 0xf31   :  { %v4968_v58 = vmul.f32 %v4962_v52, %v8977_v62  ;;  %v5026_v62 = vand.u32 2147483647, %v5024_v22  ;;  %v5104_v43 = vmul.f32 %v9119_v39, %v5094_v31  ;;  %v728_v52 = vpop.f32.mrf.mxu0  ;;  %v5543_v22 = vpop.f32.mrf.mxu1 }
 0xf32   :  { %v5046_v28 = vmax.f32 %v5044_v36, 0.0 }
 0xf33   :  { %v5014_v13 = vadd.f32 %v9072_v23, %v4968_v58  ;;  %v5028_v24 = vsub.f32 1.0, %v5026_v62  ;;  %v5517_v58 = vpop.f32.mrf.mxu0 }
 0xf34   :  { %v1012_v6 = vadd.f32 %v5517_v58, %v738_v20 }
 0xf35   :  { %v4767_v17 = vpop.permute.xlu1 %4766  ;;  %v1002_v4 = vpop.f32.mrf.mxu0 }
 0xf36   :  { %v4770_v32 = vmul.f32 %v4767_v17, %v9020_v47  ;;  %v5030_v47 = vmax.f32 %v5028_v24, 0.0  ;;  %v737_v17 = vadd.f32 %v5251_v37, %v728_v52 }
 0xf38   :  { %v4772_v45 = vadd.f32 %v4770_v32, %v4726_v59  ;;  %v5048_v10 = vmul.f32 %v5046_v28, %v5030_v47  ;;  %v1011_v62 = vadd.f32 %v1002_v4, %v737_v17 }
 0xf3a   :  { %v4818_v55 = vadd.f32 %v4816_v11, %v4772_v45  ;;  %v4966_v23 = vpop.permute.xlu1 %4965 }
 0xf3b   :  { %v4969_v16 = vmul.f32 %v4966_v23, %v9048_v19  ;;  %v5073_v19 = vand.u32 2147483647, %v5071_v0 }
 0xf3d   :  { %v5015_v8 = vadd.f32 %v9090_v42, %v4969_v16  ;;  %v5089_v42 = vand.u32 2147483647, %v5087_v44  ;;  %v5075_v53 = vsub.f32 1.0, %v5073_v19 }
 0xf3f   :  { %v4809_v30 = vpop.permute.xlu1 %4808  ;;  %v5091_v50 = vsub.f32 1.0, %v5089_v42  ;;  %v5077_v7 = vmax.f32 %v5075_v53, 0.0 }
 0xf40   :  { %v4815_v18 = vmul.f32 %v4809_v30, %v4805_v38 }
 0xf41   :  { %v5093_v26 = vmax.f32 %v5091_v50, 0.0 }
 0xf42   :  { %v4817_v11 = vadd.f32 %v4815_v18, %v4771_v34 }
 0xf43   :  { %v5095_v59 = vmul.f32 %v5093_v26, %v5077_v7 }
 0xf44   :  { %v5052_v25 = vpop.permute.xlu1 %5051  ;;  %5690 = vmatprep.mubr.msk.f32.mxu1 %vm655_vm8, %v4817_v11 }
 0xf45   :  { %v5058_v56 = vmul.f32 %v5052_v25, %v5048_v10 }
 0xf47   :  { %v5060_v54 = vadd.f32 %v5058_v56, %v5014_v13  ;;  %v5536_v13 = vpop.f32.mrf.mxu0 }
 0xf48   :  { %v5056_v40 = vpop.permute.xlu1 %5055  ;;  %v1348_v21 = vadd.f32 %v5536_v13, %v1012_v6 }
 0xf49   :  { %v5106_v57 = vadd.f32 %v5104_v43, %v5060_v54  ;;  %v5059_v63 = vmul.f32 %v5056_v40, %v9139_v48  ;;  %v1338_v27 = vpop.f32.mrf.mxu0 }
 0xf4a   :  { %v1347_v45 = vadd.f32 %v1338_v27, %v1011_v62  ;;  %v1621_v35 = vadd.f32 %v5543_v22, %v1348_v21 }
 0xf4b   :  { %v5061_v41 = vadd.f32 %v5059_v63, %v5015_v8  ;;  %5697 = vmatprep.mubr.msk.f32.mxu0 %vm929_vm9, %v5106_v57  ;;  %v5562_v32 = vpop.f32.mrf.mxu0 }
 0xf4c   :  { %v4826_v3 = vpop.permute.xlu1 %4825  ;;  %v1949_v23 = vadd.f32 %v5562_v32, %v1621_v35 }
 0xf4d   :  { %5682 = vmatprep.subr.mxu1 %v4826_v3  ;;  %v1939_v46 = vpop.f32.mrf.mxu0 }
 0xf4e   :  { %5683 = vmatpush3.msra.mxu1 %v4826_v3 }
 0xf50   :  { %v5102_v12 = vpop.permute.xlu1 %5101 }
 0xf51   :  { %v5105_v61 = vmul.f32 %v5102_v12, %v5095_v59 }
 0xf53   :  { %v5107_v33 = vadd.f32 %v5105_v61, %v5061_v41 }
 0xf54   :  { %v4824_v39 = vpop.permute.xlu1 %4823 }
 0xf55   :  { %5684 = vmatprep.subr.mxu1 %v4824_v39 }
 0xf56   :  { %5685 = vmatpush3.msra.mxu1 %v4824_v39 }
 0xf57   :  { %5686 = vmatprep.subr.mxu1 %v9129_v51 }
 0xf58   :  { %v4820_v34 = vpop.permute.xlu1 %4819  ;;  %5687 = vmatpush3.msra.mxu1 %v9129_v51  ;;  %v1611_v51 = vpop.f32.mrf.mxu1 }
 0xf59   :  { %5688 = vmatprep.subr.mxu1 %v4820_v34 }
 0xf5a   :  { %5689 = vmatpush3.msra.mxu1 %v4820_v34  ;;  %v5569_v1 = vpop.f32.mrf.mxu1 }
 0xf5b   :  { %5691 = vmatmul.mubr.msk.f32.vlgmr.msra.gmra.mxu1 %vm655_vm8, %v4818_v55  ;;  %v1620_v55 = vadd.f32 %v1611_v51, %v1347_v45  ;;  %v2220_v2 = vadd.f32 %v5569_v1, %v1949_v23 }
 0xf5c   :  { %v5109_v48 = vpop.permute.xlu1 %5108  ;;  %v2210_v49 = vpop.f32.mrf.mxu1 }
 0xf5d   :  { %5695 = vmatprep.subr.mxu0 %v5109_v48  ;;  %v1948_v24 = vadd.f32 %v1939_v46, %v1620_v55 }
 0xf5e   :  { %5696 = vmatpush3.msra.mxu0 %v5109_v48 }
 0xf5f   :  { %5698 = vmatmul.mubr.msk.f32.vlgmr.msra.gmra.mxu0 %vm929_vm9, %v5107_v33  ;;  %v2219_v5 = vadd.f32 %v2210_v49, %v1948_v24 }
 0xf88   :  { %v5588_v9 = vpop.f32.mrf.mxu1 }
 0xf89   :  { %v2548_v36 = vadd.f32 %v5588_v9, %v2220_v2 }
 0xf8a   :  { %v2538_v16 = vpop.f32.mrf.mxu1 }
 0xf8b   :  { %v2547_v8 = vadd.f32 %v2538_v16, %v2219_v5 }
 0xf8c   :  { %v5621_v30 = vpop.f32.mrf.mxu1 }
 0xf8e   :  { %v3382_v44 = vpop.f32.mrf.mxu1 }
 0xf9d   :  { %v5640_v19 = vpop.f32.mrf.mxu1 }
 0xf9f   :  { %v3717_v56 = vpop.f32.mrf.mxu1 }
 0xfab   :  { %v5595_v15 = vpop.f32.mrf.mxu0 }
 0xfac   :  { %v2819_v38 = vadd.f32 %v5595_v15, %v2548_v36 }
 0xfad   :  { %v2809_v47 = vpop.f32.mrf.mxu0 }
 0xfae   :  { %2822 = vst.msk [vmem:[#allocation2 + $0x8] sm:$0xff] %vm2820_vm10, %v2819_v38  ;;  %v2818_v29 = vadd.f32 %v2809_v47, %v2547_v8 }
 0xfb0   :  { %2821 = vst.msk [vmem:[#allocation2] sm:$0xff] %vm2820_vm10, %v2818_v29 }
 0xfbb   :  { %v5614_v0 = vpop.f32.mrf.mxu0 }
 0xfbc   :  { %v3127_v28 = vadd.f32 %v5614_v0, %v5251_v37 }
 0xfbd   :  { %v3117_v18 = vpop.f32.mrf.mxu0 }
 0xfbe   :  { %v3126_v14 = vadd.f32 %v5251_v37, %v3117_v18  ;;  %v3392_v31 = vadd.f32 %v5621_v30, %v3127_v28 }
 0xfbf   :  { %v5647_v11 = vpop.f32.mrf.mxu0 }
 0xfc0   :  { %v3391_v10 = vadd.f32 %v3382_v44, %v3126_v14  ;;  %v3727_v42 = vadd.f32 %v5640_v19, %v3392_v31 }
 0xfc1   :  { %v3990_v25 = vpop.f32.mrf.mxu0 }
 0xfc2   :  { %v3726_v53 = vadd.f32 %v3717_v56, %v3391_v10  ;;  %v4000_v40 = vadd.f32 %v5647_v11, %v3727_v42 }
 0xfc4   :  { %v3999_v57 = vadd.f32 %v3990_v25, %v3726_v53 }
 0xfcf   :  { %v5666_v43 = vpop.f32.mrf.mxu0 }
 0xfd0   :  { %v5673_v54 = vpop.f32.mrf.mxu1  ;;  %v4327_v63 = vadd.f32 %v5666_v43, %v4000_v40 }
 0xfd1   :  { %v4317_v50 = vpop.f32.mrf.mxu0 }
 0xfd2   :  { %v4588_v7 = vpop.f32.mrf.mxu1  ;;  %v4326_v41 = vadd.f32 %v4317_v50, %v3999_v57  ;;  %v4598_v26 = vadd.f32 %v5673_v54, %v4327_v63 }
 0xfd4   :  { %v4597_v12 = vadd.f32 %v4588_v7, %v4326_v41 }
0x101b   :  { %v5692_v3 = vpop.f32.mrf.mxu1 }
0x101c   :  { %v4925_v61 = vadd.f32 %v5692_v3, %v4598_v26 }
0x101d   :  { %v4915_v59 = vpop.f32.mrf.mxu1 }
0x101e   :  { %v4924_v39 = vadd.f32 %v4915_v59, %v4597_v12 }
0x101f   :  { %v5699_v33 = vpop.f32.mrf.mxu0 }
0x1020   :  { %v5196_v34 = vadd.f32 %v5699_v33, %v4925_v61 }
0x1021   :  { %v5186_v48 = vpop.f32.mrf.mxu0 }
0x1022   :  { %5198 = vst.msk [vmem:[#allocation2 + $0x18] sm:$0xff] %vm2820_vm10, %v5196_v34  ;;  %v5195_v60 = vadd.f32 %v5186_v48, %v4924_v39 }
0x1024   :  { %5197 = vst.msk [vmem:[#allocation2 + $0x10] sm:$0xff] %vm2820_vm10, %v5195_v60 }
0x1025   :  { %6160 = shalt.err (!%p6157_p4)
}
0x1026   :  { %s6274_s23 = smov 128   ;;  %s6275_s0 = smov 8  }
0x1027   :  { %5214 = dma.vmem_to_hbm [thread:$0]  %s5209_s22, 512, %s9193_s6, [#allocation3], %s6274_s23, %s6274_s23, %s6275_s0  }
0x1028   :  { %6169 = dma.done.wait [#allocation3], 512  }
0x1029   :  { %6170 = vsyncadd [#allocation3], 4294966784 }
0x102a   :  { %5218 = vsyncpa [#allocation3], 1 }

</bundles_post_ra>
